<compile_context>
chip_gen: v7x
topology: tpu7x:2x2x1
jax: 0.10.0
libtpu: 0.0.40
codegen_flags: <defaults>
</compile_context>

<pallas_src>
import math
import functools

import jax
import jax.numpy as jnp
from jax import lax
from jax.experimental import pallas as pl
from jax.experimental.pallas import tpu as pltpu

_LN_EPS = 1e-5        # nn.LayerNorm default
_MASK_BIAS = -1e30    # additive mask bias (large finite, avoids NaN rows)


# --------------------------------------------------------------------------- #
# In-kernel helpers
# --------------------------------------------------------------------------- #
def _layer_norm(x, gamma, beta):
    """LayerNorm over the last axis; gamma/beta are (1, D)."""
    mu = jnp.mean(x, axis=-1, keepdims=True)
    xc = x - mu
    var = jnp.mean(xc * xc, axis=-1, keepdims=True)
    return xc * lax.rsqrt(var + _LN_EPS) * gamma + beta


def _mha(xq, xkv, bias, ap, l, *, num_heads, d_k):
    """Multi-head attention + output projection for layer `l`.

    xq: (Sq, D), xkv: (Skv, D), bias: additive mask bias broadcastable to
    (Sq, Skv).  `ap` is a dict of stacked per-layer weight REFS with the head
    axis leading:
      wq/wk/wv: (L, H, D, d_k)   bq/bk/bv: (L, H, 1, d_k)
      wo:       (L, H, d_k, D)   bo:       (L, 1, D)
    Each head's context is pushed straight through its Wo rows and accumulated
    (no concat, no relayout); scores contract on d_k (no K transpose).
    """
    scale = 1.0 / math.sqrt(d_k)
    out = ap["bo"][l]                                        # (1, D)
    for h in range(num_heads):
        qh = (jnp.dot(xq, ap["wq"][l, h], preferred_element_type=jnp.float32)
              + ap["bq"][l, h]) * scale                      # (Sq, d_k)
        kh = (jnp.dot(xkv, ap["wk"][l, h], preferred_element_type=jnp.float32)
              + ap["bk"][l, h])                              # (Skv, d_k)
        vh = (jnp.dot(xkv, ap["wv"][l, h], preferred_element_type=jnp.float32)
              + ap["bv"][l, h])                              # (Skv, d_k)
        # Contract on d_k of both operands -> no explicit kh.T (no XLU transpose).
        scores = lax.dot_general(qh, kh, (((1,), (1,)), ((), ())),
                                 preferred_element_type=jnp.float32) + bias
        m = jnp.max(scores, axis=-1, keepdims=True)
        e = jnp.exp(scores - m)
        denom = jnp.sum(e, axis=-1, keepdims=True)
        w = e * pl.reciprocal(denom, approx=True)            # EUP vrcp
        ctx = jnp.dot(w, vh, preferred_element_type=jnp.float32)        # (Sq, d_k)
        out = out + jnp.dot(ctx, ap["wo"][l, h],
                            preferred_element_type=jnp.float32)         # (Sq, D)
    return out


def _ffn(x, fp, l):
    """lin1 -> ReLU -> lin2 for layer l (fp holds stacked refs)."""
    h = jnp.maximum(
        jnp.dot(x, fp["w1"][l], preferred_element_type=jnp.float32) + fp["b1"][l],
        0.0)
    return jnp.dot(h, fp["w2"][l], preferred_element_type=jnp.float32) + fp["b2"][l]


# --------------------------------------------------------------------------- #
# Fused whole-forward kernel (one batch element per grid step)
# --------------------------------------------------------------------------- #
def _fused_transformer_kernel(enc_x_ref, dec_x_ref, srcb_ref, tgtb_ref, *rest,
                              treedef, num_heads, d_k, n_enc, n_dec):
    o_ref = rest[-1]
    p = jax.tree_util.tree_unflatten(treedef, rest[:-1])     # dict of weight refs

    St = dec_x_ref.shape[1]

    # Mask biases: O(S) inputs, causal part built in-kernel (no O(S^2) mask DMA).
    src_key_bias = srcb_ref[0]                               # (1, Ss)
    tgt_row_bias = tgtb_ref[0]                               # (St, 1)
    qi = lax.broadcasted_iota(jnp.int32, (St, St), 0)
    ki = lax.broadcasted_iota(jnp.int32, (St, St), 1)
    dec_self_bias = tgt_row_bias + jnp.where(ki <= qi, 0.0, _MASK_BIAS)  # (St, St)

    # ----- encoder stack (activations stay in vregs/VMEM) -----
    enc = enc_x_ref[0]                                       # (Ss, D)
    ea, ef = p["enc"]["attn"], p["enc"]["ffn"]
    for l in range(n_enc):
        a = _mha(enc, enc, src_key_bias, ea, l, num_heads=num_heads, d_k=d_k)
        enc = _layer_norm(enc + a, ea["gamma"][l], ea["beta"][l])
        f = _ffn(enc, ef, l)
        enc = _layer_norm(enc + f, ef["gamma"][l], ef["beta"][l])

    # ----- decoder stack -----
    dec = dec_x_ref[0]                                       # (St, D)
    ds, dc, df = p["dec"]["self"], p["dec"]["cross"], p["dec"]["ffn"]
    for l in range(n_dec):
        a = _mha(dec, dec, dec_self_bias, ds, l, num_heads=num_heads, d_k=d_k)
        dec = _layer_norm(dec + a, ds["gamma"][l], ds["beta"][l])
        a = _mha(dec, enc, src_key_bias, dc, l, num_heads=num_heads, d_k=d_k)
        dec = _layer_norm(dec + a, dc["gamma"][l], dc["beta"][l])
        f = _ffn(dec, df, l)
        dec = _layer_norm(dec + f, df["gamma"][l], df["beta"][l])

    # ----- vocab projection (V = 128 -> lane-dense store) -----
    o_ref[0] = (jnp.dot(dec, p["w_out"][...], preferred_element_type=jnp.float32)
                + p["b_out"][...])


# --------------------------------------------------------------------------- #
# pallas_call wrapper (full Transformer forward)
# --------------------------------------------------------------------------- #
def _rep_spec(a):
    nd = a.ndim
    return pl.BlockSpec(a.shape, lambda b, _nd=nd: (0,) * _nd)


def transformer_forward(src, tgt, params, *, num_heads):
    B, Ss = src.shape
    St = tgt.shape[1]
    kp = params["kp"]
    D = params["enc_emb"].shape[1]
    V = kp["w_out"].shape[1]
    d_k = D // num_heads
    n_enc = kp["enc"]["ffn"]["w1"].shape[0]
    n_dec = kp["dec"]["ffn"]["w1"].shape[0]

    # Token-validity additive biases (wrapper); causal mask is built in-kernel.
    src_key_bias = jnp.where(src != 0, 0.0, _MASK_BIAS).astype(jnp.float32)[:, None, :]
    tgt_row_bias = jnp.where(tgt != 0, 0.0, _MASK_BIAS).astype(jnp.float32)[:, :, None]

    # Embedding gather + positional encoding stay in plain JAX (wrapper).
    pe = params["pe"]
    enc_x = jnp.take(params["enc_emb"], src, axis=0) + pe[None, :Ss, :]
    dec_x = jnp.take(params["dec_emb"], tgt, axis=0) + pe[None, :St, :]

    flat, treedef = jax.tree_util.tree_flatten(kp)

    kernel = functools.partial(_fused_transformer_kernel, treedef=treedef,
                               num_heads=num_heads, d_k=d_k,
                               n_enc=n_enc, n_dec=n_dec)

    return pl.pallas_call(
        kernel,
        out_shape=jax.ShapeDtypeStruct((B, St, V), jnp.float32),
        grid_spec=pltpu.PrefetchScalarGridSpec(
            num_scalar_prefetch=0,
            grid=(B,),
            in_specs=[
                pl.BlockSpec((1, Ss, D), lambda b: (b, 0, 0)),   # enc_x
                pl.BlockSpec((1, St, D), lambda b: (b, 0, 0)),   # dec_x
                pl.BlockSpec((1, 1, Ss), lambda b: (b, 0, 0)),   # src key bias
                pl.BlockSpec((1, St, 1), lambda b: (b, 0, 0)),   # tgt row bias
            ] + [_rep_spec(a) for a in flat],                    # all weights
            out_specs=pl.BlockSpec((1, St, V), lambda b: (b, 0, 0)),
        ),
        compiler_params=pltpu.CompilerParams(
            dimension_semantics=("parallel",)),                  # v7x: 1 TC per batch elem
    )(enc_x, dec_x, src_key_bias, tgt_row_bias, *flat)


# --------------------------------------------------------------------------- #
# Parameter construction (mirrors PyTorch default inits; head-major layout)
# --------------------------------------------------------------------------- #
def init_params(key, *, n_words, d_model, d_ff, n_enc, n_dec, max_seq_len,
                pad_index, num_heads):
    d_k = d_model // num_heads
    keys = iter(jax.random.split(key, 512))

    def nxt():
        return next(keys)

    def linear(fan_in, fan_out):
        bound = 1.0 / math.sqrt(fan_in)
        w = jax.random.uniform(nxt(), (fan_in, fan_out), jnp.float32, -bound, bound)
        b = jax.random.uniform(nxt(), (1, fan_out), jnp.float32, -bound, bound)
        return w, b

    def attn():
        wq, bq = linear(d_model, d_model)
        wk, bk = linear(d_model, d_model)
        wv, bv = linear(d_model, d_model)
        wo, bo = linear(d_model, d_model)

        def head_in_w(w):   # (D, D) -> (H, D, d_k)
            return w.reshape(d_model, num_heads, d_k).transpose(1, 0, 2)

        def head_in_b(b):   # (1, D) -> (H, 1, d_k)
            return b.reshape(1, num_heads, d_k).transpose(1, 0, 2)

        return {"wq": head_in_w(wq), "wk": head_in_w(wk), "wv": head_in_w(wv),
                "bq": head_in_b(bq), "bk": head_in_b(bk), "bv": head_in_b(bv),
                "wo": wo.reshape(num_heads, d_k, d_model),      # (H, d_k, D)
                "bo": bo,
                "gamma": jnp.ones((1, d_model), jnp.float32),
                "beta": jnp.zeros((1, d_model), jnp.float32)}

    def ffn():
        w1, b1 = linear(d_model, d_ff)
        w2, b2 = linear(d_ff, d_model)
        return {"w1": w1, "b1": b1, "w2": w2, "b2": b2,
                "gamma": jnp.ones((1, d_model), jnp.float32),
                "beta": jnp.zeros((1, d_model), jnp.float32)}

    def stack_layers(layer_dicts):
        return jax.tree_util.tree_map(lambda *xs: jnp.stack(xs, axis=0), *layer_dicts)

    enc_attn = stack_layers([attn() for _ in range(n_enc)])
    enc_ffn = stack_layers([ffn() for _ in range(n_enc)])
    dec_self = stack_layers([attn() for _ in range(n_dec)])
    dec_cross = stack_layers([attn() for _ in range(n_dec)])
    dec_ffn = stack_layers([ffn() for _ in range(n_dec)])
    w_out, b_out = linear(d_model, n_words)

    enc_emb = jax.random.normal(nxt(), (n_words, d_model), jnp.float32).at[pad_index].set(0.0)
    dec_emb = jax.random.normal(nxt(), (n_words, d_model), jnp.float32).at[pad_index].set(0.0)

    position = jnp.arange(max_seq_len, dtype=jnp.float32)[:, None]
    div_term = jnp.exp(jnp.arange(0, d_model, 2, dtype=jnp.float32)
                       * (-math.log(10000.0) / d_model))
    pe = jnp.zeros((max_seq_len, d_model), jnp.float32)
    pe = pe.at[:, 0::2].set(jnp.sin(position * div_term))
    pe = pe.at[:, 1::2].set(jnp.cos(position * div_term))

    kp = {"enc": {"attn": enc_attn, "ffn": enc_ffn},
          "dec": {"self": dec_self, "cross": dec_cross, "ffn": dec_ffn},
          "w_out": w_out, "b_out": b_out}
    return {"enc_emb": enc_emb, "dec_emb": dec_emb, "pe": pe, "kp": kp}


# --------------------------------------------------------------------------- #
# Pure-JAX reference mirroring the PyTorch forward (eval mode)
# --------------------------------------------------------------------------- #
def _ref_full_in_w(w):   # (H, D, d_k) -> (D, D)
    H, D, dk = w.shape
    return jnp.transpose(w, (1, 0, 2)).reshape(D, H * dk)


def _ref_full_in_b(b):   # (H, 1, d_k) -> (1, D)
    H, _, dk = b.shape
    return jnp.transpose(b, (1, 0, 2)).reshape(1, H * dk)


def _ref_full_out_w(w):  # (H, d_k, D) -> (D, D)
    H, dk, D = w.shape
    return w.reshape(H * dk, D)


def transformer_reference(src, tgt, params, num_heads):
    kp = params["kp"]
    B, Ss = src.shape
    St = tgt.shape[1]
    D = params["enc_emb"].shape[1]
    d_k = D // num_heads
    n_enc = kp["enc"]["ffn"]["w1"].shape[0]
    n_dec = kp["dec"]["ffn"]["w1"].shape[0]

    src_valid = src != 0
    tgt_valid = tgt != 0
    src_mask4 = src_valid[:, None, None, :]
    nopeak = jnp.tril(jnp.ones((St, St), dtype=bool))
    tgt_mask4 = tgt_valid[:, None, :, None] & nopeak[None, None, :, :]

    pe = params["pe"]
    enc = jnp.take(params["enc_emb"], src, axis=0) + pe[None, :Ss, :]
    dec = jnp.take(params["dec_emb"], tgt, axis=0) + pe[None, :St, :]

    def ln(x, g, b):
        mu = jnp.mean(x, axis=-1, keepdims=True)
        var = jnp.mean((x - mu) ** 2, axis=-1, keepdims=True)
        return (x - mu) / jnp.sqrt(var + _LN_EPS) * g + b

    def attn(q_in, kv_in, mask4, ap, l):
        wq, wk, wv = (_ref_full_in_w(ap["wq"][l]), _ref_full_in_w(ap["wk"][l]),
                      _ref_full_in_w(ap["wv"][l]))
        bq, bk, bv = (_ref_full_in_b(ap["bq"][l]), _ref_full_in_b(ap["bk"][l]),
                      _ref_full_in_b(ap["bv"][l]))
        wo, bo = _ref_full_out_w(ap["wo"][l]), ap["bo"][l]
        Bq, Sq, _ = q_in.shape
        Skv = kv_in.shape[1]

        def split(t, S):
            return t.reshape(Bq, S, num_heads, d_k).transpose(0, 2, 1, 3)

        Q = split(q_in @ wq + bq, Sq)
        K = split(kv_in @ wk + bk, Skv)
        V = split(kv_in @ wv + bv, Skv)
        s = jnp.einsum("bhqd,bhkd->bhqk", Q, K) / math.sqrt(d_k)
        s = jnp.where(mask4, s, -jnp.inf)
        w = jax.nn.softmax(s, axis=-1)
        ctx = jnp.einsum("bhqk,bhkd->bhqd", w, V)
        ctx = ctx.transpose(0, 2, 1, 3).reshape(Bq, Sq, D)
        return ctx @ wo + bo

    def ffn(x, fp, l):
        h = jnp.maximum(x @ fp["w1"][l] + fp["b1"][l], 0.0)
        return h @ fp["w2"][l] + fp["b2"][l]

    ea, ef = kp["enc"]["attn"], kp["enc"]["ffn"]
    for l in range(n_enc):
        a = attn(enc, enc, src_mask4, ea, l)
        enc = ln(enc + a, ea["gamma"][l], ea["beta"][l])
        f = ffn(enc, ef, l)
        enc = ln(enc + f, ef["gamma"][l], ef["beta"][l])

    ds, dc, df = kp["dec"]["self"], kp["dec"]["cross"], kp["dec"]["ffn"]
    for l in range(n_dec):
        a = attn(dec, dec, tgt_mask4, ds, l)
        dec = ln(dec + a, ds["gamma"][l], ds["beta"][l])
        a = attn(dec, enc, src_mask4, dc, l)
        dec = ln(dec + a, dc["gamma"][l], dc["beta"][l])
        f = ffn(dec, df, l)
        dec = ln(dec + f, df["gamma"][l], df["beta"][l])

    return dec @ kp["w_out"] + kp["b_out"]


# --------------------------------------------------------------------------- #
# Main
# --------------------------------------------------------------------------- #
if __name__ == "__main__":
    # Small config consistent with the module (dropout=0.0 -> eval-equivalent).
    n_words = 128        # multiple of 128 -> lane-dense logits store
    d_model = 32
    n_heads = 4
    d_ff = 64
    n_enc_layers = 2
    n_dec_layers = 2
    max_seq_len = 16
    pad_index = 0
    batch = 2
    src_len = 8
    tgt_len = 8

    root = jax.random.PRNGKey(0)
    k_params, k_src, k_tgt = jax.random.split(root, 3)
    params = init_params(k_params, n_words=n_words, d_model=d_model, d_ff=d_ff,
                         n_enc=n_enc_layers, n_dec=n_dec_layers,
                         max_seq_len=max_seq_len, pad_index=pad_index,
                         num_heads=n_heads)

    # Tokens in [1, n_words) so no attention row is fully masked in the
    # reference (-inf fill); the kernel's additive bias is NaN-safe regardless.
    src = jax.random.randint(k_src, (batch, src_len), 1, n_words, dtype=jnp.int32)
    tgt = jax.random.randint(k_tgt, (batch, tgt_len), 1, n_words, dtype=jnp.int32)

    fwd = jax.jit(functools.partial(transformer_forward, num_heads=n_heads))
    logits = jax.block_until_ready(fwd(src, tgt, params))

    ref = transformer_reference(src, tgt, params, n_heads)
    assert logits.shape == (batch, tgt_len, n_words)
    max_err = float(jnp.max(jnp.abs(logits - ref)))
    assert jnp.allclose(logits, ref, atol=5e-3, rtol=5e-3), \
        f"mismatch vs reference: max abs err {max_err}"

    print("KERNEL_OK")
</pallas_src>

<mosaic_0001>
module attributes {stable_mosaic.version = 11 : i64} {
  func.func @_fused_transformer_kernel(%arg0: i32, %arg1: memref<1x8x32xf32, #tpu.memory_space<vmem>>, %arg2: memref<1x8x32xf32, #tpu.memory_space<vmem>>, %arg3: memref<1x1x8xf32, #tpu.memory_space<vmem>>, %arg4: memref<1x8x1xf32, #tpu.memory_space<vmem>>, %arg5: memref<1x128xf32, #tpu.memory_space<vmem>>, %arg6: memref<2x1x32xf32, #tpu.memory_space<vmem>>, %arg7: memref<2x4x1x8xf32, #tpu.memory_space<vmem>>, %arg8: memref<2x1x32xf32, #tpu.memory_space<vmem>>, %arg9: memref<2x4x1x8xf32, #tpu.memory_space<vmem>>, %arg10: memref<2x4x1x8xf32, #tpu.memory_space<vmem>>, %arg11: memref<2x1x32xf32, #tpu.memory_space<vmem>>, %arg12: memref<2x4x32x8xf32, #tpu.memory_space<vmem>>, %arg13: memref<2x4x8x32xf32, #tpu.memory_space<vmem>>, %arg14: memref<2x4x32x8xf32, #tpu.memory_space<vmem>>, %arg15: memref<2x4x32x8xf32, #tpu.memory_space<vmem>>, %arg16: memref<2x1x64xf32, #tpu.memory_space<vmem>>, %arg17: memref<2x1x32xf32, #tpu.memory_space<vmem>>, %arg18: memref<2x1x32xf32, #tpu.memory_space<vmem>>, %arg19: memref<2x1x32xf32, #tpu.memory_space<vmem>>, %arg20: memref<2x32x64xf32, #tpu.memory_space<vmem>>, %arg21: memref<2x64x32xf32, #tpu.memory_space<vmem>>, %arg22: memref<2x1x32xf32, #tpu.memory_space<vmem>>, %arg23: memref<2x4x1x8xf32, #tpu.memory_space<vmem>>, %arg24: memref<2x1x32xf32, #tpu.memory_space<vmem>>, %arg25: memref<2x4x1x8xf32, #tpu.memory_space<vmem>>, %arg26: memref<2x4x1x8xf32, #tpu.memory_space<vmem>>, %arg27: memref<2x1x32xf32, #tpu.memory_space<vmem>>, %arg28: memref<2x4x32x8xf32, #tpu.memory_space<vmem>>, %arg29: memref<2x4x8x32xf32, #tpu.memory_space<vmem>>, %arg30: memref<2x4x32x8xf32, #tpu.memory_space<vmem>>, %arg31: memref<2x4x32x8xf32, #tpu.memory_space<vmem>>, %arg32: memref<2x1x32xf32, #tpu.memory_space<vmem>>, %arg33: memref<2x4x1x8xf32, #tpu.memory_space<vmem>>, %arg34: memref<2x1x32xf32, #tpu.memory_space<vmem>>, %arg35: memref<2x4x1x8xf32, #tpu.memory_space<vmem>>, %arg36: memref<2x4x1x8xf32, #tpu.memory_space<vmem>>, %arg37: memref<2x1x32xf32, #tpu.memory_space<vmem>>, %arg38: memref<2x4x32x8xf32, #tpu.memory_space<vmem>>, %arg39: memref<2x4x8x32xf32, #tpu.memory_space<vmem>>, %arg40: memref<2x4x32x8xf32, #tpu.memory_space<vmem>>, %arg41: memref<2x4x32x8xf32, #tpu.memory_space<vmem>>, %arg42: memref<2x1x64xf32, #tpu.memory_space<vmem>>, %arg43: memref<2x1x32xf32, #tpu.memory_space<vmem>>, %arg44: memref<2x1x32xf32, #tpu.memory_space<vmem>>, %arg45: memref<2x1x32xf32, #tpu.memory_space<vmem>>, %arg46: memref<2x32x64xf32, #tpu.memory_space<vmem>>, %arg47: memref<2x64x32xf32, #tpu.memory_space<vmem>>, %arg48: memref<32x128xf32, #tpu.memory_space<vmem>>, %arg49: memref<1x8x128xf32, #tpu.memory_space<vmem>>) attributes {dimension_semantics = [#tpu.dimension_semantics<parallel>], iteration_bounds = array<i64: 2>, scalar_prefetch = 0 : i64, scratch_operands = 0 : i64, tpu.core_type = #tpu.core_type<tc>, window_params = [{transform_indices = @transform_0, window_bounds = array<i64: 1, 8, 32>}, {transform_indices = @transform_1, window_bounds = array<i64: 1, 8, 32>}, {transform_indices = @transform_2, window_bounds = array<i64: 1, 1, 8>}, {transform_indices = @transform_3, window_bounds = array<i64: 1, 8, 1>}, {pipeline_mode = #tpu.pipeline_mode<synchronous>, transform_indices = @transform_4, window_bounds = array<i64: 1, 128>}, {pipeline_mode = #tpu.pipeline_mode<synchronous>, transform_indices = @transform_5, window_bounds = array<i64: 2, 1, 32>}, {pipeline_mode = #tpu.pipeline_mode<synchronous>, transform_indices = @transform_6, window_bounds = array<i64: 2, 4, 1, 8>}, {pipeline_mode = #tpu.pipeline_mode<synchronous>, transform_indices = @transform_7, window_bounds = array<i64: 2, 1, 32>}, {pipeline_mode = #tpu.pipeline_mode<synchronous>, transform_indices = @transform_8, window_bounds = array<i64: 2, 4, 1, 8>}, {pipeline_mode = #tpu.pipeline_mode<synchronous>, transform_indices = @transform_9, window_bounds = array<i64: 2, 4, 1, 8>}, {pipeline_mode = #tpu.pipeline_mode<synchronous>, transform_indices = @transform_10, window_bounds = array<i64: 2, 1, 32>}, {pipeline_mode = #tpu.pipeline_mode<synchronous>, transform_indices = @transform_11, window_bounds = array<i64: 2, 4, 32, 8>}, {pipeline_mode = #tpu.pipeline_mode<synchronous>, transform_indices = @transform_12, window_bounds = array<i64: 2, 4, 8, 32>}, {pipeline_mode = #tpu.pipeline_mode<synchronous>, transform_indices = @transform_13, window_bounds = array<i64: 2, 4, 32, 8>}, {pipeline_mode = #tpu.pipeline_mode<synchronous>, transform_indices = @transform_14, window_bounds = array<i64: 2, 4, 32, 8>}, {pipeline_mode = #tpu.pipeline_mode<synchronous>, transform_indices = @transform_15, window_bounds = array<i64: 2, 1, 64>}, {pipeline_mode = #tpu.pipeline_mode<synchronous>, transform_indices = @transform_16, window_bounds = array<i64: 2, 1, 32>}, {pipeline_mode = #tpu.pipeline_mode<synchronous>, transform_indices = @transform_17, window_bounds = array<i64: 2, 1, 32>}, {pipeline_mode = #tpu.pipeline_mode<synchronous>, transform_indices = @transform_18, window_bounds = array<i64: 2, 1, 32>}, {pipeline_mode = #tpu.pipeline_mode<synchronous>, transform_indices = @transform_19, window_bounds = array<i64: 2, 32, 64>}, {pipeline_mode = #tpu.pipeline_mode<synchronous>, transform_indices = @transform_20, window_bounds = array<i64: 2, 64, 32>}, {pipeline_mode = #tpu.pipeline_mode<synchronous>, transform_indices = @transform_21, window_bounds = array<i64: 2, 1, 32>}, {pipeline_mode = #tpu.pipeline_mode<synchronous>, transform_indices = @transform_22, window_bounds = array<i64: 2, 4, 1, 8>}, {pipeline_mode = #tpu.pipeline_mode<synchronous>, transform_indices = @transform_23, window_bounds = array<i64: 2, 1, 32>}, {pipeline_mode = #tpu.pipeline_mode<synchronous>, transform_indices = @transform_24, window_bounds = array<i64: 2, 4, 1, 8>}, {pipeline_mode = #tpu.pipeline_mode<synchronous>, transform_indices = @transform_25, window_bounds = array<i64: 2, 4, 1, 8>}, {pipeline_mode = #tpu.pipeline_mode<synchronous>, transform_indices = @transform_26, window_bounds = array<i64: 2, 1, 32>}, {pipeline_mode = #tpu.pipeline_mode<synchronous>, transform_indices = @transform_27, window_bounds = array<i64: 2, 4, 32, 8>}, {pipeline_mode = #tpu.pipeline_mode<synchronous>, transform_indices = @transform_28, window_bounds = array<i64: 2, 4, 8, 32>}, {pipeline_mode = #tpu.pipeline_mode<synchronous>, transform_indices = @transform_29, window_bounds = array<i64: 2, 4, 32, 8>}, {pipeline_mode = #tpu.pipeline_mode<synchronous>, transform_indices = @transform_30, window_bounds = array<i64: 2, 4, 32, 8>}, {pipeline_mode = #tpu.pipeline_mode<synchronous>, transform_indices = @transform_31, window_bounds = array<i64: 2, 1, 32>}, {pipeline_mode = #tpu.pipeline_mode<synchronous>, transform_indices = @transform_32, window_bounds = array<i64: 2, 4, 1, 8>}, {pipeline_mode = #tpu.pipeline_mode<synchronous>, transform_indices = @transform_33, window_bounds = array<i64: 2, 1, 32>}, {pipeline_mode = #tpu.pipeline_mode<synchronous>, transform_indices = @transform_34, window_bounds = array<i64: 2, 4, 1, 8>}, {pipeline_mode = #tpu.pipeline_mode<synchronous>, transform_indices = @transform_35, window_bounds = array<i64: 2, 4, 1, 8>}, {pipeline_mode = #tpu.pipeline_mode<synchronous>, transform_indices = @transform_36, window_bounds = array<i64: 2, 1, 32>}, {pipeline_mode = #tpu.pipeline_mode<synchronous>, transform_indices = @transform_37, window_bounds = array<i64: 2, 4, 32, 8>}, {pipeline_mode = #tpu.pipeline_mode<synchronous>, transform_indices = @transform_38, window_bounds = array<i64: 2, 4, 8, 32>}, {pipeline_mode = #tpu.pipeline_mode<synchronous>, transform_indices = @transform_39, window_bounds = array<i64: 2, 4, 32, 8>}, {pipeline_mode = #tpu.pipeline_mode<synchronous>, transform_indices = @transform_40, window_bounds = array<i64: 2, 4, 32, 8>}, {pipeline_mode = #tpu.pipeline_mode<synchronous>, transform_indices = @transform_41, window_bounds = array<i64: 2, 1, 64>}, {pipeline_mode = #tpu.pipeline_mode<synchronous>, transform_indices = @transform_42, window_bounds = array<i64: 2, 1, 32>}, {pipeline_mode = #tpu.pipeline_mode<synchronous>, transform_indices = @transform_43, window_bounds = array<i64: 2, 1, 32>}, {pipeline_mode = #tpu.pipeline_mode<synchronous>, transform_indices = @transform_44, window_bounds = array<i64: 2, 1, 32>}, {pipeline_mode = #tpu.pipeline_mode<synchronous>, transform_indices = @transform_45, window_bounds = array<i64: 2, 32, 64>}, {pipeline_mode = #tpu.pipeline_mode<synchronous>, transform_indices = @transform_46, window_bounds = array<i64: 2, 64, 32>}, {pipeline_mode = #tpu.pipeline_mode<synchronous>, transform_indices = @transform_47, window_bounds = array<i64: 32, 128>}, {transform_indices = @transform_48, window_bounds = array<i64: 1, 8, 128>}]} {
    %c0 = arith.constant 0 : index
    %c0_0 = arith.constant 0 : index
    %c0_1 = arith.constant 0 : index
    %0 = vector.load %arg3[%c0, %c0_0, %c0_1] : memref<1x1x8xf32, #tpu.memory_space<vmem>>, vector<1x1x8xf32>
    %1 = vector.shape_cast %0 : vector<1x1x8xf32> to vector<1x8xf32>
    %c0_2 = arith.constant 0 : index
    %c0_3 = arith.constant 0 : index
    %c0_4 = arith.constant 0 : index
    %2 = vector.load %arg4[%c0_2, %c0_3, %c0_4] : memref<1x8x1xf32, #tpu.memory_space<vmem>>, vector<1x8x1xf32>
    %3 = vector.shape_cast %2 : vector<1x8x1xf32> to vector<8x1xf32>
    %4 = tpu.iota {dimensions = array<i32: 0>} : vector<8x8xi32>
    %5 = tpu.iota {dimensions = array<i32: 1>} : vector<8x8xi32>
    %6 = arith.cmpi sle, %5, %4 : vector<8x8xi32>
    %cst = arith.constant 0.000000e+00 : f32
    %cst_5 = arith.constant -1.000000e+30 : f32
    %7 = vector.broadcast %cst : f32 to vector<8x8xf32>
    %8 = vector.broadcast %cst_5 : f32 to vector<8x8xf32>
    %9 = arith.select %6, %7, %8 : vector<8x8xi1>, vector<8x8xf32>
    %10 = vector.broadcast %3 : vector<8x1xf32> to vector<8x8xf32>
    %11 = arith.addf %10, %9 : vector<8x8xf32>
    %c0_6 = arith.constant 0 : index
    %c0_7 = arith.constant 0 : index
    %c0_8 = arith.constant 0 : index
    %12 = vector.load %arg1[%c0_6, %c0_7, %c0_8] : memref<1x8x32xf32, #tpu.memory_space<vmem>>, vector<1x8x32xf32>
    %13 = vector.shape_cast %12 : vector<1x8x32xf32> to vector<8x32xf32>
    %c0_9 = arith.constant 0 : index
    %c0_10 = arith.constant 0 : index
    %c0_11 = arith.constant 0 : index
    %14 = vector.load %arg34[%c0_9, %c0_10, %c0_11] : memref<2x1x32xf32, #tpu.memory_space<vmem>>, vector<1x1x32xf32>
    %15 = vector.shape_cast %14 : vector<1x1x32xf32> to vector<1x32xf32>
    %c0_12 = arith.constant 0 : index
    %c0_13 = arith.constant 0 : index
    %c0_14 = arith.constant 0 : index
    %c0_15 = arith.constant 0 : index
    %16 = vector.load %arg40[%c0_12, %c0_13, %c0_14, %c0_15] : memref<2x4x32x8xf32, #tpu.memory_space<vmem>>, vector<1x1x32x8xf32>
    %17 = vector.shape_cast %16 : vector<1x1x32x8xf32> to vector<32x8xf32>
    %cst_16 = arith.constant dense<0.000000e+00> : vector<8x8xf32>
    %18 = tpu.matmul %13, %17, %cst_16 {dimension_numbers = #tpu.dot_dimension_numbers<[1], [0], [0], [1], [0, 0, 1, 1], [], []>} : vector<8x32xf32>, vector<32x8xf32>, vector<8x8xf32> -> vector<8x8xf32>
    %c0_17 = arith.constant 0 : index
    %c0_18 = arith.constant 0 : index
    %c0_19 = arith.constant 0 : index
    %c0_20 = arith.constant 0 : index
    %19 = vector.load %arg35[%c0_17, %c0_18, %c0_19, %c0_20] : memref<2x4x1x8xf32, #tpu.memory_space<vmem>>, vector<1x1x1x8xf32>
    %20 = vector.shape_cast %19 : vector<1x1x1x8xf32> to vector<1x8xf32>
    %21 = vector.broadcast %20 : vector<1x8xf32> to vector<8x8xf32>
    %22 = arith.addf %18, %21 : vector<8x8xf32>
    %cst_21 = arith.constant 0.353553385 : f32
    %23 = vector.broadcast %cst_21 : f32 to vector<8x8xf32>
    %24 = arith.mulf %22, %23 : vector<8x8xf32>
    %c0_22 = arith.constant 0 : index
    %c0_23 = arith.constant 0 : index
    %c0_24 = arith.constant 0 : index
    %c0_25 = arith.constant 0 : index
    %25 = vector.load %arg38[%c0_22, %c0_23, %c0_24, %c0_25] : memref<2x4x32x8xf32, #tpu.memory_space<vmem>>, vector<1x1x32x8xf32>
    %26 = vector.shape_cast %25 : vector<1x1x32x8xf32> to vector<32x8xf32>
    %cst_26 = arith.constant dense<0.000000e+00> : vector<8x8xf32>
    %27 = tpu.matmul %13, %26, %cst_26 {dimension_numbers = #tpu.dot_dimension_numbers<[1], [0], [0], [1], [0, 0, 1, 1], [], []>} : vector<8x32xf32>, vector<32x8xf32>, vector<8x8xf32> -> vector<8x8xf32>
    %c0_27 = arith.constant 0 : index
    %c0_28 = arith.constant 0 : index
    %c0_29 = arith.constant 0 : index
    %c0_30 = arith.constant 0 : index
    %28 = vector.load %arg33[%c0_27, %c0_28, %c0_29, %c0_30] : memref<2x4x1x8xf32, #tpu.memory_space<vmem>>, vector<1x1x1x8xf32>
    %29 = vector.shape_cast %28 : vector<1x1x1x8xf32> to vector<1x8xf32>
    %30 = vector.broadcast %29 : vector<1x8xf32> to vector<8x8xf32>
    %31 = arith.addf %27, %30 : vector<8x8xf32>
    %c0_31 = arith.constant 0 : index
    %c0_32 = arith.constant 0 : index
    %c0_33 = arith.constant 0 : index
    %c0_34 = arith.constant 0 : index
    %32 = vector.load %arg41[%c0_31, %c0_32, %c0_33, %c0_34] : memref<2x4x32x8xf32, #tpu.memory_space<vmem>>, vector<1x1x32x8xf32>
    %33 = vector.shape_cast %32 : vector<1x1x32x8xf32> to vector<32x8xf32>
    %cst_35 = arith.constant dense<0.000000e+00> : vector<8x8xf32>
    %34 = tpu.matmul %13, %33, %cst_35 {dimension_numbers = #tpu.dot_dimension_numbers<[1], [0], [0], [1], [0, 0, 1, 1], [], []>} : vector<8x32xf32>, vector<32x8xf32>, vector<8x8xf32> -> vector<8x8xf32>
    %c0_36 = arith.constant 0 : index
    %c0_37 = arith.constant 0 : index
    %c0_38 = arith.constant 0 : index
    %c0_39 = arith.constant 0 : index
    %35 = vector.load %arg36[%c0_36, %c0_37, %c0_38, %c0_39] : memref<2x4x1x8xf32, #tpu.memory_space<vmem>>, vector<1x1x1x8xf32>
    %36 = vector.shape_cast %35 : vector<1x1x1x8xf32> to vector<1x8xf32>
    %37 = vector.broadcast %36 : vector<1x8xf32> to vector<8x8xf32>
    %38 = arith.addf %34, %37 : vector<8x8xf32>
    %cst_40 = arith.constant dense<0.000000e+00> : vector<8x8xf32>
    %39 = tpu.matmul %24, %31, %cst_40 {dimension_numbers = #tpu.dot_dimension_numbers<[1], [1], [0], [0], [0, 0, 1, 0], [], []>} : vector<8x8xf32>, vector<8x8xf32>, vector<8x8xf32> -> vector<8x8xf32>
    %40 = vector.broadcast %1 : vector<1x8xf32> to vector<8x8xf32>
    %41 = arith.addf %39, %40 : vector<8x8xf32>
    %cst_41 = arith.constant dense<0xFF800000> : vector<8xf32>
    %42 = vector.multi_reduction <maximumf>, %41, %cst_41 [1] : vector<8x8xf32> to vector<8xf32>
    %43 = vector.shape_cast %42 : vector<8xf32> to vector<8x1xf32>
    %44 = vector.broadcast %43 : vector<8x1xf32> to vector<8x8xf32>
    %45 = arith.subf %41, %44 : vector<8x8xf32>
    %46 = math.exp %45 : vector<8x8xf32>
    %cst_42 = arith.constant dense<0.000000e+00> : vector<8xf32>
    %47 = vector.multi_reduction <add>, %46, %cst_42 [1] : vector<8x8xf32> to vector<8xf32>
    %48 = vector.shape_cast %47 : vector<8xf32> to vector<8x1xf32>
    %49 = tpu.reciprocal %48 {approx = true} : vector<8x1xf32> -> vector<8x1xf32>
    %50 = vector.broadcast %49 : vector<8x1xf32> to vector<8x8xf32>
    %51 = arith.mulf %46, %50 : vector<8x8xf32>
    %cst_43 = arith.constant dense<0.000000e+00> : vector<8x8xf32>
    %52 = tpu.matmul %51, %38, %cst_43 {dimension_numbers = #tpu.dot_dimension_numbers<[1], [0], [0], [1], [0, 0, 1, 1], [], []>} : vector<8x8xf32>, vector<8x8xf32>, vector<8x8xf32> -> vector<8x8xf32>
    %c0_44 = arith.constant 0 : index
    %c0_45 = arith.constant 0 : index
    %c0_46 = arith.constant 0 : index
    %c0_47 = arith.constant 0 : index
    %53 = vector.load %arg39[%c0_44, %c0_45, %c0_46, %c0_47] : memref<2x4x8x32xf32, #tpu.memory_space<vmem>>, vector<1x1x8x32xf32>
    %54 = vector.shape_cast %53 : vector<1x1x8x32xf32> to vector<8x32xf32>
    %cst_48 = arith.constant dense<0.000000e+00> : vector<8x32xf32>
    %55 = tpu.matmul %52, %54, %cst_48 {dimension_numbers = #tpu.dot_dimension_numbers<[1], [0], [0], [1], [0, 0, 1, 1], [], []>} : vector<8x8xf32>, vector<8x32xf32>, vector<8x32xf32> -> vector<8x32xf32>
    %56 = vector.broadcast %15 : vector<1x32xf32> to vector<8x32xf32>
    %57 = arith.addf %56, %55 : vector<8x32xf32>
    %c0_49 = arith.constant 0 : index
    %c1 = arith.constant 1 : index
    %c0_50 = arith.constant 0 : index
    %c0_51 = arith.constant 0 : index
    %58 = vector.load %arg40[%c0_49, %c1, %c0_50, %c0_51] : memref<2x4x32x8xf32, #tpu.memory_space<vmem>>, vector<1x1x32x8xf32>
    %59 = vector.shape_cast %58 : vector<1x1x32x8xf32> to vector<32x8xf32>
    %cst_52 = arith.constant dense<0.000000e+00> : vector<8x8xf32>
    %60 = tpu.matmul %13, %59, %cst_52 {dimension_numbers = #tpu.dot_dimension_numbers<[1], [0], [0], [1], [0, 0, 1, 1], [], []>} : vector<8x32xf32>, vector<32x8xf32>, vector<8x8xf32> -> vector<8x8xf32>
    %c0_53 = arith.constant 0 : index
    %c1_54 = arith.constant 1 : index
    %c0_55 = arith.constant 0 : index
    %c0_56 = arith.constant 0 : index
    %61 = vector.load %arg35[%c0_53, %c1_54, %c0_55, %c0_56] : memref<2x4x1x8xf32, #tpu.memory_space<vmem>>, vector<1x1x1x8xf32>
    %62 = vector.shape_cast %61 : vector<1x1x1x8xf32> to vector<1x8xf32>
    %63 = vector.broadcast %62 : vector<1x8xf32> to vector<8x8xf32>
    %64 = arith.addf %60, %63 : vector<8x8xf32>
    %cst_57 = arith.constant 0.353553385 : f32
    %65 = vector.broadcast %cst_57 : f32 to vector<8x8xf32>
    %66 = arith.mulf %64, %65 : vector<8x8xf32>
    %c0_58 = arith.constant 0 : index
    %c1_59 = arith.constant 1 : index
    %c0_60 = arith.constant 0 : index
    %c0_61 = arith.constant 0 : index
    %67 = vector.load %arg38[%c0_58, %c1_59, %c0_60, %c0_61] : memref<2x4x32x8xf32, #tpu.memory_space<vmem>>, vector<1x1x32x8xf32>
    %68 = vector.shape_cast %67 : vector<1x1x32x8xf32> to vector<32x8xf32>
    %cst_62 = arith.constant dense<0.000000e+00> : vector<8x8xf32>
    %69 = tpu.matmul %13, %68, %cst_62 {dimension_numbers = #tpu.dot_dimension_numbers<[1], [0], [0], [1], [0, 0, 1, 1], [], []>} : vector<8x32xf32>, vector<32x8xf32>, vector<8x8xf32> -> vector<8x8xf32>
    %c0_63 = arith.constant 0 : index
    %c1_64 = arith.constant 1 : index
    %c0_65 = arith.constant 0 : index
    %c0_66 = arith.constant 0 : index
    %70 = vector.load %arg33[%c0_63, %c1_64, %c0_65, %c0_66] : memref<2x4x1x8xf32, #tpu.memory_space<vmem>>, vector<1x1x1x8xf32>
    %71 = vector.shape_cast %70 : vector<1x1x1x8xf32> to vector<1x8xf32>
    %72 = vector.broadcast %71 : vector<1x8xf32> to vector<8x8xf32>
    %73 = arith.addf %69, %72 : vector<8x8xf32>
    %c0_67 = arith.constant 0 : index
    %c1_68 = arith.constant 1 : index
    %c0_69 = arith.constant 0 : index
    %c0_70 = arith.constant 0 : index
    %74 = vector.load %arg41[%c0_67, %c1_68, %c0_69, %c0_70] : memref<2x4x32x8xf32, #tpu.memory_space<vmem>>, vector<1x1x32x8xf32>
    %75 = vector.shape_cast %74 : vector<1x1x32x8xf32> to vector<32x8xf32>
    %cst_71 = arith.constant dense<0.000000e+00> : vector<8x8xf32>
    %76 = tpu.matmul %13, %75, %cst_71 {dimension_numbers = #tpu.dot_dimension_numbers<[1], [0], [0], [1], [0, 0, 1, 1], [], []>} : vector<8x32xf32>, vector<32x8xf32>, vector<8x8xf32> -> vector<8x8xf32>
    %c0_72 = arith.constant 0 : index
    %c1_73 = arith.constant 1 : index
    %c0_74 = arith.constant 0 : index
    %c0_75 = arith.constant 0 : index
    %77 = vector.load %arg36[%c0_72, %c1_73, %c0_74, %c0_75] : memref<2x4x1x8xf32, #tpu.memory_space<vmem>>, vector<1x1x1x8xf32>
    %78 = vector.shape_cast %77 : vector<1x1x1x8xf32> to vector<1x8xf32>
    %79 = vector.broadcast %78 : vector<1x8xf32> to vector<8x8xf32>
    %80 = arith.addf %76, %79 : vector<8x8xf32>
    %cst_76 = arith.constant dense<0.000000e+00> : vector<8x8xf32>
    %81 = tpu.matmul %66, %73, %cst_76 {dimension_numbers = #tpu.dot_dimension_numbers<[1], [1], [0], [0], [0, 0, 1, 0], [], []>} : vector<8x8xf32>, vector<8x8xf32>, vector<8x8xf32> -> vector<8x8xf32>
    %82 = vector.broadcast %1 : vector<1x8xf32> to vector<8x8xf32>
    %83 = arith.addf %81, %82 : vector<8x8xf32>
    %cst_77 = arith.constant dense<0xFF800000> : vector<8xf32>
    %84 = vector.multi_reduction <maximumf>, %83, %cst_77 [1] : vector<8x8xf32> to vector<8xf32>
    %85 = vector.shape_cast %84 : vector<8xf32> to vector<8x1xf32>
    %86 = vector.broadcast %85 : vector<8x1xf32> to vector<8x8xf32>
    %87 = arith.subf %83, %86 : vector<8x8xf32>
    %88 = math.exp %87 : vector<8x8xf32>
    %cst_78 = arith.constant dense<0.000000e+00> : vector<8xf32>
    %89 = vector.multi_reduction <add>, %88, %cst_78 [1] : vector<8x8xf32> to vector<8xf32>
    %90 = vector.shape_cast %89 : vector<8xf32> to vector<8x1xf32>
    %91 = tpu.reciprocal %90 {approx = true} : vector<8x1xf32> -> vector<8x1xf32>
    %92 = vector.broadcast %91 : vector<8x1xf32> to vector<8x8xf32>
    %93 = arith.mulf %88, %92 : vector<8x8xf32>
    %cst_79 = arith.constant dense<0.000000e+00> : vector<8x8xf32>
    %94 = tpu.matmul %93, %80, %cst_79 {dimension_numbers = #tpu.dot_dimension_numbers<[1], [0], [0], [1], [0, 0, 1, 1], [], []>} : vector<8x8xf32>, vector<8x8xf32>, vector<8x8xf32> -> vector<8x8xf32>
    %c0_80 = arith.constant 0 : index
    %c1_81 = arith.constant 1 : index
    %c0_82 = arith.constant 0 : index
    %c0_83 = arith.constant 0 : index
    %95 = vector.load %arg39[%c0_80, %c1_81, %c0_82, %c0_83] : memref<2x4x8x32xf32, #tpu.memory_space<vmem>>, vector<1x1x8x32xf32>
    %96 = vector.shape_cast %95 : vector<1x1x8x32xf32> to vector<8x32xf32>
    %cst_84 = arith.constant dense<0.000000e+00> : vector<8x32xf32>
    %97 = tpu.matmul %94, %96, %cst_84 {dimension_numbers = #tpu.dot_dimension_numbers<[1], [0], [0], [1], [0, 0, 1, 1], [], []>} : vector<8x8xf32>, vector<8x32xf32>, vector<8x32xf32> -> vector<8x32xf32>
    %98 = arith.addf %57, %97 : vector<8x32xf32>
    %c0_85 = arith.constant 0 : index
    %c2 = arith.constant 2 : index
    %c0_86 = arith.constant 0 : index
    %c0_87 = arith.constant 0 : index
    %99 = vector.load %arg40[%c0_85, %c2, %c0_86, %c0_87] : memref<2x4x32x8xf32, #tpu.memory_space<vmem>>, vector<1x1x32x8xf32>
    %100 = vector.shape_cast %99 : vector<1x1x32x8xf32> to vector<32x8xf32>
    %cst_88 = arith.constant dense<0.000000e+00> : vector<8x8xf32>
    %101 = tpu.matmul %13, %100, %cst_88 {dimension_numbers = #tpu.dot_dimension_numbers<[1], [0], [0], [1], [0, 0, 1, 1], [], []>} : vector<8x32xf32>, vector<32x8xf32>, vector<8x8xf32> -> vector<8x8xf32>
    %c0_89 = arith.constant 0 : index
    %c2_90 = arith.constant 2 : index
    %c0_91 = arith.constant 0 : index
    %c0_92 = arith.constant 0 : index
    %102 = vector.load %arg35[%c0_89, %c2_90, %c0_91, %c0_92] : memref<2x4x1x8xf32, #tpu.memory_space<vmem>>, vector<1x1x1x8xf32>
    %103 = vector.shape_cast %102 : vector<1x1x1x8xf32> to vector<1x8xf32>
    %104 = vector.broadcast %103 : vector<1x8xf32> to vector<8x8xf32>
    %105 = arith.addf %101, %104 : vector<8x8xf32>
    %cst_93 = arith.constant 0.353553385 : f32
    %106 = vector.broadcast %cst_93 : f32 to vector<8x8xf32>
    %107 = arith.mulf %105, %106 : vector<8x8xf32>
    %c0_94 = arith.constant 0 : index
    %c2_95 = arith.constant 2 : index
    %c0_96 = arith.constant 0 : index
    %c0_97 = arith.constant 0 : index
    %108 = vector.load %arg38[%c0_94, %c2_95, %c0_96, %c0_97] : memref<2x4x32x8xf32, #tpu.memory_space<vmem>>, vector<1x1x32x8xf32>
    %109 = vector.shape_cast %108 : vector<1x1x32x8xf32> to vector<32x8xf32>
    %cst_98 = arith.constant dense<0.000000e+00> : vector<8x8xf32>
    %110 = tpu.matmul %13, %109, %cst_98 {dimension_numbers = #tpu.dot_dimension_numbers<[1], [0], [0], [1], [0, 0, 1, 1], [], []>} : vector<8x32xf32>, vector<32x8xf32>, vector<8x8xf32> -> vector<8x8xf32>
    %c0_99 = arith.constant 0 : index
    %c2_100 = arith.constant 2 : index
    %c0_101 = arith.constant 0 : index
    %c0_102 = arith.constant 0 : index
    %111 = vector.load %arg33[%c0_99, %c2_100, %c0_101, %c0_102] : memref<2x4x1x8xf32, #tpu.memory_space<vmem>>, vector<1x1x1x8xf32>
    %112 = vector.shape_cast %111 : vector<1x1x1x8xf32> to vector<1x8xf32>
    %113 = vector.broadcast %112 : vector<1x8xf32> to vector<8x8xf32>
    %114 = arith.addf %110, %113 : vector<8x8xf32>
    %c0_103 = arith.constant 0 : index
    %c2_104 = arith.constant 2 : index
    %c0_105 = arith.constant 0 : index
    %c0_106 = arith.constant 0 : index
    %115 = vector.load %arg41[%c0_103, %c2_104, %c0_105, %c0_106] : memref<2x4x32x8xf32, #tpu.memory_space<vmem>>, vector<1x1x32x8xf32>
    %116 = vector.shape_cast %115 : vector<1x1x32x8xf32> to vector<32x8xf32>
    %cst_107 = arith.constant dense<0.000000e+00> : vector<8x8xf32>
    %117 = tpu.matmul %13, %116, %cst_107 {dimension_numbers = #tpu.dot_dimension_numbers<[1], [0], [0], [1], [0, 0, 1, 1], [], []>} : vector<8x32xf32>, vector<32x8xf32>, vector<8x8xf32> -> vector<8x8xf32>
    %c0_108 = arith.constant 0 : index
    %c2_109 = arith.constant 2 : index
    %c0_110 = arith.constant 0 : index
    %c0_111 = arith.constant 0 : index
    %118 = vector.load %arg36[%c0_108, %c2_109, %c0_110, %c0_111] : memref<2x4x1x8xf32, #tpu.memory_space<vmem>>, vector<1x1x1x8xf32>
    %119 = vector.shape_cast %118 : vector<1x1x1x8xf32> to vector<1x8xf32>
    %120 = vector.broadcast %119 : vector<1x8xf32> to vector<8x8xf32>
    %121 = arith.addf %117, %120 : vector<8x8xf32>
    %cst_112 = arith.constant dense<0.000000e+00> : vector<8x8xf32>
    %122 = tpu.matmul %107, %114, %cst_112 {dimension_numbers = #tpu.dot_dimension_numbers<[1], [1], [0], [0], [0, 0, 1, 0], [], []>} : vector<8x8xf32>, vector<8x8xf32>, vector<8x8xf32> -> vector<8x8xf32>
    %123 = vector.broadcast %1 : vector<1x8xf32> to vector<8x8xf32>
    %124 = arith.addf %122, %123 : vector<8x8xf32>
    %cst_113 = arith.constant dense<0xFF800000> : vector<8xf32>
    %125 = vector.multi_reduction <maximumf>, %124, %cst_113 [1] : vector<8x8xf32> to vector<8xf32>
    %126 = vector.shape_cast %125 : vector<8xf32> to vector<8x1xf32>
    %127 = vector.broadcast %126 : vector<8x1xf32> to vector<8x8xf32>
    %128 = arith.subf %124, %127 : vector<8x8xf32>
    %129 = math.exp %128 : vector<8x8xf32>
    %cst_114 = arith.constant dense<0.000000e+00> : vector<8xf32>
    %130 = vector.multi_reduction <add>, %129, %cst_114 [1] : vector<8x8xf32> to vector<8xf32>
    %131 = vector.shape_cast %130 : vector<8xf32> to vector<8x1xf32>
    %132 = tpu.reciprocal %131 {approx = true} : vector<8x1xf32> -> vector<8x1xf32>
    %133 = vector.broadcast %132 : vector<8x1xf32> to vector<8x8xf32>
    %134 = arith.mulf %129, %133 : vector<8x8xf32>
    %cst_115 = arith.constant dense<0.000000e+00> : vector<8x8xf32>
    %135 = tpu.matmul %134, %121, %cst_115 {dimension_numbers = #tpu.dot_dimension_numbers<[1], [0], [0], [1], [0, 0, 1, 1], [], []>} : vector<8x8xf32>, vector<8x8xf32>, vector<8x8xf32> -> vector<8x8xf32>
    %c0_116 = arith.constant 0 : index
    %c2_117 = arith.constant 2 : index
    %c0_118 = arith.constant 0 : index
    %c0_119 = arith.constant 0 : index
    %136 = vector.load %arg39[%c0_116, %c2_117, %c0_118, %c0_119] : memref<2x4x8x32xf32, #tpu.memory_space<vmem>>, vector<1x1x8x32xf32>
    %137 = vector.shape_cast %136 : vector<1x1x8x32xf32> to vector<8x32xf32>
    %cst_120 = arith.constant dense<0.000000e+00> : vector<8x32xf32>
    %138 = tpu.matmul %135, %137, %cst_120 {dimension_numbers = #tpu.dot_dimension_numbers<[1], [0], [0], [1], [0, 0, 1, 1], [], []>} : vector<8x8xf32>, vector<8x32xf32>, vector<8x32xf32> -> vector<8x32xf32>
    %139 = arith.addf %98, %138 : vector<8x32xf32>
    %c0_121 = arith.constant 0 : index
    %c3 = arith.constant 3 : index
    %c0_122 = arith.constant 0 : index
    %c0_123 = arith.constant 0 : index
    %140 = vector.load %arg40[%c0_121, %c3, %c0_122, %c0_123] : memref<2x4x32x8xf32, #tpu.memory_space<vmem>>, vector<1x1x32x8xf32>
    %141 = vector.shape_cast %140 : vector<1x1x32x8xf32> to vector<32x8xf32>
    %cst_124 = arith.constant dense<0.000000e+00> : vector<8x8xf32>
    %142 = tpu.matmul %13, %141, %cst_124 {dimension_numbers = #tpu.dot_dimension_numbers<[1], [0], [0], [1], [0, 0, 1, 1], [], []>} : vector<8x32xf32>, vector<32x8xf32>, vector<8x8xf32> -> vector<8x8xf32>
    %c0_125 = arith.constant 0 : index
    %c3_126 = arith.constant 3 : index
    %c0_127 = arith.constant 0 : index
    %c0_128 = arith.constant 0 : index
    %143 = vector.load %arg35[%c0_125, %c3_126, %c0_127, %c0_128] : memref<2x4x1x8xf32, #tpu.memory_space<vmem>>, vector<1x1x1x8xf32>
    %144 = vector.shape_cast %143 : vector<1x1x1x8xf32> to vector<1x8xf32>
    %145 = vector.broadcast %144 : vector<1x8xf32> to vector<8x8xf32>
    %146 = arith.addf %142, %145 : vector<8x8xf32>
    %cst_129 = arith.constant 0.353553385 : f32
    %147 = vector.broadcast %cst_129 : f32 to vector<8x8xf32>
    %148 = arith.mulf %146, %147 : vector<8x8xf32>
    %c0_130 = arith.constant 0 : index
    %c3_131 = arith.constant 3 : index
    %c0_132 = arith.constant 0 : index
    %c0_133 = arith.constant 0 : index
    %149 = vector.load %arg38[%c0_130, %c3_131, %c0_132, %c0_133] : memref<2x4x32x8xf32, #tpu.memory_space<vmem>>, vector<1x1x32x8xf32>
    %150 = vector.shape_cast %149 : vector<1x1x32x8xf32> to vector<32x8xf32>
    %cst_134 = arith.constant dense<0.000000e+00> : vector<8x8xf32>
    %151 = tpu.matmul %13, %150, %cst_134 {dimension_numbers = #tpu.dot_dimension_numbers<[1], [0], [0], [1], [0, 0, 1, 1], [], []>} : vector<8x32xf32>, vector<32x8xf32>, vector<8x8xf32> -> vector<8x8xf32>
    %c0_135 = arith.constant 0 : index
    %c3_136 = arith.constant 3 : index
    %c0_137 = arith.constant 0 : index
    %c0_138 = arith.constant 0 : index
    %152 = vector.load %arg33[%c0_135, %c3_136, %c0_137, %c0_138] : memref<2x4x1x8xf32, #tpu.memory_space<vmem>>, vector<1x1x1x8xf32>
    %153 = vector.shape_cast %152 : vector<1x1x1x8xf32> to vector<1x8xf32>
    %154 = vector.broadcast %153 : vector<1x8xf32> to vector<8x8xf32>
    %155 = arith.addf %151, %154 : vector<8x8xf32>
    %c0_139 = arith.constant 0 : index
    %c3_140 = arith.constant 3 : index
    %c0_141 = arith.constant 0 : index
    %c0_142 = arith.constant 0 : index
    %156 = vector.load %arg41[%c0_139, %c3_140, %c0_141, %c0_142] : memref<2x4x32x8xf32, #tpu.memory_space<vmem>>, vector<1x1x32x8xf32>
    %157 = vector.shape_cast %156 : vector<1x1x32x8xf32> to vector<32x8xf32>
    %cst_143 = arith.constant dense<0.000000e+00> : vector<8x8xf32>
    %158 = tpu.matmul %13, %157, %cst_143 {dimension_numbers = #tpu.dot_dimension_numbers<[1], [0], [0], [1], [0, 0, 1, 1], [], []>} : vector<8x32xf32>, vector<32x8xf32>, vector<8x8xf32> -> vector<8x8xf32>
    %c0_144 = arith.constant 0 : index
    %c3_145 = arith.constant 3 : index
    %c0_146 = arith.constant 0 : index
    %c0_147 = arith.constant 0 : index
    %159 = vector.load %arg36[%c0_144, %c3_145, %c0_146, %c0_147] : memref<2x4x1x8xf32, #tpu.memory_space<vmem>>, vector<1x1x1x8xf32>
    %160 = vector.shape_cast %159 : vector<1x1x1x8xf32> to vector<1x8xf32>
    %161 = vector.broadcast %160 : vector<1x8xf32> to vector<8x8xf32>
    %162 = arith.addf %158, %161 : vector<8x8xf32>
    %cst_148 = arith.constant dense<0.000000e+00> : vector<8x8xf32>
    %163 = tpu.matmul %148, %155, %cst_148 {dimension_numbers = #tpu.dot_dimension_numbers<[1], [1], [0], [0], [0, 0, 1, 0], [], []>} : vector<8x8xf32>, vector<8x8xf32>, vector<8x8xf32> -> vector<8x8xf32>
    %164 = vector.broadcast %1 : vector<1x8xf32> to vector<8x8xf32>
    %165 = arith.addf %163, %164 : vector<8x8xf32>
    %cst_149 = arith.constant dense<0xFF800000> : vector<8xf32>
    %166 = vector.multi_reduction <maximumf>, %165, %cst_149 [1] : vector<8x8xf32> to vector<8xf32>
    %167 = vector.shape_cast %166 : vector<8xf32> to vector<8x1xf32>
    %168 = vector.broadcast %167 : vector<8x1xf32> to vector<8x8xf32>
    %169 = arith.subf %165, %168 : vector<8x8xf32>
    %170 = math.exp %169 : vector<8x8xf32>
    %cst_150 = arith.constant dense<0.000000e+00> : vector<8xf32>
    %171 = vector.multi_reduction <add>, %170, %cst_150 [1] : vector<8x8xf32> to vector<8xf32>
    %172 = vector.shape_cast %171 : vector<8xf32> to vector<8x1xf32>
    %173 = tpu.reciprocal %172 {approx = true} : vector<8x1xf32> -> vector<8x1xf32>
    %174 = vector.broadcast %173 : vector<8x1xf32> to vector<8x8xf32>
    %175 = arith.mulf %170, %174 : vector<8x8xf32>
    %cst_151 = arith.constant dense<0.000000e+00> : vector<8x8xf32>
    %176 = tpu.matmul %175, %162, %cst_151 {dimension_numbers = #tpu.dot_dimension_numbers<[1], [0], [0], [1], [0, 0, 1, 1], [], []>} : vector<8x8xf32>, vector<8x8xf32>, vector<8x8xf32> -> vector<8x8xf32>
    %c0_152 = arith.constant 0 : index
    %c3_153 = arith.constant 3 : index
    %c0_154 = arith.constant 0 : index
    %c0_155 = arith.constant 0 : index
    %177 = vector.load %arg39[%c0_152, %c3_153, %c0_154, %c0_155] : memref<2x4x8x32xf32, #tpu.memory_space<vmem>>, vector<1x1x8x32xf32>
    %178 = vector.shape_cast %177 : vector<1x1x8x32xf32> to vector<8x32xf32>
    %cst_156 = arith.constant dense<0.000000e+00> : vector<8x32xf32>
    %179 = tpu.matmul %176, %178, %cst_156 {dimension_numbers = #tpu.dot_dimension_numbers<[1], [0], [0], [1], [0, 0, 1, 1], [], []>} : vector<8x8xf32>, vector<8x32xf32>, vector<8x32xf32> -> vector<8x32xf32>
    %180 = arith.addf %139, %179 : vector<8x32xf32>
    %181 = arith.addf %13, %180 : vector<8x32xf32>
    %c0_157 = arith.constant 0 : index
    %c0_158 = arith.constant 0 : index
    %c0_159 = arith.constant 0 : index
    %182 = vector.load %arg37[%c0_157, %c0_158, %c0_159] : memref<2x1x32xf32, #tpu.memory_space<vmem>>, vector<1x1x32xf32>
    %183 = vector.shape_cast %182 : vector<1x1x32xf32> to vector<1x32xf32>
    %c0_160 = arith.constant 0 : index
    %c0_161 = arith.constant 0 : index
    %c0_162 = arith.constant 0 : index
    %184 = vector.load %arg32[%c0_160, %c0_161, %c0_162] : memref<2x1x32xf32, #tpu.memory_space<vmem>>, vector<1x1x32xf32>
    %185 = vector.shape_cast %184 : vector<1x1x32xf32> to vector<1x32xf32>
    %cst_163 = arith.constant dense<0.000000e+00> : vector<8xf32>
    %186 = vector.multi_reduction <add>, %181, %cst_163 [1] : vector<8x32xf32> to vector<8xf32>
    %187 = vector.shape_cast %186 : vector<8xf32> to vector<8x1xf32>
    %cst_164 = arith.constant 3.200000e+01 : f32
    %188 = vector.broadcast %cst_164 : f32 to vector<8x1xf32>
    %189 = arith.divf %187, %188 : vector<8x1xf32>
    %190 = vector.broadcast %189 : vector<8x1xf32> to vector<8x32xf32>
    %191 = arith.subf %181, %190 : vector<8x32xf32>
    %192 = arith.mulf %191, %191 : vector<8x32xf32>
    %cst_165 = arith.constant dense<0.000000e+00> : vector<8xf32>
    %193 = vector.multi_reduction <add>, %192, %cst_165 [1] : vector<8x32xf32> to vector<8xf32>
    %194 = vector.shape_cast %193 : vector<8xf32> to vector<8x1xf32>
    %cst_166 = arith.constant 3.200000e+01 : f32
    %195 = vector.broadcast %cst_166 : f32 to vector<8x1xf32>
    %196 = arith.divf %194, %195 : vector<8x1xf32>
    %cst_167 = arith.constant 9.99999974E-6 : f32
    %197 = vector.broadcast %cst_167 : f32 to vector<8x1xf32>
    %198 = arith.addf %196, %197 : vector<8x1xf32>
    %199 = math.rsqrt %198 : vector<8x1xf32>
    %200 = vector.broadcast %199 : vector<8x1xf32> to vector<8x32xf32>
    %201 = arith.mulf %191, %200 : vector<8x32xf32>
    %202 = vector.broadcast %183 : vector<1x32xf32> to vector<8x32xf32>
    %203 = arith.mulf %201, %202 : vector<8x32xf32>
    %204 = vector.broadcast %185 : vector<1x32xf32> to vector<8x32xf32>
    %205 = arith.addf %203, %204 : vector<8x32xf32>
    %c0_168 = arith.constant 0 : index
    %c0_169 = arith.constant 0 : index
    %c0_170 = arith.constant 0 : index
    %206 = vector.load %arg46[%c0_168, %c0_169, %c0_170] : memref<2x32x64xf32, #tpu.memory_space<vmem>>, vector<1x32x64xf32>
    %207 = vector.shape_cast %206 : vector<1x32x64xf32> to vector<32x64xf32>
    %cst_171 = arith.constant dense<0.000000e+00> : vector<8x64xf32>
    %208 = tpu.matmul %205, %207, %cst_171 {dimension_numbers = #tpu.dot_dimension_numbers<[1], [0], [0], [1], [0, 0, 1, 1], [], []>} : vector<8x32xf32>, vector<32x64xf32>, vector<8x64xf32> -> vector<8x64xf32>
    %c0_172 = arith.constant 0 : index
    %c0_173 = arith.constant 0 : index
    %c0_174 = arith.constant 0 : index
    %209 = vector.load %arg42[%c0_172, %c0_173, %c0_174] : memref<2x1x64xf32, #tpu.memory_space<vmem>>, vector<1x1x64xf32>
    %210 = vector.shape_cast %209 : vector<1x1x64xf32> to vector<1x64xf32>
    %211 = vector.broadcast %210 : vector<1x64xf32> to vector<8x64xf32>
    %212 = arith.addf %208, %211 : vector<8x64xf32>
    %cst_175 = arith.constant 0.000000e+00 : f32
    %213 = vector.broadcast %cst_175 : f32 to vector<8x64xf32>
    %214 = arith.maximumf %212, %213 : vector<8x64xf32>
    %c0_176 = arith.constant 0 : index
    %c0_177 = arith.constant 0 : index
    %c0_178 = arith.constant 0 : index
    %215 = vector.load %arg47[%c0_176, %c0_177, %c0_178] : memref<2x64x32xf32, #tpu.memory_space<vmem>>, vector<1x64x32xf32>
    %216 = vector.shape_cast %215 : vector<1x64x32xf32> to vector<64x32xf32>
    %cst_179 = arith.constant dense<0.000000e+00> : vector<8x32xf32>
    %217 = tpu.matmul %214, %216, %cst_179 {dimension_numbers = #tpu.dot_dimension_numbers<[1], [0], [0], [1], [0, 0, 1, 1], [], []>} : vector<8x64xf32>, vector<64x32xf32>, vector<8x32xf32> -> vector<8x32xf32>
    %c0_180 = arith.constant 0 : index
    %c0_181 = arith.constant 0 : index
    %c0_182 = arith.constant 0 : index
    %218 = vector.load %arg43[%c0_180, %c0_181, %c0_182] : memref<2x1x32xf32, #tpu.memory_space<vmem>>, vector<1x1x32xf32>
    %219 = vector.shape_cast %218 : vector<1x1x32xf32> to vector<1x32xf32>
    %220 = vector.broadcast %219 : vector<1x32xf32> to vector<8x32xf32>
    %221 = arith.addf %217, %220 : vector<8x32xf32>
    %222 = arith.addf %205, %221 : vector<8x32xf32>
    %c0_183 = arith.constant 0 : index
    %c0_184 = arith.constant 0 : index
    %c0_185 = arith.constant 0 : index
    %223 = vector.load %arg45[%c0_183, %c0_184, %c0_185] : memref<2x1x32xf32, #tpu.memory_space<vmem>>, vector<1x1x32xf32>
    %224 = vector.shape_cast %223 : vector<1x1x32xf32> to vector<1x32xf32>
    %c0_186 = arith.constant 0 : index
    %c0_187 = arith.constant 0 : index
    %c0_188 = arith.constant 0 : index
    %225 = vector.load %arg44[%c0_186, %c0_187, %c0_188] : memref<2x1x32xf32, #tpu.memory_space<vmem>>, vector<1x1x32xf32>
    %226 = vector.shape_cast %225 : vector<1x1x32xf32> to vector<1x32xf32>
    %cst_189 = arith.constant dense<0.000000e+00> : vector<8xf32>
    %227 = vector.multi_reduction <add>, %222, %cst_189 [1] : vector<8x32xf32> to vector<8xf32>
    %228 = vector.shape_cast %227 : vector<8xf32> to vector<8x1xf32>
    %cst_190 = arith.constant 3.200000e+01 : f32
    %229 = vector.broadcast %cst_190 : f32 to vector<8x1xf32>
    %230 = arith.divf %228, %229 : vector<8x1xf32>
    %231 = vector.broadcast %230 : vector<8x1xf32> to vector<8x32xf32>
    %232 = arith.subf %222, %231 : vector<8x32xf32>
    %233 = arith.mulf %232, %232 : vector<8x32xf32>
    %cst_191 = arith.constant dense<0.000000e+00> : vector<8xf32>
    %234 = vector.multi_reduction <add>, %233, %cst_191 [1] : vector<8x32xf32> to vector<8xf32>
    %235 = vector.shape_cast %234 : vector<8xf32> to vector<8x1xf32>
    %cst_192 = arith.constant 3.200000e+01 : f32
    %236 = vector.broadcast %cst_192 : f32 to vector<8x1xf32>
    %237 = arith.divf %235, %236 : vector<8x1xf32>
    %cst_193 = arith.constant 9.99999974E-6 : f32
    %238 = vector.broadcast %cst_193 : f32 to vector<8x1xf32>
    %239 = arith.addf %237, %238 : vector<8x1xf32>
    %240 = math.rsqrt %239 : vector<8x1xf32>
    %241 = vector.broadcast %240 : vector<8x1xf32> to vector<8x32xf32>
    %242 = arith.mulf %232, %241 : vector<8x32xf32>
    %243 = vector.broadcast %224 : vector<1x32xf32> to vector<8x32xf32>
    %244 = arith.mulf %242, %243 : vector<8x32xf32>
    %245 = vector.broadcast %226 : vector<1x32xf32> to vector<8x32xf32>
    %246 = arith.addf %244, %245 : vector<8x32xf32>
    %c1_194 = arith.constant 1 : index
    %c0_195 = arith.constant 0 : index
    %c0_196 = arith.constant 0 : index
    %247 = vector.load %arg34[%c1_194, %c0_195, %c0_196] : memref<2x1x32xf32, #tpu.memory_space<vmem>>, vector<1x1x32xf32>
    %248 = vector.shape_cast %247 : vector<1x1x32xf32> to vector<1x32xf32>
    %c1_197 = arith.constant 1 : index
    %c0_198 = arith.constant 0 : index
    %c0_199 = arith.constant 0 : index
    %c0_200 = arith.constant 0 : index
    %249 = vector.load %arg40[%c1_197, %c0_198, %c0_199, %c0_200] : memref<2x4x32x8xf32, #tpu.memory_space<vmem>>, vector<1x1x32x8xf32>
    %250 = vector.shape_cast %249 : vector<1x1x32x8xf32> to vector<32x8xf32>
    %cst_201 = arith.constant dense<0.000000e+00> : vector<8x8xf32>
    %251 = tpu.matmul %246, %250, %cst_201 {dimension_numbers = #tpu.dot_dimension_numbers<[1], [0], [0], [1], [0, 0, 1, 1], [], []>} : vector<8x32xf32>, vector<32x8xf32>, vector<8x8xf32> -> vector<8x8xf32>
    %c1_202 = arith.constant 1 : index
    %c0_203 = arith.constant 0 : index
    %c0_204 = arith.constant 0 : index
    %c0_205 = arith.constant 0 : index
    %252 = vector.load %arg35[%c1_202, %c0_203, %c0_204, %c0_205] : memref<2x4x1x8xf32, #tpu.memory_space<vmem>>, vector<1x1x1x8xf32>
    %253 = vector.shape_cast %252 : vector<1x1x1x8xf32> to vector<1x8xf32>
    %254 = vector.broadcast %253 : vector<1x8xf32> to vector<8x8xf32>
    %255 = arith.addf %251, %254 : vector<8x8xf32>
    %cst_206 = arith.constant 0.353553385 : f32
    %256 = vector.broadcast %cst_206 : f32 to vector<8x8xf32>
    %257 = arith.mulf %255, %256 : vector<8x8xf32>
    %c1_207 = arith.constant 1 : index
    %c0_208 = arith.constant 0 : index
    %c0_209 = arith.constant 0 : index
    %c0_210 = arith.constant 0 : index
    %258 = vector.load %arg38[%c1_207, %c0_208, %c0_209, %c0_210] : memref<2x4x32x8xf32, #tpu.memory_space<vmem>>, vector<1x1x32x8xf32>
    %259 = vector.shape_cast %258 : vector<1x1x32x8xf32> to vector<32x8xf32>
    %cst_211 = arith.constant dense<0.000000e+00> : vector<8x8xf32>
    %260 = tpu.matmul %246, %259, %cst_211 {dimension_numbers = #tpu.dot_dimension_numbers<[1], [0], [0], [1], [0, 0, 1, 1], [], []>} : vector<8x32xf32>, vector<32x8xf32>, vector<8x8xf32> -> vector<8x8xf32>
    %c1_212 = arith.constant 1 : index
    %c0_213 = arith.constant 0 : index
    %c0_214 = arith.constant 0 : index
    %c0_215 = arith.constant 0 : index
    %261 = vector.load %arg33[%c1_212, %c0_213, %c0_214, %c0_215] : memref<2x4x1x8xf32, #tpu.memory_space<vmem>>, vector<1x1x1x8xf32>
    %262 = vector.shape_cast %261 : vector<1x1x1x8xf32> to vector<1x8xf32>
    %263 = vector.broadcast %262 : vector<1x8xf32> to vector<8x8xf32>
    %264 = arith.addf %260, %263 : vector<8x8xf32>
    %c1_216 = arith.constant 1 : index
    %c0_217 = arith.constant 0 : index
    %c0_218 = arith.constant 0 : index
    %c0_219 = arith.constant 0 : index
    %265 = vector.load %arg41[%c1_216, %c0_217, %c0_218, %c0_219] : memref<2x4x32x8xf32, #tpu.memory_space<vmem>>, vector<1x1x32x8xf32>
    %266 = vector.shape_cast %265 : vector<1x1x32x8xf32> to vector<32x8xf32>
    %cst_220 = arith.constant dense<0.000000e+00> : vector<8x8xf32>
    %267 = tpu.matmul %246, %266, %cst_220 {dimension_numbers = #tpu.dot_dimension_numbers<[1], [0], [0], [1], [0, 0, 1, 1], [], []>} : vector<8x32xf32>, vector<32x8xf32>, vector<8x8xf32> -> vector<8x8xf32>
    %c1_221 = arith.constant 1 : index
    %c0_222 = arith.constant 0 : index
    %c0_223 = arith.constant 0 : index
    %c0_224 = arith.constant 0 : index
    %268 = vector.load %arg36[%c1_221, %c0_222, %c0_223, %c0_224] : memref<2x4x1x8xf32, #tpu.memory_space<vmem>>, vector<1x1x1x8xf32>
    %269 = vector.shape_cast %268 : vector<1x1x1x8xf32> to vector<1x8xf32>
    %270 = vector.broadcast %269 : vector<1x8xf32> to vector<8x8xf32>
    %271 = arith.addf %267, %270 : vector<8x8xf32>
    %cst_225 = arith.constant dense<0.000000e+00> : vector<8x8xf32>
    %272 = tpu.matmul %257, %264, %cst_225 {dimension_numbers = #tpu.dot_dimension_numbers<[1], [1], [0], [0], [0, 0, 1, 0], [], []>} : vector<8x8xf32>, vector<8x8xf32>, vector<8x8xf32> -> vector<8x8xf32>
    %273 = vector.broadcast %1 : vector<1x8xf32> to vector<8x8xf32>
    %274 = arith.addf %272, %273 : vector<8x8xf32>
    %cst_226 = arith.constant dense<0xFF800000> : vector<8xf32>
    %275 = vector.multi_reduction <maximumf>, %274, %cst_226 [1] : vector<8x8xf32> to vector<8xf32>
    %276 = vector.shape_cast %275 : vector<8xf32> to vector<8x1xf32>
    %277 = vector.broadcast %276 : vector<8x1xf32> to vector<8x8xf32>
    %278 = arith.subf %274, %277 : vector<8x8xf32>
    %279 = math.exp %278 : vector<8x8xf32>
    %cst_227 = arith.constant dense<0.000000e+00> : vector<8xf32>
    %280 = vector.multi_reduction <add>, %279, %cst_227 [1] : vector<8x8xf32> to vector<8xf32>
    %281 = vector.shape_cast %280 : vector<8xf32> to vector<8x1xf32>
    %282 = tpu.reciprocal %281 {approx = true} : vector<8x1xf32> -> vector<8x1xf32>
    %283 = vector.broadcast %282 : vector<8x1xf32> to vector<8x8xf32>
    %284 = arith.mulf %279, %283 : vector<8x8xf32>
    %cst_228 = arith.constant dense<0.000000e+00> : vector<8x8xf32>
    %285 = tpu.matmul %284, %271, %cst_228 {dimension_numbers = #tpu.dot_dimension_numbers<[1], [0], [0], [1], [0, 0, 1, 1], [], []>} : vector<8x8xf32>, vector<8x8xf32>, vector<8x8xf32> -> vector<8x8xf32>
    %c1_229 = arith.constant 1 : index
    %c0_230 = arith.constant 0 : index
    %c0_231 = arith.constant 0 : index
    %c0_232 = arith.constant 0 : index
    %286 = vector.load %arg39[%c1_229, %c0_230, %c0_231, %c0_232] : memref<2x4x8x32xf32, #tpu.memory_space<vmem>>, vector<1x1x8x32xf32>
    %287 = vector.shape_cast %286 : vector<1x1x8x32xf32> to vector<8x32xf32>
    %cst_233 = arith.constant dense<0.000000e+00> : vector<8x32xf32>
    %288 = tpu.matmul %285, %287, %cst_233 {dimension_numbers = #tpu.dot_dimension_numbers<[1], [0], [0], [1], [0, 0, 1, 1], [], []>} : vector<8x8xf32>, vector<8x32xf32>, vector<8x32xf32> -> vector<8x32xf32>
    %289 = vector.broadcast %248 : vector<1x32xf32> to vector<8x32xf32>
    %290 = arith.addf %289, %288 : vector<8x32xf32>
    %c1_234 = arith.constant 1 : index
    %c1_235 = arith.constant 1 : index
    %c0_236 = arith.constant 0 : index
    %c0_237 = arith.constant 0 : index
    %291 = vector.load %arg40[%c1_234, %c1_235, %c0_236, %c0_237] : memref<2x4x32x8xf32, #tpu.memory_space<vmem>>, vector<1x1x32x8xf32>
    %292 = vector.shape_cast %291 : vector<1x1x32x8xf32> to vector<32x8xf32>
    %cst_238 = arith.constant dense<0.000000e+00> : vector<8x8xf32>
    %293 = tpu.matmul %246, %292, %cst_238 {dimension_numbers = #tpu.dot_dimension_numbers<[1], [0], [0], [1], [0, 0, 1, 1], [], []>} : vector<8x32xf32>, vector<32x8xf32>, vector<8x8xf32> -> vector<8x8xf32>
    %c1_239 = arith.constant 1 : index
    %c1_240 = arith.constant 1 : index
    %c0_241 = arith.constant 0 : index
    %c0_242 = arith.constant 0 : index
    %294 = vector.load %arg35[%c1_239, %c1_240, %c0_241, %c0_242] : memref<2x4x1x8xf32, #tpu.memory_space<vmem>>, vector<1x1x1x8xf32>
    %295 = vector.shape_cast %294 : vector<1x1x1x8xf32> to vector<1x8xf32>
    %296 = vector.broadcast %295 : vector<1x8xf32> to vector<8x8xf32>
    %297 = arith.addf %293, %296 : vector<8x8xf32>
    %cst_243 = arith.constant 0.353553385 : f32
    %298 = vector.broadcast %cst_243 : f32 to vector<8x8xf32>
    %299 = arith.mulf %297, %298 : vector<8x8xf32>
    %c1_244 = arith.constant 1 : index
    %c1_245 = arith.constant 1 : index
    %c0_246 = arith.constant 0 : index
    %c0_247 = arith.constant 0 : index
    %300 = vector.load %arg38[%c1_244, %c1_245, %c0_246, %c0_247] : memref<2x4x32x8xf32, #tpu.memory_space<vmem>>, vector<1x1x32x8xf32>
    %301 = vector.shape_cast %300 : vector<1x1x32x8xf32> to vector<32x8xf32>
    %cst_248 = arith.constant dense<0.000000e+00> : vector<8x8xf32>
    %302 = tpu.matmul %246, %301, %cst_248 {dimension_numbers = #tpu.dot_dimension_numbers<[1], [0], [0], [1], [0, 0, 1, 1], [], []>} : vector<8x32xf32>, vector<32x8xf32>, vector<8x8xf32> -> vector<8x8xf32>
    %c1_249 = arith.constant 1 : index
    %c1_250 = arith.constant 1 : index
    %c0_251 = arith.constant 0 : index
    %c0_252 = arith.constant 0 : index
    %303 = vector.load %arg33[%c1_249, %c1_250, %c0_251, %c0_252] : memref<2x4x1x8xf32, #tpu.memory_space<vmem>>, vector<1x1x1x8xf32>
    %304 = vector.shape_cast %303 : vector<1x1x1x8xf32> to vector<1x8xf32>
    %305 = vector.broadcast %304 : vector<1x8xf32> to vector<8x8xf32>
    %306 = arith.addf %302, %305 : vector<8x8xf32>
    %c1_253 = arith.constant 1 : index
    %c1_254 = arith.constant 1 : index
    %c0_255 = arith.constant 0 : index
    %c0_256 = arith.constant 0 : index
    %307 = vector.load %arg41[%c1_253, %c1_254, %c0_255, %c0_256] : memref<2x4x32x8xf32, #tpu.memory_space<vmem>>, vector<1x1x32x8xf32>
    %308 = vector.shape_cast %307 : vector<1x1x32x8xf32> to vector<32x8xf32>
    %cst_257 = arith.constant dense<0.000000e+00> : vector<8x8xf32>
    %309 = tpu.matmul %246, %308, %cst_257 {dimension_numbers = #tpu.dot_dimension_numbers<[1], [0], [0], [1], [0, 0, 1, 1], [], []>} : vector<8x32xf32>, vector<32x8xf32>, vector<8x8xf32> -> vector<8x8xf32>
    %c1_258 = arith.constant 1 : index
    %c1_259 = arith.constant 1 : index
    %c0_260 = arith.constant 0 : index
    %c0_261 = arith.constant 0 : index
    %310 = vector.load %arg36[%c1_258, %c1_259, %c0_260, %c0_261] : memref<2x4x1x8xf32, #tpu.memory_space<vmem>>, vector<1x1x1x8xf32>
    %311 = vector.shape_cast %310 : vector<1x1x1x8xf32> to vector<1x8xf32>
    %312 = vector.broadcast %311 : vector<1x8xf32> to vector<8x8xf32>
    %313 = arith.addf %309, %312 : vector<8x8xf32>
    %cst_262 = arith.constant dense<0.000000e+00> : vector<8x8xf32>
    %314 = tpu.matmul %299, %306, %cst_262 {dimension_numbers = #tpu.dot_dimension_numbers<[1], [1], [0], [0], [0, 0, 1, 0], [], []>} : vector<8x8xf32>, vector<8x8xf32>, vector<8x8xf32> -> vector<8x8xf32>
    %315 = vector.broadcast %1 : vector<1x8xf32> to vector<8x8xf32>
    %316 = arith.addf %314, %315 : vector<8x8xf32>
    %cst_263 = arith.constant dense<0xFF800000> : vector<8xf32>
    %317 = vector.multi_reduction <maximumf>, %316, %cst_263 [1] : vector<8x8xf32> to vector<8xf32>
    %318 = vector.shape_cast %317 : vector<8xf32> to vector<8x1xf32>
    %319 = vector.broadcast %318 : vector<8x1xf32> to vector<8x8xf32>
    %320 = arith.subf %316, %319 : vector<8x8xf32>
    %321 = math.exp %320 : vector<8x8xf32>
    %cst_264 = arith.constant dense<0.000000e+00> : vector<8xf32>
    %322 = vector.multi_reduction <add>, %321, %cst_264 [1] : vector<8x8xf32> to vector<8xf32>
    %323 = vector.shape_cast %322 : vector<8xf32> to vector<8x1xf32>
    %324 = tpu.reciprocal %323 {approx = true} : vector<8x1xf32> -> vector<8x1xf32>
    %325 = vector.broadcast %324 : vector<8x1xf32> to vector<8x8xf32>
    %326 = arith.mulf %321, %325 : vector<8x8xf32>
    %cst_265 = arith.constant dense<0.000000e+00> : vector<8x8xf32>
    %327 = tpu.matmul %326, %313, %cst_265 {dimension_numbers = #tpu.dot_dimension_numbers<[1], [0], [0], [1], [0, 0, 1, 1], [], []>} : vector<8x8xf32>, vector<8x8xf32>, vector<8x8xf32> -> vector<8x8xf32>
    %c1_266 = arith.constant 1 : index
    %c1_267 = arith.constant 1 : index
    %c0_268 = arith.constant 0 : index
    %c0_269 = arith.constant 0 : index
    %328 = vector.load %arg39[%c1_266, %c1_267, %c0_268, %c0_269] : memref<2x4x8x32xf32, #tpu.memory_space<vmem>>, vector<1x1x8x32xf32>
    %329 = vector.shape_cast %328 : vector<1x1x8x32xf32> to vector<8x32xf32>
    %cst_270 = arith.constant dense<0.000000e+00> : vector<8x32xf32>
    %330 = tpu.matmul %327, %329, %cst_270 {dimension_numbers = #tpu.dot_dimension_numbers<[1], [0], [0], [1], [0, 0, 1, 1], [], []>} : vector<8x8xf32>, vector<8x32xf32>, vector<8x32xf32> -> vector<8x32xf32>
    %331 = arith.addf %290, %330 : vector<8x32xf32>
    %c1_271 = arith.constant 1 : index
    %c2_272 = arith.constant 2 : index
    %c0_273 = arith.constant 0 : index
    %c0_274 = arith.constant 0 : index
    %332 = vector.load %arg40[%c1_271, %c2_272, %c0_273, %c0_274] : memref<2x4x32x8xf32, #tpu.memory_space<vmem>>, vector<1x1x32x8xf32>
    %333 = vector.shape_cast %332 : vector<1x1x32x8xf32> to vector<32x8xf32>
    %cst_275 = arith.constant dense<0.000000e+00> : vector<8x8xf32>
    %334 = tpu.matmul %246, %333, %cst_275 {dimension_numbers = #tpu.dot_dimension_numbers<[1], [0], [0], [1], [0, 0, 1, 1], [], []>} : vector<8x32xf32>, vector<32x8xf32>, vector<8x8xf32> -> vector<8x8xf32>
    %c1_276 = arith.constant 1 : index
    %c2_277 = arith.constant 2 : index
    %c0_278 = arith.constant 0 : index
    %c0_279 = arith.constant 0 : index
    %335 = vector.load %arg35[%c1_276, %c2_277, %c0_278, %c0_279] : memref<2x4x1x8xf32, #tpu.memory_space<vmem>>, vector<1x1x1x8xf32>
    %336 = vector.shape_cast %335 : vector<1x1x1x8xf32> to vector<1x8xf32>
    %337 = vector.broadcast %336 : vector<1x8xf32> to vector<8x8xf32>
    %338 = arith.addf %334, %337 : vector<8x8xf32>
    %cst_280 = arith.constant 0.353553385 : f32
    %339 = vector.broadcast %cst_280 : f32 to vector<8x8xf32>
    %340 = arith.mulf %338, %339 : vector<8x8xf32>
    %c1_281 = arith.constant 1 : index
    %c2_282 = arith.constant 2 : index
    %c0_283 = arith.constant 0 : index
    %c0_284 = arith.constant 0 : index
    %341 = vector.load %arg38[%c1_281, %c2_282, %c0_283, %c0_284] : memref<2x4x32x8xf32, #tpu.memory_space<vmem>>, vector<1x1x32x8xf32>
    %342 = vector.shape_cast %341 : vector<1x1x32x8xf32> to vector<32x8xf32>
    %cst_285 = arith.constant dense<0.000000e+00> : vector<8x8xf32>
    %343 = tpu.matmul %246, %342, %cst_285 {dimension_numbers = #tpu.dot_dimension_numbers<[1], [0], [0], [1], [0, 0, 1, 1], [], []>} : vector<8x32xf32>, vector<32x8xf32>, vector<8x8xf32> -> vector<8x8xf32>
    %c1_286 = arith.constant 1 : index
    %c2_287 = arith.constant 2 : index
    %c0_288 = arith.constant 0 : index
    %c0_289 = arith.constant 0 : index
    %344 = vector.load %arg33[%c1_286, %c2_287, %c0_288, %c0_289] : memref<2x4x1x8xf32, #tpu.memory_space<vmem>>, vector<1x1x1x8xf32>
    %345 = vector.shape_cast %344 : vector<1x1x1x8xf32> to vector<1x8xf32>
    %346 = vector.broadcast %345 : vector<1x8xf32> to vector<8x8xf32>
    %347 = arith.addf %343, %346 : vector<8x8xf32>
    %c1_290 = arith.constant 1 : index
    %c2_291 = arith.constant 2 : index
    %c0_292 = arith.constant 0 : index
    %c0_293 = arith.constant 0 : index
    %348 = vector.load %arg41[%c1_290, %c2_291, %c0_292, %c0_293] : memref<2x4x32x8xf32, #tpu.memory_space<vmem>>, vector<1x1x32x8xf32>
    %349 = vector.shape_cast %348 : vector<1x1x32x8xf32> to vector<32x8xf32>
    %cst_294 = arith.constant dense<0.000000e+00> : vector<8x8xf32>
    %350 = tpu.matmul %246, %349, %cst_294 {dimension_numbers = #tpu.dot_dimension_numbers<[1], [0], [0], [1], [0, 0, 1, 1], [], []>} : vector<8x32xf32>, vector<32x8xf32>, vector<8x8xf32> -> vector<8x8xf32>
    %c1_295 = arith.constant 1 : index
    %c2_296 = arith.constant 2 : index
    %c0_297 = arith.constant 0 : index
    %c0_298 = arith.constant 0 : index
    %351 = vector.load %arg36[%c1_295, %c2_296, %c0_297, %c0_298] : memref<2x4x1x8xf32, #tpu.memory_space<vmem>>, vector<1x1x1x8xf32>
    %352 = vector.shape_cast %351 : vector<1x1x1x8xf32> to vector<1x8xf32>
    %353 = vector.broadcast %352 : vector<1x8xf32> to vector<8x8xf32>
    %354 = arith.addf %350, %353 : vector<8x8xf32>
    %cst_299 = arith.constant dense<0.000000e+00> : vector<8x8xf32>
    %355 = tpu.matmul %340, %347, %cst_299 {dimension_numbers = #tpu.dot_dimension_numbers<[1], [1], [0], [0], [0, 0, 1, 0], [], []>} : vector<8x8xf32>, vector<8x8xf32>, vector<8x8xf32> -> vector<8x8xf32>
    %356 = vector.broadcast %1 : vector<1x8xf32> to vector<8x8xf32>
    %357 = arith.addf %355, %356 : vector<8x8xf32>
    %cst_300 = arith.constant dense<0xFF800000> : vector<8xf32>
    %358 = vector.multi_reduction <maximumf>, %357, %cst_300 [1] : vector<8x8xf32> to vector<8xf32>
    %359 = vector.shape_cast %358 : vector<8xf32> to vector<8x1xf32>
    %360 = vector.broadcast %359 : vector<8x1xf32> to vector<8x8xf32>
    %361 = arith.subf %357, %360 : vector<8x8xf32>
    %362 = math.exp %361 : vector<8x8xf32>
    %cst_301 = arith.constant dense<0.000000e+00> : vector<8xf32>
    %363 = vector.multi_reduction <add>, %362, %cst_301 [1] : vector<8x8xf32> to vector<8xf32>
    %364 = vector.shape_cast %363 : vector<8xf32> to vector<8x1xf32>
    %365 = tpu.reciprocal %364 {approx = true} : vector<8x1xf32> -> vector<8x1xf32>
    %366 = vector.broadcast %365 : vector<8x1xf32> to vector<8x8xf32>
    %367 = arith.mulf %362, %366 : vector<8x8xf32>
    %cst_302 = arith.constant dense<0.000000e+00> : vector<8x8xf32>
    %368 = tpu.matmul %367, %354, %cst_302 {dimension_numbers = #tpu.dot_dimension_numbers<[1], [0], [0], [1], [0, 0, 1, 1], [], []>} : vector<8x8xf32>, vector<8x8xf32>, vector<8x8xf32> -> vector<8x8xf32>
    %c1_303 = arith.constant 1 : index
    %c2_304 = arith.constant 2 : index
    %c0_305 = arith.constant 0 : index
    %c0_306 = arith.constant 0 : index
    %369 = vector.load %arg39[%c1_303, %c2_304, %c0_305, %c0_306] : memref<2x4x8x32xf32, #tpu.memory_space<vmem>>, vector<1x1x8x32xf32>
    %370 = vector.shape_cast %369 : vector<1x1x8x32xf32> to vector<8x32xf32>
    %cst_307 = arith.constant dense<0.000000e+00> : vector<8x32xf32>
    %371 = tpu.matmul %368, %370, %cst_307 {dimension_numbers = #tpu.dot_dimension_numbers<[1], [0], [0], [1], [0, 0, 1, 1], [], []>} : vector<8x8xf32>, vector<8x32xf32>, vector<8x32xf32> -> vector<8x32xf32>
    %372 = arith.addf %331, %371 : vector<8x32xf32>
    %c1_308 = arith.constant 1 : index
    %c3_309 = arith.constant 3 : index
    %c0_310 = arith.constant 0 : index
    %c0_311 = arith.constant 0 : index
    %373 = vector.load %arg40[%c1_308, %c3_309, %c0_310, %c0_311] : memref<2x4x32x8xf32, #tpu.memory_space<vmem>>, vector<1x1x32x8xf32>
    %374 = vector.shape_cast %373 : vector<1x1x32x8xf32> to vector<32x8xf32>
    %cst_312 = arith.constant dense<0.000000e+00> : vector<8x8xf32>
    %375 = tpu.matmul %246, %374, %cst_312 {dimension_numbers = #tpu.dot_dimension_numbers<[1], [0], [0], [1], [0, 0, 1, 1], [], []>} : vector<8x32xf32>, vector<32x8xf32>, vector<8x8xf32> -> vector<8x8xf32>
    %c1_313 = arith.constant 1 : index
    %c3_314 = arith.constant 3 : index
    %c0_315 = arith.constant 0 : index
    %c0_316 = arith.constant 0 : index
    %376 = vector.load %arg35[%c1_313, %c3_314, %c0_315, %c0_316] : memref<2x4x1x8xf32, #tpu.memory_space<vmem>>, vector<1x1x1x8xf32>
    %377 = vector.shape_cast %376 : vector<1x1x1x8xf32> to vector<1x8xf32>
    %378 = vector.broadcast %377 : vector<1x8xf32> to vector<8x8xf32>
    %379 = arith.addf %375, %378 : vector<8x8xf32>
    %cst_317 = arith.constant 0.353553385 : f32
    %380 = vector.broadcast %cst_317 : f32 to vector<8x8xf32>
    %381 = arith.mulf %379, %380 : vector<8x8xf32>
    %c1_318 = arith.constant 1 : index
    %c3_319 = arith.constant 3 : index
    %c0_320 = arith.constant 0 : index
    %c0_321 = arith.constant 0 : index
    %382 = vector.load %arg38[%c1_318, %c3_319, %c0_320, %c0_321] : memref<2x4x32x8xf32, #tpu.memory_space<vmem>>, vector<1x1x32x8xf32>
    %383 = vector.shape_cast %382 : vector<1x1x32x8xf32> to vector<32x8xf32>
    %cst_322 = arith.constant dense<0.000000e+00> : vector<8x8xf32>
    %384 = tpu.matmul %246, %383, %cst_322 {dimension_numbers = #tpu.dot_dimension_numbers<[1], [0], [0], [1], [0, 0, 1, 1], [], []>} : vector<8x32xf32>, vector<32x8xf32>, vector<8x8xf32> -> vector<8x8xf32>
    %c1_323 = arith.constant 1 : index
    %c3_324 = arith.constant 3 : index
    %c0_325 = arith.constant 0 : index
    %c0_326 = arith.constant 0 : index
    %385 = vector.load %arg33[%c1_323, %c3_324, %c0_325, %c0_326] : memref<2x4x1x8xf32, #tpu.memory_space<vmem>>, vector<1x1x1x8xf32>
    %386 = vector.shape_cast %385 : vector<1x1x1x8xf32> to vector<1x8xf32>
    %387 = vector.broadcast %386 : vector<1x8xf32> to vector<8x8xf32>
    %388 = arith.addf %384, %387 : vector<8x8xf32>
    %c1_327 = arith.constant 1 : index
    %c3_328 = arith.constant 3 : index
    %c0_329 = arith.constant 0 : index
    %c0_330 = arith.constant 0 : index
    %389 = vector.load %arg41[%c1_327, %c3_328, %c0_329, %c0_330] : memref<2x4x32x8xf32, #tpu.memory_space<vmem>>, vector<1x1x32x8xf32>
    %390 = vector.shape_cast %389 : vector<1x1x32x8xf32> to vector<32x8xf32>
    %cst_331 = arith.constant dense<0.000000e+00> : vector<8x8xf32>
    %391 = tpu.matmul %246, %390, %cst_331 {dimension_numbers = #tpu.dot_dimension_numbers<[1], [0], [0], [1], [0, 0, 1, 1], [], []>} : vector<8x32xf32>, vector<32x8xf32>, vector<8x8xf32> -> vector<8x8xf32>
    %c1_332 = arith.constant 1 : index
    %c3_333 = arith.constant 3 : index
    %c0_334 = arith.constant 0 : index
    %c0_335 = arith.constant 0 : index
    %392 = vector.load %arg36[%c1_332, %c3_333, %c0_334, %c0_335] : memref<2x4x1x8xf32, #tpu.memory_space<vmem>>, vector<1x1x1x8xf32>
    %393 = vector.shape_cast %392 : vector<1x1x1x8xf32> to vector<1x8xf32>
    %394 = vector.broadcast %393 : vector<1x8xf32> to vector<8x8xf32>
    %395 = arith.addf %391, %394 : vector<8x8xf32>
    %cst_336 = arith.constant dense<0.000000e+00> : vector<8x8xf32>
    %396 = tpu.matmul %381, %388, %cst_336 {dimension_numbers = #tpu.dot_dimension_numbers<[1], [1], [0], [0], [0, 0, 1, 0], [], []>} : vector<8x8xf32>, vector<8x8xf32>, vector<8x8xf32> -> vector<8x8xf32>
    %397 = vector.broadcast %1 : vector<1x8xf32> to vector<8x8xf32>
    %398 = arith.addf %396, %397 : vector<8x8xf32>
    %cst_337 = arith.constant dense<0xFF800000> : vector<8xf32>
    %399 = vector.multi_reduction <maximumf>, %398, %cst_337 [1] : vector<8x8xf32> to vector<8xf32>
    %400 = vector.shape_cast %399 : vector<8xf32> to vector<8x1xf32>
    %401 = vector.broadcast %400 : vector<8x1xf32> to vector<8x8xf32>
    %402 = arith.subf %398, %401 : vector<8x8xf32>
    %403 = math.exp %402 : vector<8x8xf32>
    %cst_338 = arith.constant dense<0.000000e+00> : vector<8xf32>
    %404 = vector.multi_reduction <add>, %403, %cst_338 [1] : vector<8x8xf32> to vector<8xf32>
    %405 = vector.shape_cast %404 : vector<8xf32> to vector<8x1xf32>
    %406 = tpu.reciprocal %405 {approx = true} : vector<8x1xf32> -> vector<8x1xf32>
    %407 = vector.broadcast %406 : vector<8x1xf32> to vector<8x8xf32>
    %408 = arith.mulf %403, %407 : vector<8x8xf32>
    %cst_339 = arith.constant dense<0.000000e+00> : vector<8x8xf32>
    %409 = tpu.matmul %408, %395, %cst_339 {dimension_numbers = #tpu.dot_dimension_numbers<[1], [0], [0], [1], [0, 0, 1, 1], [], []>} : vector<8x8xf32>, vector<8x8xf32>, vector<8x8xf32> -> vector<8x8xf32>
    %c1_340 = arith.constant 1 : index
    %c3_341 = arith.constant 3 : index
    %c0_342 = arith.constant 0 : index
    %c0_343 = arith.constant 0 : index
    %410 = vector.load %arg39[%c1_340, %c3_341, %c0_342, %c0_343] : memref<2x4x8x32xf32, #tpu.memory_space<vmem>>, vector<1x1x8x32xf32>
    %411 = vector.shape_cast %410 : vector<1x1x8x32xf32> to vector<8x32xf32>
    %cst_344 = arith.constant dense<0.000000e+00> : vector<8x32xf32>
    %412 = tpu.matmul %409, %411, %cst_344 {dimension_numbers = #tpu.dot_dimension_numbers<[1], [0], [0], [1], [0, 0, 1, 1], [], []>} : vector<8x8xf32>, vector<8x32xf32>, vector<8x32xf32> -> vector<8x32xf32>
    %413 = arith.addf %372, %412 : vector<8x32xf32>
    %414 = arith.addf %246, %413 : vector<8x32xf32>
    %c1_345 = arith.constant 1 : index
    %c0_346 = arith.constant 0 : index
    %c0_347 = arith.constant 0 : index
    %415 = vector.load %arg37[%c1_345, %c0_346, %c0_347] : memref<2x1x32xf32, #tpu.memory_space<vmem>>, vector<1x1x32xf32>
    %416 = vector.shape_cast %415 : vector<1x1x32xf32> to vector<1x32xf32>
    %c1_348 = arith.constant 1 : index
    %c0_349 = arith.constant 0 : index
    %c0_350 = arith.constant 0 : index
    %417 = vector.load %arg32[%c1_348, %c0_349, %c0_350] : memref<2x1x32xf32, #tpu.memory_space<vmem>>, vector<1x1x32xf32>
    %418 = vector.shape_cast %417 : vector<1x1x32xf32> to vector<1x32xf32>
    %cst_351 = arith.constant dense<0.000000e+00> : vector<8xf32>
    %419 = vector.multi_reduction <add>, %414, %cst_351 [1] : vector<8x32xf32> to vector<8xf32>
    %420 = vector.shape_cast %419 : vector<8xf32> to vector<8x1xf32>
    %cst_352 = arith.constant 3.200000e+01 : f32
    %421 = vector.broadcast %cst_352 : f32 to vector<8x1xf32>
    %422 = arith.divf %420, %421 : vector<8x1xf32>
    %423 = vector.broadcast %422 : vector<8x1xf32> to vector<8x32xf32>
    %424 = arith.subf %414, %423 : vector<8x32xf32>
    %425 = arith.mulf %424, %424 : vector<8x32xf32>
    %cst_353 = arith.constant dense<0.000000e+00> : vector<8xf32>
    %426 = vector.multi_reduction <add>, %425, %cst_353 [1] : vector<8x32xf32> to vector<8xf32>
    %427 = vector.shape_cast %426 : vector<8xf32> to vector<8x1xf32>
    %cst_354 = arith.constant 3.200000e+01 : f32
    %428 = vector.broadcast %cst_354 : f32 to vector<8x1xf32>
    %429 = arith.divf %427, %428 : vector<8x1xf32>
    %cst_355 = arith.constant 9.99999974E-6 : f32
    %430 = vector.broadcast %cst_355 : f32 to vector<8x1xf32>
    %431 = arith.addf %429, %430 : vector<8x1xf32>
    %432 = math.rsqrt %431 : vector<8x1xf32>
    %433 = vector.broadcast %432 : vector<8x1xf32> to vector<8x32xf32>
    %434 = arith.mulf %424, %433 : vector<8x32xf32>
    %435 = vector.broadcast %416 : vector<1x32xf32> to vector<8x32xf32>
    %436 = arith.mulf %434, %435 : vector<8x32xf32>
    %437 = vector.broadcast %418 : vector<1x32xf32> to vector<8x32xf32>
    %438 = arith.addf %436, %437 : vector<8x32xf32>
    %c1_356 = arith.constant 1 : index
    %c0_357 = arith.constant 0 : index
    %c0_358 = arith.constant 0 : index
    %439 = vector.load %arg46[%c1_356, %c0_357, %c0_358] : memref<2x32x64xf32, #tpu.memory_space<vmem>>, vector<1x32x64xf32>
    %440 = vector.shape_cast %439 : vector<1x32x64xf32> to vector<32x64xf32>
    %cst_359 = arith.constant dense<0.000000e+00> : vector<8x64xf32>
    %441 = tpu.matmul %438, %440, %cst_359 {dimension_numbers = #tpu.dot_dimension_numbers<[1], [0], [0], [1], [0, 0, 1, 1], [], []>} : vector<8x32xf32>, vector<32x64xf32>, vector<8x64xf32> -> vector<8x64xf32>
    %c1_360 = arith.constant 1 : index
    %c0_361 = arith.constant 0 : index
    %c0_362 = arith.constant 0 : index
    %442 = vector.load %arg42[%c1_360, %c0_361, %c0_362] : memref<2x1x64xf32, #tpu.memory_space<vmem>>, vector<1x1x64xf32>
    %443 = vector.shape_cast %442 : vector<1x1x64xf32> to vector<1x64xf32>
    %444 = vector.broadcast %443 : vector<1x64xf32> to vector<8x64xf32>
    %445 = arith.addf %441, %444 : vector<8x64xf32>
    %cst_363 = arith.constant 0.000000e+00 : f32
    %446 = vector.broadcast %cst_363 : f32 to vector<8x64xf32>
    %447 = arith.maximumf %445, %446 : vector<8x64xf32>
    %c1_364 = arith.constant 1 : index
    %c0_365 = arith.constant 0 : index
    %c0_366 = arith.constant 0 : index
    %448 = vector.load %arg47[%c1_364, %c0_365, %c0_366] : memref<2x64x32xf32, #tpu.memory_space<vmem>>, vector<1x64x32xf32>
    %449 = vector.shape_cast %448 : vector<1x64x32xf32> to vector<64x32xf32>
    %cst_367 = arith.constant dense<0.000000e+00> : vector<8x32xf32>
    %450 = tpu.matmul %447, %449, %cst_367 {dimension_numbers = #tpu.dot_dimension_numbers<[1], [0], [0], [1], [0, 0, 1, 1], [], []>} : vector<8x64xf32>, vector<64x32xf32>, vector<8x32xf32> -> vector<8x32xf32>
    %c1_368 = arith.constant 1 : index
    %c0_369 = arith.constant 0 : index
    %c0_370 = arith.constant 0 : index
    %451 = vector.load %arg43[%c1_368, %c0_369, %c0_370] : memref<2x1x32xf32, #tpu.memory_space<vmem>>, vector<1x1x32xf32>
    %452 = vector.shape_cast %451 : vector<1x1x32xf32> to vector<1x32xf32>
    %453 = vector.broadcast %452 : vector<1x32xf32> to vector<8x32xf32>
    %454 = arith.addf %450, %453 : vector<8x32xf32>
    %455 = arith.addf %438, %454 : vector<8x32xf32>
    %c1_371 = arith.constant 1 : index
    %c0_372 = arith.constant 0 : index
    %c0_373 = arith.constant 0 : index
    %456 = vector.load %arg45[%c1_371, %c0_372, %c0_373] : memref<2x1x32xf32, #tpu.memory_space<vmem>>, vector<1x1x32xf32>
    %457 = vector.shape_cast %456 : vector<1x1x32xf32> to vector<1x32xf32>
    %c1_374 = arith.constant 1 : index
    %c0_375 = arith.constant 0 : index
    %c0_376 = arith.constant 0 : index
    %458 = vector.load %arg44[%c1_374, %c0_375, %c0_376] : memref<2x1x32xf32, #tpu.memory_space<vmem>>, vector<1x1x32xf32>
    %459 = vector.shape_cast %458 : vector<1x1x32xf32> to vector<1x32xf32>
    %cst_377 = arith.constant dense<0.000000e+00> : vector<8xf32>
    %460 = vector.multi_reduction <add>, %455, %cst_377 [1] : vector<8x32xf32> to vector<8xf32>
    %461 = vector.shape_cast %460 : vector<8xf32> to vector<8x1xf32>
    %cst_378 = arith.constant 3.200000e+01 : f32
    %462 = vector.broadcast %cst_378 : f32 to vector<8x1xf32>
    %463 = arith.divf %461, %462 : vector<8x1xf32>
    %464 = vector.broadcast %463 : vector<8x1xf32> to vector<8x32xf32>
    %465 = arith.subf %455, %464 : vector<8x32xf32>
    %466 = arith.mulf %465, %465 : vector<8x32xf32>
    %cst_379 = arith.constant dense<0.000000e+00> : vector<8xf32>
    %467 = vector.multi_reduction <add>, %466, %cst_379 [1] : vector<8x32xf32> to vector<8xf32>
    %468 = vector.shape_cast %467 : vector<8xf32> to vector<8x1xf32>
    %cst_380 = arith.constant 3.200000e+01 : f32
    %469 = vector.broadcast %cst_380 : f32 to vector<8x1xf32>
    %470 = arith.divf %468, %469 : vector<8x1xf32>
    %cst_381 = arith.constant 9.99999974E-6 : f32
    %471 = vector.broadcast %cst_381 : f32 to vector<8x1xf32>
    %472 = arith.addf %470, %471 : vector<8x1xf32>
    %473 = math.rsqrt %472 : vector<8x1xf32>
    %474 = vector.broadcast %473 : vector<8x1xf32> to vector<8x32xf32>
    %475 = arith.mulf %465, %474 : vector<8x32xf32>
    %476 = vector.broadcast %457 : vector<1x32xf32> to vector<8x32xf32>
    %477 = arith.mulf %475, %476 : vector<8x32xf32>
    %478 = vector.broadcast %459 : vector<1x32xf32> to vector<8x32xf32>
    %479 = arith.addf %477, %478 : vector<8x32xf32>
    %c0_382 = arith.constant 0 : index
    %c0_383 = arith.constant 0 : index
    %c0_384 = arith.constant 0 : index
    %480 = vector.load %arg2[%c0_382, %c0_383, %c0_384] : memref<1x8x32xf32, #tpu.memory_space<vmem>>, vector<1x8x32xf32>
    %481 = vector.shape_cast %480 : vector<1x8x32xf32> to vector<8x32xf32>
    %c0_385 = arith.constant 0 : index
    %c0_386 = arith.constant 0 : index
    %c0_387 = arith.constant 0 : index
    %482 = vector.load %arg24[%c0_385, %c0_386, %c0_387] : memref<2x1x32xf32, #tpu.memory_space<vmem>>, vector<1x1x32xf32>
    %483 = vector.shape_cast %482 : vector<1x1x32xf32> to vector<1x32xf32>
    %c0_388 = arith.constant 0 : index
    %c0_389 = arith.constant 0 : index
    %c0_390 = arith.constant 0 : index
    %c0_391 = arith.constant 0 : index
    %484 = vector.load %arg30[%c0_388, %c0_389, %c0_390, %c0_391] : memref<2x4x32x8xf32, #tpu.memory_space<vmem>>, vector<1x1x32x8xf32>
    %485 = vector.shape_cast %484 : vector<1x1x32x8xf32> to vector<32x8xf32>
    %cst_392 = arith.constant dense<0.000000e+00> : vector<8x8xf32>
    %486 = tpu.matmul %481, %485, %cst_392 {dimension_numbers = #tpu.dot_dimension_numbers<[1], [0], [0], [1], [0, 0, 1, 1], [], []>} : vector<8x32xf32>, vector<32x8xf32>, vector<8x8xf32> -> vector<8x8xf32>
    %c0_393 = arith.constant 0 : index
    %c0_394 = arith.constant 0 : index
    %c0_395 = arith.constant 0 : index
    %c0_396 = arith.constant 0 : index
    %487 = vector.load %arg25[%c0_393, %c0_394, %c0_395, %c0_396] : memref<2x4x1x8xf32, #tpu.memory_space<vmem>>, vector<1x1x1x8xf32>
    %488 = vector.shape_cast %487 : vector<1x1x1x8xf32> to vector<1x8xf32>
    %489 = vector.broadcast %488 : vector<1x8xf32> to vector<8x8xf32>
    %490 = arith.addf %486, %489 : vector<8x8xf32>
    %cst_397 = arith.constant 0.353553385 : f32
    %491 = vector.broadcast %cst_397 : f32 to vector<8x8xf32>
    %492 = arith.mulf %490, %491 : vector<8x8xf32>
    %c0_398 = arith.constant 0 : index
    %c0_399 = arith.constant 0 : index
    %c0_400 = arith.constant 0 : index
    %c0_401 = arith.constant 0 : index
    %493 = vector.load %arg28[%c0_398, %c0_399, %c0_400, %c0_401] : memref<2x4x32x8xf32, #tpu.memory_space<vmem>>, vector<1x1x32x8xf32>
    %494 = vector.shape_cast %493 : vector<1x1x32x8xf32> to vector<32x8xf32>
    %cst_402 = arith.constant dense<0.000000e+00> : vector<8x8xf32>
    %495 = tpu.matmul %481, %494, %cst_402 {dimension_numbers = #tpu.dot_dimension_numbers<[1], [0], [0], [1], [0, 0, 1, 1], [], []>} : vector<8x32xf32>, vector<32x8xf32>, vector<8x8xf32> -> vector<8x8xf32>
    %c0_403 = arith.constant 0 : index
    %c0_404 = arith.constant 0 : index
    %c0_405 = arith.constant 0 : index
    %c0_406 = arith.constant 0 : index
    %496 = vector.load %arg23[%c0_403, %c0_404, %c0_405, %c0_406] : memref<2x4x1x8xf32, #tpu.memory_space<vmem>>, vector<1x1x1x8xf32>
    %497 = vector.shape_cast %496 : vector<1x1x1x8xf32> to vector<1x8xf32>
    %498 = vector.broadcast %497 : vector<1x8xf32> to vector<8x8xf32>
    %499 = arith.addf %495, %498 : vector<8x8xf32>
    %c0_407 = arith.constant 0 : index
    %c0_408 = arith.constant 0 : index
    %c0_409 = arith.constant 0 : index
    %c0_410 = arith.constant 0 : index
    %500 = vector.load %arg31[%c0_407, %c0_408, %c0_409, %c0_410] : memref<2x4x32x8xf32, #tpu.memory_space<vmem>>, vector<1x1x32x8xf32>
    %501 = vector.shape_cast %500 : vector<1x1x32x8xf32> to vector<32x8xf32>
    %cst_411 = arith.constant dense<0.000000e+00> : vector<8x8xf32>
    %502 = tpu.matmul %481, %501, %cst_411 {dimension_numbers = #tpu.dot_dimension_numbers<[1], [0], [0], [1], [0, 0, 1, 1], [], []>} : vector<8x32xf32>, vector<32x8xf32>, vector<8x8xf32> -> vector<8x8xf32>
    %c0_412 = arith.constant 0 : index
    %c0_413 = arith.constant 0 : index
    %c0_414 = arith.constant 0 : index
    %c0_415 = arith.constant 0 : index
    %503 = vector.load %arg26[%c0_412, %c0_413, %c0_414, %c0_415] : memref<2x4x1x8xf32, #tpu.memory_space<vmem>>, vector<1x1x1x8xf32>
    %504 = vector.shape_cast %503 : vector<1x1x1x8xf32> to vector<1x8xf32>
    %505 = vector.broadcast %504 : vector<1x8xf32> to vector<8x8xf32>
    %506 = arith.addf %502, %505 : vector<8x8xf32>
    %cst_416 = arith.constant dense<0.000000e+00> : vector<8x8xf32>
    %507 = tpu.matmul %492, %499, %cst_416 {dimension_numbers = #tpu.dot_dimension_numbers<[1], [1], [0], [0], [0, 0, 1, 0], [], []>} : vector<8x8xf32>, vector<8x8xf32>, vector<8x8xf32> -> vector<8x8xf32>
    %508 = arith.addf %507, %11 : vector<8x8xf32>
    %cst_417 = arith.constant dense<0xFF800000> : vector<8xf32>
    %509 = vector.multi_reduction <maximumf>, %508, %cst_417 [1] : vector<8x8xf32> to vector<8xf32>
    %510 = vector.shape_cast %509 : vector<8xf32> to vector<8x1xf32>
    %511 = vector.broadcast %510 : vector<8x1xf32> to vector<8x8xf32>
    %512 = arith.subf %508, %511 : vector<8x8xf32>
    %513 = math.exp %512 : vector<8x8xf32>
    %cst_418 = arith.constant dense<0.000000e+00> : vector<8xf32>
    %514 = vector.multi_reduction <add>, %513, %cst_418 [1] : vector<8x8xf32> to vector<8xf32>
    %515 = vector.shape_cast %514 : vector<8xf32> to vector<8x1xf32>
    %516 = tpu.reciprocal %515 {approx = true} : vector<8x1xf32> -> vector<8x1xf32>
    %517 = vector.broadcast %516 : vector<8x1xf32> to vector<8x8xf32>
    %518 = arith.mulf %513, %517 : vector<8x8xf32>
    %cst_419 = arith.constant dense<0.000000e+00> : vector<8x8xf32>
    %519 = tpu.matmul %518, %506, %cst_419 {dimension_numbers = #tpu.dot_dimension_numbers<[1], [0], [0], [1], [0, 0, 1, 1], [], []>} : vector<8x8xf32>, vector<8x8xf32>, vector<8x8xf32> -> vector<8x8xf32>
    %c0_420 = arith.constant 0 : index
    %c0_421 = arith.constant 0 : index
    %c0_422 = arith.constant 0 : index
    %c0_423 = arith.constant 0 : index
    %520 = vector.load %arg29[%c0_420, %c0_421, %c0_422, %c0_423] : memref<2x4x8x32xf32, #tpu.memory_space<vmem>>, vector<1x1x8x32xf32>
    %521 = vector.shape_cast %520 : vector<1x1x8x32xf32> to vector<8x32xf32>
    %cst_424 = arith.constant dense<0.000000e+00> : vector<8x32xf32>
    %522 = tpu.matmul %519, %521, %cst_424 {dimension_numbers = #tpu.dot_dimension_numbers<[1], [0], [0], [1], [0, 0, 1, 1], [], []>} : vector<8x8xf32>, vector<8x32xf32>, vector<8x32xf32> -> vector<8x32xf32>
    %523 = vector.broadcast %483 : vector<1x32xf32> to vector<8x32xf32>
    %524 = arith.addf %523, %522 : vector<8x32xf32>
    %c0_425 = arith.constant 0 : index
    %c1_426 = arith.constant 1 : index
    %c0_427 = arith.constant 0 : index
    %c0_428 = arith.constant 0 : index
    %525 = vector.load %arg30[%c0_425, %c1_426, %c0_427, %c0_428] : memref<2x4x32x8xf32, #tpu.memory_space<vmem>>, vector<1x1x32x8xf32>
    %526 = vector.shape_cast %525 : vector<1x1x32x8xf32> to vector<32x8xf32>
    %cst_429 = arith.constant dense<0.000000e+00> : vector<8x8xf32>
    %527 = tpu.matmul %481, %526, %cst_429 {dimension_numbers = #tpu.dot_dimension_numbers<[1], [0], [0], [1], [0, 0, 1, 1], [], []>} : vector<8x32xf32>, vector<32x8xf32>, vector<8x8xf32> -> vector<8x8xf32>
    %c0_430 = arith.constant 0 : index
    %c1_431 = arith.constant 1 : index
    %c0_432 = arith.constant 0 : index
    %c0_433 = arith.constant 0 : index
    %528 = vector.load %arg25[%c0_430, %c1_431, %c0_432, %c0_433] : memref<2x4x1x8xf32, #tpu.memory_space<vmem>>, vector<1x1x1x8xf32>
    %529 = vector.shape_cast %528 : vector<1x1x1x8xf32> to vector<1x8xf32>
    %530 = vector.broadcast %529 : vector<1x8xf32> to vector<8x8xf32>
    %531 = arith.addf %527, %530 : vector<8x8xf32>
    %cst_434 = arith.constant 0.353553385 : f32
    %532 = vector.broadcast %cst_434 : f32 to vector<8x8xf32>
    %533 = arith.mulf %531, %532 : vector<8x8xf32>
    %c0_435 = arith.constant 0 : index
    %c1_436 = arith.constant 1 : index
    %c0_437 = arith.constant 0 : index
    %c0_438 = arith.constant 0 : index
    %534 = vector.load %arg28[%c0_435, %c1_436, %c0_437, %c0_438] : memref<2x4x32x8xf32, #tpu.memory_space<vmem>>, vector<1x1x32x8xf32>
    %535 = vector.shape_cast %534 : vector<1x1x32x8xf32> to vector<32x8xf32>
    %cst_439 = arith.constant dense<0.000000e+00> : vector<8x8xf32>
    %536 = tpu.matmul %481, %535, %cst_439 {dimension_numbers = #tpu.dot_dimension_numbers<[1], [0], [0], [1], [0, 0, 1, 1], [], []>} : vector<8x32xf32>, vector<32x8xf32>, vector<8x8xf32> -> vector<8x8xf32>
    %c0_440 = arith.constant 0 : index
    %c1_441 = arith.constant 1 : index
    %c0_442 = arith.constant 0 : index
    %c0_443 = arith.constant 0 : index
    %537 = vector.load %arg23[%c0_440, %c1_441, %c0_442, %c0_443] : memref<2x4x1x8xf32, #tpu.memory_space<vmem>>, vector<1x1x1x8xf32>
    %538 = vector.shape_cast %537 : vector<1x1x1x8xf32> to vector<1x8xf32>
    %539 = vector.broadcast %538 : vector<1x8xf32> to vector<8x8xf32>
    %540 = arith.addf %536, %539 : vector<8x8xf32>
    %c0_444 = arith.constant 0 : index
    %c1_445 = arith.constant 1 : index
    %c0_446 = arith.constant 0 : index
    %c0_447 = arith.constant 0 : index
    %541 = vector.load %arg31[%c0_444, %c1_445, %c0_446, %c0_447] : memref<2x4x32x8xf32, #tpu.memory_space<vmem>>, vector<1x1x32x8xf32>
    %542 = vector.shape_cast %541 : vector<1x1x32x8xf32> to vector<32x8xf32>
    %cst_448 = arith.constant dense<0.000000e+00> : vector<8x8xf32>
    %543 = tpu.matmul %481, %542, %cst_448 {dimension_numbers = #tpu.dot_dimension_numbers<[1], [0], [0], [1], [0, 0, 1, 1], [], []>} : vector<8x32xf32>, vector<32x8xf32>, vector<8x8xf32> -> vector<8x8xf32>
    %c0_449 = arith.constant 0 : index
    %c1_450 = arith.constant 1 : index
    %c0_451 = arith.constant 0 : index
    %c0_452 = arith.constant 0 : index
    %544 = vector.load %arg26[%c0_449, %c1_450, %c0_451, %c0_452] : memref<2x4x1x8xf32, #tpu.memory_space<vmem>>, vector<1x1x1x8xf32>
    %545 = vector.shape_cast %544 : vector<1x1x1x8xf32> to vector<1x8xf32>
    %546 = vector.broadcast %545 : vector<1x8xf32> to vector<8x8xf32>
    %547 = arith.addf %543, %546 : vector<8x8xf32>
    %cst_453 = arith.constant dense<0.000000e+00> : vector<8x8xf32>
    %548 = tpu.matmul %533, %540, %cst_453 {dimension_numbers = #tpu.dot_dimension_numbers<[1], [1], [0], [0], [0, 0, 1, 0], [], []>} : vector<8x8xf32>, vector<8x8xf32>, vector<8x8xf32> -> vector<8x8xf32>
    %549 = arith.addf %548, %11 : vector<8x8xf32>
    %cst_454 = arith.constant dense<0xFF800000> : vector<8xf32>
    %550 = vector.multi_reduction <maximumf>, %549, %cst_454 [1] : vector<8x8xf32> to vector<8xf32>
    %551 = vector.shape_cast %550 : vector<8xf32> to vector<8x1xf32>
    %552 = vector.broadcast %551 : vector<8x1xf32> to vector<8x8xf32>
    %553 = arith.subf %549, %552 : vector<8x8xf32>
    %554 = math.exp %553 : vector<8x8xf32>
    %cst_455 = arith.constant dense<0.000000e+00> : vector<8xf32>
    %555 = vector.multi_reduction <add>, %554, %cst_455 [1] : vector<8x8xf32> to vector<8xf32>
    %556 = vector.shape_cast %555 : vector<8xf32> to vector<8x1xf32>
    %557 = tpu.reciprocal %556 {approx = true} : vector<8x1xf32> -> vector<8x1xf32>
    %558 = vector.broadcast %557 : vector<8x1xf32> to vector<8x8xf32>
    %559 = arith.mulf %554, %558 : vector<8x8xf32>
    %cst_456 = arith.constant dense<0.000000e+00> : vector<8x8xf32>
    %560 = tpu.matmul %559, %547, %cst_456 {dimension_numbers = #tpu.dot_dimension_numbers<[1], [0], [0], [1], [0, 0, 1, 1], [], []>} : vector<8x8xf32>, vector<8x8xf32>, vector<8x8xf32> -> vector<8x8xf32>
    %c0_457 = arith.constant 0 : index
    %c1_458 = arith.constant 1 : index
    %c0_459 = arith.constant 0 : index
    %c0_460 = arith.constant 0 : index
    %561 = vector.load %arg29[%c0_457, %c1_458, %c0_459, %c0_460] : memref<2x4x8x32xf32, #tpu.memory_space<vmem>>, vector<1x1x8x32xf32>
    %562 = vector.shape_cast %561 : vector<1x1x8x32xf32> to vector<8x32xf32>
    %cst_461 = arith.constant dense<0.000000e+00> : vector<8x32xf32>
    %563 = tpu.matmul %560, %562, %cst_461 {dimension_numbers = #tpu.dot_dimension_numbers<[1], [0], [0], [1], [0, 0, 1, 1], [], []>} : vector<8x8xf32>, vector<8x32xf32>, vector<8x32xf32> -> vector<8x32xf32>
    %564 = arith.addf %524, %563 : vector<8x32xf32>
    %c0_462 = arith.constant 0 : index
    %c2_463 = arith.constant 2 : index
    %c0_464 = arith.constant 0 : index
    %c0_465 = arith.constant 0 : index
    %565 = vector.load %arg30[%c0_462, %c2_463, %c0_464, %c0_465] : memref<2x4x32x8xf32, #tpu.memory_space<vmem>>, vector<1x1x32x8xf32>
    %566 = vector.shape_cast %565 : vector<1x1x32x8xf32> to vector<32x8xf32>
    %cst_466 = arith.constant dense<0.000000e+00> : vector<8x8xf32>
    %567 = tpu.matmul %481, %566, %cst_466 {dimension_numbers = #tpu.dot_dimension_numbers<[1], [0], [0], [1], [0, 0, 1, 1], [], []>} : vector<8x32xf32>, vector<32x8xf32>, vector<8x8xf32> -> vector<8x8xf32>
    %c0_467 = arith.constant 0 : index
    %c2_468 = arith.constant 2 : index
    %c0_469 = arith.constant 0 : index
    %c0_470 = arith.constant 0 : index
    %568 = vector.load %arg25[%c0_467, %c2_468, %c0_469, %c0_470] : memref<2x4x1x8xf32, #tpu.memory_space<vmem>>, vector<1x1x1x8xf32>
    %569 = vector.shape_cast %568 : vector<1x1x1x8xf32> to vector<1x8xf32>
    %570 = vector.broadcast %569 : vector<1x8xf32> to vector<8x8xf32>
    %571 = arith.addf %567, %570 : vector<8x8xf32>
    %cst_471 = arith.constant 0.353553385 : f32
    %572 = vector.broadcast %cst_471 : f32 to vector<8x8xf32>
    %573 = arith.mulf %571, %572 : vector<8x8xf32>
    %c0_472 = arith.constant 0 : index
    %c2_473 = arith.constant 2 : index
    %c0_474 = arith.constant 0 : index
    %c0_475 = arith.constant 0 : index
    %574 = vector.load %arg28[%c0_472, %c2_473, %c0_474, %c0_475] : memref<2x4x32x8xf32, #tpu.memory_space<vmem>>, vector<1x1x32x8xf32>
    %575 = vector.shape_cast %574 : vector<1x1x32x8xf32> to vector<32x8xf32>
    %cst_476 = arith.constant dense<0.000000e+00> : vector<8x8xf32>
    %576 = tpu.matmul %481, %575, %cst_476 {dimension_numbers = #tpu.dot_dimension_numbers<[1], [0], [0], [1], [0, 0, 1, 1], [], []>} : vector<8x32xf32>, vector<32x8xf32>, vector<8x8xf32> -> vector<8x8xf32>
    %c0_477 = arith.constant 0 : index
    %c2_478 = arith.constant 2 : index
    %c0_479 = arith.constant 0 : index
    %c0_480 = arith.constant 0 : index
    %577 = vector.load %arg23[%c0_477, %c2_478, %c0_479, %c0_480] : memref<2x4x1x8xf32, #tpu.memory_space<vmem>>, vector<1x1x1x8xf32>
    %578 = vector.shape_cast %577 : vector<1x1x1x8xf32> to vector<1x8xf32>
    %579 = vector.broadcast %578 : vector<1x8xf32> to vector<8x8xf32>
    %580 = arith.addf %576, %579 : vector<8x8xf32>
    %c0_481 = arith.constant 0 : index
    %c2_482 = arith.constant 2 : index
    %c0_483 = arith.constant 0 : index
    %c0_484 = arith.constant 0 : index
    %581 = vector.load %arg31[%c0_481, %c2_482, %c0_483, %c0_484] : memref<2x4x32x8xf32, #tpu.memory_space<vmem>>, vector<1x1x32x8xf32>
    %582 = vector.shape_cast %581 : vector<1x1x32x8xf32> to vector<32x8xf32>
    %cst_485 = arith.constant dense<0.000000e+00> : vector<8x8xf32>
    %583 = tpu.matmul %481, %582, %cst_485 {dimension_numbers = #tpu.dot_dimension_numbers<[1], [0], [0], [1], [0, 0, 1, 1], [], []>} : vector<8x32xf32>, vector<32x8xf32>, vector<8x8xf32> -> vector<8x8xf32>
    %c0_486 = arith.constant 0 : index
    %c2_487 = arith.constant 2 : index
    %c0_488 = arith.constant 0 : index
    %c0_489 = arith.constant 0 : index
    %584 = vector.load %arg26[%c0_486, %c2_487, %c0_488, %c0_489] : memref<2x4x1x8xf32, #tpu.memory_space<vmem>>, vector<1x1x1x8xf32>
    %585 = vector.shape_cast %584 : vector<1x1x1x8xf32> to vector<1x8xf32>
    %586 = vector.broadcast %585 : vector<1x8xf32> to vector<8x8xf32>
    %587 = arith.addf %583, %586 : vector<8x8xf32>
    %cst_490 = arith.constant dense<0.000000e+00> : vector<8x8xf32>
    %588 = tpu.matmul %573, %580, %cst_490 {dimension_numbers = #tpu.dot_dimension_numbers<[1], [1], [0], [0], [0, 0, 1, 0], [], []>} : vector<8x8xf32>, vector<8x8xf32>, vector<8x8xf32> -> vector<8x8xf32>
    %589 = arith.addf %588, %11 : vector<8x8xf32>
    %cst_491 = arith.constant dense<0xFF800000> : vector<8xf32>
    %590 = vector.multi_reduction <maximumf>, %589, %cst_491 [1] : vector<8x8xf32> to vector<8xf32>
    %591 = vector.shape_cast %590 : vector<8xf32> to vector<8x1xf32>
    %592 = vector.broadcast %591 : vector<8x1xf32> to vector<8x8xf32>
    %593 = arith.subf %589, %592 : vector<8x8xf32>
    %594 = math.exp %593 : vector<8x8xf32>
    %cst_492 = arith.constant dense<0.000000e+00> : vector<8xf32>
    %595 = vector.multi_reduction <add>, %594, %cst_492 [1] : vector<8x8xf32> to vector<8xf32>
    %596 = vector.shape_cast %595 : vector<8xf32> to vector<8x1xf32>
    %597 = tpu.reciprocal %596 {approx = true} : vector<8x1xf32> -> vector<8x1xf32>
    %598 = vector.broadcast %597 : vector<8x1xf32> to vector<8x8xf32>
    %599 = arith.mulf %594, %598 : vector<8x8xf32>
    %cst_493 = arith.constant dense<0.000000e+00> : vector<8x8xf32>
    %600 = tpu.matmul %599, %587, %cst_493 {dimension_numbers = #tpu.dot_dimension_numbers<[1], [0], [0], [1], [0, 0, 1, 1], [], []>} : vector<8x8xf32>, vector<8x8xf32>, vector<8x8xf32> -> vector<8x8xf32>
    %c0_494 = arith.constant 0 : index
    %c2_495 = arith.constant 2 : index
    %c0_496 = arith.constant 0 : index
    %c0_497 = arith.constant 0 : index
    %601 = vector.load %arg29[%c0_494, %c2_495, %c0_496, %c0_497] : memref<2x4x8x32xf32, #tpu.memory_space<vmem>>, vector<1x1x8x32xf32>
    %602 = vector.shape_cast %601 : vector<1x1x8x32xf32> to vector<8x32xf32>
    %cst_498 = arith.constant dense<0.000000e+00> : vector<8x32xf32>
    %603 = tpu.matmul %600, %602, %cst_498 {dimension_numbers = #tpu.dot_dimension_numbers<[1], [0], [0], [1], [0, 0, 1, 1], [], []>} : vector<8x8xf32>, vector<8x32xf32>, vector<8x32xf32> -> vector<8x32xf32>
    %604 = arith.addf %564, %603 : vector<8x32xf32>
    %c0_499 = arith.constant 0 : index
    %c3_500 = arith.constant 3 : index
    %c0_501 = arith.constant 0 : index
    %c0_502 = arith.constant 0 : index
    %605 = vector.load %arg30[%c0_499, %c3_500, %c0_501, %c0_502] : memref<2x4x32x8xf32, #tpu.memory_space<vmem>>, vector<1x1x32x8xf32>
    %606 = vector.shape_cast %605 : vector<1x1x32x8xf32> to vector<32x8xf32>
    %cst_503 = arith.constant dense<0.000000e+00> : vector<8x8xf32>
    %607 = tpu.matmul %481, %606, %cst_503 {dimension_numbers = #tpu.dot_dimension_numbers<[1], [0], [0], [1], [0, 0, 1, 1], [], []>} : vector<8x32xf32>, vector<32x8xf32>, vector<8x8xf32> -> vector<8x8xf32>
    %c0_504 = arith.constant 0 : index
    %c3_505 = arith.constant 3 : index
    %c0_506 = arith.constant 0 : index
    %c0_507 = arith.constant 0 : index
    %608 = vector.load %arg25[%c0_504, %c3_505, %c0_506, %c0_507] : memref<2x4x1x8xf32, #tpu.memory_space<vmem>>, vector<1x1x1x8xf32>
    %609 = vector.shape_cast %608 : vector<1x1x1x8xf32> to vector<1x8xf32>
    %610 = vector.broadcast %609 : vector<1x8xf32> to vector<8x8xf32>
    %611 = arith.addf %607, %610 : vector<8x8xf32>
    %cst_508 = arith.constant 0.353553385 : f32
    %612 = vector.broadcast %cst_508 : f32 to vector<8x8xf32>
    %613 = arith.mulf %611, %612 : vector<8x8xf32>
    %c0_509 = arith.constant 0 : index
    %c3_510 = arith.constant 3 : index
    %c0_511 = arith.constant 0 : index
    %c0_512 = arith.constant 0 : index
    %614 = vector.load %arg28[%c0_509, %c3_510, %c0_511, %c0_512] : memref<2x4x32x8xf32, #tpu.memory_space<vmem>>, vector<1x1x32x8xf32>
    %615 = vector.shape_cast %614 : vector<1x1x32x8xf32> to vector<32x8xf32>
    %cst_513 = arith.constant dense<0.000000e+00> : vector<8x8xf32>
    %616 = tpu.matmul %481, %615, %cst_513 {dimension_numbers = #tpu.dot_dimension_numbers<[1], [0], [0], [1], [0, 0, 1, 1], [], []>} : vector<8x32xf32>, vector<32x8xf32>, vector<8x8xf32> -> vector<8x8xf32>
    %c0_514 = arith.constant 0 : index
    %c3_515 = arith.constant 3 : index
    %c0_516 = arith.constant 0 : index
    %c0_517 = arith.constant 0 : index
    %617 = vector.load %arg23[%c0_514, %c3_515, %c0_516, %c0_517] : memref<2x4x1x8xf32, #tpu.memory_space<vmem>>, vector<1x1x1x8xf32>
    %618 = vector.shape_cast %617 : vector<1x1x1x8xf32> to vector<1x8xf32>
    %619 = vector.broadcast %618 : vector<1x8xf32> to vector<8x8xf32>
    %620 = arith.addf %616, %619 : vector<8x8xf32>
    %c0_518 = arith.constant 0 : index
    %c3_519 = arith.constant 3 : index
    %c0_520 = arith.constant 0 : index
    %c0_521 = arith.constant 0 : index
    %621 = vector.load %arg31[%c0_518, %c3_519, %c0_520, %c0_521] : memref<2x4x32x8xf32, #tpu.memory_space<vmem>>, vector<1x1x32x8xf32>
    %622 = vector.shape_cast %621 : vector<1x1x32x8xf32> to vector<32x8xf32>
    %cst_522 = arith.constant dense<0.000000e+00> : vector<8x8xf32>
    %623 = tpu.matmul %481, %622, %cst_522 {dimension_numbers = #tpu.dot_dimension_numbers<[1], [0], [0], [1], [0, 0, 1, 1], [], []>} : vector<8x32xf32>, vector<32x8xf32>, vector<8x8xf32> -> vector<8x8xf32>
    %c0_523 = arith.constant 0 : index
    %c3_524 = arith.constant 3 : index
    %c0_525 = arith.constant 0 : index
    %c0_526 = arith.constant 0 : index
    %624 = vector.load %arg26[%c0_523, %c3_524, %c0_525, %c0_526] : memref<2x4x1x8xf32, #tpu.memory_space<vmem>>, vector<1x1x1x8xf32>
    %625 = vector.shape_cast %624 : vector<1x1x1x8xf32> to vector<1x8xf32>
    %626 = vector.broadcast %625 : vector<1x8xf32> to vector<8x8xf32>
    %627 = arith.addf %623, %626 : vector<8x8xf32>
    %cst_527 = arith.constant dense<0.000000e+00> : vector<8x8xf32>
    %628 = tpu.matmul %613, %620, %cst_527 {dimension_numbers = #tpu.dot_dimension_numbers<[1], [1], [0], [0], [0, 0, 1, 0], [], []>} : vector<8x8xf32>, vector<8x8xf32>, vector<8x8xf32> -> vector<8x8xf32>
    %629 = arith.addf %628, %11 : vector<8x8xf32>
    %cst_528 = arith.constant dense<0xFF800000> : vector<8xf32>
    %630 = vector.multi_reduction <maximumf>, %629, %cst_528 [1] : vector<8x8xf32> to vector<8xf32>
    %631 = vector.shape_cast %630 : vector<8xf32> to vector<8x1xf32>
    %632 = vector.broadcast %631 : vector<8x1xf32> to vector<8x8xf32>
    %633 = arith.subf %629, %632 : vector<8x8xf32>
    %634 = math.exp %633 : vector<8x8xf32>
    %cst_529 = arith.constant dense<0.000000e+00> : vector<8xf32>
    %635 = vector.multi_reduction <add>, %634, %cst_529 [1] : vector<8x8xf32> to vector<8xf32>
    %636 = vector.shape_cast %635 : vector<8xf32> to vector<8x1xf32>
    %637 = tpu.reciprocal %636 {approx = true} : vector<8x1xf32> -> vector<8x1xf32>
    %638 = vector.broadcast %637 : vector<8x1xf32> to vector<8x8xf32>
    %639 = arith.mulf %634, %638 : vector<8x8xf32>
    %cst_530 = arith.constant dense<0.000000e+00> : vector<8x8xf32>
    %640 = tpu.matmul %639, %627, %cst_530 {dimension_numbers = #tpu.dot_dimension_numbers<[1], [0], [0], [1], [0, 0, 1, 1], [], []>} : vector<8x8xf32>, vector<8x8xf32>, vector<8x8xf32> -> vector<8x8xf32>
    %c0_531 = arith.constant 0 : index
    %c3_532 = arith.constant 3 : index
    %c0_533 = arith.constant 0 : index
    %c0_534 = arith.constant 0 : index
    %641 = vector.load %arg29[%c0_531, %c3_532, %c0_533, %c0_534] : memref<2x4x8x32xf32, #tpu.memory_space<vmem>>, vector<1x1x8x32xf32>
    %642 = vector.shape_cast %641 : vector<1x1x8x32xf32> to vector<8x32xf32>
    %cst_535 = arith.constant dense<0.000000e+00> : vector<8x32xf32>
    %643 = tpu.matmul %640, %642, %cst_535 {dimension_numbers = #tpu.dot_dimension_numbers<[1], [0], [0], [1], [0, 0, 1, 1], [], []>} : vector<8x8xf32>, vector<8x32xf32>, vector<8x32xf32> -> vector<8x32xf32>
    %644 = arith.addf %604, %643 : vector<8x32xf32>
    %645 = arith.addf %481, %644 : vector<8x32xf32>
    %c0_536 = arith.constant 0 : index
    %c0_537 = arith.constant 0 : index
    %c0_538 = arith.constant 0 : index
    %646 = vector.load %arg27[%c0_536, %c0_537, %c0_538] : memref<2x1x32xf32, #tpu.memory_space<vmem>>, vector<1x1x32xf32>
    %647 = vector.shape_cast %646 : vector<1x1x32xf32> to vector<1x32xf32>
    %c0_539 = arith.constant 0 : index
    %c0_540 = arith.constant 0 : index
    %c0_541 = arith.constant 0 : index
    %648 = vector.load %arg22[%c0_539, %c0_540, %c0_541] : memref<2x1x32xf32, #tpu.memory_space<vmem>>, vector<1x1x32xf32>
    %649 = vector.shape_cast %648 : vector<1x1x32xf32> to vector<1x32xf32>
    %cst_542 = arith.constant dense<0.000000e+00> : vector<8xf32>
    %650 = vector.multi_reduction <add>, %645, %cst_542 [1] : vector<8x32xf32> to vector<8xf32>
    %651 = vector.shape_cast %650 : vector<8xf32> to vector<8x1xf32>
    %cst_543 = arith.constant 3.200000e+01 : f32
    %652 = vector.broadcast %cst_543 : f32 to vector<8x1xf32>
    %653 = arith.divf %651, %652 : vector<8x1xf32>
    %654 = vector.broadcast %653 : vector<8x1xf32> to vector<8x32xf32>
    %655 = arith.subf %645, %654 : vector<8x32xf32>
    %656 = arith.mulf %655, %655 : vector<8x32xf32>
    %cst_544 = arith.constant dense<0.000000e+00> : vector<8xf32>
    %657 = vector.multi_reduction <add>, %656, %cst_544 [1] : vector<8x32xf32> to vector<8xf32>
    %658 = vector.shape_cast %657 : vector<8xf32> to vector<8x1xf32>
    %cst_545 = arith.constant 3.200000e+01 : f32
    %659 = vector.broadcast %cst_545 : f32 to vector<8x1xf32>
    %660 = arith.divf %658, %659 : vector<8x1xf32>
    %cst_546 = arith.constant 9.99999974E-6 : f32
    %661 = vector.broadcast %cst_546 : f32 to vector<8x1xf32>
    %662 = arith.addf %660, %661 : vector<8x1xf32>
    %663 = math.rsqrt %662 : vector<8x1xf32>
    %664 = vector.broadcast %663 : vector<8x1xf32> to vector<8x32xf32>
    %665 = arith.mulf %655, %664 : vector<8x32xf32>
    %666 = vector.broadcast %647 : vector<1x32xf32> to vector<8x32xf32>
    %667 = arith.mulf %665, %666 : vector<8x32xf32>
    %668 = vector.broadcast %649 : vector<1x32xf32> to vector<8x32xf32>
    %669 = arith.addf %667, %668 : vector<8x32xf32>
    %c0_547 = arith.constant 0 : index
    %c0_548 = arith.constant 0 : index
    %c0_549 = arith.constant 0 : index
    %670 = vector.load %arg8[%c0_547, %c0_548, %c0_549] : memref<2x1x32xf32, #tpu.memory_space<vmem>>, vector<1x1x32xf32>
    %671 = vector.shape_cast %670 : vector<1x1x32xf32> to vector<1x32xf32>
    %c0_550 = arith.constant 0 : index
    %c0_551 = arith.constant 0 : index
    %c0_552 = arith.constant 0 : index
    %c0_553 = arith.constant 0 : index
    %672 = vector.load %arg14[%c0_550, %c0_551, %c0_552, %c0_553] : memref<2x4x32x8xf32, #tpu.memory_space<vmem>>, vector<1x1x32x8xf32>
    %673 = vector.shape_cast %672 : vector<1x1x32x8xf32> to vector<32x8xf32>
    %cst_554 = arith.constant dense<0.000000e+00> : vector<8x8xf32>
    %674 = tpu.matmul %669, %673, %cst_554 {dimension_numbers = #tpu.dot_dimension_numbers<[1], [0], [0], [1], [0, 0, 1, 1], [], []>} : vector<8x32xf32>, vector<32x8xf32>, vector<8x8xf32> -> vector<8x8xf32>
    %c0_555 = arith.constant 0 : index
    %c0_556 = arith.constant 0 : index
    %c0_557 = arith.constant 0 : index
    %c0_558 = arith.constant 0 : index
    %675 = vector.load %arg9[%c0_555, %c0_556, %c0_557, %c0_558] : memref<2x4x1x8xf32, #tpu.memory_space<vmem>>, vector<1x1x1x8xf32>
    %676 = vector.shape_cast %675 : vector<1x1x1x8xf32> to vector<1x8xf32>
    %677 = vector.broadcast %676 : vector<1x8xf32> to vector<8x8xf32>
    %678 = arith.addf %674, %677 : vector<8x8xf32>
    %cst_559 = arith.constant 0.353553385 : f32
    %679 = vector.broadcast %cst_559 : f32 to vector<8x8xf32>
    %680 = arith.mulf %678, %679 : vector<8x8xf32>
    %c0_560 = arith.constant 0 : index
    %c0_561 = arith.constant 0 : index
    %c0_562 = arith.constant 0 : index
    %c0_563 = arith.constant 0 : index
    %681 = vector.load %arg12[%c0_560, %c0_561, %c0_562, %c0_563] : memref<2x4x32x8xf32, #tpu.memory_space<vmem>>, vector<1x1x32x8xf32>
    %682 = vector.shape_cast %681 : vector<1x1x32x8xf32> to vector<32x8xf32>
    %cst_564 = arith.constant dense<0.000000e+00> : vector<8x8xf32>
    %683 = tpu.matmul %479, %682, %cst_564 {dimension_numbers = #tpu.dot_dimension_numbers<[1], [0], [0], [1], [0, 0, 1, 1], [], []>} : vector<8x32xf32>, vector<32x8xf32>, vector<8x8xf32> -> vector<8x8xf32>
    %c0_565 = arith.constant 0 : index
    %c0_566 = arith.constant 0 : index
    %c0_567 = arith.constant 0 : index
    %c0_568 = arith.constant 0 : index
    %684 = vector.load %arg7[%c0_565, %c0_566, %c0_567, %c0_568] : memref<2x4x1x8xf32, #tpu.memory_space<vmem>>, vector<1x1x1x8xf32>
    %685 = vector.shape_cast %684 : vector<1x1x1x8xf32> to vector<1x8xf32>
    %686 = vector.broadcast %685 : vector<1x8xf32> to vector<8x8xf32>
    %687 = arith.addf %683, %686 : vector<8x8xf32>
    %c0_569 = arith.constant 0 : index
    %c0_570 = arith.constant 0 : index
    %c0_571 = arith.constant 0 : index
    %c0_572 = arith.constant 0 : index
    %688 = vector.load %arg15[%c0_569, %c0_570, %c0_571, %c0_572] : memref<2x4x32x8xf32, #tpu.memory_space<vmem>>, vector<1x1x32x8xf32>
    %689 = vector.shape_cast %688 : vector<1x1x32x8xf32> to vector<32x8xf32>
    %cst_573 = arith.constant dense<0.000000e+00> : vector<8x8xf32>
    %690 = tpu.matmul %479, %689, %cst_573 {dimension_numbers = #tpu.dot_dimension_numbers<[1], [0], [0], [1], [0, 0, 1, 1], [], []>} : vector<8x32xf32>, vector<32x8xf32>, vector<8x8xf32> -> vector<8x8xf32>
    %c0_574 = arith.constant 0 : index
    %c0_575 = arith.constant 0 : index
    %c0_576 = arith.constant 0 : index
    %c0_577 = arith.constant 0 : index
    %691 = vector.load %arg10[%c0_574, %c0_575, %c0_576, %c0_577] : memref<2x4x1x8xf32, #tpu.memory_space<vmem>>, vector<1x1x1x8xf32>
    %692 = vector.shape_cast %691 : vector<1x1x1x8xf32> to vector<1x8xf32>
    %693 = vector.broadcast %692 : vector<1x8xf32> to vector<8x8xf32>
    %694 = arith.addf %690, %693 : vector<8x8xf32>
    %cst_578 = arith.constant dense<0.000000e+00> : vector<8x8xf32>
    %695 = tpu.matmul %680, %687, %cst_578 {dimension_numbers = #tpu.dot_dimension_numbers<[1], [1], [0], [0], [0, 0, 1, 0], [], []>} : vector<8x8xf32>, vector<8x8xf32>, vector<8x8xf32> -> vector<8x8xf32>
    %696 = vector.broadcast %1 : vector<1x8xf32> to vector<8x8xf32>
    %697 = arith.addf %695, %696 : vector<8x8xf32>
    %cst_579 = arith.constant dense<0xFF800000> : vector<8xf32>
    %698 = vector.multi_reduction <maximumf>, %697, %cst_579 [1] : vector<8x8xf32> to vector<8xf32>
    %699 = vector.shape_cast %698 : vector<8xf32> to vector<8x1xf32>
    %700 = vector.broadcast %699 : vector<8x1xf32> to vector<8x8xf32>
    %701 = arith.subf %697, %700 : vector<8x8xf32>
    %702 = math.exp %701 : vector<8x8xf32>
    %cst_580 = arith.constant dense<0.000000e+00> : vector<8xf32>
    %703 = vector.multi_reduction <add>, %702, %cst_580 [1] : vector<8x8xf32> to vector<8xf32>
    %704 = vector.shape_cast %703 : vector<8xf32> to vector<8x1xf32>
    %705 = tpu.reciprocal %704 {approx = true} : vector<8x1xf32> -> vector<8x1xf32>
    %706 = vector.broadcast %705 : vector<8x1xf32> to vector<8x8xf32>
    %707 = arith.mulf %702, %706 : vector<8x8xf32>
    %cst_581 = arith.constant dense<0.000000e+00> : vector<8x8xf32>
    %708 = tpu.matmul %707, %694, %cst_581 {dimension_numbers = #tpu.dot_dimension_numbers<[1], [0], [0], [1], [0, 0, 1, 1], [], []>} : vector<8x8xf32>, vector<8x8xf32>, vector<8x8xf32> -> vector<8x8xf32>
    %c0_582 = arith.constant 0 : index
    %c0_583 = arith.constant 0 : index
    %c0_584 = arith.constant 0 : index
    %c0_585 = arith.constant 0 : index
    %709 = vector.load %arg13[%c0_582, %c0_583, %c0_584, %c0_585] : memref<2x4x8x32xf32, #tpu.memory_space<vmem>>, vector<1x1x8x32xf32>
    %710 = vector.shape_cast %709 : vector<1x1x8x32xf32> to vector<8x32xf32>
    %cst_586 = arith.constant dense<0.000000e+00> : vector<8x32xf32>
    %711 = tpu.matmul %708, %710, %cst_586 {dimension_numbers = #tpu.dot_dimension_numbers<[1], [0], [0], [1], [0, 0, 1, 1], [], []>} : vector<8x8xf32>, vector<8x32xf32>, vector<8x32xf32> -> vector<8x32xf32>
    %712 = vector.broadcast %671 : vector<1x32xf32> to vector<8x32xf32>
    %713 = arith.addf %712, %711 : vector<8x32xf32>
    %c0_587 = arith.constant 0 : index
    %c1_588 = arith.constant 1 : index
    %c0_589 = arith.constant 0 : index
    %c0_590 = arith.constant 0 : index
    %714 = vector.load %arg14[%c0_587, %c1_588, %c0_589, %c0_590] : memref<2x4x32x8xf32, #tpu.memory_space<vmem>>, vector<1x1x32x8xf32>
    %715 = vector.shape_cast %714 : vector<1x1x32x8xf32> to vector<32x8xf32>
    %cst_591 = arith.constant dense<0.000000e+00> : vector<8x8xf32>
    %716 = tpu.matmul %669, %715, %cst_591 {dimension_numbers = #tpu.dot_dimension_numbers<[1], [0], [0], [1], [0, 0, 1, 1], [], []>} : vector<8x32xf32>, vector<32x8xf32>, vector<8x8xf32> -> vector<8x8xf32>
    %c0_592 = arith.constant 0 : index
    %c1_593 = arith.constant 1 : index
    %c0_594 = arith.constant 0 : index
    %c0_595 = arith.constant 0 : index
    %717 = vector.load %arg9[%c0_592, %c1_593, %c0_594, %c0_595] : memref<2x4x1x8xf32, #tpu.memory_space<vmem>>, vector<1x1x1x8xf32>
    %718 = vector.shape_cast %717 : vector<1x1x1x8xf32> to vector<1x8xf32>
    %719 = vector.broadcast %718 : vector<1x8xf32> to vector<8x8xf32>
    %720 = arith.addf %716, %719 : vector<8x8xf32>
    %cst_596 = arith.constant 0.353553385 : f32
    %721 = vector.broadcast %cst_596 : f32 to vector<8x8xf32>
    %722 = arith.mulf %720, %721 : vector<8x8xf32>
    %c0_597 = arith.constant 0 : index
    %c1_598 = arith.constant 1 : index
    %c0_599 = arith.constant 0 : index
    %c0_600 = arith.constant 0 : index
    %723 = vector.load %arg12[%c0_597, %c1_598, %c0_599, %c0_600] : memref<2x4x32x8xf32, #tpu.memory_space<vmem>>, vector<1x1x32x8xf32>
    %724 = vector.shape_cast %723 : vector<1x1x32x8xf32> to vector<32x8xf32>
    %cst_601 = arith.constant dense<0.000000e+00> : vector<8x8xf32>
    %725 = tpu.matmul %479, %724, %cst_601 {dimension_numbers = #tpu.dot_dimension_numbers<[1], [0], [0], [1], [0, 0, 1, 1], [], []>} : vector<8x32xf32>, vector<32x8xf32>, vector<8x8xf32> -> vector<8x8xf32>
    %c0_602 = arith.constant 0 : index
    %c1_603 = arith.constant 1 : index
    %c0_604 = arith.constant 0 : index
    %c0_605 = arith.constant 0 : index
    %726 = vector.load %arg7[%c0_602, %c1_603, %c0_604, %c0_605] : memref<2x4x1x8xf32, #tpu.memory_space<vmem>>, vector<1x1x1x8xf32>
    %727 = vector.shape_cast %726 : vector<1x1x1x8xf32> to vector<1x8xf32>
    %728 = vector.broadcast %727 : vector<1x8xf32> to vector<8x8xf32>
    %729 = arith.addf %725, %728 : vector<8x8xf32>
    %c0_606 = arith.constant 0 : index
    %c1_607 = arith.constant 1 : index
    %c0_608 = arith.constant 0 : index
    %c0_609 = arith.constant 0 : index
    %730 = vector.load %arg15[%c0_606, %c1_607, %c0_608, %c0_609] : memref<2x4x32x8xf32, #tpu.memory_space<vmem>>, vector<1x1x32x8xf32>
    %731 = vector.shape_cast %730 : vector<1x1x32x8xf32> to vector<32x8xf32>
    %cst_610 = arith.constant dense<0.000000e+00> : vector<8x8xf32>
    %732 = tpu.matmul %479, %731, %cst_610 {dimension_numbers = #tpu.dot_dimension_numbers<[1], [0], [0], [1], [0, 0, 1, 1], [], []>} : vector<8x32xf32>, vector<32x8xf32>, vector<8x8xf32> -> vector<8x8xf32>
    %c0_611 = arith.constant 0 : index
    %c1_612 = arith.constant 1 : index
    %c0_613 = arith.constant 0 : index
    %c0_614 = arith.constant 0 : index
    %733 = vector.load %arg10[%c0_611, %c1_612, %c0_613, %c0_614] : memref<2x4x1x8xf32, #tpu.memory_space<vmem>>, vector<1x1x1x8xf32>
    %734 = vector.shape_cast %733 : vector<1x1x1x8xf32> to vector<1x8xf32>
    %735 = vector.broadcast %734 : vector<1x8xf32> to vector<8x8xf32>
    %736 = arith.addf %732, %735 : vector<8x8xf32>
    %cst_615 = arith.constant dense<0.000000e+00> : vector<8x8xf32>
    %737 = tpu.matmul %722, %729, %cst_615 {dimension_numbers = #tpu.dot_dimension_numbers<[1], [1], [0], [0], [0, 0, 1, 0], [], []>} : vector<8x8xf32>, vector<8x8xf32>, vector<8x8xf32> -> vector<8x8xf32>
    %738 = vector.broadcast %1 : vector<1x8xf32> to vector<8x8xf32>
    %739 = arith.addf %737, %738 : vector<8x8xf32>
    %cst_616 = arith.constant dense<0xFF800000> : vector<8xf32>
    %740 = vector.multi_reduction <maximumf>, %739, %cst_616 [1] : vector<8x8xf32> to vector<8xf32>
    %741 = vector.shape_cast %740 : vector<8xf32> to vector<8x1xf32>
    %742 = vector.broadcast %741 : vector<8x1xf32> to vector<8x8xf32>
    %743 = arith.subf %739, %742 : vector<8x8xf32>
    %744 = math.exp %743 : vector<8x8xf32>
    %cst_617 = arith.constant dense<0.000000e+00> : vector<8xf32>
    %745 = vector.multi_reduction <add>, %744, %cst_617 [1] : vector<8x8xf32> to vector<8xf32>
    %746 = vector.shape_cast %745 : vector<8xf32> to vector<8x1xf32>
    %747 = tpu.reciprocal %746 {approx = true} : vector<8x1xf32> -> vector<8x1xf32>
    %748 = vector.broadcast %747 : vector<8x1xf32> to vector<8x8xf32>
    %749 = arith.mulf %744, %748 : vector<8x8xf32>
    %cst_618 = arith.constant dense<0.000000e+00> : vector<8x8xf32>
    %750 = tpu.matmul %749, %736, %cst_618 {dimension_numbers = #tpu.dot_dimension_numbers<[1], [0], [0], [1], [0, 0, 1, 1], [], []>} : vector<8x8xf32>, vector<8x8xf32>, vector<8x8xf32> -> vector<8x8xf32>
    %c0_619 = arith.constant 0 : index
    %c1_620 = arith.constant 1 : index
    %c0_621 = arith.constant 0 : index
    %c0_622 = arith.constant 0 : index
    %751 = vector.load %arg13[%c0_619, %c1_620, %c0_621, %c0_622] : memref<2x4x8x32xf32, #tpu.memory_space<vmem>>, vector<1x1x8x32xf32>
    %752 = vector.shape_cast %751 : vector<1x1x8x32xf32> to vector<8x32xf32>
    %cst_623 = arith.constant dense<0.000000e+00> : vector<8x32xf32>
    %753 = tpu.matmul %750, %752, %cst_623 {dimension_numbers = #tpu.dot_dimension_numbers<[1], [0], [0], [1], [0, 0, 1, 1], [], []>} : vector<8x8xf32>, vector<8x32xf32>, vector<8x32xf32> -> vector<8x32xf32>
    %754 = arith.addf %713, %753 : vector<8x32xf32>
    %c0_624 = arith.constant 0 : index
    %c2_625 = arith.constant 2 : index
    %c0_626 = arith.constant 0 : index
    %c0_627 = arith.constant 0 : index
    %755 = vector.load %arg14[%c0_624, %c2_625, %c0_626, %c0_627] : memref<2x4x32x8xf32, #tpu.memory_space<vmem>>, vector<1x1x32x8xf32>
    %756 = vector.shape_cast %755 : vector<1x1x32x8xf32> to vector<32x8xf32>
    %cst_628 = arith.constant dense<0.000000e+00> : vector<8x8xf32>
    %757 = tpu.matmul %669, %756, %cst_628 {dimension_numbers = #tpu.dot_dimension_numbers<[1], [0], [0], [1], [0, 0, 1, 1], [], []>} : vector<8x32xf32>, vector<32x8xf32>, vector<8x8xf32> -> vector<8x8xf32>
    %c0_629 = arith.constant 0 : index
    %c2_630 = arith.constant 2 : index
    %c0_631 = arith.constant 0 : index
    %c0_632 = arith.constant 0 : index
    %758 = vector.load %arg9[%c0_629, %c2_630, %c0_631, %c0_632] : memref<2x4x1x8xf32, #tpu.memory_space<vmem>>, vector<1x1x1x8xf32>
    %759 = vector.shape_cast %758 : vector<1x1x1x8xf32> to vector<1x8xf32>
    %760 = vector.broadcast %759 : vector<1x8xf32> to vector<8x8xf32>
    %761 = arith.addf %757, %760 : vector<8x8xf32>
    %cst_633 = arith.constant 0.353553385 : f32
    %762 = vector.broadcast %cst_633 : f32 to vector<8x8xf32>
    %763 = arith.mulf %761, %762 : vector<8x8xf32>
    %c0_634 = arith.constant 0 : index
    %c2_635 = arith.constant 2 : index
    %c0_636 = arith.constant 0 : index
    %c0_637 = arith.constant 0 : index
    %764 = vector.load %arg12[%c0_634, %c2_635, %c0_636, %c0_637] : memref<2x4x32x8xf32, #tpu.memory_space<vmem>>, vector<1x1x32x8xf32>
    %765 = vector.shape_cast %764 : vector<1x1x32x8xf32> to vector<32x8xf32>
    %cst_638 = arith.constant dense<0.000000e+00> : vector<8x8xf32>
    %766 = tpu.matmul %479, %765, %cst_638 {dimension_numbers = #tpu.dot_dimension_numbers<[1], [0], [0], [1], [0, 0, 1, 1], [], []>} : vector<8x32xf32>, vector<32x8xf32>, vector<8x8xf32> -> vector<8x8xf32>
    %c0_639 = arith.constant 0 : index
    %c2_640 = arith.constant 2 : index
    %c0_641 = arith.constant 0 : index
    %c0_642 = arith.constant 0 : index
    %767 = vector.load %arg7[%c0_639, %c2_640, %c0_641, %c0_642] : memref<2x4x1x8xf32, #tpu.memory_space<vmem>>, vector<1x1x1x8xf32>
    %768 = vector.shape_cast %767 : vector<1x1x1x8xf32> to vector<1x8xf32>
    %769 = vector.broadcast %768 : vector<1x8xf32> to vector<8x8xf32>
    %770 = arith.addf %766, %769 : vector<8x8xf32>
    %c0_643 = arith.constant 0 : index
    %c2_644 = arith.constant 2 : index
    %c0_645 = arith.constant 0 : index
    %c0_646 = arith.constant 0 : index
    %771 = vector.load %arg15[%c0_643, %c2_644, %c0_645, %c0_646] : memref<2x4x32x8xf32, #tpu.memory_space<vmem>>, vector<1x1x32x8xf32>
    %772 = vector.shape_cast %771 : vector<1x1x32x8xf32> to vector<32x8xf32>
    %cst_647 = arith.constant dense<0.000000e+00> : vector<8x8xf32>
    %773 = tpu.matmul %479, %772, %cst_647 {dimension_numbers = #tpu.dot_dimension_numbers<[1], [0], [0], [1], [0, 0, 1, 1], [], []>} : vector<8x32xf32>, vector<32x8xf32>, vector<8x8xf32> -> vector<8x8xf32>
    %c0_648 = arith.constant 0 : index
    %c2_649 = arith.constant 2 : index
    %c0_650 = arith.constant 0 : index
    %c0_651 = arith.constant 0 : index
    %774 = vector.load %arg10[%c0_648, %c2_649, %c0_650, %c0_651] : memref<2x4x1x8xf32, #tpu.memory_space<vmem>>, vector<1x1x1x8xf32>
    %775 = vector.shape_cast %774 : vector<1x1x1x8xf32> to vector<1x8xf32>
    %776 = vector.broadcast %775 : vector<1x8xf32> to vector<8x8xf32>
    %777 = arith.addf %773, %776 : vector<8x8xf32>
    %cst_652 = arith.constant dense<0.000000e+00> : vector<8x8xf32>
    %778 = tpu.matmul %763, %770, %cst_652 {dimension_numbers = #tpu.dot_dimension_numbers<[1], [1], [0], [0], [0, 0, 1, 0], [], []>} : vector<8x8xf32>, vector<8x8xf32>, vector<8x8xf32> -> vector<8x8xf32>
    %779 = vector.broadcast %1 : vector<1x8xf32> to vector<8x8xf32>
    %780 = arith.addf %778, %779 : vector<8x8xf32>
    %cst_653 = arith.constant dense<0xFF800000> : vector<8xf32>
    %781 = vector.multi_reduction <maximumf>, %780, %cst_653 [1] : vector<8x8xf32> to vector<8xf32>
    %782 = vector.shape_cast %781 : vector<8xf32> to vector<8x1xf32>
    %783 = vector.broadcast %782 : vector<8x1xf32> to vector<8x8xf32>
    %784 = arith.subf %780, %783 : vector<8x8xf32>
    %785 = math.exp %784 : vector<8x8xf32>
    %cst_654 = arith.constant dense<0.000000e+00> : vector<8xf32>
    %786 = vector.multi_reduction <add>, %785, %cst_654 [1] : vector<8x8xf32> to vector<8xf32>
    %787 = vector.shape_cast %786 : vector<8xf32> to vector<8x1xf32>
    %788 = tpu.reciprocal %787 {approx = true} : vector<8x1xf32> -> vector<8x1xf32>
    %789 = vector.broadcast %788 : vector<8x1xf32> to vector<8x8xf32>
    %790 = arith.mulf %785, %789 : vector<8x8xf32>
    %cst_655 = arith.constant dense<0.000000e+00> : vector<8x8xf32>
    %791 = tpu.matmul %790, %777, %cst_655 {dimension_numbers = #tpu.dot_dimension_numbers<[1], [0], [0], [1], [0, 0, 1, 1], [], []>} : vector<8x8xf32>, vector<8x8xf32>, vector<8x8xf32> -> vector<8x8xf32>
    %c0_656 = arith.constant 0 : index
    %c2_657 = arith.constant 2 : index
    %c0_658 = arith.constant 0 : index
    %c0_659 = arith.constant 0 : index
    %792 = vector.load %arg13[%c0_656, %c2_657, %c0_658, %c0_659] : memref<2x4x8x32xf32, #tpu.memory_space<vmem>>, vector<1x1x8x32xf32>
    %793 = vector.shape_cast %792 : vector<1x1x8x32xf32> to vector<8x32xf32>
    %cst_660 = arith.constant dense<0.000000e+00> : vector<8x32xf32>
    %794 = tpu.matmul %791, %793, %cst_660 {dimension_numbers = #tpu.dot_dimension_numbers<[1], [0], [0], [1], [0, 0, 1, 1], [], []>} : vector<8x8xf32>, vector<8x32xf32>, vector<8x32xf32> -> vector<8x32xf32>
    %795 = arith.addf %754, %794 : vector<8x32xf32>
    %c0_661 = arith.constant 0 : index
    %c3_662 = arith.constant 3 : index
    %c0_663 = arith.constant 0 : index
    %c0_664 = arith.constant 0 : index
    %796 = vector.load %arg14[%c0_661, %c3_662, %c0_663, %c0_664] : memref<2x4x32x8xf32, #tpu.memory_space<vmem>>, vector<1x1x32x8xf32>
    %797 = vector.shape_cast %796 : vector<1x1x32x8xf32> to vector<32x8xf32>
    %cst_665 = arith.constant dense<0.000000e+00> : vector<8x8xf32>
    %798 = tpu.matmul %669, %797, %cst_665 {dimension_numbers = #tpu.dot_dimension_numbers<[1], [0], [0], [1], [0, 0, 1, 1], [], []>} : vector<8x32xf32>, vector<32x8xf32>, vector<8x8xf32> -> vector<8x8xf32>
    %c0_666 = arith.constant 0 : index
    %c3_667 = arith.constant 3 : index
    %c0_668 = arith.constant 0 : index
    %c0_669 = arith.constant 0 : index
    %799 = vector.load %arg9[%c0_666, %c3_667, %c0_668, %c0_669] : memref<2x4x1x8xf32, #tpu.memory_space<vmem>>, vector<1x1x1x8xf32>
    %800 = vector.shape_cast %799 : vector<1x1x1x8xf32> to vector<1x8xf32>
    %801 = vector.broadcast %800 : vector<1x8xf32> to vector<8x8xf32>
    %802 = arith.addf %798, %801 : vector<8x8xf32>
    %cst_670 = arith.constant 0.353553385 : f32
    %803 = vector.broadcast %cst_670 : f32 to vector<8x8xf32>
    %804 = arith.mulf %802, %803 : vector<8x8xf32>
    %c0_671 = arith.constant 0 : index
    %c3_672 = arith.constant 3 : index
    %c0_673 = arith.constant 0 : index
    %c0_674 = arith.constant 0 : index
    %805 = vector.load %arg12[%c0_671, %c3_672, %c0_673, %c0_674] : memref<2x4x32x8xf32, #tpu.memory_space<vmem>>, vector<1x1x32x8xf32>
    %806 = vector.shape_cast %805 : vector<1x1x32x8xf32> to vector<32x8xf32>
    %cst_675 = arith.constant dense<0.000000e+00> : vector<8x8xf32>
    %807 = tpu.matmul %479, %806, %cst_675 {dimension_numbers = #tpu.dot_dimension_numbers<[1], [0], [0], [1], [0, 0, 1, 1], [], []>} : vector<8x32xf32>, vector<32x8xf32>, vector<8x8xf32> -> vector<8x8xf32>
    %c0_676 = arith.constant 0 : index
    %c3_677 = arith.constant 3 : index
    %c0_678 = arith.constant 0 : index
    %c0_679 = arith.constant 0 : index
    %808 = vector.load %arg7[%c0_676, %c3_677, %c0_678, %c0_679] : memref<2x4x1x8xf32, #tpu.memory_space<vmem>>, vector<1x1x1x8xf32>
    %809 = vector.shape_cast %808 : vector<1x1x1x8xf32> to vector<1x8xf32>
    %810 = vector.broadcast %809 : vector<1x8xf32> to vector<8x8xf32>
    %811 = arith.addf %807, %810 : vector<8x8xf32>
    %c0_680 = arith.constant 0 : index
    %c3_681 = arith.constant 3 : index
    %c0_682 = arith.constant 0 : index
    %c0_683 = arith.constant 0 : index
    %812 = vector.load %arg15[%c0_680, %c3_681, %c0_682, %c0_683] : memref<2x4x32x8xf32, #tpu.memory_space<vmem>>, vector<1x1x32x8xf32>
    %813 = vector.shape_cast %812 : vector<1x1x32x8xf32> to vector<32x8xf32>
    %cst_684 = arith.constant dense<0.000000e+00> : vector<8x8xf32>
    %814 = tpu.matmul %479, %813, %cst_684 {dimension_numbers = #tpu.dot_dimension_numbers<[1], [0], [0], [1], [0, 0, 1, 1], [], []>} : vector<8x32xf32>, vector<32x8xf32>, vector<8x8xf32> -> vector<8x8xf32>
    %c0_685 = arith.constant 0 : index
    %c3_686 = arith.constant 3 : index
    %c0_687 = arith.constant 0 : index
    %c0_688 = arith.constant 0 : index
    %815 = vector.load %arg10[%c0_685, %c3_686, %c0_687, %c0_688] : memref<2x4x1x8xf32, #tpu.memory_space<vmem>>, vector<1x1x1x8xf32>
    %816 = vector.shape_cast %815 : vector<1x1x1x8xf32> to vector<1x8xf32>
    %817 = vector.broadcast %816 : vector<1x8xf32> to vector<8x8xf32>
    %818 = arith.addf %814, %817 : vector<8x8xf32>
    %cst_689 = arith.constant dense<0.000000e+00> : vector<8x8xf32>
    %819 = tpu.matmul %804, %811, %cst_689 {dimension_numbers = #tpu.dot_dimension_numbers<[1], [1], [0], [0], [0, 0, 1, 0], [], []>} : vector<8x8xf32>, vector<8x8xf32>, vector<8x8xf32> -> vector<8x8xf32>
    %820 = vector.broadcast %1 : vector<1x8xf32> to vector<8x8xf32>
    %821 = arith.addf %819, %820 : vector<8x8xf32>
    %cst_690 = arith.constant dense<0xFF800000> : vector<8xf32>
    %822 = vector.multi_reduction <maximumf>, %821, %cst_690 [1] : vector<8x8xf32> to vector<8xf32>
    %823 = vector.shape_cast %822 : vector<8xf32> to vector<8x1xf32>
    %824 = vector.broadcast %823 : vector<8x1xf32> to vector<8x8xf32>
    %825 = arith.subf %821, %824 : vector<8x8xf32>
    %826 = math.exp %825 : vector<8x8xf32>
    %cst_691 = arith.constant dense<0.000000e+00> : vector<8xf32>
    %827 = vector.multi_reduction <add>, %826, %cst_691 [1] : vector<8x8xf32> to vector<8xf32>
    %828 = vector.shape_cast %827 : vector<8xf32> to vector<8x1xf32>
    %829 = tpu.reciprocal %828 {approx = true} : vector<8x1xf32> -> vector<8x1xf32>
    %830 = vector.broadcast %829 : vector<8x1xf32> to vector<8x8xf32>
    %831 = arith.mulf %826, %830 : vector<8x8xf32>
    %cst_692 = arith.constant dense<0.000000e+00> : vector<8x8xf32>
    %832 = tpu.matmul %831, %818, %cst_692 {dimension_numbers = #tpu.dot_dimension_numbers<[1], [0], [0], [1], [0, 0, 1, 1], [], []>} : vector<8x8xf32>, vector<8x8xf32>, vector<8x8xf32> -> vector<8x8xf32>
    %c0_693 = arith.constant 0 : index
    %c3_694 = arith.constant 3 : index
    %c0_695 = arith.constant 0 : index
    %c0_696 = arith.constant 0 : index
    %833 = vector.load %arg13[%c0_693, %c3_694, %c0_695, %c0_696] : memref<2x4x8x32xf32, #tpu.memory_space<vmem>>, vector<1x1x8x32xf32>
    %834 = vector.shape_cast %833 : vector<1x1x8x32xf32> to vector<8x32xf32>
    %cst_697 = arith.constant dense<0.000000e+00> : vector<8x32xf32>
    %835 = tpu.matmul %832, %834, %cst_697 {dimension_numbers = #tpu.dot_dimension_numbers<[1], [0], [0], [1], [0, 0, 1, 1], [], []>} : vector<8x8xf32>, vector<8x32xf32>, vector<8x32xf32> -> vector<8x32xf32>
    %836 = arith.addf %795, %835 : vector<8x32xf32>
    %837 = arith.addf %669, %836 : vector<8x32xf32>
    %c0_698 = arith.constant 0 : index
    %c0_699 = arith.constant 0 : index
    %c0_700 = arith.constant 0 : index
    %838 = vector.load %arg11[%c0_698, %c0_699, %c0_700] : memref<2x1x32xf32, #tpu.memory_space<vmem>>, vector<1x1x32xf32>
    %839 = vector.shape_cast %838 : vector<1x1x32xf32> to vector<1x32xf32>
    %c0_701 = arith.constant 0 : index
    %c0_702 = arith.constant 0 : index
    %c0_703 = arith.constant 0 : index
    %840 = vector.load %arg6[%c0_701, %c0_702, %c0_703] : memref<2x1x32xf32, #tpu.memory_space<vmem>>, vector<1x1x32xf32>
    %841 = vector.shape_cast %840 : vector<1x1x32xf32> to vector<1x32xf32>
    %cst_704 = arith.constant dense<0.000000e+00> : vector<8xf32>
    %842 = vector.multi_reduction <add>, %837, %cst_704 [1] : vector<8x32xf32> to vector<8xf32>
    %843 = vector.shape_cast %842 : vector<8xf32> to vector<8x1xf32>
    %cst_705 = arith.constant 3.200000e+01 : f32
    %844 = vector.broadcast %cst_705 : f32 to vector<8x1xf32>
    %845 = arith.divf %843, %844 : vector<8x1xf32>
    %846 = vector.broadcast %845 : vector<8x1xf32> to vector<8x32xf32>
    %847 = arith.subf %837, %846 : vector<8x32xf32>
    %848 = arith.mulf %847, %847 : vector<8x32xf32>
    %cst_706 = arith.constant dense<0.000000e+00> : vector<8xf32>
    %849 = vector.multi_reduction <add>, %848, %cst_706 [1] : vector<8x32xf32> to vector<8xf32>
    %850 = vector.shape_cast %849 : vector<8xf32> to vector<8x1xf32>
    %cst_707 = arith.constant 3.200000e+01 : f32
    %851 = vector.broadcast %cst_707 : f32 to vector<8x1xf32>
    %852 = arith.divf %850, %851 : vector<8x1xf32>
    %cst_708 = arith.constant 9.99999974E-6 : f32
    %853 = vector.broadcast %cst_708 : f32 to vector<8x1xf32>
    %854 = arith.addf %852, %853 : vector<8x1xf32>
    %855 = math.rsqrt %854 : vector<8x1xf32>
    %856 = vector.broadcast %855 : vector<8x1xf32> to vector<8x32xf32>
    %857 = arith.mulf %847, %856 : vector<8x32xf32>
    %858 = vector.broadcast %839 : vector<1x32xf32> to vector<8x32xf32>
    %859 = arith.mulf %857, %858 : vector<8x32xf32>
    %860 = vector.broadcast %841 : vector<1x32xf32> to vector<8x32xf32>
    %861 = arith.addf %859, %860 : vector<8x32xf32>
    %c0_709 = arith.constant 0 : index
    %c0_710 = arith.constant 0 : index
    %c0_711 = arith.constant 0 : index
    %862 = vector.load %arg20[%c0_709, %c0_710, %c0_711] : memref<2x32x64xf32, #tpu.memory_space<vmem>>, vector<1x32x64xf32>
    %863 = vector.shape_cast %862 : vector<1x32x64xf32> to vector<32x64xf32>
    %cst_712 = arith.constant dense<0.000000e+00> : vector<8x64xf32>
    %864 = tpu.matmul %861, %863, %cst_712 {dimension_numbers = #tpu.dot_dimension_numbers<[1], [0], [0], [1], [0, 0, 1, 1], [], []>} : vector<8x32xf32>, vector<32x64xf32>, vector<8x64xf32> -> vector<8x64xf32>
    %c0_713 = arith.constant 0 : index
    %c0_714 = arith.constant 0 : index
    %c0_715 = arith.constant 0 : index
    %865 = vector.load %arg16[%c0_713, %c0_714, %c0_715] : memref<2x1x64xf32, #tpu.memory_space<vmem>>, vector<1x1x64xf32>
    %866 = vector.shape_cast %865 : vector<1x1x64xf32> to vector<1x64xf32>
    %867 = vector.broadcast %866 : vector<1x64xf32> to vector<8x64xf32>
    %868 = arith.addf %864, %867 : vector<8x64xf32>
    %cst_716 = arith.constant 0.000000e+00 : f32
    %869 = vector.broadcast %cst_716 : f32 to vector<8x64xf32>
    %870 = arith.maximumf %868, %869 : vector<8x64xf32>
    %c0_717 = arith.constant 0 : index
    %c0_718 = arith.constant 0 : index
    %c0_719 = arith.constant 0 : index
    %871 = vector.load %arg21[%c0_717, %c0_718, %c0_719] : memref<2x64x32xf32, #tpu.memory_space<vmem>>, vector<1x64x32xf32>
    %872 = vector.shape_cast %871 : vector<1x64x32xf32> to vector<64x32xf32>
    %cst_720 = arith.constant dense<0.000000e+00> : vector<8x32xf32>
    %873 = tpu.matmul %870, %872, %cst_720 {dimension_numbers = #tpu.dot_dimension_numbers<[1], [0], [0], [1], [0, 0, 1, 1], [], []>} : vector<8x64xf32>, vector<64x32xf32>, vector<8x32xf32> -> vector<8x32xf32>
    %c0_721 = arith.constant 0 : index
    %c0_722 = arith.constant 0 : index
    %c0_723 = arith.constant 0 : index
    %874 = vector.load %arg17[%c0_721, %c0_722, %c0_723] : memref<2x1x32xf32, #tpu.memory_space<vmem>>, vector<1x1x32xf32>
    %875 = vector.shape_cast %874 : vector<1x1x32xf32> to vector<1x32xf32>
    %876 = vector.broadcast %875 : vector<1x32xf32> to vector<8x32xf32>
    %877 = arith.addf %873, %876 : vector<8x32xf32>
    %878 = arith.addf %861, %877 : vector<8x32xf32>
    %c0_724 = arith.constant 0 : index
    %c0_725 = arith.constant 0 : index
    %c0_726 = arith.constant 0 : index
    %879 = vector.load %arg19[%c0_724, %c0_725, %c0_726] : memref<2x1x32xf32, #tpu.memory_space<vmem>>, vector<1x1x32xf32>
    %880 = vector.shape_cast %879 : vector<1x1x32xf32> to vector<1x32xf32>
    %c0_727 = arith.constant 0 : index
    %c0_728 = arith.constant 0 : index
    %c0_729 = arith.constant 0 : index
    %881 = vector.load %arg18[%c0_727, %c0_728, %c0_729] : memref<2x1x32xf32, #tpu.memory_space<vmem>>, vector<1x1x32xf32>
    %882 = vector.shape_cast %881 : vector<1x1x32xf32> to vector<1x32xf32>
    %cst_730 = arith.constant dense<0.000000e+00> : vector<8xf32>
    %883 = vector.multi_reduction <add>, %878, %cst_730 [1] : vector<8x32xf32> to vector<8xf32>
    %884 = vector.shape_cast %883 : vector<8xf32> to vector<8x1xf32>
    %cst_731 = arith.constant 3.200000e+01 : f32
    %885 = vector.broadcast %cst_731 : f32 to vector<8x1xf32>
    %886 = arith.divf %884, %885 : vector<8x1xf32>
    %887 = vector.broadcast %886 : vector<8x1xf32> to vector<8x32xf32>
    %888 = arith.subf %878, %887 : vector<8x32xf32>
    %889 = arith.mulf %888, %888 : vector<8x32xf32>
    %cst_732 = arith.constant dense<0.000000e+00> : vector<8xf32>
    %890 = vector.multi_reduction <add>, %889, %cst_732 [1] : vector<8x32xf32> to vector<8xf32>
    %891 = vector.shape_cast %890 : vector<8xf32> to vector<8x1xf32>
    %cst_733 = arith.constant 3.200000e+01 : f32
    %892 = vector.broadcast %cst_733 : f32 to vector<8x1xf32>
    %893 = arith.divf %891, %892 : vector<8x1xf32>
    %cst_734 = arith.constant 9.99999974E-6 : f32
    %894 = vector.broadcast %cst_734 : f32 to vector<8x1xf32>
    %895 = arith.addf %893, %894 : vector<8x1xf32>
    %896 = math.rsqrt %895 : vector<8x1xf32>
    %897 = vector.broadcast %896 : vector<8x1xf32> to vector<8x32xf32>
    %898 = arith.mulf %888, %897 : vector<8x32xf32>
    %899 = vector.broadcast %880 : vector<1x32xf32> to vector<8x32xf32>
    %900 = arith.mulf %898, %899 : vector<8x32xf32>
    %901 = vector.broadcast %882 : vector<1x32xf32> to vector<8x32xf32>
    %902 = arith.addf %900, %901 : vector<8x32xf32>
    %c1_735 = arith.constant 1 : index
    %c0_736 = arith.constant 0 : index
    %c0_737 = arith.constant 0 : index
    %903 = vector.load %arg24[%c1_735, %c0_736, %c0_737] : memref<2x1x32xf32, #tpu.memory_space<vmem>>, vector<1x1x32xf32>
    %904 = vector.shape_cast %903 : vector<1x1x32xf32> to vector<1x32xf32>
    %c1_738 = arith.constant 1 : index
    %c0_739 = arith.constant 0 : index
    %c0_740 = arith.constant 0 : index
    %c0_741 = arith.constant 0 : index
    %905 = vector.load %arg30[%c1_738, %c0_739, %c0_740, %c0_741] : memref<2x4x32x8xf32, #tpu.memory_space<vmem>>, vector<1x1x32x8xf32>
    %906 = vector.shape_cast %905 : vector<1x1x32x8xf32> to vector<32x8xf32>
    %cst_742 = arith.constant dense<0.000000e+00> : vector<8x8xf32>
    %907 = tpu.matmul %902, %906, %cst_742 {dimension_numbers = #tpu.dot_dimension_numbers<[1], [0], [0], [1], [0, 0, 1, 1], [], []>} : vector<8x32xf32>, vector<32x8xf32>, vector<8x8xf32> -> vector<8x8xf32>
    %c1_743 = arith.constant 1 : index
    %c0_744 = arith.constant 0 : index
    %c0_745 = arith.constant 0 : index
    %c0_746 = arith.constant 0 : index
    %908 = vector.load %arg25[%c1_743, %c0_744, %c0_745, %c0_746] : memref<2x4x1x8xf32, #tpu.memory_space<vmem>>, vector<1x1x1x8xf32>
    %909 = vector.shape_cast %908 : vector<1x1x1x8xf32> to vector<1x8xf32>
    %910 = vector.broadcast %909 : vector<1x8xf32> to vector<8x8xf32>
    %911 = arith.addf %907, %910 : vector<8x8xf32>
    %cst_747 = arith.constant 0.353553385 : f32
    %912 = vector.broadcast %cst_747 : f32 to vector<8x8xf32>
    %913 = arith.mulf %911, %912 : vector<8x8xf32>
    %c1_748 = arith.constant 1 : index
    %c0_749 = arith.constant 0 : index
    %c0_750 = arith.constant 0 : index
    %c0_751 = arith.constant 0 : index
    %914 = vector.load %arg28[%c1_748, %c0_749, %c0_750, %c0_751] : memref<2x4x32x8xf32, #tpu.memory_space<vmem>>, vector<1x1x32x8xf32>
    %915 = vector.shape_cast %914 : vector<1x1x32x8xf32> to vector<32x8xf32>
    %cst_752 = arith.constant dense<0.000000e+00> : vector<8x8xf32>
    %916 = tpu.matmul %902, %915, %cst_752 {dimension_numbers = #tpu.dot_dimension_numbers<[1], [0], [0], [1], [0, 0, 1, 1], [], []>} : vector<8x32xf32>, vector<32x8xf32>, vector<8x8xf32> -> vector<8x8xf32>
    %c1_753 = arith.constant 1 : index
    %c0_754 = arith.constant 0 : index
    %c0_755 = arith.constant 0 : index
    %c0_756 = arith.constant 0 : index
    %917 = vector.load %arg23[%c1_753, %c0_754, %c0_755, %c0_756] : memref<2x4x1x8xf32, #tpu.memory_space<vmem>>, vector<1x1x1x8xf32>
    %918 = vector.shape_cast %917 : vector<1x1x1x8xf32> to vector<1x8xf32>
    %919 = vector.broadcast %918 : vector<1x8xf32> to vector<8x8xf32>
    %920 = arith.addf %916, %919 : vector<8x8xf32>
    %c1_757 = arith.constant 1 : index
    %c0_758 = arith.constant 0 : index
    %c0_759 = arith.constant 0 : index
    %c0_760 = arith.constant 0 : index
    %921 = vector.load %arg31[%c1_757, %c0_758, %c0_759, %c0_760] : memref<2x4x32x8xf32, #tpu.memory_space<vmem>>, vector<1x1x32x8xf32>
    %922 = vector.shape_cast %921 : vector<1x1x32x8xf32> to vector<32x8xf32>
    %cst_761 = arith.constant dense<0.000000e+00> : vector<8x8xf32>
    %923 = tpu.matmul %902, %922, %cst_761 {dimension_numbers = #tpu.dot_dimension_numbers<[1], [0], [0], [1], [0, 0, 1, 1], [], []>} : vector<8x32xf32>, vector<32x8xf32>, vector<8x8xf32> -> vector<8x8xf32>
    %c1_762 = arith.constant 1 : index
    %c0_763 = arith.constant 0 : index
    %c0_764 = arith.constant 0 : index
    %c0_765 = arith.constant 0 : index
    %924 = vector.load %arg26[%c1_762, %c0_763, %c0_764, %c0_765] : memref<2x4x1x8xf32, #tpu.memory_space<vmem>>, vector<1x1x1x8xf32>
    %925 = vector.shape_cast %924 : vector<1x1x1x8xf32> to vector<1x8xf32>
    %926 = vector.broadcast %925 : vector<1x8xf32> to vector<8x8xf32>
    %927 = arith.addf %923, %926 : vector<8x8xf32>
    %cst_766 = arith.constant dense<0.000000e+00> : vector<8x8xf32>
    %928 = tpu.matmul %913, %920, %cst_766 {dimension_numbers = #tpu.dot_dimension_numbers<[1], [1], [0], [0], [0, 0, 1, 0], [], []>} : vector<8x8xf32>, vector<8x8xf32>, vector<8x8xf32> -> vector<8x8xf32>
    %929 = arith.addf %928, %11 : vector<8x8xf32>
    %cst_767 = arith.constant dense<0xFF800000> : vector<8xf32>
    %930 = vector.multi_reduction <maximumf>, %929, %cst_767 [1] : vector<8x8xf32> to vector<8xf32>
    %931 = vector.shape_cast %930 : vector<8xf32> to vector<8x1xf32>
    %932 = vector.broadcast %931 : vector<8x1xf32> to vector<8x8xf32>
    %933 = arith.subf %929, %932 : vector<8x8xf32>
    %934 = math.exp %933 : vector<8x8xf32>
    %cst_768 = arith.constant dense<0.000000e+00> : vector<8xf32>
    %935 = vector.multi_reduction <add>, %934, %cst_768 [1] : vector<8x8xf32> to vector<8xf32>
    %936 = vector.shape_cast %935 : vector<8xf32> to vector<8x1xf32>
    %937 = tpu.reciprocal %936 {approx = true} : vector<8x1xf32> -> vector<8x1xf32>
    %938 = vector.broadcast %937 : vector<8x1xf32> to vector<8x8xf32>
    %939 = arith.mulf %934, %938 : vector<8x8xf32>
    %cst_769 = arith.constant dense<0.000000e+00> : vector<8x8xf32>
    %940 = tpu.matmul %939, %927, %cst_769 {dimension_numbers = #tpu.dot_dimension_numbers<[1], [0], [0], [1], [0, 0, 1, 1], [], []>} : vector<8x8xf32>, vector<8x8xf32>, vector<8x8xf32> -> vector<8x8xf32>
    %c1_770 = arith.constant 1 : index
    %c0_771 = arith.constant 0 : index
    %c0_772 = arith.constant 0 : index
    %c0_773 = arith.constant 0 : index
    %941 = vector.load %arg29[%c1_770, %c0_771, %c0_772, %c0_773] : memref<2x4x8x32xf32, #tpu.memory_space<vmem>>, vector<1x1x8x32xf32>
    %942 = vector.shape_cast %941 : vector<1x1x8x32xf32> to vector<8x32xf32>
    %cst_774 = arith.constant dense<0.000000e+00> : vector<8x32xf32>
    %943 = tpu.matmul %940, %942, %cst_774 {dimension_numbers = #tpu.dot_dimension_numbers<[1], [0], [0], [1], [0, 0, 1, 1], [], []>} : vector<8x8xf32>, vector<8x32xf32>, vector<8x32xf32> -> vector<8x32xf32>
    %944 = vector.broadcast %904 : vector<1x32xf32> to vector<8x32xf32>
    %945 = arith.addf %944, %943 : vector<8x32xf32>
    %c1_775 = arith.constant 1 : index
    %c1_776 = arith.constant 1 : index
    %c0_777 = arith.constant 0 : index
    %c0_778 = arith.constant 0 : index
    %946 = vector.load %arg30[%c1_775, %c1_776, %c0_777, %c0_778] : memref<2x4x32x8xf32, #tpu.memory_space<vmem>>, vector<1x1x32x8xf32>
    %947 = vector.shape_cast %946 : vector<1x1x32x8xf32> to vector<32x8xf32>
    %cst_779 = arith.constant dense<0.000000e+00> : vector<8x8xf32>
    %948 = tpu.matmul %902, %947, %cst_779 {dimension_numbers = #tpu.dot_dimension_numbers<[1], [0], [0], [1], [0, 0, 1, 1], [], []>} : vector<8x32xf32>, vector<32x8xf32>, vector<8x8xf32> -> vector<8x8xf32>
    %c1_780 = arith.constant 1 : index
    %c1_781 = arith.constant 1 : index
    %c0_782 = arith.constant 0 : index
    %c0_783 = arith.constant 0 : index
    %949 = vector.load %arg25[%c1_780, %c1_781, %c0_782, %c0_783] : memref<2x4x1x8xf32, #tpu.memory_space<vmem>>, vector<1x1x1x8xf32>
    %950 = vector.shape_cast %949 : vector<1x1x1x8xf32> to vector<1x8xf32>
    %951 = vector.broadcast %950 : vector<1x8xf32> to vector<8x8xf32>
    %952 = arith.addf %948, %951 : vector<8x8xf32>
    %cst_784 = arith.constant 0.353553385 : f32
    %953 = vector.broadcast %cst_784 : f32 to vector<8x8xf32>
    %954 = arith.mulf %952, %953 : vector<8x8xf32>
    %c1_785 = arith.constant 1 : index
    %c1_786 = arith.constant 1 : index
    %c0_787 = arith.constant 0 : index
    %c0_788 = arith.constant 0 : index
    %955 = vector.load %arg28[%c1_785, %c1_786, %c0_787, %c0_788] : memref<2x4x32x8xf32, #tpu.memory_space<vmem>>, vector<1x1x32x8xf32>
    %956 = vector.shape_cast %955 : vector<1x1x32x8xf32> to vector<32x8xf32>
    %cst_789 = arith.constant dense<0.000000e+00> : vector<8x8xf32>
    %957 = tpu.matmul %902, %956, %cst_789 {dimension_numbers = #tpu.dot_dimension_numbers<[1], [0], [0], [1], [0, 0, 1, 1], [], []>} : vector<8x32xf32>, vector<32x8xf32>, vector<8x8xf32> -> vector<8x8xf32>
    %c1_790 = arith.constant 1 : index
    %c1_791 = arith.constant 1 : index
    %c0_792 = arith.constant 0 : index
    %c0_793 = arith.constant 0 : index
    %958 = vector.load %arg23[%c1_790, %c1_791, %c0_792, %c0_793] : memref<2x4x1x8xf32, #tpu.memory_space<vmem>>, vector<1x1x1x8xf32>
    %959 = vector.shape_cast %958 : vector<1x1x1x8xf32> to vector<1x8xf32>
    %960 = vector.broadcast %959 : vector<1x8xf32> to vector<8x8xf32>
    %961 = arith.addf %957, %960 : vector<8x8xf32>
    %c1_794 = arith.constant 1 : index
    %c1_795 = arith.constant 1 : index
    %c0_796 = arith.constant 0 : index
    %c0_797 = arith.constant 0 : index
    %962 = vector.load %arg31[%c1_794, %c1_795, %c0_796, %c0_797] : memref<2x4x32x8xf32, #tpu.memory_space<vmem>>, vector<1x1x32x8xf32>
    %963 = vector.shape_cast %962 : vector<1x1x32x8xf32> to vector<32x8xf32>
    %cst_798 = arith.constant dense<0.000000e+00> : vector<8x8xf32>
    %964 = tpu.matmul %902, %963, %cst_798 {dimension_numbers = #tpu.dot_dimension_numbers<[1], [0], [0], [1], [0, 0, 1, 1], [], []>} : vector<8x32xf32>, vector<32x8xf32>, vector<8x8xf32> -> vector<8x8xf32>
    %c1_799 = arith.constant 1 : index
    %c1_800 = arith.constant 1 : index
    %c0_801 = arith.constant 0 : index
    %c0_802 = arith.constant 0 : index
    %965 = vector.load %arg26[%c1_799, %c1_800, %c0_801, %c0_802] : memref<2x4x1x8xf32, #tpu.memory_space<vmem>>, vector<1x1x1x8xf32>
    %966 = vector.shape_cast %965 : vector<1x1x1x8xf32> to vector<1x8xf32>
    %967 = vector.broadcast %966 : vector<1x8xf32> to vector<8x8xf32>
    %968 = arith.addf %964, %967 : vector<8x8xf32>
    %cst_803 = arith.constant dense<0.000000e+00> : vector<8x8xf32>
    %969 = tpu.matmul %954, %961, %cst_803 {dimension_numbers = #tpu.dot_dimension_numbers<[1], [1], [0], [0], [0, 0, 1, 0], [], []>} : vector<8x8xf32>, vector<8x8xf32>, vector<8x8xf32> -> vector<8x8xf32>
    %970 = arith.addf %969, %11 : vector<8x8xf32>
    %cst_804 = arith.constant dense<0xFF800000> : vector<8xf32>
    %971 = vector.multi_reduction <maximumf>, %970, %cst_804 [1] : vector<8x8xf32> to vector<8xf32>
    %972 = vector.shape_cast %971 : vector<8xf32> to vector<8x1xf32>
    %973 = vector.broadcast %972 : vector<8x1xf32> to vector<8x8xf32>
    %974 = arith.subf %970, %973 : vector<8x8xf32>
    %975 = math.exp %974 : vector<8x8xf32>
    %cst_805 = arith.constant dense<0.000000e+00> : vector<8xf32>
    %976 = vector.multi_reduction <add>, %975, %cst_805 [1] : vector<8x8xf32> to vector<8xf32>
    %977 = vector.shape_cast %976 : vector<8xf32> to vector<8x1xf32>
    %978 = tpu.reciprocal %977 {approx = true} : vector<8x1xf32> -> vector<8x1xf32>
    %979 = vector.broadcast %978 : vector<8x1xf32> to vector<8x8xf32>
    %980 = arith.mulf %975, %979 : vector<8x8xf32>
    %cst_806 = arith.constant dense<0.000000e+00> : vector<8x8xf32>
    %981 = tpu.matmul %980, %968, %cst_806 {dimension_numbers = #tpu.dot_dimension_numbers<[1], [0], [0], [1], [0, 0, 1, 1], [], []>} : vector<8x8xf32>, vector<8x8xf32>, vector<8x8xf32> -> vector<8x8xf32>
    %c1_807 = arith.constant 1 : index
    %c1_808 = arith.constant 1 : index
    %c0_809 = arith.constant 0 : index
    %c0_810 = arith.constant 0 : index
    %982 = vector.load %arg29[%c1_807, %c1_808, %c0_809, %c0_810] : memref<2x4x8x32xf32, #tpu.memory_space<vmem>>, vector<1x1x8x32xf32>
    %983 = vector.shape_cast %982 : vector<1x1x8x32xf32> to vector<8x32xf32>
    %cst_811 = arith.constant dense<0.000000e+00> : vector<8x32xf32>
    %984 = tpu.matmul %981, %983, %cst_811 {dimension_numbers = #tpu.dot_dimension_numbers<[1], [0], [0], [1], [0, 0, 1, 1], [], []>} : vector<8x8xf32>, vector<8x32xf32>, vector<8x32xf32> -> vector<8x32xf32>
    %985 = arith.addf %945, %984 : vector<8x32xf32>
    %c1_812 = arith.constant 1 : index
    %c2_813 = arith.constant 2 : index
    %c0_814 = arith.constant 0 : index
    %c0_815 = arith.constant 0 : index
    %986 = vector.load %arg30[%c1_812, %c2_813, %c0_814, %c0_815] : memref<2x4x32x8xf32, #tpu.memory_space<vmem>>, vector<1x1x32x8xf32>
    %987 = vector.shape_cast %986 : vector<1x1x32x8xf32> to vector<32x8xf32>
    %cst_816 = arith.constant dense<0.000000e+00> : vector<8x8xf32>
    %988 = tpu.matmul %902, %987, %cst_816 {dimension_numbers = #tpu.dot_dimension_numbers<[1], [0], [0], [1], [0, 0, 1, 1], [], []>} : vector<8x32xf32>, vector<32x8xf32>, vector<8x8xf32> -> vector<8x8xf32>
    %c1_817 = arith.constant 1 : index
    %c2_818 = arith.constant 2 : index
    %c0_819 = arith.constant 0 : index
    %c0_820 = arith.constant 0 : index
    %989 = vector.load %arg25[%c1_817, %c2_818, %c0_819, %c0_820] : memref<2x4x1x8xf32, #tpu.memory_space<vmem>>, vector<1x1x1x8xf32>
    %990 = vector.shape_cast %989 : vector<1x1x1x8xf32> to vector<1x8xf32>
    %991 = vector.broadcast %990 : vector<1x8xf32> to vector<8x8xf32>
    %992 = arith.addf %988, %991 : vector<8x8xf32>
    %cst_821 = arith.constant 0.353553385 : f32
    %993 = vector.broadcast %cst_821 : f32 to vector<8x8xf32>
    %994 = arith.mulf %992, %993 : vector<8x8xf32>
    %c1_822 = arith.constant 1 : index
    %c2_823 = arith.constant 2 : index
    %c0_824 = arith.constant 0 : index
    %c0_825 = arith.constant 0 : index
    %995 = vector.load %arg28[%c1_822, %c2_823, %c0_824, %c0_825] : memref<2x4x32x8xf32, #tpu.memory_space<vmem>>, vector<1x1x32x8xf32>
    %996 = vector.shape_cast %995 : vector<1x1x32x8xf32> to vector<32x8xf32>
    %cst_826 = arith.constant dense<0.000000e+00> : vector<8x8xf32>
    %997 = tpu.matmul %902, %996, %cst_826 {dimension_numbers = #tpu.dot_dimension_numbers<[1], [0], [0], [1], [0, 0, 1, 1], [], []>} : vector<8x32xf32>, vector<32x8xf32>, vector<8x8xf32> -> vector<8x8xf32>
    %c1_827 = arith.constant 1 : index
    %c2_828 = arith.constant 2 : index
    %c0_829 = arith.constant 0 : index
    %c0_830 = arith.constant 0 : index
    %998 = vector.load %arg23[%c1_827, %c2_828, %c0_829, %c0_830] : memref<2x4x1x8xf32, #tpu.memory_space<vmem>>, vector<1x1x1x8xf32>
    %999 = vector.shape_cast %998 : vector<1x1x1x8xf32> to vector<1x8xf32>
    %1000 = vector.broadcast %999 : vector<1x8xf32> to vector<8x8xf32>
    %1001 = arith.addf %997, %1000 : vector<8x8xf32>
    %c1_831 = arith.constant 1 : index
    %c2_832 = arith.constant 2 : index
    %c0_833 = arith.constant 0 : index
    %c0_834 = arith.constant 0 : index
    %1002 = vector.load %arg31[%c1_831, %c2_832, %c0_833, %c0_834] : memref<2x4x32x8xf32, #tpu.memory_space<vmem>>, vector<1x1x32x8xf32>
    %1003 = vector.shape_cast %1002 : vector<1x1x32x8xf32> to vector<32x8xf32>
    %cst_835 = arith.constant dense<0.000000e+00> : vector<8x8xf32>
    %1004 = tpu.matmul %902, %1003, %cst_835 {dimension_numbers = #tpu.dot_dimension_numbers<[1], [0], [0], [1], [0, 0, 1, 1], [], []>} : vector<8x32xf32>, vector<32x8xf32>, vector<8x8xf32> -> vector<8x8xf32>
    %c1_836 = arith.constant 1 : index
    %c2_837 = arith.constant 2 : index
    %c0_838 = arith.constant 0 : index
    %c0_839 = arith.constant 0 : index
    %1005 = vector.load %arg26[%c1_836, %c2_837, %c0_838, %c0_839] : memref<2x4x1x8xf32, #tpu.memory_space<vmem>>, vector<1x1x1x8xf32>
    %1006 = vector.shape_cast %1005 : vector<1x1x1x8xf32> to vector<1x8xf32>
    %1007 = vector.broadcast %1006 : vector<1x8xf32> to vector<8x8xf32>
    %1008 = arith.addf %1004, %1007 : vector<8x8xf32>
    %cst_840 = arith.constant dense<0.000000e+00> : vector<8x8xf32>
    %1009 = tpu.matmul %994, %1001, %cst_840 {dimension_numbers = #tpu.dot_dimension_numbers<[1], [1], [0], [0], [0, 0, 1, 0], [], []>} : vector<8x8xf32>, vector<8x8xf32>, vector<8x8xf32> -> vector<8x8xf32>
    %1010 = arith.addf %1009, %11 : vector<8x8xf32>
    %cst_841 = arith.constant dense<0xFF800000> : vector<8xf32>
    %1011 = vector.multi_reduction <maximumf>, %1010, %cst_841 [1] : vector<8x8xf32> to vector<8xf32>
    %1012 = vector.shape_cast %1011 : vector<8xf32> to vector<8x1xf32>
    %1013 = vector.broadcast %1012 : vector<8x1xf32> to vector<8x8xf32>
    %1014 = arith.subf %1010, %1013 : vector<8x8xf32>
    %1015 = math.exp %1014 : vector<8x8xf32>
    %cst_842 = arith.constant dense<0.000000e+00> : vector<8xf32>
    %1016 = vector.multi_reduction <add>, %1015, %cst_842 [1] : vector<8x8xf32> to vector<8xf32>
    %1017 = vector.shape_cast %1016 : vector<8xf32> to vector<8x1xf32>
    %1018 = tpu.reciprocal %1017 {approx = true} : vector<8x1xf32> -> vector<8x1xf32>
    %1019 = vector.broadcast %1018 : vector<8x1xf32> to vector<8x8xf32>
    %1020 = arith.mulf %1015, %1019 : vector<8x8xf32>
    %cst_843 = arith.constant dense<0.000000e+00> : vector<8x8xf32>
    %1021 = tpu.matmul %1020, %1008, %cst_843 {dimension_numbers = #tpu.dot_dimension_numbers<[1], [0], [0], [1], [0, 0, 1, 1], [], []>} : vector<8x8xf32>, vector<8x8xf32>, vector<8x8xf32> -> vector<8x8xf32>
    %c1_844 = arith.constant 1 : index
    %c2_845 = arith.constant 2 : index
    %c0_846 = arith.constant 0 : index
    %c0_847 = arith.constant 0 : index
    %1022 = vector.load %arg29[%c1_844, %c2_845, %c0_846, %c0_847] : memref<2x4x8x32xf32, #tpu.memory_space<vmem>>, vector<1x1x8x32xf32>
    %1023 = vector.shape_cast %1022 : vector<1x1x8x32xf32> to vector<8x32xf32>
    %cst_848 = arith.constant dense<0.000000e+00> : vector<8x32xf32>
    %1024 = tpu.matmul %1021, %1023, %cst_848 {dimension_numbers = #tpu.dot_dimension_numbers<[1], [0], [0], [1], [0, 0, 1, 1], [], []>} : vector<8x8xf32>, vector<8x32xf32>, vector<8x32xf32> -> vector<8x32xf32>
    %1025 = arith.addf %985, %1024 : vector<8x32xf32>
    %c1_849 = arith.constant 1 : index
    %c3_850 = arith.constant 3 : index
    %c0_851 = arith.constant 0 : index
    %c0_852 = arith.constant 0 : index
    %1026 = vector.load %arg30[%c1_849, %c3_850, %c0_851, %c0_852] : memref<2x4x32x8xf32, #tpu.memory_space<vmem>>, vector<1x1x32x8xf32>
    %1027 = vector.shape_cast %1026 : vector<1x1x32x8xf32> to vector<32x8xf32>
    %cst_853 = arith.constant dense<0.000000e+00> : vector<8x8xf32>
    %1028 = tpu.matmul %902, %1027, %cst_853 {dimension_numbers = #tpu.dot_dimension_numbers<[1], [0], [0], [1], [0, 0, 1, 1], [], []>} : vector<8x32xf32>, vector<32x8xf32>, vector<8x8xf32> -> vector<8x8xf32>
    %c1_854 = arith.constant 1 : index
    %c3_855 = arith.constant 3 : index
    %c0_856 = arith.constant 0 : index
    %c0_857 = arith.constant 0 : index
    %1029 = vector.load %arg25[%c1_854, %c3_855, %c0_856, %c0_857] : memref<2x4x1x8xf32, #tpu.memory_space<vmem>>, vector<1x1x1x8xf32>
    %1030 = vector.shape_cast %1029 : vector<1x1x1x8xf32> to vector<1x8xf32>
    %1031 = vector.broadcast %1030 : vector<1x8xf32> to vector<8x8xf32>
    %1032 = arith.addf %1028, %1031 : vector<8x8xf32>
    %cst_858 = arith.constant 0.353553385 : f32
    %1033 = vector.broadcast %cst_858 : f32 to vector<8x8xf32>
    %1034 = arith.mulf %1032, %1033 : vector<8x8xf32>
    %c1_859 = arith.constant 1 : index
    %c3_860 = arith.constant 3 : index
    %c0_861 = arith.constant 0 : index
    %c0_862 = arith.constant 0 : index
    %1035 = vector.load %arg28[%c1_859, %c3_860, %c0_861, %c0_862] : memref<2x4x32x8xf32, #tpu.memory_space<vmem>>, vector<1x1x32x8xf32>
    %1036 = vector.shape_cast %1035 : vector<1x1x32x8xf32> to vector<32x8xf32>
    %cst_863 = arith.constant dense<0.000000e+00> : vector<8x8xf32>
    %1037 = tpu.matmul %902, %1036, %cst_863 {dimension_numbers = #tpu.dot_dimension_numbers<[1], [0], [0], [1], [0, 0, 1, 1], [], []>} : vector<8x32xf32>, vector<32x8xf32>, vector<8x8xf32> -> vector<8x8xf32>
    %c1_864 = arith.constant 1 : index
    %c3_865 = arith.constant 3 : index
    %c0_866 = arith.constant 0 : index
    %c0_867 = arith.constant 0 : index
    %1038 = vector.load %arg23[%c1_864, %c3_865, %c0_866, %c0_867] : memref<2x4x1x8xf32, #tpu.memory_space<vmem>>, vector<1x1x1x8xf32>
    %1039 = vector.shape_cast %1038 : vector<1x1x1x8xf32> to vector<1x8xf32>
    %1040 = vector.broadcast %1039 : vector<1x8xf32> to vector<8x8xf32>
    %1041 = arith.addf %1037, %1040 : vector<8x8xf32>
    %c1_868 = arith.constant 1 : index
    %c3_869 = arith.constant 3 : index
    %c0_870 = arith.constant 0 : index
    %c0_871 = arith.constant 0 : index
    %1042 = vector.load %arg31[%c1_868, %c3_869, %c0_870, %c0_871] : memref<2x4x32x8xf32, #tpu.memory_space<vmem>>, vector<1x1x32x8xf32>
    %1043 = vector.shape_cast %1042 : vector<1x1x32x8xf32> to vector<32x8xf32>
    %cst_872 = arith.constant dense<0.000000e+00> : vector<8x8xf32>
    %1044 = tpu.matmul %902, %1043, %cst_872 {dimension_numbers = #tpu.dot_dimension_numbers<[1], [0], [0], [1], [0, 0, 1, 1], [], []>} : vector<8x32xf32>, vector<32x8xf32>, vector<8x8xf32> -> vector<8x8xf32>
    %c1_873 = arith.constant 1 : index
    %c3_874 = arith.constant 3 : index
    %c0_875 = arith.constant 0 : index
    %c0_876 = arith.constant 0 : index
    %1045 = vector.load %arg26[%c1_873, %c3_874, %c0_875, %c0_876] : memref<2x4x1x8xf32, #tpu.memory_space<vmem>>, vector<1x1x1x8xf32>
    %1046 = vector.shape_cast %1045 : vector<1x1x1x8xf32> to vector<1x8xf32>
    %1047 = vector.broadcast %1046 : vector<1x8xf32> to vector<8x8xf32>
    %1048 = arith.addf %1044, %1047 : vector<8x8xf32>
    %cst_877 = arith.constant dense<0.000000e+00> : vector<8x8xf32>
    %1049 = tpu.matmul %1034, %1041, %cst_877 {dimension_numbers = #tpu.dot_dimension_numbers<[1], [1], [0], [0], [0, 0, 1, 0], [], []>} : vector<8x8xf32>, vector<8x8xf32>, vector<8x8xf32> -> vector<8x8xf32>
    %1050 = arith.addf %1049, %11 : vector<8x8xf32>
    %cst_878 = arith.constant dense<0xFF800000> : vector<8xf32>
    %1051 = vector.multi_reduction <maximumf>, %1050, %cst_878 [1] : vector<8x8xf32> to vector<8xf32>
    %1052 = vector.shape_cast %1051 : vector<8xf32> to vector<8x1xf32>
    %1053 = vector.broadcast %1052 : vector<8x1xf32> to vector<8x8xf32>
    %1054 = arith.subf %1050, %1053 : vector<8x8xf32>
    %1055 = math.exp %1054 : vector<8x8xf32>
    %cst_879 = arith.constant dense<0.000000e+00> : vector<8xf32>
    %1056 = vector.multi_reduction <add>, %1055, %cst_879 [1] : vector<8x8xf32> to vector<8xf32>
    %1057 = vector.shape_cast %1056 : vector<8xf32> to vector<8x1xf32>
    %1058 = tpu.reciprocal %1057 {approx = true} : vector<8x1xf32> -> vector<8x1xf32>
    %1059 = vector.broadcast %1058 : vector<8x1xf32> to vector<8x8xf32>
    %1060 = arith.mulf %1055, %1059 : vector<8x8xf32>
    %cst_880 = arith.constant dense<0.000000e+00> : vector<8x8xf32>
    %1061 = tpu.matmul %1060, %1048, %cst_880 {dimension_numbers = #tpu.dot_dimension_numbers<[1], [0], [0], [1], [0, 0, 1, 1], [], []>} : vector<8x8xf32>, vector<8x8xf32>, vector<8x8xf32> -> vector<8x8xf32>
    %c1_881 = arith.constant 1 : index
    %c3_882 = arith.constant 3 : index
    %c0_883 = arith.constant 0 : index
    %c0_884 = arith.constant 0 : index
    %1062 = vector.load %arg29[%c1_881, %c3_882, %c0_883, %c0_884] : memref<2x4x8x32xf32, #tpu.memory_space<vmem>>, vector<1x1x8x32xf32>
    %1063 = vector.shape_cast %1062 : vector<1x1x8x32xf32> to vector<8x32xf32>
    %cst_885 = arith.constant dense<0.000000e+00> : vector<8x32xf32>
    %1064 = tpu.matmul %1061, %1063, %cst_885 {dimension_numbers = #tpu.dot_dimension_numbers<[1], [0], [0], [1], [0, 0, 1, 1], [], []>} : vector<8x8xf32>, vector<8x32xf32>, vector<8x32xf32> -> vector<8x32xf32>
    %1065 = arith.addf %1025, %1064 : vector<8x32xf32>
    %1066 = arith.addf %902, %1065 : vector<8x32xf32>
    %c1_886 = arith.constant 1 : index
    %c0_887 = arith.constant 0 : index
    %c0_888 = arith.constant 0 : index
    %1067 = vector.load %arg27[%c1_886, %c0_887, %c0_888] : memref<2x1x32xf32, #tpu.memory_space<vmem>>, vector<1x1x32xf32>
    %1068 = vector.shape_cast %1067 : vector<1x1x32xf32> to vector<1x32xf32>
    %c1_889 = arith.constant 1 : index
    %c0_890 = arith.constant 0 : index
    %c0_891 = arith.constant 0 : index
    %1069 = vector.load %arg22[%c1_889, %c0_890, %c0_891] : memref<2x1x32xf32, #tpu.memory_space<vmem>>, vector<1x1x32xf32>
    %1070 = vector.shape_cast %1069 : vector<1x1x32xf32> to vector<1x32xf32>
    %cst_892 = arith.constant dense<0.000000e+00> : vector<8xf32>
    %1071 = vector.multi_reduction <add>, %1066, %cst_892 [1] : vector<8x32xf32> to vector<8xf32>
    %1072 = vector.shape_cast %1071 : vector<8xf32> to vector<8x1xf32>
    %cst_893 = arith.constant 3.200000e+01 : f32
    %1073 = vector.broadcast %cst_893 : f32 to vector<8x1xf32>
    %1074 = arith.divf %1072, %1073 : vector<8x1xf32>
    %1075 = vector.broadcast %1074 : vector<8x1xf32> to vector<8x32xf32>
    %1076 = arith.subf %1066, %1075 : vector<8x32xf32>
    %1077 = arith.mulf %1076, %1076 : vector<8x32xf32>
    %cst_894 = arith.constant dense<0.000000e+00> : vector<8xf32>
    %1078 = vector.multi_reduction <add>, %1077, %cst_894 [1] : vector<8x32xf32> to vector<8xf32>
    %1079 = vector.shape_cast %1078 : vector<8xf32> to vector<8x1xf32>
    %cst_895 = arith.constant 3.200000e+01 : f32
    %1080 = vector.broadcast %cst_895 : f32 to vector<8x1xf32>
    %1081 = arith.divf %1079, %1080 : vector<8x1xf32>
    %cst_896 = arith.constant 9.99999974E-6 : f32
    %1082 = vector.broadcast %cst_896 : f32 to vector<8x1xf32>
    %1083 = arith.addf %1081, %1082 : vector<8x1xf32>
    %1084 = math.rsqrt %1083 : vector<8x1xf32>
    %1085 = vector.broadcast %1084 : vector<8x1xf32> to vector<8x32xf32>
    %1086 = arith.mulf %1076, %1085 : vector<8x32xf32>
    %1087 = vector.broadcast %1068 : vector<1x32xf32> to vector<8x32xf32>
    %1088 = arith.mulf %1086, %1087 : vector<8x32xf32>
    %1089 = vector.broadcast %1070 : vector<1x32xf32> to vector<8x32xf32>
    %1090 = arith.addf %1088, %1089 : vector<8x32xf32>
    %c1_897 = arith.constant 1 : index
    %c0_898 = arith.constant 0 : index
    %c0_899 = arith.constant 0 : index
    %1091 = vector.load %arg8[%c1_897, %c0_898, %c0_899] : memref<2x1x32xf32, #tpu.memory_space<vmem>>, vector<1x1x32xf32>
    %1092 = vector.shape_cast %1091 : vector<1x1x32xf32> to vector<1x32xf32>
    %c1_900 = arith.constant 1 : index
    %c0_901 = arith.constant 0 : index
    %c0_902 = arith.constant 0 : index
    %c0_903 = arith.constant 0 : index
    %1093 = vector.load %arg14[%c1_900, %c0_901, %c0_902, %c0_903] : memref<2x4x32x8xf32, #tpu.memory_space<vmem>>, vector<1x1x32x8xf32>
    %1094 = vector.shape_cast %1093 : vector<1x1x32x8xf32> to vector<32x8xf32>
    %cst_904 = arith.constant dense<0.000000e+00> : vector<8x8xf32>
    %1095 = tpu.matmul %1090, %1094, %cst_904 {dimension_numbers = #tpu.dot_dimension_numbers<[1], [0], [0], [1], [0, 0, 1, 1], [], []>} : vector<8x32xf32>, vector<32x8xf32>, vector<8x8xf32> -> vector<8x8xf32>
    %c1_905 = arith.constant 1 : index
    %c0_906 = arith.constant 0 : index
    %c0_907 = arith.constant 0 : index
    %c0_908 = arith.constant 0 : index
    %1096 = vector.load %arg9[%c1_905, %c0_906, %c0_907, %c0_908] : memref<2x4x1x8xf32, #tpu.memory_space<vmem>>, vector<1x1x1x8xf32>
    %1097 = vector.shape_cast %1096 : vector<1x1x1x8xf32> to vector<1x8xf32>
    %1098 = vector.broadcast %1097 : vector<1x8xf32> to vector<8x8xf32>
    %1099 = arith.addf %1095, %1098 : vector<8x8xf32>
    %cst_909 = arith.constant 0.353553385 : f32
    %1100 = vector.broadcast %cst_909 : f32 to vector<8x8xf32>
    %1101 = arith.mulf %1099, %1100 : vector<8x8xf32>
    %c1_910 = arith.constant 1 : index
    %c0_911 = arith.constant 0 : index
    %c0_912 = arith.constant 0 : index
    %c0_913 = arith.constant 0 : index
    %1102 = vector.load %arg12[%c1_910, %c0_911, %c0_912, %c0_913] : memref<2x4x32x8xf32, #tpu.memory_space<vmem>>, vector<1x1x32x8xf32>
    %1103 = vector.shape_cast %1102 : vector<1x1x32x8xf32> to vector<32x8xf32>
    %cst_914 = arith.constant dense<0.000000e+00> : vector<8x8xf32>
    %1104 = tpu.matmul %479, %1103, %cst_914 {dimension_numbers = #tpu.dot_dimension_numbers<[1], [0], [0], [1], [0, 0, 1, 1], [], []>} : vector<8x32xf32>, vector<32x8xf32>, vector<8x8xf32> -> vector<8x8xf32>
    %c1_915 = arith.constant 1 : index
    %c0_916 = arith.constant 0 : index
    %c0_917 = arith.constant 0 : index
    %c0_918 = arith.constant 0 : index
    %1105 = vector.load %arg7[%c1_915, %c0_916, %c0_917, %c0_918] : memref<2x4x1x8xf32, #tpu.memory_space<vmem>>, vector<1x1x1x8xf32>
    %1106 = vector.shape_cast %1105 : vector<1x1x1x8xf32> to vector<1x8xf32>
    %1107 = vector.broadcast %1106 : vector<1x8xf32> to vector<8x8xf32>
    %1108 = arith.addf %1104, %1107 : vector<8x8xf32>
    %c1_919 = arith.constant 1 : index
    %c0_920 = arith.constant 0 : index
    %c0_921 = arith.constant 0 : index
    %c0_922 = arith.constant 0 : index
    %1109 = vector.load %arg15[%c1_919, %c0_920, %c0_921, %c0_922] : memref<2x4x32x8xf32, #tpu.memory_space<vmem>>, vector<1x1x32x8xf32>
    %1110 = vector.shape_cast %1109 : vector<1x1x32x8xf32> to vector<32x8xf32>
    %cst_923 = arith.constant dense<0.000000e+00> : vector<8x8xf32>
    %1111 = tpu.matmul %479, %1110, %cst_923 {dimension_numbers = #tpu.dot_dimension_numbers<[1], [0], [0], [1], [0, 0, 1, 1], [], []>} : vector<8x32xf32>, vector<32x8xf32>, vector<8x8xf32> -> vector<8x8xf32>
    %c1_924 = arith.constant 1 : index
    %c0_925 = arith.constant 0 : index
    %c0_926 = arith.constant 0 : index
    %c0_927 = arith.constant 0 : index
    %1112 = vector.load %arg10[%c1_924, %c0_925, %c0_926, %c0_927] : memref<2x4x1x8xf32, #tpu.memory_space<vmem>>, vector<1x1x1x8xf32>
    %1113 = vector.shape_cast %1112 : vector<1x1x1x8xf32> to vector<1x8xf32>
    %1114 = vector.broadcast %1113 : vector<1x8xf32> to vector<8x8xf32>
    %1115 = arith.addf %1111, %1114 : vector<8x8xf32>
    %cst_928 = arith.constant dense<0.000000e+00> : vector<8x8xf32>
    %1116 = tpu.matmul %1101, %1108, %cst_928 {dimension_numbers = #tpu.dot_dimension_numbers<[1], [1], [0], [0], [0, 0, 1, 0], [], []>} : vector<8x8xf32>, vector<8x8xf32>, vector<8x8xf32> -> vector<8x8xf32>
    %1117 = vector.broadcast %1 : vector<1x8xf32> to vector<8x8xf32>
    %1118 = arith.addf %1116, %1117 : vector<8x8xf32>
    %cst_929 = arith.constant dense<0xFF800000> : vector<8xf32>
    %1119 = vector.multi_reduction <maximumf>, %1118, %cst_929 [1] : vector<8x8xf32> to vector<8xf32>
    %1120 = vector.shape_cast %1119 : vector<8xf32> to vector<8x1xf32>
    %1121 = vector.broadcast %1120 : vector<8x1xf32> to vector<8x8xf32>
    %1122 = arith.subf %1118, %1121 : vector<8x8xf32>
    %1123 = math.exp %1122 : vector<8x8xf32>
    %cst_930 = arith.constant dense<0.000000e+00> : vector<8xf32>
    %1124 = vector.multi_reduction <add>, %1123, %cst_930 [1] : vector<8x8xf32> to vector<8xf32>
    %1125 = vector.shape_cast %1124 : vector<8xf32> to vector<8x1xf32>
    %1126 = tpu.reciprocal %1125 {approx = true} : vector<8x1xf32> -> vector<8x1xf32>
    %1127 = vector.broadcast %1126 : vector<8x1xf32> to vector<8x8xf32>
    %1128 = arith.mulf %1123, %1127 : vector<8x8xf32>
    %cst_931 = arith.constant dense<0.000000e+00> : vector<8x8xf32>
    %1129 = tpu.matmul %1128, %1115, %cst_931 {dimension_numbers = #tpu.dot_dimension_numbers<[1], [0], [0], [1], [0, 0, 1, 1], [], []>} : vector<8x8xf32>, vector<8x8xf32>, vector<8x8xf32> -> vector<8x8xf32>
    %c1_932 = arith.constant 1 : index
    %c0_933 = arith.constant 0 : index
    %c0_934 = arith.constant 0 : index
    %c0_935 = arith.constant 0 : index
    %1130 = vector.load %arg13[%c1_932, %c0_933, %c0_934, %c0_935] : memref<2x4x8x32xf32, #tpu.memory_space<vmem>>, vector<1x1x8x32xf32>
    %1131 = vector.shape_cast %1130 : vector<1x1x8x32xf32> to vector<8x32xf32>
    %cst_936 = arith.constant dense<0.000000e+00> : vector<8x32xf32>
    %1132 = tpu.matmul %1129, %1131, %cst_936 {dimension_numbers = #tpu.dot_dimension_numbers<[1], [0], [0], [1], [0, 0, 1, 1], [], []>} : vector<8x8xf32>, vector<8x32xf32>, vector<8x32xf32> -> vector<8x32xf32>
    %1133 = vector.broadcast %1092 : vector<1x32xf32> to vector<8x32xf32>
    %1134 = arith.addf %1133, %1132 : vector<8x32xf32>
    %c1_937 = arith.constant 1 : index
    %c1_938 = arith.constant 1 : index
    %c0_939 = arith.constant 0 : index
    %c0_940 = arith.constant 0 : index
    %1135 = vector.load %arg14[%c1_937, %c1_938, %c0_939, %c0_940] : memref<2x4x32x8xf32, #tpu.memory_space<vmem>>, vector<1x1x32x8xf32>
    %1136 = vector.shape_cast %1135 : vector<1x1x32x8xf32> to vector<32x8xf32>
    %cst_941 = arith.constant dense<0.000000e+00> : vector<8x8xf32>
    %1137 = tpu.matmul %1090, %1136, %cst_941 {dimension_numbers = #tpu.dot_dimension_numbers<[1], [0], [0], [1], [0, 0, 1, 1], [], []>} : vector<8x32xf32>, vector<32x8xf32>, vector<8x8xf32> -> vector<8x8xf32>
    %c1_942 = arith.constant 1 : index
    %c1_943 = arith.constant 1 : index
    %c0_944 = arith.constant 0 : index
    %c0_945 = arith.constant 0 : index
    %1138 = vector.load %arg9[%c1_942, %c1_943, %c0_944, %c0_945] : memref<2x4x1x8xf32, #tpu.memory_space<vmem>>, vector<1x1x1x8xf32>
    %1139 = vector.shape_cast %1138 : vector<1x1x1x8xf32> to vector<1x8xf32>
    %1140 = vector.broadcast %1139 : vector<1x8xf32> to vector<8x8xf32>
    %1141 = arith.addf %1137, %1140 : vector<8x8xf32>
    %cst_946 = arith.constant 0.353553385 : f32
    %1142 = vector.broadcast %cst_946 : f32 to vector<8x8xf32>
    %1143 = arith.mulf %1141, %1142 : vector<8x8xf32>
    %c1_947 = arith.constant 1 : index
    %c1_948 = arith.constant 1 : index
    %c0_949 = arith.constant 0 : index
    %c0_950 = arith.constant 0 : index
    %1144 = vector.load %arg12[%c1_947, %c1_948, %c0_949, %c0_950] : memref<2x4x32x8xf32, #tpu.memory_space<vmem>>, vector<1x1x32x8xf32>
    %1145 = vector.shape_cast %1144 : vector<1x1x32x8xf32> to vector<32x8xf32>
    %cst_951 = arith.constant dense<0.000000e+00> : vector<8x8xf32>
    %1146 = tpu.matmul %479, %1145, %cst_951 {dimension_numbers = #tpu.dot_dimension_numbers<[1], [0], [0], [1], [0, 0, 1, 1], [], []>} : vector<8x32xf32>, vector<32x8xf32>, vector<8x8xf32> -> vector<8x8xf32>
    %c1_952 = arith.constant 1 : index
    %c1_953 = arith.constant 1 : index
    %c0_954 = arith.constant 0 : index
    %c0_955 = arith.constant 0 : index
    %1147 = vector.load %arg7[%c1_952, %c1_953, %c0_954, %c0_955] : memref<2x4x1x8xf32, #tpu.memory_space<vmem>>, vector<1x1x1x8xf32>
    %1148 = vector.shape_cast %1147 : vector<1x1x1x8xf32> to vector<1x8xf32>
    %1149 = vector.broadcast %1148 : vector<1x8xf32> to vector<8x8xf32>
    %1150 = arith.addf %1146, %1149 : vector<8x8xf32>
    %c1_956 = arith.constant 1 : index
    %c1_957 = arith.constant 1 : index
    %c0_958 = arith.constant 0 : index
    %c0_959 = arith.constant 0 : index
    %1151 = vector.load %arg15[%c1_956, %c1_957, %c0_958, %c0_959] : memref<2x4x32x8xf32, #tpu.memory_space<vmem>>, vector<1x1x32x8xf32>
    %1152 = vector.shape_cast %1151 : vector<1x1x32x8xf32> to vector<32x8xf32>
    %cst_960 = arith.constant dense<0.000000e+00> : vector<8x8xf32>
    %1153 = tpu.matmul %479, %1152, %cst_960 {dimension_numbers = #tpu.dot_dimension_numbers<[1], [0], [0], [1], [0, 0, 1, 1], [], []>} : vector<8x32xf32>, vector<32x8xf32>, vector<8x8xf32> -> vector<8x8xf32>
    %c1_961 = arith.constant 1 : index
    %c1_962 = arith.constant 1 : index
    %c0_963 = arith.constant 0 : index
    %c0_964 = arith.constant 0 : index
    %1154 = vector.load %arg10[%c1_961, %c1_962, %c0_963, %c0_964] : memref<2x4x1x8xf32, #tpu.memory_space<vmem>>, vector<1x1x1x8xf32>
    %1155 = vector.shape_cast %1154 : vector<1x1x1x8xf32> to vector<1x8xf32>
    %1156 = vector.broadcast %1155 : vector<1x8xf32> to vector<8x8xf32>
    %1157 = arith.addf %1153, %1156 : vector<8x8xf32>
    %cst_965 = arith.constant dense<0.000000e+00> : vector<8x8xf32>
    %1158 = tpu.matmul %1143, %1150, %cst_965 {dimension_numbers = #tpu.dot_dimension_numbers<[1], [1], [0], [0], [0, 0, 1, 0], [], []>} : vector<8x8xf32>, vector<8x8xf32>, vector<8x8xf32> -> vector<8x8xf32>
    %1159 = vector.broadcast %1 : vector<1x8xf32> to vector<8x8xf32>
    %1160 = arith.addf %1158, %1159 : vector<8x8xf32>
    %cst_966 = arith.constant dense<0xFF800000> : vector<8xf32>
    %1161 = vector.multi_reduction <maximumf>, %1160, %cst_966 [1] : vector<8x8xf32> to vector<8xf32>
    %1162 = vector.shape_cast %1161 : vector<8xf32> to vector<8x1xf32>
    %1163 = vector.broadcast %1162 : vector<8x1xf32> to vector<8x8xf32>
    %1164 = arith.subf %1160, %1163 : vector<8x8xf32>
    %1165 = math.exp %1164 : vector<8x8xf32>
    %cst_967 = arith.constant dense<0.000000e+00> : vector<8xf32>
    %1166 = vector.multi_reduction <add>, %1165, %cst_967 [1] : vector<8x8xf32> to vector<8xf32>
    %1167 = vector.shape_cast %1166 : vector<8xf32> to vector<8x1xf32>
    %1168 = tpu.reciprocal %1167 {approx = true} : vector<8x1xf32> -> vector<8x1xf32>
    %1169 = vector.broadcast %1168 : vector<8x1xf32> to vector<8x8xf32>
    %1170 = arith.mulf %1165, %1169 : vector<8x8xf32>
    %cst_968 = arith.constant dense<0.000000e+00> : vector<8x8xf32>
    %1171 = tpu.matmul %1170, %1157, %cst_968 {dimension_numbers = #tpu.dot_dimension_numbers<[1], [0], [0], [1], [0, 0, 1, 1], [], []>} : vector<8x8xf32>, vector<8x8xf32>, vector<8x8xf32> -> vector<8x8xf32>
    %c1_969 = arith.constant 1 : index
    %c1_970 = arith.constant 1 : index
    %c0_971 = arith.constant 0 : index
    %c0_972 = arith.constant 0 : index
    %1172 = vector.load %arg13[%c1_969, %c1_970, %c0_971, %c0_972] : memref<2x4x8x32xf32, #tpu.memory_space<vmem>>, vector<1x1x8x32xf32>
    %1173 = vector.shape_cast %1172 : vector<1x1x8x32xf32> to vector<8x32xf32>
    %cst_973 = arith.constant dense<0.000000e+00> : vector<8x32xf32>
    %1174 = tpu.matmul %1171, %1173, %cst_973 {dimension_numbers = #tpu.dot_dimension_numbers<[1], [0], [0], [1], [0, 0, 1, 1], [], []>} : vector<8x8xf32>, vector<8x32xf32>, vector<8x32xf32> -> vector<8x32xf32>
    %1175 = arith.addf %1134, %1174 : vector<8x32xf32>
    %c1_974 = arith.constant 1 : index
    %c2_975 = arith.constant 2 : index
    %c0_976 = arith.constant 0 : index
    %c0_977 = arith.constant 0 : index
    %1176 = vector.load %arg14[%c1_974, %c2_975, %c0_976, %c0_977] : memref<2x4x32x8xf32, #tpu.memory_space<vmem>>, vector<1x1x32x8xf32>
    %1177 = vector.shape_cast %1176 : vector<1x1x32x8xf32> to vector<32x8xf32>
    %cst_978 = arith.constant dense<0.000000e+00> : vector<8x8xf32>
    %1178 = tpu.matmul %1090, %1177, %cst_978 {dimension_numbers = #tpu.dot_dimension_numbers<[1], [0], [0], [1], [0, 0, 1, 1], [], []>} : vector<8x32xf32>, vector<32x8xf32>, vector<8x8xf32> -> vector<8x8xf32>
    %c1_979 = arith.constant 1 : index
    %c2_980 = arith.constant 2 : index
    %c0_981 = arith.constant 0 : index
    %c0_982 = arith.constant 0 : index
    %1179 = vector.load %arg9[%c1_979, %c2_980, %c0_981, %c0_982] : memref<2x4x1x8xf32, #tpu.memory_space<vmem>>, vector<1x1x1x8xf32>
    %1180 = vector.shape_cast %1179 : vector<1x1x1x8xf32> to vector<1x8xf32>
    %1181 = vector.broadcast %1180 : vector<1x8xf32> to vector<8x8xf32>
    %1182 = arith.addf %1178, %1181 : vector<8x8xf32>
    %cst_983 = arith.constant 0.353553385 : f32
    %1183 = vector.broadcast %cst_983 : f32 to vector<8x8xf32>
    %1184 = arith.mulf %1182, %1183 : vector<8x8xf32>
    %c1_984 = arith.constant 1 : index
    %c2_985 = arith.constant 2 : index
    %c0_986 = arith.constant 0 : index
    %c0_987 = arith.constant 0 : index
    %1185 = vector.load %arg12[%c1_984, %c2_985, %c0_986, %c0_987] : memref<2x4x32x8xf32, #tpu.memory_space<vmem>>, vector<1x1x32x8xf32>
    %1186 = vector.shape_cast %1185 : vector<1x1x32x8xf32> to vector<32x8xf32>
    %cst_988 = arith.constant dense<0.000000e+00> : vector<8x8xf32>
    %1187 = tpu.matmul %479, %1186, %cst_988 {dimension_numbers = #tpu.dot_dimension_numbers<[1], [0], [0], [1], [0, 0, 1, 1], [], []>} : vector<8x32xf32>, vector<32x8xf32>, vector<8x8xf32> -> vector<8x8xf32>
    %c1_989 = arith.constant 1 : index
    %c2_990 = arith.constant 2 : index
    %c0_991 = arith.constant 0 : index
    %c0_992 = arith.constant 0 : index
    %1188 = vector.load %arg7[%c1_989, %c2_990, %c0_991, %c0_992] : memref<2x4x1x8xf32, #tpu.memory_space<vmem>>, vector<1x1x1x8xf32>
    %1189 = vector.shape_cast %1188 : vector<1x1x1x8xf32> to vector<1x8xf32>
    %1190 = vector.broadcast %1189 : vector<1x8xf32> to vector<8x8xf32>
    %1191 = arith.addf %1187, %1190 : vector<8x8xf32>
    %c1_993 = arith.constant 1 : index
    %c2_994 = arith.constant 2 : index
    %c0_995 = arith.constant 0 : index
    %c0_996 = arith.constant 0 : index
    %1192 = vector.load %arg15[%c1_993, %c2_994, %c0_995, %c0_996] : memref<2x4x32x8xf32, #tpu.memory_space<vmem>>, vector<1x1x32x8xf32>
    %1193 = vector.shape_cast %1192 : vector<1x1x32x8xf32> to vector<32x8xf32>
    %cst_997 = arith.constant dense<0.000000e+00> : vector<8x8xf32>
    %1194 = tpu.matmul %479, %1193, %cst_997 {dimension_numbers = #tpu.dot_dimension_numbers<[1], [0], [0], [1], [0, 0, 1, 1], [], []>} : vector<8x32xf32>, vector<32x8xf32>, vector<8x8xf32> -> vector<8x8xf32>
    %c1_998 = arith.constant 1 : index
    %c2_999 = arith.constant 2 : index
    %c0_1000 = arith.constant 0 : index
    %c0_1001 = arith.constant 0 : index
    %1195 = vector.load %arg10[%c1_998, %c2_999, %c0_1000, %c0_1001] : memref<2x4x1x8xf32, #tpu.memory_space<vmem>>, vector<1x1x1x8xf32>
    %1196 = vector.shape_cast %1195 : vector<1x1x1x8xf32> to vector<1x8xf32>
    %1197 = vector.broadcast %1196 : vector<1x8xf32> to vector<8x8xf32>
    %1198 = arith.addf %1194, %1197 : vector<8x8xf32>
    %cst_1002 = arith.constant dense<0.000000e+00> : vector<8x8xf32>
    %1199 = tpu.matmul %1184, %1191, %cst_1002 {dimension_numbers = #tpu.dot_dimension_numbers<[1], [1], [0], [0], [0, 0, 1, 0], [], []>} : vector<8x8xf32>, vector<8x8xf32>, vector<8x8xf32> -> vector<8x8xf32>
    %1200 = vector.broadcast %1 : vector<1x8xf32> to vector<8x8xf32>
    %1201 = arith.addf %1199, %1200 : vector<8x8xf32>
    %cst_1003 = arith.constant dense<0xFF800000> : vector<8xf32>
    %1202 = vector.multi_reduction <maximumf>, %1201, %cst_1003 [1] : vector<8x8xf32> to vector<8xf32>
    %1203 = vector.shape_cast %1202 : vector<8xf32> to vector<8x1xf32>
    %1204 = vector.broadcast %1203 : vector<8x1xf32> to vector<8x8xf32>
    %1205 = arith.subf %1201, %1204 : vector<8x8xf32>
    %1206 = math.exp %1205 : vector<8x8xf32>
    %cst_1004 = arith.constant dense<0.000000e+00> : vector<8xf32>
    %1207 = vector.multi_reduction <add>, %1206, %cst_1004 [1] : vector<8x8xf32> to vector<8xf32>
    %1208 = vector.shape_cast %1207 : vector<8xf32> to vector<8x1xf32>
    %1209 = tpu.reciprocal %1208 {approx = true} : vector<8x1xf32> -> vector<8x1xf32>
    %1210 = vector.broadcast %1209 : vector<8x1xf32> to vector<8x8xf32>
    %1211 = arith.mulf %1206, %1210 : vector<8x8xf32>
    %cst_1005 = arith.constant dense<0.000000e+00> : vector<8x8xf32>
    %1212 = tpu.matmul %1211, %1198, %cst_1005 {dimension_numbers = #tpu.dot_dimension_numbers<[1], [0], [0], [1], [0, 0, 1, 1], [], []>} : vector<8x8xf32>, vector<8x8xf32>, vector<8x8xf32> -> vector<8x8xf32>
    %c1_1006 = arith.constant 1 : index
    %c2_1007 = arith.constant 2 : index
    %c0_1008 = arith.constant 0 : index
    %c0_1009 = arith.constant 0 : index
    %1213 = vector.load %arg13[%c1_1006, %c2_1007, %c0_1008, %c0_1009] : memref<2x4x8x32xf32, #tpu.memory_space<vmem>>, vector<1x1x8x32xf32>
    %1214 = vector.shape_cast %1213 : vector<1x1x8x32xf32> to vector<8x32xf32>
    %cst_1010 = arith.constant dense<0.000000e+00> : vector<8x32xf32>
    %1215 = tpu.matmul %1212, %1214, %cst_1010 {dimension_numbers = #tpu.dot_dimension_numbers<[1], [0], [0], [1], [0, 0, 1, 1], [], []>} : vector<8x8xf32>, vector<8x32xf32>, vector<8x32xf32> -> vector<8x32xf32>
    %1216 = arith.addf %1175, %1215 : vector<8x32xf32>
    %c1_1011 = arith.constant 1 : index
    %c3_1012 = arith.constant 3 : index
    %c0_1013 = arith.constant 0 : index
    %c0_1014 = arith.constant 0 : index
    %1217 = vector.load %arg14[%c1_1011, %c3_1012, %c0_1013, %c0_1014] : memref<2x4x32x8xf32, #tpu.memory_space<vmem>>, vector<1x1x32x8xf32>
    %1218 = vector.shape_cast %1217 : vector<1x1x32x8xf32> to vector<32x8xf32>
    %cst_1015 = arith.constant dense<0.000000e+00> : vector<8x8xf32>
    %1219 = tpu.matmul %1090, %1218, %cst_1015 {dimension_numbers = #tpu.dot_dimension_numbers<[1], [0], [0], [1], [0, 0, 1, 1], [], []>} : vector<8x32xf32>, vector<32x8xf32>, vector<8x8xf32> -> vector<8x8xf32>
    %c1_1016 = arith.constant 1 : index
    %c3_1017 = arith.constant 3 : index
    %c0_1018 = arith.constant 0 : index
    %c0_1019 = arith.constant 0 : index
    %1220 = vector.load %arg9[%c1_1016, %c3_1017, %c0_1018, %c0_1019] : memref<2x4x1x8xf32, #tpu.memory_space<vmem>>, vector<1x1x1x8xf32>
    %1221 = vector.shape_cast %1220 : vector<1x1x1x8xf32> to vector<1x8xf32>
    %1222 = vector.broadcast %1221 : vector<1x8xf32> to vector<8x8xf32>
    %1223 = arith.addf %1219, %1222 : vector<8x8xf32>
    %cst_1020 = arith.constant 0.353553385 : f32
    %1224 = vector.broadcast %cst_1020 : f32 to vector<8x8xf32>
    %1225 = arith.mulf %1223, %1224 : vector<8x8xf32>
    %c1_1021 = arith.constant 1 : index
    %c3_1022 = arith.constant 3 : index
    %c0_1023 = arith.constant 0 : index
    %c0_1024 = arith.constant 0 : index
    %1226 = vector.load %arg12[%c1_1021, %c3_1022, %c0_1023, %c0_1024] : memref<2x4x32x8xf32, #tpu.memory_space<vmem>>, vector<1x1x32x8xf32>
    %1227 = vector.shape_cast %1226 : vector<1x1x32x8xf32> to vector<32x8xf32>
    %cst_1025 = arith.constant dense<0.000000e+00> : vector<8x8xf32>
    %1228 = tpu.matmul %479, %1227, %cst_1025 {dimension_numbers = #tpu.dot_dimension_numbers<[1], [0], [0], [1], [0, 0, 1, 1], [], []>} : vector<8x32xf32>, vector<32x8xf32>, vector<8x8xf32> -> vector<8x8xf32>
    %c1_1026 = arith.constant 1 : index
    %c3_1027 = arith.constant 3 : index
    %c0_1028 = arith.constant 0 : index
    %c0_1029 = arith.constant 0 : index
    %1229 = vector.load %arg7[%c1_1026, %c3_1027, %c0_1028, %c0_1029] : memref<2x4x1x8xf32, #tpu.memory_space<vmem>>, vector<1x1x1x8xf32>
    %1230 = vector.shape_cast %1229 : vector<1x1x1x8xf32> to vector<1x8xf32>
    %1231 = vector.broadcast %1230 : vector<1x8xf32> to vector<8x8xf32>
    %1232 = arith.addf %1228, %1231 : vector<8x8xf32>
    %c1_1030 = arith.constant 1 : index
    %c3_1031 = arith.constant 3 : index
    %c0_1032 = arith.constant 0 : index
    %c0_1033 = arith.constant 0 : index
    %1233 = vector.load %arg15[%c1_1030, %c3_1031, %c0_1032, %c0_1033] : memref<2x4x32x8xf32, #tpu.memory_space<vmem>>, vector<1x1x32x8xf32>
    %1234 = vector.shape_cast %1233 : vector<1x1x32x8xf32> to vector<32x8xf32>
    %cst_1034 = arith.constant dense<0.000000e+00> : vector<8x8xf32>
    %1235 = tpu.matmul %479, %1234, %cst_1034 {dimension_numbers = #tpu.dot_dimension_numbers<[1], [0], [0], [1], [0, 0, 1, 1], [], []>} : vector<8x32xf32>, vector<32x8xf32>, vector<8x8xf32> -> vector<8x8xf32>
    %c1_1035 = arith.constant 1 : index
    %c3_1036 = arith.constant 3 : index
    %c0_1037 = arith.constant 0 : index
    %c0_1038 = arith.constant 0 : index
    %1236 = vector.load %arg10[%c1_1035, %c3_1036, %c0_1037, %c0_1038] : memref<2x4x1x8xf32, #tpu.memory_space<vmem>>, vector<1x1x1x8xf32>
    %1237 = vector.shape_cast %1236 : vector<1x1x1x8xf32> to vector<1x8xf32>
    %1238 = vector.broadcast %1237 : vector<1x8xf32> to vector<8x8xf32>
    %1239 = arith.addf %1235, %1238 : vector<8x8xf32>
    %cst_1039 = arith.constant dense<0.000000e+00> : vector<8x8xf32>
    %1240 = tpu.matmul %1225, %1232, %cst_1039 {dimension_numbers = #tpu.dot_dimension_numbers<[1], [1], [0], [0], [0, 0, 1, 0], [], []>} : vector<8x8xf32>, vector<8x8xf32>, vector<8x8xf32> -> vector<8x8xf32>
    %1241 = vector.broadcast %1 : vector<1x8xf32> to vector<8x8xf32>
    %1242 = arith.addf %1240, %1241 : vector<8x8xf32>
    %cst_1040 = arith.constant dense<0xFF800000> : vector<8xf32>
    %1243 = vector.multi_reduction <maximumf>, %1242, %cst_1040 [1] : vector<8x8xf32> to vector<8xf32>
    %1244 = vector.shape_cast %1243 : vector<8xf32> to vector<8x1xf32>
    %1245 = vector.broadcast %1244 : vector<8x1xf32> to vector<8x8xf32>
    %1246 = arith.subf %1242, %1245 : vector<8x8xf32>
    %1247 = math.exp %1246 : vector<8x8xf32>
    %cst_1041 = arith.constant dense<0.000000e+00> : vector<8xf32>
    %1248 = vector.multi_reduction <add>, %1247, %cst_1041 [1] : vector<8x8xf32> to vector<8xf32>
    %1249 = vector.shape_cast %1248 : vector<8xf32> to vector<8x1xf32>
    %1250 = tpu.reciprocal %1249 {approx = true} : vector<8x1xf32> -> vector<8x1xf32>
    %1251 = vector.broadcast %1250 : vector<8x1xf32> to vector<8x8xf32>
    %1252 = arith.mulf %1247, %1251 : vector<8x8xf32>
    %cst_1042 = arith.constant dense<0.000000e+00> : vector<8x8xf32>
    %1253 = tpu.matmul %1252, %1239, %cst_1042 {dimension_numbers = #tpu.dot_dimension_numbers<[1], [0], [0], [1], [0, 0, 1, 1], [], []>} : vector<8x8xf32>, vector<8x8xf32>, vector<8x8xf32> -> vector<8x8xf32>
    %c1_1043 = arith.constant 1 : index
    %c3_1044 = arith.constant 3 : index
    %c0_1045 = arith.constant 0 : index
    %c0_1046 = arith.constant 0 : index
    %1254 = vector.load %arg13[%c1_1043, %c3_1044, %c0_1045, %c0_1046] : memref<2x4x8x32xf32, #tpu.memory_space<vmem>>, vector<1x1x8x32xf32>
    %1255 = vector.shape_cast %1254 : vector<1x1x8x32xf32> to vector<8x32xf32>
    %cst_1047 = arith.constant dense<0.000000e+00> : vector<8x32xf32>
    %1256 = tpu.matmul %1253, %1255, %cst_1047 {dimension_numbers = #tpu.dot_dimension_numbers<[1], [0], [0], [1], [0, 0, 1, 1], [], []>} : vector<8x8xf32>, vector<8x32xf32>, vector<8x32xf32> -> vector<8x32xf32>
    %1257 = arith.addf %1216, %1256 : vector<8x32xf32>
    %1258 = arith.addf %1090, %1257 : vector<8x32xf32>
    %c1_1048 = arith.constant 1 : index
    %c0_1049 = arith.constant 0 : index
    %c0_1050 = arith.constant 0 : index
    %1259 = vector.load %arg11[%c1_1048, %c0_1049, %c0_1050] : memref<2x1x32xf32, #tpu.memory_space<vmem>>, vector<1x1x32xf32>
    %1260 = vector.shape_cast %1259 : vector<1x1x32xf32> to vector<1x32xf32>
    %c1_1051 = arith.constant 1 : index
    %c0_1052 = arith.constant 0 : index
    %c0_1053 = arith.constant 0 : index
    %1261 = vector.load %arg6[%c1_1051, %c0_1052, %c0_1053] : memref<2x1x32xf32, #tpu.memory_space<vmem>>, vector<1x1x32xf32>
    %1262 = vector.shape_cast %1261 : vector<1x1x32xf32> to vector<1x32xf32>
    %cst_1054 = arith.constant dense<0.000000e+00> : vector<8xf32>
    %1263 = vector.multi_reduction <add>, %1258, %cst_1054 [1] : vector<8x32xf32> to vector<8xf32>
    %1264 = vector.shape_cast %1263 : vector<8xf32> to vector<8x1xf32>
    %cst_1055 = arith.constant 3.200000e+01 : f32
    %1265 = vector.broadcast %cst_1055 : f32 to vector<8x1xf32>
    %1266 = arith.divf %1264, %1265 : vector<8x1xf32>
    %1267 = vector.broadcast %1266 : vector<8x1xf32> to vector<8x32xf32>
    %1268 = arith.subf %1258, %1267 : vector<8x32xf32>
    %1269 = arith.mulf %1268, %1268 : vector<8x32xf32>
    %cst_1056 = arith.constant dense<0.000000e+00> : vector<8xf32>
    %1270 = vector.multi_reduction <add>, %1269, %cst_1056 [1] : vector<8x32xf32> to vector<8xf32>
    %1271 = vector.shape_cast %1270 : vector<8xf32> to vector<8x1xf32>
    %cst_1057 = arith.constant 3.200000e+01 : f32
    %1272 = vector.broadcast %cst_1057 : f32 to vector<8x1xf32>
    %1273 = arith.divf %1271, %1272 : vector<8x1xf32>
    %cst_1058 = arith.constant 9.99999974E-6 : f32
    %1274 = vector.broadcast %cst_1058 : f32 to vector<8x1xf32>
    %1275 = arith.addf %1273, %1274 : vector<8x1xf32>
    %1276 = math.rsqrt %1275 : vector<8x1xf32>
    %1277 = vector.broadcast %1276 : vector<8x1xf32> to vector<8x32xf32>
    %1278 = arith.mulf %1268, %1277 : vector<8x32xf32>
    %1279 = vector.broadcast %1260 : vector<1x32xf32> to vector<8x32xf32>
    %1280 = arith.mulf %1278, %1279 : vector<8x32xf32>
    %1281 = vector.broadcast %1262 : vector<1x32xf32> to vector<8x32xf32>
    %1282 = arith.addf %1280, %1281 : vector<8x32xf32>
    %c1_1059 = arith.constant 1 : index
    %c0_1060 = arith.constant 0 : index
    %c0_1061 = arith.constant 0 : index
    %1283 = vector.load %arg20[%c1_1059, %c0_1060, %c0_1061] : memref<2x32x64xf32, #tpu.memory_space<vmem>>, vector<1x32x64xf32>
    %1284 = vector.shape_cast %1283 : vector<1x32x64xf32> to vector<32x64xf32>
    %cst_1062 = arith.constant dense<0.000000e+00> : vector<8x64xf32>
    %1285 = tpu.matmul %1282, %1284, %cst_1062 {dimension_numbers = #tpu.dot_dimension_numbers<[1], [0], [0], [1], [0, 0, 1, 1], [], []>} : vector<8x32xf32>, vector<32x64xf32>, vector<8x64xf32> -> vector<8x64xf32>
    %c1_1063 = arith.constant 1 : index
    %c0_1064 = arith.constant 0 : index
    %c0_1065 = arith.constant 0 : index
    %1286 = vector.load %arg16[%c1_1063, %c0_1064, %c0_1065] : memref<2x1x64xf32, #tpu.memory_space<vmem>>, vector<1x1x64xf32>
    %1287 = vector.shape_cast %1286 : vector<1x1x64xf32> to vector<1x64xf32>
    %1288 = vector.broadcast %1287 : vector<1x64xf32> to vector<8x64xf32>
    %1289 = arith.addf %1285, %1288 : vector<8x64xf32>
    %cst_1066 = arith.constant 0.000000e+00 : f32
    %1290 = vector.broadcast %cst_1066 : f32 to vector<8x64xf32>
    %1291 = arith.maximumf %1289, %1290 : vector<8x64xf32>
    %c1_1067 = arith.constant 1 : index
    %c0_1068 = arith.constant 0 : index
    %c0_1069 = arith.constant 0 : index
    %1292 = vector.load %arg21[%c1_1067, %c0_1068, %c0_1069] : memref<2x64x32xf32, #tpu.memory_space<vmem>>, vector<1x64x32xf32>
    %1293 = vector.shape_cast %1292 : vector<1x64x32xf32> to vector<64x32xf32>
    %cst_1070 = arith.constant dense<0.000000e+00> : vector<8x32xf32>
    %1294 = tpu.matmul %1291, %1293, %cst_1070 {dimension_numbers = #tpu.dot_dimension_numbers<[1], [0], [0], [1], [0, 0, 1, 1], [], []>} : vector<8x64xf32>, vector<64x32xf32>, vector<8x32xf32> -> vector<8x32xf32>
    %c1_1071 = arith.constant 1 : index
    %c0_1072 = arith.constant 0 : index
    %c0_1073 = arith.constant 0 : index
    %1295 = vector.load %arg17[%c1_1071, %c0_1072, %c0_1073] : memref<2x1x32xf32, #tpu.memory_space<vmem>>, vector<1x1x32xf32>
    %1296 = vector.shape_cast %1295 : vector<1x1x32xf32> to vector<1x32xf32>
    %1297 = vector.broadcast %1296 : vector<1x32xf32> to vector<8x32xf32>
    %1298 = arith.addf %1294, %1297 : vector<8x32xf32>
    %1299 = arith.addf %1282, %1298 : vector<8x32xf32>
    %c1_1074 = arith.constant 1 : index
    %c0_1075 = arith.constant 0 : index
    %c0_1076 = arith.constant 0 : index
    %1300 = vector.load %arg19[%c1_1074, %c0_1075, %c0_1076] : memref<2x1x32xf32, #tpu.memory_space<vmem>>, vector<1x1x32xf32>
    %1301 = vector.shape_cast %1300 : vector<1x1x32xf32> to vector<1x32xf32>
    %c1_1077 = arith.constant 1 : index
    %c0_1078 = arith.constant 0 : index
    %c0_1079 = arith.constant 0 : index
    %1302 = vector.load %arg18[%c1_1077, %c0_1078, %c0_1079] : memref<2x1x32xf32, #tpu.memory_space<vmem>>, vector<1x1x32xf32>
    %1303 = vector.shape_cast %1302 : vector<1x1x32xf32> to vector<1x32xf32>
    %cst_1080 = arith.constant dense<0.000000e+00> : vector<8xf32>
    %1304 = vector.multi_reduction <add>, %1299, %cst_1080 [1] : vector<8x32xf32> to vector<8xf32>
    %1305 = vector.shape_cast %1304 : vector<8xf32> to vector<8x1xf32>
    %cst_1081 = arith.constant 3.200000e+01 : f32
    %1306 = vector.broadcast %cst_1081 : f32 to vector<8x1xf32>
    %1307 = arith.divf %1305, %1306 : vector<8x1xf32>
    %1308 = vector.broadcast %1307 : vector<8x1xf32> to vector<8x32xf32>
    %1309 = arith.subf %1299, %1308 : vector<8x32xf32>
    %1310 = arith.mulf %1309, %1309 : vector<8x32xf32>
    %cst_1082 = arith.constant dense<0.000000e+00> : vector<8xf32>
    %1311 = vector.multi_reduction <add>, %1310, %cst_1082 [1] : vector<8x32xf32> to vector<8xf32>
    %1312 = vector.shape_cast %1311 : vector<8xf32> to vector<8x1xf32>
    %cst_1083 = arith.constant 3.200000e+01 : f32
    %1313 = vector.broadcast %cst_1083 : f32 to vector<8x1xf32>
    %1314 = arith.divf %1312, %1313 : vector<8x1xf32>
    %cst_1084 = arith.constant 9.99999974E-6 : f32
    %1315 = vector.broadcast %cst_1084 : f32 to vector<8x1xf32>
    %1316 = arith.addf %1314, %1315 : vector<8x1xf32>
    %1317 = math.rsqrt %1316 : vector<8x1xf32>
    %1318 = vector.broadcast %1317 : vector<8x1xf32> to vector<8x32xf32>
    %1319 = arith.mulf %1309, %1318 : vector<8x32xf32>
    %1320 = vector.broadcast %1301 : vector<1x32xf32> to vector<8x32xf32>
    %1321 = arith.mulf %1319, %1320 : vector<8x32xf32>
    %1322 = vector.broadcast %1303 : vector<1x32xf32> to vector<8x32xf32>
    %1323 = arith.addf %1321, %1322 : vector<8x32xf32>
    %c0_1085 = arith.constant 0 : index
    %c0_1086 = arith.constant 0 : index
    %1324 = vector.load %arg48[%c0_1085, %c0_1086] : memref<32x128xf32, #tpu.memory_space<vmem>>, vector<32x128xf32>
    %cst_1087 = arith.constant dense<0.000000e+00> : vector<8x128xf32>
    %1325 = tpu.matmul %1323, %1324, %cst_1087 {dimension_numbers = #tpu.dot_dimension_numbers<[1], [0], [0], [1], [0, 0, 1, 1], [], []>} : vector<8x32xf32>, vector<32x128xf32>, vector<8x128xf32> -> vector<8x128xf32>
    %c0_1088 = arith.constant 0 : index
    %c0_1089 = arith.constant 0 : index
    %1326 = vector.load %arg5[%c0_1088, %c0_1089] : memref<1x128xf32, #tpu.memory_space<vmem>>, vector<1x128xf32>
    %1327 = vector.broadcast %1326 : vector<1x128xf32> to vector<8x128xf32>
    %1328 = arith.addf %1325, %1327 : vector<8x128xf32>
    %c0_1090 = arith.constant 0 : index
    %c0_1091 = arith.constant 0 : index
    %c0_1092 = arith.constant 0 : index
    %1329 = vector.load %arg49[%c0_1090, %c0_1091, %c0_1092] : memref<1x8x128xf32, #tpu.memory_space<vmem>>, vector<1x8x128xf32>
    %1330 = vector.shape_cast %1329 : vector<1x8x128xf32> to vector<8x128xf32>
    %1331 = vector.shape_cast %1328 : vector<8x128xf32> to vector<1x8x128xf32>
    tpu.vector_store %arg49[%c0_1090, %c0_1091, %c0_1092], %1331 {strides = array<i32>} : memref<1x8x128xf32, #tpu.memory_space<vmem>>, vector<1x8x128xf32>,
    return
  }
  func.func @transform_0(%arg0: i32) -> (i32, i32, i32) {
    %c0_i32 = arith.constant 0 : i32
    %c0_i32_0 = arith.constant 0 : i32
    %c0_i32_1 = arith.constant 0 : i32
    return %arg0, %c0_i32, %c0_i32_0 : i32, i32, i32
  }
  func.func @transform_1(%arg0: i32) -> (i32, i32, i32) {
    %c0_i32 = arith.constant 0 : i32
    %c0_i32_0 = arith.constant 0 : i32
    %c0_i32_1 = arith.constant 0 : i32
    return %arg0, %c0_i32, %c0_i32_0 : i32, i32, i32
  }
  func.func @transform_2(%arg0: i32) -> (i32, i32, i32) {
    %c0_i32 = arith.constant 0 : i32
    %c0_i32_0 = arith.constant 0 : i32
    %c0_i32_1 = arith.constant 0 : i32
    return %arg0, %c0_i32, %c0_i32_0 : i32, i32, i32
  }
  func.func @transform_3(%arg0: i32) -> (i32, i32, i32) {
    %c0_i32 = arith.constant 0 : i32
    %c0_i32_0 = arith.constant 0 : i32
    %c0_i32_1 = arith.constant 0 : i32
    return %arg0, %c0_i32, %c0_i32_0 : i32, i32, i32
  }
  func.func @transform_4(%arg0: i32) -> (i32, i32) {
    %c0_i32 = arith.constant 0 : i32
    %c0_i32_0 = arith.constant 0 : i32
    %c0_i32_1 = arith.constant 0 : i32
    return %c0_i32, %c0_i32_0 : i32, i32
  }
  func.func @transform_5(%arg0: i32) -> (i32, i32, i32) {
    %c0_i32 = arith.constant 0 : i32
    %c0_i32_0 = arith.constant 0 : i32
    %c0_i32_1 = arith.constant 0 : i32
    %c0_i32_2 = arith.constant 0 : i32
    return %c0_i32, %c0_i32_0, %c0_i32_1 : i32, i32, i32
  }
  func.func @transform_6(%arg0: i32) -> (i32, i32, i32, i32) {
    %c0_i32 = arith.constant 0 : i32
    %c0_i32_0 = arith.constant 0 : i32
    %c0_i32_1 = arith.constant 0 : i32
    %c0_i32_2 = arith.constant 0 : i32
    %c0_i32_3 = arith.constant 0 : i32
    return %c0_i32, %c0_i32_0, %c0_i32_1, %c0_i32_2 : i32, i32, i32, i32
  }
  func.func @transform_7(%arg0: i32) -> (i32, i32, i32) {
    %c0_i32 = arith.constant 0 : i32
    %c0_i32_0 = arith.constant 0 : i32
    %c0_i32_1 = arith.constant 0 : i32
    %c0_i32_2 = arith.constant 0 : i32
    return %c0_i32, %c0_i32_0, %c0_i32_1 : i32, i32, i32
  }
  func.func @transform_8(%arg0: i32) -> (i32, i32, i32, i32) {
    %c0_i32 = arith.constant 0 : i32
    %c0_i32_0 = arith.constant 0 : i32
    %c0_i32_1 = arith.constant 0 : i32
    %c0_i32_2 = arith.constant 0 : i32
    %c0_i32_3 = arith.constant 0 : i32
    return %c0_i32, %c0_i32_0, %c0_i32_1, %c0_i32_2 : i32, i32, i32, i32
  }
  func.func @transform_9(%arg0: i32) -> (i32, i32, i32, i32) {
    %c0_i32 = arith.constant 0 : i32
    %c0_i32_0 = arith.constant 0 : i32
    %c0_i32_1 = arith.constant 0 : i32
    %c0_i32_2 = arith.constant 0 : i32
    %c0_i32_3 = arith.constant 0 : i32
    return %c0_i32, %c0_i32_0, %c0_i32_1, %c0_i32_2 : i32, i32, i32, i32
  }
  func.func @transform_10(%arg0: i32) -> (i32, i32, i32) {
    %c0_i32 = arith.constant 0 : i32
    %c0_i32_0 = arith.constant 0 : i32
    %c0_i32_1 = arith.constant 0 : i32
    %c0_i32_2 = arith.constant 0 : i32
    return %c0_i32, %c0_i32_0, %c0_i32_1 : i32, i32, i32
  }
  func.func @transform_11(%arg0: i32) -> (i32, i32, i32, i32) {
    %c0_i32 = arith.constant 0 : i32
    %c0_i32_0 = arith.constant 0 : i32
    %c0_i32_1 = arith.constant 0 : i32
    %c0_i32_2 = arith.constant 0 : i32
    %c0_i32_3 = arith.constant 0 : i32
    return %c0_i32, %c0_i32_0, %c0_i32_1, %c0_i32_2 : i32, i32, i32, i32
  }
  func.func @transform_12(%arg0: i32) -> (i32, i32, i32, i32) {
    %c0_i32 = arith.constant 0 : i32
    %c0_i32_0 = arith.constant 0 : i32
    %c0_i32_1 = arith.constant 0 : i32
    %c0_i32_2 = arith.constant 0 : i32
    %c0_i32_3 = arith.constant 0 : i32
    return %c0_i32, %c0_i32_0, %c0_i32_1, %c0_i32_2 : i32, i32, i32, i32
  }
  func.func @transform_13(%arg0: i32) -> (i32, i32, i32, i32) {
    %c0_i32 = arith.constant 0 : i32
    %c0_i32_0 = arith.constant 0 : i32
    %c0_i32_1 = arith.constant 0 : i32
    %c0_i32_2 = arith.constant 0 : i32
    %c0_i32_3 = arith.constant 0 : i32
    return %c0_i32, %c0_i32_0, %c0_i32_1, %c0_i32_2 : i32, i32, i32, i32
  }
  func.func @transform_14(%arg0: i32) -> (i32, i32, i32, i32) {
    %c0_i32 = arith.constant 0 : i32
    %c0_i32_0 = arith.constant 0 : i32
    %c0_i32_1 = arith.constant 0 : i32
    %c0_i32_2 = arith.constant 0 : i32
    %c0_i32_3 = arith.constant 0 : i32
    return %c0_i32, %c0_i32_0, %c0_i32_1, %c0_i32_2 : i32, i32, i32, i32
  }
  func.func @transform_15(%arg0: i32) -> (i32, i32, i32) {
    %c0_i32 = arith.constant 0 : i32
    %c0_i32_0 = arith.constant 0 : i32
    %c0_i32_1 = arith.constant 0 : i32
    %c0_i32_2 = arith.constant 0 : i32
    return %c0_i32, %c0_i32_0, %c0_i32_1 : i32, i32, i32
  }
  func.func @transform_16(%arg0: i32) -> (i32, i32, i32) {
    %c0_i32 = arith.constant 0 : i32
    %c0_i32_0 = arith.constant 0 : i32
    %c0_i32_1 = arith.constant 0 : i32
    %c0_i32_2 = arith.constant 0 : i32
    return %c0_i32, %c0_i32_0, %c0_i32_1 : i32, i32, i32
  }
  func.func @transform_17(%arg0: i32) -> (i32, i32, i32) {
    %c0_i32 = arith.constant 0 : i32
    %c0_i32_0 = arith.constant 0 : i32
    %c0_i32_1 = arith.constant 0 : i32
    %c0_i32_2 = arith.constant 0 : i32
    return %c0_i32, %c0_i32_0, %c0_i32_1 : i32, i32, i32
  }
  func.func @transform_18(%arg0: i32) -> (i32, i32, i32) {
    %c0_i32 = arith.constant 0 : i32
    %c0_i32_0 = arith.constant 0 : i32
    %c0_i32_1 = arith.constant 0 : i32
    %c0_i32_2 = arith.constant 0 : i32
    return %c0_i32, %c0_i32_0, %c0_i32_1 : i32, i32, i32
  }
  func.func @transform_19(%arg0: i32) -> (i32, i32, i32) {
    %c0_i32 = arith.constant 0 : i32
    %c0_i32_0 = arith.constant 0 : i32
    %c0_i32_1 = arith.constant 0 : i32
    %c0_i32_2 = arith.constant 0 : i32
    return %c0_i32, %c0_i32_0, %c0_i32_1 : i32, i32, i32
  }
  func.func @transform_20(%arg0: i32) -> (i32, i32, i32) {
    %c0_i32 = arith.constant 0 : i32
    %c0_i32_0 = arith.constant 0 : i32
    %c0_i32_1 = arith.constant 0 : i32
    %c0_i32_2 = arith.constant 0 : i32
    return %c0_i32, %c0_i32_0, %c0_i32_1 : i32, i32, i32
  }
  func.func @transform_21(%arg0: i32) -> (i32, i32, i32) {
    %c0_i32 = arith.constant 0 : i32
    %c0_i32_0 = arith.constant 0 : i32
    %c0_i32_1 = arith.constant 0 : i32
    %c0_i32_2 = arith.constant 0 : i32
    return %c0_i32, %c0_i32_0, %c0_i32_1 : i32, i32, i32
  }
  func.func @transform_22(%arg0: i32) -> (i32, i32, i32, i32) {
    %c0_i32 = arith.constant 0 : i32
    %c0_i32_0 = arith.constant 0 : i32
    %c0_i32_1 = arith.constant 0 : i32
    %c0_i32_2 = arith.constant 0 : i32
    %c0_i32_3 = arith.constant 0 : i32
    return %c0_i32, %c0_i32_0, %c0_i32_1, %c0_i32_2 : i32, i32, i32, i32
  }
  func.func @transform_23(%arg0: i32) -> (i32, i32, i32) {
    %c0_i32 = arith.constant 0 : i32
    %c0_i32_0 = arith.constant 0 : i32
    %c0_i32_1 = arith.constant 0 : i32
    %c0_i32_2 = arith.constant 0 : i32
    return %c0_i32, %c0_i32_0, %c0_i32_1 : i32, i32, i32
  }
  func.func @transform_24(%arg0: i32) -> (i32, i32, i32, i32) {
    %c0_i32 = arith.constant 0 : i32
    %c0_i32_0 = arith.constant 0 : i32
    %c0_i32_1 = arith.constant 0 : i32
    %c0_i32_2 = arith.constant 0 : i32
    %c0_i32_3 = arith.constant 0 : i32
    return %c0_i32, %c0_i32_0, %c0_i32_1, %c0_i32_2 : i32, i32, i32, i32
  }
  func.func @transform_25(%arg0: i32) -> (i32, i32, i32, i32) {
    %c0_i32 = arith.constant 0 : i32
    %c0_i32_0 = arith.constant 0 : i32
    %c0_i32_1 = arith.constant 0 : i32
    %c0_i32_2 = arith.constant 0 : i32
    %c0_i32_3 = arith.constant 0 : i32
    return %c0_i32, %c0_i32_0, %c0_i32_1, %c0_i32_2 : i32, i32, i32, i32
  }
  func.func @transform_26(%arg0: i32) -> (i32, i32, i32) {
    %c0_i32 = arith.constant 0 : i32
    %c0_i32_0 = arith.constant 0 : i32
    %c0_i32_1 = arith.constant 0 : i32
    %c0_i32_2 = arith.constant 0 : i32
    return %c0_i32, %c0_i32_0, %c0_i32_1 : i32, i32, i32
  }
  func.func @transform_27(%arg0: i32) -> (i32, i32, i32, i32) {
    %c0_i32 = arith.constant 0 : i32
    %c0_i32_0 = arith.constant 0 : i32
    %c0_i32_1 = arith.constant 0 : i32
    %c0_i32_2 = arith.constant 0 : i32
    %c0_i32_3 = arith.constant 0 : i32
    return %c0_i32, %c0_i32_0, %c0_i32_1, %c0_i32_2 : i32, i32, i32, i32
  }
  func.func @transform_28(%arg0: i32) -> (i32, i32, i32, i32) {
    %c0_i32 = arith.constant 0 : i32
    %c0_i32_0 = arith.constant 0 : i32
    %c0_i32_1 = arith.constant 0 : i32
    %c0_i32_2 = arith.constant 0 : i32
    %c0_i32_3 = arith.constant 0 : i32
    return %c0_i32, %c0_i32_0, %c0_i32_1, %c0_i32_2 : i32, i32, i32, i32
  }
  func.func @transform_29(%arg0: i32) -> (i32, i32, i32, i32) {
    %c0_i32 = arith.constant 0 : i32
    %c0_i32_0 = arith.constant 0 : i32
    %c0_i32_1 = arith.constant 0 : i32
    %c0_i32_2 = arith.constant 0 : i32
    %c0_i32_3 = arith.constant 0 : i32
    return %c0_i32, %c0_i32_0, %c0_i32_1, %c0_i32_2 : i32, i32, i32, i32
  }
  func.func @transform_30(%arg0: i32) -> (i32, i32, i32, i32) {
    %c0_i32 = arith.constant 0 : i32
    %c0_i32_0 = arith.constant 0 : i32
    %c0_i32_1 = arith.constant 0 : i32
    %c0_i32_2 = arith.constant 0 : i32
    %c0_i32_3 = arith.constant 0 : i32
    return %c0_i32, %c0_i32_0, %c0_i32_1, %c0_i32_2 : i32, i32, i32, i32
  }
  func.func @transform_31(%arg0: i32) -> (i32, i32, i32) {
    %c0_i32 = arith.constant 0 : i32
    %c0_i32_0 = arith.constant 0 : i32
    %c0_i32_1 = arith.constant 0 : i32
    %c0_i32_2 = arith.constant 0 : i32
    return %c0_i32, %c0_i32_0, %c0_i32_1 : i32, i32, i32
  }
  func.func @transform_32(%arg0: i32) -> (i32, i32, i32, i32) {
    %c0_i32 = arith.constant 0 : i32
    %c0_i32_0 = arith.constant 0 : i32
    %c0_i32_1 = arith.constant 0 : i32
    %c0_i32_2 = arith.constant 0 : i32
    %c0_i32_3 = arith.constant 0 : i32
    return %c0_i32, %c0_i32_0, %c0_i32_1, %c0_i32_2 : i32, i32, i32, i32
  }
  func.func @transform_33(%arg0: i32) -> (i32, i32, i32) {
    %c0_i32 = arith.constant 0 : i32
    %c0_i32_0 = arith.constant 0 : i32
    %c0_i32_1 = arith.constant 0 : i32
    %c0_i32_2 = arith.constant 0 : i32
    return %c0_i32, %c0_i32_0, %c0_i32_1 : i32, i32, i32
  }
  func.func @transform_34(%arg0: i32) -> (i32, i32, i32, i32) {
    %c0_i32 = arith.constant 0 : i32
    %c0_i32_0 = arith.constant 0 : i32
    %c0_i32_1 = arith.constant 0 : i32
    %c0_i32_2 = arith.constant 0 : i32
    %c0_i32_3 = arith.constant 0 : i32
    return %c0_i32, %c0_i32_0, %c0_i32_1, %c0_i32_2 : i32, i32, i32, i32
  }
  func.func @transform_35(%arg0: i32) -> (i32, i32, i32, i32) {
    %c0_i32 = arith.constant 0 : i32
    %c0_i32_0 = arith.constant 0 : i32
    %c0_i32_1 = arith.constant 0 : i32
    %c0_i32_2 = arith.constant 0 : i32
    %c0_i32_3 = arith.constant 0 : i32
    return %c0_i32, %c0_i32_0, %c0_i32_1, %c0_i32_2 : i32, i32, i32, i32
  }
  func.func @transform_36(%arg0: i32) -> (i32, i32, i32) {
    %c0_i32 = arith.constant 0 : i32
    %c0_i32_0 = arith.constant 0 : i32
    %c0_i32_1 = arith.constant 0 : i32
    %c0_i32_2 = arith.constant 0 : i32
    return %c0_i32, %c0_i32_0, %c0_i32_1 : i32, i32, i32
  }
  func.func @transform_37(%arg0: i32) -> (i32, i32, i32, i32) {
    %c0_i32 = arith.constant 0 : i32
    %c0_i32_0 = arith.constant 0 : i32
    %c0_i32_1 = arith.constant 0 : i32
    %c0_i32_2 = arith.constant 0 : i32
    %c0_i32_3 = arith.constant 0 : i32
    return %c0_i32, %c0_i32_0, %c0_i32_1, %c0_i32_2 : i32, i32, i32, i32
  }
  func.func @transform_38(%arg0: i32) -> (i32, i32, i32, i32) {
    %c0_i32 = arith.constant 0 : i32
    %c0_i32_0 = arith.constant 0 : i32
    %c0_i32_1 = arith.constant 0 : i32
    %c0_i32_2 = arith.constant 0 : i32
    %c0_i32_3 = arith.constant 0 : i32
    return %c0_i32, %c0_i32_0, %c0_i32_1, %c0_i32_2 : i32, i32, i32, i32
  }
  func.func @transform_39(%arg0: i32) -> (i32, i32, i32, i32) {
    %c0_i32 = arith.constant 0 : i32
    %c0_i32_0 = arith.constant 0 : i32
    %c0_i32_1 = arith.constant 0 : i32
    %c0_i32_2 = arith.constant 0 : i32
    %c0_i32_3 = arith.constant 0 : i32
    return %c0_i32, %c0_i32_0, %c0_i32_1, %c0_i32_2 : i32, i32, i32, i32
  }
  func.func @transform_40(%arg0: i32) -> (i32, i32, i32, i32) {
    %c0_i32 = arith.constant 0 : i32
    %c0_i32_0 = arith.constant 0 : i32
    %c0_i32_1 = arith.constant 0 : i32
    %c0_i32_2 = arith.constant 0 : i32
    %c0_i32_3 = arith.constant 0 : i32
    return %c0_i32, %c0_i32_0, %c0_i32_1, %c0_i32_2 : i32, i32, i32, i32
  }
  func.func @transform_41(%arg0: i32) -> (i32, i32, i32) {
    %c0_i32 = arith.constant 0 : i32
    %c0_i32_0 = arith.constant 0 : i32
    %c0_i32_1 = arith.constant 0 : i32
    %c0_i32_2 = arith.constant 0 : i32
    return %c0_i32, %c0_i32_0, %c0_i32_1 : i32, i32, i32
  }
  func.func @transform_42(%arg0: i32) -> (i32, i32, i32) {
    %c0_i32 = arith.constant 0 : i32
    %c0_i32_0 = arith.constant 0 : i32
    %c0_i32_1 = arith.constant 0 : i32
    %c0_i32_2 = arith.constant 0 : i32
    return %c0_i32, %c0_i32_0, %c0_i32_1 : i32, i32, i32
  }
  func.func @transform_43(%arg0: i32) -> (i32, i32, i32) {
    %c0_i32 = arith.constant 0 : i32
    %c0_i32_0 = arith.constant 0 : i32
    %c0_i32_1 = arith.constant 0 : i32
    %c0_i32_2 = arith.constant 0 : i32
    return %c0_i32, %c0_i32_0, %c0_i32_1 : i32, i32, i32
  }
  func.func @transform_44(%arg0: i32) -> (i32, i32, i32) {
    %c0_i32 = arith.constant 0 : i32
    %c0_i32_0 = arith.constant 0 : i32
    %c0_i32_1 = arith.constant 0 : i32
    %c0_i32_2 = arith.constant 0 : i32
    return %c0_i32, %c0_i32_0, %c0_i32_1 : i32, i32, i32
  }
  func.func @transform_45(%arg0: i32) -> (i32, i32, i32) {
    %c0_i32 = arith.constant 0 : i32
    %c0_i32_0 = arith.constant 0 : i32
    %c0_i32_1 = arith.constant 0 : i32
    %c0_i32_2 = arith.constant 0 : i32
    return %c0_i32, %c0_i32_0, %c0_i32_1 : i32, i32, i32
  }
  func.func @transform_46(%arg0: i32) -> (i32, i32, i32) {
    %c0_i32 = arith.constant 0 : i32
    %c0_i32_0 = arith.constant 0 : i32
    %c0_i32_1 = arith.constant 0 : i32
    %c0_i32_2 = arith.constant 0 : i32
    return %c0_i32, %c0_i32_0, %c0_i32_1 : i32, i32, i32
  }
  func.func @transform_47(%arg0: i32) -> (i32, i32) {
    %c0_i32 = arith.constant 0 : i32
    %c0_i32_0 = arith.constant 0 : i32
    %c0_i32_1 = arith.constant 0 : i32
    return %c0_i32, %c0_i32_0 : i32, i32
  }
  func.func @transform_48(%arg0: i32) -> (i32, i32, i32) {
    %c0_i32 = arith.constant 0 : i32
    %c0_i32_0 = arith.constant 0 : i32
    %c0_i32_1 = arith.constant 0 : i32
    return %arg0, %c0_i32, %c0_i32_0 : i32, i32, i32
  }
}

</mosaic_0001>

<bundles_post_ra>
// kernel: transformer_forward.1
= control target key start
LH: loop header
LB: loop body
LE: loop exit
PB: predicated region body
PF: predicated region fallthrough
CT: control target
= control target key end

     0   :  { %s17770_s6 = smov 1   ;;  %s17771_s10 = smov 2   ;;  %s19620_s0 = inlined_call_operand.smem [shape: u32[49], index: -1, kind: input, shape index: {}] }
   0x1   :  { %s17832_s5 = sld [smem:[%s19620_s0]]   ;;  %s17772_s14 = smov 3  }
   0x2   :  { %s17837_s9 = sld [smem:[%s19620_s0 + %s17770_s6]]   ;;  %s17773_s18 = smov 4  }
   0x3   :  { %s17842_s13 = sld [smem:[%s19620_s0 + %s17771_s10]]   ;;  %s17774_s22 = smov 5  }
   0x4   :  { %s17847_s17 = sld [smem:[%s19620_s0 + %s17772_s14]]   ;;  %s17775_s26 = smov 6  }
   0x5   :  { %s17852_s21 = sld [smem:[%s19620_s0 + %s17773_s18]]   ;;  %s17776_s30 = smov 7  }
   0x6   :  { %s17857_s25 = sld [smem:[%s19620_s0 + %s17774_s22]]   ;;  %s17777_s4 = smov 8  }
   0x7   :  { %19685 = sst [smem:[#allocation5_spill]] %s17832_s5  ;;  %s17778_s10 = smov 9  }
   0x8   :  { %19686 = sst [smem:[#allocation6_spill]] %s17837_s9  ;;  %s17779_s15 = smov 10  }
   0x9   :  { %19687 = sst [smem:[#allocation7_spill]] %s17842_s13  ;;  %s17780_s20 = smov 11  }
   0xa   :  { %19688 = sst [smem:[#allocation8_spill]] %s17847_s17  ;;  %s17782_s1 = smov 13  }
   0xb   :  { %19689 = sst [smem:[#allocation9_spill]] %s17852_s21  ;;  %s17783_s7 = smov 14  }
   0xc   :  { %19690 = sst [smem:[#allocation10_spill]] %s17857_s25  ;;  %s17785_s22 = smov 16  }
   0xd   :  { %s17862_s29 = sld [smem:[%s19620_s0 + %s17775_s26]]   ;;  %s17781_s26 = smov 12  }
   0xe   :  { %s17867_s3 = sld [smem:[%s19620_s0 + %s17776_s30]]   ;;  %s17786_s28 = smov 17  }
   0xf   :  { %s17872_s8 = sld [smem:[%s19620_s0 + %s17777_s4]]  }
  0x10   :  { %s17877_s14 = sld [smem:[%s19620_s0 + %s17778_s10]]  }
  0x11   :  { %s17882_s19 = sld [smem:[%s19620_s0 + %s17779_s15]]   ;;  %s17784_s15 = smov 15  }
  0x12   :  { %s17887_s24 = sld [smem:[%s19620_s0 + %s17780_s20]]  }
  0x13   :  { %19691 = sst [smem:[#allocation11_spill]] %s17862_s29 }
  0x14   :  { %19692 = sst [smem:[#allocation12_spill]] %s17867_s3 }
  0x15   :  { %19693 = sst [smem:[#allocation13_spill]] %s17872_s8 }
  0x16   :  { %19694 = sst [smem:[#allocation14_spill]] %s17877_s14 }
  0x17   :  { %19695 = sst [smem:[#allocation15_spill]] %s17882_s19 }
  0x18   :  { %19696 = sst [smem:[#allocation16_spill]] %s17887_s24 }
  0x19   :  { %s17892_s30 = sld [smem:[%s19620_s0 + %s17781_s26]]  }
  0x1a   :  { %s17897_s6 = sld [smem:[%s19620_s0 + %s17782_s1]]  }
  0x1b   :  { %s17902_s12 = sld [smem:[%s19620_s0 + %s17783_s7]]   ;;  %s17787_s7 = smov 18  }
  0x1c   :  { %s17907_s20 = sld [smem:[%s19620_s0 + %s17784_s15]]   ;;  %s17788_s15 = smov 19  }
  0x1d   :  { %s17912_s27 = sld [smem:[%s19620_s0 + %s17785_s22]]   ;;  %s17789_s22 = smov 20  }
  0x1e   :  { %s17917_s4 = sld [smem:[%s19620_s0 + %s17786_s28]]   ;;  %s17790_s28 = smov 21  }
  0x1f   :  { %19697 = sst [smem:[#allocation17_spill]] %s17892_s30 }
  0x20   :  { %19698 = sst [smem:[#allocation18_spill]] %s17897_s6 }
  0x21   :  { %19699 = sst [smem:[#allocation19_spill]] %s17902_s12 }
  0x22   :  { %19700 = sst [smem:[#allocation20_spill]] %s17907_s20 }
  0x23   :  { %19701 = sst [smem:[#allocation21_spill]] %s17912_s27 }
  0x24   :  { %19702 = sst [smem:[#allocation22_spill]] %s17917_s4 }
  0x25   :  { %s17922_s21 = sld [smem:[%s19620_s0 + %s17787_s7]]   ;;  %s17791_s7 = smov 22  }
  0x26   :  { %s17927_s20 = sld [smem:[%s19620_s0 + %s17788_s15]]   ;;  %s17792_s15 = smov 23  }
  0x27   :  { %s17932_s27 = sld [smem:[%s19620_s0 + %s17789_s22]]   ;;  %s17793_s22 = smov 24  }
  0x28   :  { %s17937_s4 = sld [smem:[%s19620_s0 + %s17790_s28]]   ;;  %s17794_s28 = smov 25  }
  0x29   :  { %s17947_s25 = sld [smem:[%s19620_s0 + %s17792_s15]]   ;;  %s17796_s15 = smov 27  }
  0x2a   :  { %s17952_s19 = sld [smem:[%s19620_s0 + %s17793_s22]]   ;;  %s17797_s22 = smov 28  }
  0x2b   :  { %19703 = sst [smem:[#allocation23_spill]] %s17922_s21 }
  0x2c   :  { %19704 = sst [smem:[#allocation24_spill]] %s17927_s20 }
  0x2d   :  { %19705 = sst [smem:[#allocation25_spill]] %s17932_s27 }
  0x2e   :  { %19706 = sst [smem:[#allocation26_spill]] %s17937_s4 }
  0x2f   :  { %s17942_s21 = sld [smem:[%s19620_s0 + %s17791_s7]]   ;;  %s17795_s7 = smov 26  }
  0x30   :  { %19708 = sst [smem:[#allocation28_spill]] %s17947_s25 }
  0x31   :  { %19709 = sst [smem:[#allocation29_spill]] %s17952_s19 }
  0x32   :  { %s17957_s27 = sld [smem:[%s19620_s0 + %s17794_s28]]   ;;  %s17798_s28 = smov 29  }
  0x33   :  { %s17962_s20 = sld [smem:[%s19620_s0 + %s17795_s7]]   ;;  %s17799_s7 = smov 30  }
  0x34   :  { %s17967_s3 = sld [smem:[%s19620_s0 + %s17796_s15]]   ;;  %s17800_s15 = smov 31  }
  0x35   :  { %19707 = sst [smem:[#allocation27_spill]] %s17942_s21 }
  0x36   :  { %s17972_s30 = sld [smem:[%s19620_s0 + %s17797_s22]]   ;;  %s17801_s22 = smov 32  }
  0x37   :  { %s17977_s14 = sld [smem:[%s19620_s0 + %s17798_s28]]   ;;  %s17802_s28 = smov 33  }
  0x38   :  { %19710 = sst [smem:[#allocation30_spill]] %s17957_s27 }
  0x39   :  { %19711 = sst [smem:[#allocation31_spill]] %s17962_s20 }
  0x3a   :  { %19712 = sst [smem:[#allocation32_spill]] %s17967_s3 }
  0x3b   :  { %s17982_s8 = sld [smem:[%s19620_s0 + %s17799_s7]]   ;;  %s17803_s7 = smov 34  }
  0x3c   :  { %19713 = sst [smem:[#allocation33_spill]] %s17972_s30 }
  0x3d   :  { %19714 = sst [smem:[#allocation34_spill]] %s17977_s14 }
  0x3e   :  { %s17987_s29 = sld [smem:[%s19620_s0 + %s17800_s15]]   ;;  %s17804_s15 = smov 35  }
  0x3f   :  { %s17992_s4 = sld [smem:[%s19620_s0 + %s17801_s22]]   ;;  %s17805_s22 = smov 36  }
  0x40   :  { %s17997_s12 = sld [smem:[%s19620_s0 + %s17802_s28]]   ;;  %s17806_s28 = smov 37  }
  0x41   :  { %19715 = sst [smem:[#allocation35_spill]] %s17982_s8 }
  0x42   :  { %s18002_s20 = sld [smem:[%s19620_s0 + %s17803_s7]]   ;;  %s17807_s7 = smov 38  }
  0x43   :  { %s18007_s6 = sld [smem:[%s19620_s0 + %s17804_s15]]   ;;  %s17808_s15 = smov 39  }
  0x44   :  { %19716 = sst [smem:[#allocation36_spill]] %s17987_s29 }
  0x45   :  { %19717 = sst [smem:[#allocation37_spill]] %s17992_s4 }
  0x46   :  { %19718 = sst [smem:[#allocation38_spill]] %s17997_s12 }
  0x47   :  { %s18012_s24 = sld [smem:[%s19620_s0 + %s17805_s22]]   ;;  %s17809_s22 = smov 40  }
  0x48   :  { %19719 = sst [smem:[#allocation39_spill]] %s18002_s20 }
  0x49   :  { %19720 = sst [smem:[#allocation40_spill]] %s18007_s6 }
  0x4a   :  { %s18017_s25 = sld [smem:[%s19620_s0 + %s17806_s28]]   ;;  %s17810_s28 = smov 41  }
  0x4b   :  { %s18022_s30 = sld [smem:[%s19620_s0 + %s17807_s7]]   ;;  %s17811_s7 = smov 42  }
  0x4c   :  { %s18027_s27 = sld [smem:[%s19620_s0 + %s17808_s15]]   ;;  %s17812_s15 = smov 43  }
  0x4d   :  { %19721 = sst [smem:[#allocation41_spill]] %s18012_s24 }
  0x4e   :  { %s18032_s8 = sld [smem:[%s19620_s0 + %s17809_s22]]   ;;  %s17813_s22 = smov 44  }
  0x4f   :  { %s18037_s21 = sld [smem:[%s19620_s0 + %s17810_s28]]   ;;  %s17814_s28 = smov 45  }
  0x50   :  { %19722 = sst [smem:[#allocation42_spill]] %s18017_s25 }
  0x51   :  { %19723 = sst [smem:[#allocation43_spill]] %s18022_s30 }
  0x52   :  { %19724 = sst [smem:[#allocation44_spill]] %s18027_s27 }
  0x53   :  { %s18042_s19 = sld [smem:[%s19620_s0 + %s17811_s7]]   ;;  %s17815_s7 = smov 46  }
  0x54   :  { %19725 = sst [smem:[#allocation45_spill]] %s18032_s8 }
  0x55   :  { %19726 = sst [smem:[#allocation46_spill]] %s18037_s21 }
  0x56   :  { %s18047_s17 = sld [smem:[%s19620_s0 + %s17812_s15]]   ;;  %s17816_s15 = smov 47  }
  0x57   :  { %s18052_s3 = sld [smem:[%s19620_s0 + %s17813_s22]]   ;;  %s17817_s22 = smov 48  }
  0x58   :  { %s18057_s9 = sld [smem:[%s19620_s0 + %s17814_s28]]  }
  0x59   :  { %19727 = sst [smem:[#allocation47_spill]] %s18042_s19 }
  0x5a   :  { %s18062_s14 = sld [smem:[%s19620_s0 + %s17815_s7]]  }
  0x5c   :  { %19728 = sst [smem:[#allocation48_spill]] %s18047_s17 }
  0x5d   :  { %19729 = sst [smem:[#allocation49_spill]] %s18052_s3 }
  0x5e   :  { %19730 = sst [smem:[#allocation50_spill]] %s18057_s9 }
  0x5f   :  { %s18067_s17 = sld [smem:[%s19620_s0 + %s17816_s15]]  }
  0x60   :  { %19731 = sst [smem:[#allocation51_spill]] %s18062_s14 }
  0x61   :  { %s18072_s3 = sld [smem:[%s19620_s0 + %s17817_s22]]  }
  0x65   :  { %19732 = sst [smem:[#allocation52_spill]] %s18067_s17 }
  0x67   :  { %19733 = sst [smem:[#allocation53_spill]] %s18072_s3 }
  0x68   :  { %102 = vsyncpa [#allocation3], 0 }
  0x69   :  { %104 = vsyncpa [#allocation3 + $0x1], 0  ;;  %s18074_s28 = smov 0   ;;  %s18076_s1 = smov 0  }
  0x6a   :  { %s18078_s2 = smov 0   ;;  %s18080_s7 = smov 0  }
  0x6b LB: > { %s19734_s30 = sld [smem:[#allocation43_spill]]  ;;  %s19735_s29 = sld [smem:[#allocation36_spill]]  ;;  %s17760_s1 = sphi %s18076_s1, %s19808_s1   ;;  %s17756_s28 = sphi %s18074_s28, %s19807_s28   ;;  %s17768_s7 = sphi %s18080_s7, %s19804_s7   ;;  %s17764_s2 = sphi %s18078_s2, %s19806_s2  }
  0x6c   : > { %s19736_s27 = sld [smem:[#allocation44_spill]]  ;;  %s19737_s25 = sld [smem:[#allocation42_spill]] }
  0x6d   : > { %s19738_s24 = sld [smem:[#allocation41_spill]]  ;;  %s19739_s21 = sld [smem:[#allocation46_spill]] }
  0x6e   : > { %s19740_s20 = sld [smem:[#allocation39_spill]]  ;;  %s19742_s14 = sld [smem:[#allocation51_spill]] }
  0x6f   : > { %s19741_s19 = sld [smem:[#allocation47_spill]]  ;;  %s19743_s12 = sld [smem:[#allocation38_spill]] }
  0x70   : > { %s19744_s9 = sld [smem:[#allocation50_spill]]  ;;  %s19745_s8 = sld [smem:[#allocation45_spill]] }
  0x71   : > { %s19746_s6 = sld [smem:[#allocation40_spill]]  ;;  %s19747_s4 = sld [smem:[#allocation37_spill]] }
  0x72   : > { %19748 = sst [smem:[#allocation54_spill]] %s17756_s28  ;;  %s18095_s0 = sadd.s32 4294967295, %s17768_s7  }
  0x73   : > { %19749 = sst [smem:[#allocation55_spill]] %s17764_s2  ;;  %s14462_s10 = sadd.s32 4294967294, %s17768_s7  }
  0x74   : > { %19750 = sst [smem:[#allocation56_spill]] %s17768_s7  ;;  %s18099_s11 = sadd.s32 1, %s17768_s7  }
  0x75   : > { %19751 = sst [smem:[#allocation57_spill]] %s18095_s0  ;;  %s1145_s15 = sadd.s32 1, %s17764_s2 }
  0x76   : > { %19752 = sst [smem:[#allocation58_spill]] %s18099_s11  ;;  %s1142_s16 = ssub.s32 %s17768_s7, %s18099_s11 }
  0x77   : > { %p1155_p0 = scmp.ne.s32.totalorder %s17764_s2, %s17760_s1  ;;  %p1143_p1 = scmp.eq.s32.totalorder %s1142_s16, 0 }
  0x78   : > { %p1156_p2 = scmp.eq.s32.totalorder %s18095_s0, 1  ;;  %p1161_p3 = scmp.ne.s32.totalorder %s17760_s1, %s17756_s28 }
  0x79   : > { %p1162_p4 = scmp.eq.s32.totalorder %s14462_s10, 1  ;;  %p14465_p7 = scmp.ge.s32.totalorder %s17768_s7, 1 }
  0x7a   : > { %s18110_s18 = scalar_select %p1143_p1, %s17764_s2, %s1145_s15  }
  0x7b   : > { %p18112_p5 = por %p1156_p2, %p1155_p0  ;;  %p18116_p6 = por %p1162_p4, %p1161_p3 }
  0x7c   : > { %19753 = sst [smem:[#allocation59_spill]] %s18110_s18  ;;  %p1339_p8 = scmp.lt.s32.totalorder %s17768_s7, 3 }
  0x7d   : > { %s19754_s22 = scalar_select %p18112_p5, 1, 0 }
  0x7e   : > { %s19756_s23 = scalar_select %p18116_p6, 1, 0 }
  0x7f   : > { %19755 = sst [smem:[#allocation60_spill]] %s19754_s22  ;;  %p1340_p9 = pnand %p14465_p7, %p1339_p8 }
  0x80   : > { %19757 = sst [smem:[#allocation61_spill]] %s19756_s23  ;;  %v1494_v0 = vld [vmem:[%s19736_s27] sm:$0xff] (!%p1340_p9)  ;;  %v1495_v1 = vld [vmem:[%s19736_s27 + $0x8] sm:$0xff] (!%p1340_p9)  ;;  %v17818_v3 = vmov (!%p1340_p9), 0.0|0.0   ;;  %v1496_v6 = vld [vmem:[%s19736_s27 + $0x10] sm:$0xff] (!%p1340_p9)  ;;  %p1463_p10 = scmp.lt.s32.totalorder (!%p1340_p9), %s18095_s0, 1 }
  0x81   : > { %1343 = sbr.rel (%p1340_p9) target bundleno = 28920 (0x70f8), region = 212  ;;  %v1580_v2 = vld [vmem:[%s19737_s25] sm:$0xff] (!%p1340_p9)  ;;  %16984 = vmatprep.subr.bf16.mxu0 (!%p1340_p9), %v17818_v3  ;;  %16990 = vmatprep.subr.bf16.mxu1 (!%p1340_p9), %v17818_v3  ;;  %v16985_v4 = vpack.c.bf16 (!%p1340_p9), %v1495_v1, %v1494_v0  ;;  %v1581_v5 = vld [vmem:[%s19737_s25 + $0x8] sm:$0xff] (!%p1340_p9)  ;;  %v1497_v7 = vld [vmem:[%s19736_s27 + $0x18] sm:$0xff] (!%p1340_p9)  ;;  %s19758_s5 = sld [smem:[#allocation5_spill]] (!%p1340_p9)  ;;  %vm17819_vm0 = vmmov (!%p1340_p9), 0  }
  0x82   : > { %v16991_v8 = vpack.c.bf16 (!%p1340_p9), %v1581_v5, %v1580_v2  ;;  %v1582_v9 = vld [vmem:[%s19737_s25 + $0x10] sm:$0xff] (!%p1340_p9)  ;;  %v1583_v10 = vld [vmem:[%s19737_s25 + $0x18] sm:$0xff] (!%p1340_p9)  ;;  %v17820_v11 = vmov (!%p1340_p9), 0.0   ;;  %v16988_v12 = vpack.c.bf16 (!%p1340_p9), %v1497_v7, %v1496_v6  ;;  %vm1505_vm1 = vcmask (!%p1340_p9), 261120   ;;  %v14470_v15 = vld [vmem:[%s19740_s20] ss:$0 sm:$0xff] (!%p1340_p9) }
  0x83   : > { %15709 = vmatprep.mubr.msk.f32.mxu0 (!%p1340_p9), %vm17819_vm0, %v17820_v11  ;;  %15720 = vmatprep.mubr.msk.f32.mxu1 (!%p1340_p9), %vm17819_vm0, %v17820_v11  ;;  %v16994_v13 = vpack.c.bf16 (!%p1340_p9), %v1583_v10, %v1582_v9  ;;  %v14472_v16 = vld [vmem:[%s19747_s4] ss:$0 sm:$0xff] (!%p1340_p9)  ;;  %vm1748_vm2 = vcmask (!%p1340_p9), 64512   ;;  %s19759_s13 = sld [smem:[#allocation7_spill]] (!%p1340_p9)  ;;  %v1662_v25 = vld [vmem:[%s19745_s8 + $0x8] sm:$0xff] (!%p1340_p9)  ;;  %v1663_v26 = vld [vmem:[%s19745_s8 + $0x10] sm:$0xff] (!%p1340_p9) }
  0x84   : > { %16986 = vmatpush3.bf16.msra.mxu0 (!%p1340_p9), %v16985_v4  ;;  %16992 = vmatpush3.bf16.msra.mxu1 (!%p1340_p9), %v16991_v8  ;;  %v1661_v24 = vld [vmem:[%s19745_s8] sm:$0xff] (!%p1340_p9)  ;;  %v1664_v28 = vld [vmem:[%s19745_s8 + $0x18] sm:$0xff] (!%p1340_p9)  ;;  %v14483_v49 = vld [vmem:[%s19736_s27 + $0x28] sm:$0xff] (!%p1340_p9)  ;;  %vm3579_vm3 = vcmask (!%p1340_p9), 523264   ;;  %s19783_s18 = sld [smem:[#allocation25_spill]] (!%p1340_p9)  ;;  %s19784_s2 = sld [smem:[#allocation15_spill]] (!%p1340_p9) }
  0x85   : > { %16987 = vmatprep.subr.bf16.mxu0 (!%p1340_p9), %v17818_v3  ;;  %16993 = vmatprep.subr.bf16.mxu1 (!%p1340_p9), %v17818_v3  ;;  %v16997_v27 = vpack.c.bf16 (!%p1340_p9), %v1662_v25, %v1661_v24  ;;  %v17000_v29 = vpack.c.bf16 (!%p1340_p9), %v1664_v28, %v1663_v26  ;;  %v14474_v41 = vld [vmem:[%s19746_s6] ss:$0 sm:$0xff] (!%p1340_p9)  ;;  %v14484_v51 = vld [vmem:[%s19736_s27 + $0x30] sm:$0xff] (!%p1340_p9)  ;;  %v14485_v52 = vld [vmem:[%s19736_s27 + $0x38] sm:$0xff] (!%p1340_p9)  ;;  %s19786_s23 = sld [smem:[#allocation10_spill]] (!%p1340_p9)  ;;  %s19787_s28 = sld [smem:[#allocation20_spill]] (!%p1340_p9) }
  0x86   : > { %v1909_v44 = vld [vmem:[%s19734_s30] sm:$0xff] (!%p1340_p9)  ;;  %v17006_v53 = vpack.c.bf16 (!%p1340_p9), %v14485_v52, %v14484_v51  ;;  %v14490_v55 = vld [vmem:[%s19737_s25 + $0x28] sm:$0xff] (!%p1340_p9)  ;;  %v14491_v57 = vld [vmem:[%s19737_s25 + $0x30] sm:$0xff] (!%p1340_p9)  ;;  %s19789_s7 = sld [smem:[#allocation21_spill]] (!%p1340_p9) }
  0x87   : > { %v14482_v48 = vld [vmem:[%s19736_s27 + $0x20] sm:$0xff] (!%p1340_p9)  ;;  %v14492_v58 = vld [vmem:[%s19737_s25 + $0x38] sm:$0xff] (!%p1340_p9) }
  0x88   : > { %s18138_s26 = scalar_select %p1463_p10, %s18095_s0, 1  ;;  %16989 = vmatpush3.bf16.msra.mxu0 %v16988_v12  ;;  %16995 = vmatpush3.bf16.msra.mxu1 %v16994_v13  ;;  %v17003_v50 = vpack.c.bf16 %v14483_v49, %v14482_v48  ;;  %v14489_v54 = vld [vmem:[%s19737_s25 + $0x20] sm:$0xff]  ;;  %v17012_v61 = vpack.c.bf16 %v14492_v58, %v14491_v57  ;;  %v14497_v12 = vld [vmem:[%s19745_s8 + $0x28] sm:$0xff]  ;;  %v14498_v13 = vld [vmem:[%s19745_s8 + $0x30] sm:$0xff] }
  0x89   : > { %16996 = vmatprep.subr.bf16.mxu0 %v17818_v3  ;;  %15734 = vmatprep.subr.mxu1 %v17820_v11  ;;  %v17009_v56 = vpack.c.bf16 %v14490_v55, %v14489_v54  ;;  %v14487_v2 = vld [vmem:[%s19740_s20 + $0x1] ss:$0 sm:$0xff]  ;;  %v14481_v52 = vld [vmem:[%s19743_s12] ss:$0 sm:$0xff]  ;;  %v14513_v57 = vld [vmem:[%s19740_s20 + $0x2] ss:$0 sm:$0xff] }
  0x8a   : > { %s18143_s10 = sshll.u32 %s18138_s26, 3  ;;  %s18178_s16 = scalar_lea.vmem %s19759_s13, %s18138_s26  ;;  %v14494_v5 = vld [vmem:[%s19747_s4 + $0x1] ss:$0 sm:$0xff] }
  0x8b   : > { %s1466_s15 = scalar_lea.vmem %s19758_s5, %s18143_s10  ;;  %v18181_v30 = vld [vmem:[%s18178_s16] ss:$0 sm:$0xff]  ;;  %v14501_v28 = vld [vmem:[%s19746_s6 + $0x1] ss:$0 sm:$0xff]  ;;  %s19760_s26 = sld [smem:[#allocation49_spill]] }
  0x8c   : > { %v18147_v14 = vld [vmem:[%s1466_s15] sm:$0xff]  ;;  %s19761_s15 = sld [smem:[#allocation48_spill]]  ;;  %s19763_s5 = sld [smem:[#allocation6_spill]] }
  0x8d   : > { %15710 = vmatmul.mubr.msk.f32.vlgmr.msra.gmra.mrb[0].mxu0 %vm1505_vm1, %v18147_v14  ;;  %15721 = vmatmul.mubr.msk.f32.vlgmr.msra.gmra.mrb[0].mxu1 %vm1505_vm1, %v18147_v14  ;;  %v14496_v10 = vld [vmem:[%s19745_s8 + $0x20] sm:$0xff]  ;;  %s19768_s13 = sld [smem:[#allocation35_spill]]  ;;  %s19785_s11 = smov %s19784_s2 }
  0x8e   : > { %15731 = vmatprep.mubr.msk.f32.mxu0 %vm17819_vm0, %v17820_v11  ;;  %15736 = vmatprep.mubr.msk.f32.mxu1 %vm17819_vm0, %v17820_v11  ;;  %s19788_s22 = smov %s19787_s28  ;;  %s19790_s3 = smov %s19789_s7 }
  0x8f   : > { %16998 = vmatpush3.bf16.msra.mxu0 %v16997_v27 }
  0x90   : > { %16999 = vmatprep.subr.bf16.mxu0 %v17818_v3 }
  0x93   : > { %17001 = vmatpush3.bf16.msra.mxu0 %v17000_v29 }
  0x94   : > { %15744 = vmatprep.subr.mxu0 %v17820_v11 }
  0x96   : > { %15732 = vmatmul.mubr.msk.f32.vlgmr.msra.gmra.mrb[2].mxu0 %vm1505_vm1, %v18147_v14 }
  0x97   : > { %15746 = vmatprep.mubr.msk.f32.mxu0 %vm17819_vm0, %v17820_v11  ;;  %15745 = vmatpush3.msra.mxu0 %v1909_v44 }
  0x98   : > { %17008 = vmatprep.subr.bf16.mxu0 %v17818_v3 }
 0x160   : > { %v1575_v17 = vpop.f32.mrb[0].mxu0  ;;  %v1657_v19 = vpop.f32.mrb[0].mxu1 }
 0x161   : > { %v1576_v18 = vadd.f32 %v14470_v15, %v1575_v17  ;;  %v15711_v20 = vpop.f32.mrb[1].mxu0  ;;  %v1658_v21 = vadd.f32 %v14472_v16, %v1657_v19  ;;  %v15722_v22 = vpop.f32.mrb[1].mxu1  ;;  %v17015_v15 = vpack.c.bf16 %v14497_v12, %v14496_v10  ;;  %v14499_v16 = vld [vmem:[%s19745_s8 + $0x38] sm:$0xff] }
 0x162   : > { %v17018_v17 = vpack.c.bf16 %v14499_v16, %v14498_v13 }
 0x163   : > { %v1579_v23 = vmul.f32 0.35355338, %v1576_v18  ;;  %15735 = vmatpush3.xpose.msk.msra.mxu1 %vm1748_vm2, %v1658_v21 }
 0x164   : > { %15739 = vmatprep.subr.mxu1 %v17820_v11 }
 0x166   : > { %15737 = vmatmul.mubr.msk.f32.vlgmr.msra.gmra.mrb[2].mxu1 %vm1748_vm2, %v1579_v23 }
 0x167   : > { %15741 = vmatprep.mubr.msk.f32.mxu1 %vm17819_vm0, %v17820_v11 }
 0x169   : > { %v1738_v40 = vpop.f32.mrb[2].mxu0 }
 0x16a   : > { %v15733_v42 = vpop.f32.mrb[3].mxu0  ;;  %v1739_v43 = vadd.f32 %v14474_v41, %v1738_v40  ;;  %v14511_v40 = vld [vmem:[%s19736_s27 + $0x58] sm:$0xff] }
 0x16b   : > { %v14515_v42 = vld [vmem:[%s19737_s25 + $0x40] sm:$0xff] }
 0x16c   : > { %15740 = vmatpush3.msra.mxu1 %v1739_v43  ;;  %v14516_v43 = vld [vmem:[%s19737_s25 + $0x48] sm:$0xff] }
 0x16d   : > { %17002 = vmatprep.subr.bf16.mxu1 %v17818_v3  ;;  %v17027_v44 = vpack.c.bf16 %v14516_v43, %v14515_v42 }
 0x239   : > { %v1821_v31 = vpop.f32.mrb[2].mxu1 }
 0x23a   : > { %v1822_v32 = vadd.f32 %v18181_v30, %v1821_v31  ;;  %v15738_v33 = vpop.f32.mrb[3].mxu1 }
 0x23c   : > { %v1825_v34 = vsel %vm1748_vm2, %v1822_v32, -inf }
 0x23d   : > { %1826 = vmax.xlane.f32.xlu0 %v1825_v34 }
 0x2ca   : > { %v1827_v35 = vpop.xlane.xlu0 %1826 }
 0x2cb   : > { %v1828_v36 = vsub.f32 %v1822_v32, %v1827_v35  ;;  %v14506_v32 = vld [vmem:[%s19734_s30 + $0x8] sm:$0xff] }
 0x2cd   : > { %v1829_v37 = vmul.f32 1.442695, %v1828_v36  ;;  %v14508_v36 = vld [vmem:[%s19736_s27 + $0x40] sm:$0xff] }
 0x2cf   : > { %17587 = vpow2.f32 %v1829_v37  ;;  %v14509_v37 = vld [vmem:[%s19736_s27 + $0x48] sm:$0xff] }
 0x2d9   : > { %v17588_v38 = vpop.eup %17587 }
 0x2da   : > { %v1831_v39 = vsel %vm1748_vm2, %v17588_v38, 0.0 }
 0x2db   : > { %1832 = vadd.xlane.f32.xlu0 %v1831_v39  ;;  %v14510_v39 = vld [vmem:[%s19736_s27 + $0x50] sm:$0xff] }
 0x2dc   : > { %v17024_v41 = vpack.c.bf16 %v14511_v40, %v14510_v39 }
 0x368   : > { %v1833_v45 = vpop.xlane.xlu0 %1832 }
 0x369   : > { %17589 = vrcp.f32 %v1833_v45  ;;  %v14517_v45 = vld [vmem:[%s19737_s25 + $0x50] sm:$0xff] }
 0x373   : > { %v17590_v46 = vpop.eup %17589 }
 0x374   : > { %v1835_v47 = vmul.f32 %v17590_v46, %v17588_v38  ;;  %v17021_v38 = vpack.c.bf16 %v14509_v37, %v14508_v36  ;;  %v14518_v46 = vld [vmem:[%s19737_s25 + $0x58] sm:$0xff]  ;;  %v14543_v36 = vld [vmem:[%s19737_s25 + $0x70] sm:$0xff] }
 0x375   : > { %v17030_v49 = vpack.c.bf16 %v14518_v46, %v14517_v45  ;;  %v14544_v37 = vld [vmem:[%s19737_s25 + $0x78] sm:$0xff]  ;;  %v14539_v46 = vld [vmem:[%s19740_s20 + $0x3] ss:$0 sm:$0xff] }
 0x376   : > { %15742 = vmatmul.mubr.msk.f32.vlgmr.msra.gmra.mrb[4].mxu1 %vm1748_vm2, %v1835_v47  ;;  %v17048_v40 = vpack.c.bf16 %v14544_v37, %v14543_v36  ;;  %v3567_v37 = vld [vmem:[%s19742_s14 + $0x18] sm:$0xff] }
 0x377   : > { %15757 = vmatprep.mubr.msk.f32.mxu1 %vm17819_vm0, %v17820_v11  ;;  %17004 = vmatpush3.bf16.msra.mxu1 %v17003_v50 }
 0x378   : > { %17005 = vmatprep.subr.bf16.mxu1 %v17818_v3 }
 0x37b   : > { %17007 = vmatpush3.bf16.msra.mxu1 %v17006_v53 }
 0x37c   : > { %17014 = vmatprep.subr.bf16.mxu1 %v17818_v3 }
 0x37e   : > { %15758 = vmatmul.mubr.msk.f32.vlgmr.msra.gmra.mrb[6].mxu1 %vm1505_vm1, %v18147_v14 }
 0x37f   : > { %15779 = vmatprep.mubr.msk.f32.mxu1 %vm17819_vm0, %v17820_v11  ;;  %17016 = vmatpush3.bf16.msra.mxu1 %v17015_v15 }
 0x380   : > { %17017 = vmatprep.subr.bf16.mxu1 %v17818_v3 }
 0x383   : > { %17019 = vmatpush3.bf16.msra.mxu1 %v17018_v17 }
 0x384   : > { %15792 = vmatprep.subr.mxu1 %v17820_v11 }
 0x386   : > { %15780 = vmatmul.mubr.msk.f32.vlgmr.msra.gmra.mrb[8].mxu1 %vm1505_vm1, %v18147_v14 }
 0x387   : > { %15794 = vmatprep.mubr.msk.f32.mxu1 %vm17819_vm0, %v17820_v11  ;;  %15793 = vmatpush3.msra.mxu1 %v14506_v32 }
 0x388   : > { %17026 = vmatprep.subr.bf16.mxu1 %v17818_v3 }
 0x449   : > { %v1905_v59 = vpop.f32.mrb[4].mxu1 }
 0x44a   : > { %v15743_v60 = vpop.f32.mrb[5].mxu1  ;;  %15747 = vmatmul.mubr.msk.f32.vlgmr.msra.gmra.mrb[4].mxu0 %vm1748_vm2, %v1905_v59  ;;  %v14520_v59 = vld [vmem:[%s19747_s4 + $0x2] ss:$0 sm:$0xff] }
 0x44b   : > { %17010 = vmatpush3.bf16.msra.mxu0 %v17009_v56  ;;  %15768 = vmatprep.mubr.msk.f32.mxu0 %vm17819_vm0, %v17820_v11 }
 0x44c   : > { %17011 = vmatprep.subr.bf16.mxu0 %v17818_v3 }
 0x44f   : > { %17013 = vmatpush3.bf16.msra.mxu0 %v17012_v61 }
 0x450   : > { %15782 = vmatprep.subr.mxu0 %v17820_v11 }
 0x451   : > { %v2069_v62 = vpop.f32.mrb[6].mxu1 }
 0x452   : > { %15769 = vmatmul.mubr.msk.f32.vlgmr.msra.gmra.mrb[6].mxu0 %vm1505_vm1, %v18147_v14  ;;  %v15759_v63 = vpop.f32.mrb[7].mxu1  ;;  %v2070_v4 = vadd.f32 %v14487_v2, %v2069_v62  ;;  %v14524_v2 = vld [vmem:[%s19745_s8 + $0x50] sm:$0xff] }
 0x453   : > { %15784 = vmatprep.mubr.msk.f32.mxu0 %vm17819_vm0, %v17820_v11 }
 0x454   : > { %v2073_v9 = vmul.f32 0.35355338, %v2070_v4 }
 0x459   : > { %v2236_v27 = vpop.f32.mrb[8].mxu1 }
 0x45a   : > { %v15781_v29 = vpop.f32.mrb[9].mxu1  ;;  %v2237_v31 = vadd.f32 %v14501_v28, %v2236_v27  ;;  %v14535_v27 = vld [vmem:[%s19736_s27 + $0x68] sm:$0xff] }
 0x45b   : > { %v14536_v29 = vld [vmem:[%s19736_s27 + $0x70] sm:$0xff] }
 0x51d   : > { %v18216_v0 = vpop.f32.mrb[4].mxu0 }
 0x51e   : > { %v15748_v1 = vpop.f32.mrb[5].mxu0  ;;  %v1989_v53 = vadd.f32 %v14481_v52, %v18216_v0  ;;  %v14522_v0 = vld [vmem:[%s19745_s8 + $0x40] sm:$0xff] }
 0x51f   : > { %v14523_v1 = vld [vmem:[%s19745_s8 + $0x48] sm:$0xff] }
 0x520   : > { %v17033_v4 = vpack.c.bf16 %v14523_v1, %v14522_v0 }
 0x525   : > { %v2153_v6 = vpop.f32.mrb[6].mxu0 }
 0x526   : > { %v2154_v7 = vadd.f32 %v14494_v5, %v2153_v6  ;;  %v15770_v8 = vpop.f32.mrb[7].mxu0  ;;  %v14525_v5 = vld [vmem:[%s19745_s8 + $0x58] sm:$0xff] }
 0x527   : > { %v17036_v6 = vpack.c.bf16 %v14525_v5, %v14524_v2 }
 0x528   : > { %15783 = vmatpush3.xpose.msk.msra.mxu0 %vm1748_vm2, %v2154_v7 }
 0x529   : > { %15787 = vmatprep.subr.mxu0 %v17820_v11 }
 0x52b   : > { %15785 = vmatmul.mubr.msk.f32.vlgmr.msra.gmra.mrb[8].mxu0 %vm1748_vm2, %v2073_v9 }
 0x52c   : > { %15789 = vmatprep.mubr.msk.f32.mxu0 %vm17819_vm0, %v17820_v11  ;;  %15788 = vmatpush3.msra.mxu0 %v2237_v31  ;;  %v14537_v31 = vld [vmem:[%s19736_s27 + $0x78] sm:$0xff] }
 0x52d   : > { %17020 = vmatprep.subr.bf16.mxu0 %v17818_v3  ;;  %v17042_v32 = vpack.c.bf16 %v14537_v31, %v14536_v29  ;;  %v3482_v31 = vld [vmem:[%s19744_s9 + $0x18] sm:$0xff] }
 0x5fe   : > { %v2312_v18 = vpop.f32.mrb[8].mxu0 }
 0x5ff   : > { %v2313_v19 = vadd.f32 %v18181_v30, %v2312_v18  ;;  %v15786_v20 = vpop.f32.mrb[9].mxu0 }
 0x601   : > { %v2316_v21 = vsel %vm1748_vm2, %v2313_v19, -inf }
 0x602   : > { %2317 = vmax.xlane.f32.xlu1 %v2316_v21 }
 0x68f   : > { %v2318_v22 = vpop.xlane.xlu1 %2317 }
 0x690   : > { %v2319_v23 = vsub.f32 %v2313_v19, %v2318_v22  ;;  %v14527_v19 = vld [vmem:[%s19746_s6 + $0x2] ss:$0 sm:$0xff]  ;;  %v14532_v22 = vld [vmem:[%s19734_s30 + $0x10] sm:$0xff] }
 0x692   : > { %v2320_v24 = vmul.f32 1.442695, %v2319_v23 }
 0x694   : > { %17591 = vpow2.f32 %v2320_v24 }
 0x69e   : > { %v17592_v25 = vpop.eup %17591 }
 0x69f   : > { %v2322_v26 = vsel %vm1748_vm2, %v17592_v25, 0.0 }
 0x6a0   : > { %2323 = vadd.xlane.f32.xlu1 %v2322_v26  ;;  %v14534_v26 = vld [vmem:[%s19736_s27 + $0x60] sm:$0xff] }
 0x6a1   : > { %v17039_v28 = vpack.c.bf16 %v14535_v27, %v14534_v26  ;;  %v3479_v27 = vld [vmem:[%s19744_s9] sm:$0xff] }
 0x72d   : > { %v2324_v33 = vpop.xlane.xlu1 %2323 }
 0x72e   : > { %17593 = vrcp.f32 %v2324_v33  ;;  %v14541_v33 = vld [vmem:[%s19737_s25 + $0x60] sm:$0xff] }
 0x738   : > { %v17594_v34 = vpop.eup %17593 }
 0x739   : > { %v2326_v35 = vmul.f32 %v17594_v34, %v17592_v25  ;;  %v14542_v34 = vld [vmem:[%s19737_s25 + $0x68] sm:$0xff] }
 0x73b   : > { %15790 = vmatmul.mubr.msk.f32.vlgmr.msra.gmra.mrb[10].mxu0 %vm1748_vm2, %v2326_v35  ;;  %v17045_v35 = vpack.c.bf16 %v14542_v34, %v14541_v33  ;;  %v3564_v33 = vld [vmem:[%s19742_s14] sm:$0xff]  ;;  %v3565_v34 = vld [vmem:[%s19742_s14 + $0x8] sm:$0xff] }
 0x73c   : > { %15805 = vmatprep.mubr.msk.f32.mxu0 %vm17819_vm0, %v17820_v11  ;;  %17022 = vmatpush3.bf16.msra.mxu0 %v17021_v38  ;;  %v17063_v36 = vpack.c.bf16 %v3565_v34, %v3564_v33  ;;  %v14578_v33 = vld [vmem:[%s19737_s25 + $0x90] sm:$0xff]  ;;  %v14579_v34 = vld [vmem:[%s19737_s25 + $0x98] sm:$0xff] }
 0x73d   : > { %17023 = vmatprep.subr.bf16.mxu0 %v17818_v3 }
 0x740   : > { %17025 = vmatpush3.bf16.msra.mxu0 %v17024_v41 }
 0x741   : > { %17032 = vmatprep.subr.bf16.mxu0 %v17818_v3 }
 0x743   : > { %15806 = vmatmul.mubr.msk.f32.vlgmr.msra.gmra.mrb[12].mxu0 %vm1505_vm1, %v18147_v14 }
 0x744   : > { %15827 = vmatprep.mubr.msk.f32.mxu0 %vm17819_vm0, %v17820_v11  ;;  %17034 = vmatpush3.bf16.msra.mxu0 %v17033_v4 }
 0x745   : > { %17035 = vmatprep.subr.bf16.mxu0 %v17818_v3 }
 0x748   : > { %17037 = vmatpush3.bf16.msra.mxu0 %v17036_v6  ;;  %v14553_v6 = vld [vmem:[%s19746_s6 + $0x3] ss:$0 sm:$0xff] }
 0x749   : > { %15840 = vmatprep.subr.mxu0 %v17820_v11 }
 0x74b   : > { %15828 = vmatmul.mubr.msk.f32.vlgmr.msra.gmra.mrb[14].mxu0 %vm1505_vm1, %v18147_v14 }
 0x74c   : > { %15842 = vmatprep.mubr.msk.f32.mxu0 %vm17819_vm0, %v17820_v11  ;;  %15841 = vmatpush3.msra.mxu0 %v14532_v22 }
 0x74d   : > { %17044 = vmatprep.subr.bf16.mxu0 %v17818_v3 }
 0x80e   : > { %v2396_v47 = vpop.f32.mrb[10].mxu0 }
 0x80f   : > { %v15791_v48 = vpop.f32.mrb[11].mxu0  ;;  %15795 = vmatmul.mubr.msk.f32.vlgmr.msra.gmra.mrb[10].mxu1 %vm1748_vm2, %v2396_v47 }
 0x810   : > { %17028 = vmatpush3.bf16.msra.mxu1 %v17027_v44  ;;  %15816 = vmatprep.mubr.msk.f32.mxu1 %vm17819_vm0, %v17820_v11  ;;  %v14546_v48 = vld [vmem:[%s19747_s4 + $0x3] ss:$0 sm:$0xff] }
 0x811   : > { %17029 = vmatprep.subr.bf16.mxu1 %v17818_v3 }
 0x814   : > { %17031 = vmatpush3.bf16.msra.mxu1 %v17030_v49 }
 0x815   : > { %15830 = vmatprep.subr.mxu1 %v17820_v11 }
 0x816   : > { %v2555_v50 = vpop.f32.mrb[12].mxu0 }
 0x817   : > { %15817 = vmatmul.mubr.msk.f32.vlgmr.msra.gmra.mrb[12].mxu1 %vm1505_vm1, %v18147_v14  ;;  %v15807_v51 = vpop.f32.mrb[13].mxu0  ;;  %v2556_v58 = vadd.f32 %v14513_v57, %v2555_v50  ;;  %v14551_v57 = vld [vmem:[%s19745_s8 + $0x78] sm:$0xff] }
 0x818   : > { %15832 = vmatprep.mubr.msk.f32.mxu1 %vm17819_vm0, %v17820_v11 }
 0x819   : > { %v2559_v63 = vmul.f32 0.35355338, %v2556_v58 }
 0x81e   : > { %v2722_v18 = vpop.f32.mrb[14].mxu0 }
 0x81f   : > { %v15829_v20 = vpop.f32.mrb[15].mxu0  ;;  %v2723_v21 = vadd.f32 %v14527_v19, %v2722_v18 }
 0x8e2   : > { %v2471_v54 = vpop.f32.mrb[10].mxu1 }
 0x8e3   : > { %v18270_v55 = vadd.f32 %v2471_v54, %v1989_v53  ;;  %v15796_v56 = vpop.f32.mrb[11].mxu1  ;;  %v14548_v53 = vld [vmem:[%s19745_s8 + $0x60] sm:$0xff]  ;;  %v14549_v54 = vld [vmem:[%s19745_s8 + $0x68] sm:$0xff] }
 0x8e4   : > { %v17051_v56 = vpack.c.bf16 %v14549_v54, %v14548_v53  ;;  %v14562_v54 = vld [vmem:[%s19739_s21] ss:$0 sm:$0xff] }
 0x8ea   : > { %v2639_v60 = vpop.f32.mrb[12].mxu1 }
 0x8eb   : > { %v2640_v61 = vadd.f32 %v14520_v59, %v2639_v60  ;;  %v15818_v62 = vpop.f32.mrb[13].mxu1 }
 0x8ed   : > { %15831 = vmatpush3.xpose.msk.msra.mxu1 %vm1748_vm2, %v2640_v61 }
 0x8ee   : > { %15835 = vmatprep.subr.mxu1 %v17820_v11 }
 0x8f0   : > { %15833 = vmatmul.mubr.msk.f32.vlgmr.msra.gmra.mrb[14].mxu1 %vm1748_vm2, %v2559_v63 }
 0x8f1   : > { %15837 = vmatprep.mubr.msk.f32.mxu1 %vm17819_vm0, %v17820_v11  ;;  %15836 = vmatpush3.msra.mxu1 %v2723_v21 }
 0x8f2   : > { %17038 = vmatprep.subr.bf16.mxu1 %v17818_v3 }
 0x9c3   : > { %v2798_v7 = vpop.f32.mrb[14].mxu1 }
 0x9c4   : > { %v2799_v8 = vadd.f32 %v18181_v30, %v2798_v7  ;;  %v15834_v9 = vpop.f32.mrb[15].mxu1 }
 0x9c5   : > { %v14558_v9 = vld [vmem:[%s19734_s30 + $0x18] sm:$0xff] }
 0x9c6   : > { %v2802_v10 = vsel %vm1748_vm2, %v2799_v8, -inf }
 0x9c7   : > { %2803 = vmax.xlane.f32.xlu0 %v2802_v10 }
 0xa54   : > { %v2804_v12 = vpop.xlane.xlu0 %2803 }
 0xa55   : > { %v2805_v13 = vsub.f32 %v2799_v8, %v2804_v12 }
 0xa57   : > { %v2806_v15 = vmul.f32 1.442695, %v2805_v13 }
 0xa59   : > { %17595 = vpow2.f32 %v2806_v15 }
 0xa63   : > { %v17596_v16 = vpop.eup %17595 }
 0xa64   : > { %v2808_v17 = vsel %vm1748_vm2, %v17596_v16, 0.0 }
 0xa65   : > { %2809 = vadd.xlane.f32.xlu1 %v2808_v17 }
 0xaf2   : > { %v2810_v23 = vpop.xlane.xlu1 %2809 }
 0xaf3   : > { %17597 = vrcp.f32 %v2810_v23 }
 0xafd   : > { %v17598_v24 = vpop.eup %17597 }
 0xafe   : > { %v2812_v25 = vmul.f32 %v17598_v24, %v17596_v16 }
 0xb00   : > { %15838 = vmatmul.mubr.msk.f32.vlgmr.msra.gmra.mrb[16].mxu1 %vm1748_vm2, %v2812_v25 }
 0xb01   : > { %15853 = vmatprep.mubr.msk.f32.mxu1 %vm17819_vm0, %v17820_v11  ;;  %17040 = vmatpush3.bf16.msra.mxu1 %v17039_v28  ;;  %v3480_v28 = vld [vmem:[%s19744_s9 + $0x8] sm:$0xff] }
 0xb02   : > { %17041 = vmatprep.subr.bf16.mxu1 %v17818_v3  ;;  %v17057_v29 = vpack.c.bf16 %v3480_v28, %v3479_v27  ;;  %v14576_v27 = vld [vmem:[%s19737_s25 + $0x80] sm:$0xff]  ;;  %v14577_v28 = vld [vmem:[%s19737_s25 + $0x88] sm:$0xff] }
 0xb05   : > { %17043 = vmatpush3.bf16.msra.mxu1 %v17042_v32 }
 0xb06   : > { %17050 = vmatprep.subr.bf16.mxu1 %v17818_v3 }
 0xb08   : > { %15854 = vmatmul.mubr.msk.f32.vlgmr.msra.gmra.mrb[18].mxu1 %vm1505_vm1, %v18147_v14 }
 0xb09   : > { %15875 = vmatprep.mubr.msk.f32.mxu1 %vm17819_vm0, %v17820_v11  ;;  %17052 = vmatpush3.bf16.msra.mxu1 %v17051_v56 }
 0xb0a   : > { %17053 = vmatprep.subr.bf16.mxu1 %v17818_v3 }
 0xbd3   : > { %v2882_v38 = vpop.f32.mrb[16].mxu1 }
 0xbd4   : > { %v15839_v39 = vpop.f32.mrb[17].mxu1  ;;  %15843 = vmatmul.mubr.msk.f32.vlgmr.msra.gmra.mrb[16].mxu0 %vm1748_vm2, %v2882_v38 }
 0xbd5   : > { %17046 = vmatpush3.bf16.msra.mxu0 %v17045_v35  ;;  %15864 = vmatprep.mubr.msk.f32.mxu0 %vm17819_vm0, %v17820_v11  ;;  %v3566_v35 = vld [vmem:[%s19742_s14 + $0x10] sm:$0xff]  ;;  %v3568_v39 = vld [vmem:[%s19742_s14 + $0x20] sm:$0xff] }
 0xbd6   : > { %17047 = vmatprep.subr.bf16.mxu0 %v17818_v3  ;;  %v17066_v38 = vpack.c.bf16 %v3567_v37, %v3566_v35  ;;  %v17084_v35 = vpack.c.bf16 %v14579_v34, %v14578_v33  ;;  %v14615_v34 = vld [vmem:[%s19746_s6 + $0x5] ss:$0 sm:$0xff] }
 0xbd9   : > { %17049 = vmatpush3.bf16.msra.mxu0 %v17048_v40  ;;  %v3569_v40 = vld [vmem:[%s19742_s14 + $0x28] sm:$0xff] }
 0xbda   : > { %15878 = vmatprep.subr.mxu0 %v17820_v11 }
 0xbdb   : > { %v3041_v41 = vpop.f32.mrb[18].mxu1 }
 0xbdc   : > { %15865 = vmatmul.mubr.msk.f32.vlgmr.msra.gmra.mrb[18].mxu0 %vm1505_vm1, %v18147_v14  ;;  %v15855_v42 = vpop.f32.mrb[19].mxu1  ;;  %v3042_v47 = vadd.f32 %v14539_v46, %v3041_v41  ;;  %v17069_v41 = vpack.c.bf16 %v3569_v40, %v3568_v39  ;;  %v14560_v46 = vld [vmem:[%s19738_s24] ss:$0 sm:$0xff] }
 0xbdd   : > { %15880 = vmatprep.mubr.msk.f32.mxu0 %vm17819_vm0, %v17820_v11 }
 0xbde   : > { %v3045_v52 = vmul.f32 0.35355338, %v3042_v47 }
 0xca7   : > { %v2957_v43 = vpop.f32.mrb[16].mxu0 }
 0xca8   : > { %v2961_v44 = vadd.f32 %v2957_v43, %v18270_v55  ;;  %v15844_v45 = vpop.f32.mrb[17].mxu0  ;;  %v14550_v55 = vld [vmem:[%s19745_s8 + $0x70] sm:$0xff] }
 0xca9   : > { %v17054_v58 = vpack.c.bf16 %v14551_v57, %v14550_v55 }
 0xcab   : > { %17055 = vmatpush3.bf16.msra.mxu1 %v17054_v58 }
 0xcac   : > { %15888 = vmatprep.subr.mxu1 %v17820_v11 }
 0xcae   : > { %15876 = vmatmul.mubr.msk.f32.vlgmr.msra.gmra.mrb[20].mxu1 %vm1505_vm1, %v18147_v14 }
 0xcaf   : > { %v3125_v49 = vpop.f32.mrb[18].mxu0  ;;  %15890 = vmatprep.mubr.msk.f32.mxu1 %vm17819_vm0, %v17820_v11  ;;  %15889 = vmatpush3.msra.mxu1 %v14558_v9 }
 0xcb0   : > { %v3126_v50 = vadd.f32 %v14546_v48, %v3125_v49  ;;  %v15866_v51 = vpop.f32.mrb[19].mxu0  ;;  %17062 = vmatprep.subr.bf16.mxu1 %v17818_v3  ;;  %v14561_v48 = vld [vmem:[%s19735_s29] ss:$0 sm:$0xff] }
 0xcb1   : > { %v3570_v51 = vld [vmem:[%s19742_s14 + $0x30] sm:$0xff] }
 0xcb2   : > { %15879 = vmatpush3.xpose.msk.msra.mxu0 %vm1748_vm2, %v3126_v50 }
 0xcb3   : > { %15883 = vmatprep.subr.mxu0 %v17820_v11 }
 0xcb5   : > { %15881 = vmatmul.mubr.msk.f32.vlgmr.msra.gmra.mrb[20].mxu0 %vm1748_vm2, %v3045_v52  ;;  %v3571_v52 = vld [vmem:[%s19742_s14 + $0x38] sm:$0xff] }
 0xcb6   : > { %15885 = vmatprep.mubr.msk.f32.mxu0 %vm17819_vm0, %v17820_v11  ;;  %v17072_v53 = vpack.c.bf16 %v3571_v52, %v3570_v51 }
 0xd81   : > { %v3208_v5 = vpop.f32.mrb[20].mxu1 }
 0xd82   : > { %v15877_v7 = vpop.f32.mrb[21].mxu1  ;;  %v3209_v8 = vadd.f32 %v14553_v6, %v3208_v5 }
 0xd83   : > { %v14569_v7 = vld [vmem:[%s19736_s27 + $0x80] sm:$0xff] }
 0xd84   : > { %15884 = vmatpush3.msra.mxu0 %v3209_v8  ;;  %v14570_v8 = vld [vmem:[%s19736_s27 + $0x88] sm:$0xff] }
 0xd85   : > { %17056 = vmatprep.subr.bf16.mxu0 %v17818_v3  ;;  %v17075_v9 = vpack.c.bf16 %v14570_v8, %v14569_v7  ;;  %v14612_v8 = vld [vmem:[%s19745_s8 + $0xb0] sm:$0xff] }
 0xd88   : > { %v3284_v59 = vpop.f32.mrb[20].mxu0 }
 0xd89   : > { %v3285_v60 = vadd.f32 %v18181_v30, %v3284_v59  ;;  %v15882_v61 = vpop.f32.mrb[21].mxu0  ;;  %v14564_v59 = vld [vmem:[%s19741_s19] ss:$0 sm:$0xff] }
 0xd8b   : > { %v3288_v62 = vsel %vm1748_vm2, %v3285_v60, -inf }
 0xd8c   : > { %3289 = vmax.xlane.f32.xlu0 %v3288_v62 }
 0xe19   : > { %v3290_v63 = vpop.xlane.xlu0 %3289 }
 0xe1a   : > { %v3291_v0 = vsub.f32 %v3285_v60, %v3290_v63 }
 0xe1c   : > { %v3292_v1 = vmul.f32 1.442695, %v3291_v0 }
 0xe1e   : > { %17599 = vpow2.f32 %v3292_v1 }
 0xe28   : > { %v17600_v2 = vpop.eup %17599 }
 0xe29   : > { %v3294_v4 = vsel %vm1748_vm2, %v17600_v2, 0.0 }
 0xe2a   : > { %3295 = vadd.xlane.f32.xlu1 %v3294_v4 }
 0xeb7   : > { %v3296_v10 = vpop.xlane.xlu1 %3295 }
 0xeb8   : > { %17601 = vrcp.f32 %v3296_v10  ;;  %v14583_v10 = vld [vmem:[%s19745_s8 + $0x80] sm:$0xff] }
 0xec2   : > { %v17602_v12 = vpop.eup %17601 }
 0xec3   : > { %v3298_v13 = vmul.f32 %v17602_v12, %v17600_v2  ;;  %v14584_v12 = vld [vmem:[%s19745_s8 + $0x88] sm:$0xff] }
 0xec5   : > { %15886 = vmatmul.mubr.msk.f32.vlgmr.msra.gmra.mrb[22].mxu0 %vm1748_vm2, %v3298_v13  ;;  %v17087_v13 = vpack.c.bf16 %v14584_v12, %v14583_v10  ;;  %v14603_v12 = vld [vmem:[%s19737_s25 + $0xa0] sm:$0xff] }
 0xec6   : > { %15901 = vmatprep.mubr.msk.f32.mxu0 %vm17819_vm0, %v17820_v11  ;;  %17058 = vmatpush3.bf16.msra.mxu0 %v17057_v29  ;;  %v14567_v29 = vld [vmem:[%s19761_s15] ss:$0 sm:$0xff] }
 0xec7   : > { %17059 = vmatprep.subr.bf16.mxu0 %v17818_v3 }
 0xf98   : > { %v3368_v15 = vpop.f32.mrb[22].mxu0 }
 0xf99   : > { %v15887_v16 = vpop.f32.mrb[23].mxu0  ;;  %15891 = vmatmul.mubr.msk.f32.vlgmr.msra.gmra.mrb[22].mxu1 %vm1748_vm2, %v3368_v15  ;;  %v14571_v15 = vld [vmem:[%s19736_s27 + $0x90] sm:$0xff] }
 0xf9a   : > { %15920 = vmatprep.mubr.msk.f32.mxu1 %vm17819_vm0, %v17820_v11  ;;  %17064 = vmatpush3.bf16.msra.mxu1 %v17063_v36  ;;  %v14572_v16 = vld [vmem:[%s19736_s27 + $0x98] sm:$0xff]  ;;  %v14588_v36 = vld [vmem:[%s19746_s6 + $0x4] ss:$0 sm:$0xff] }
 0xf9b   : > { %17065 = vmatprep.subr.bf16.mxu1 %v17818_v3 }
 0xf9e   : > { %17067 = vmatpush3.bf16.msra.mxu1 %v17066_v38 }
 0xf9f   : > { %17068 = vmatprep.subr.bf16.mxu1 %v17818_v3 }
 0xfa2   : > { %17070 = vmatpush3.bf16.msra.mxu1 %v17069_v41 }
 0xfa3   : > { %17071 = vmatprep.subr.bf16.mxu1 %v17818_v3 }
 0xfa6   : > { %17073 = vmatpush3.bf16.msra.mxu1 %v17072_v53 }
 0xfa7   : > { %17086 = vmatprep.subr.bf16.mxu1 %v17818_v3 }
0x106c   : > { %v3443_v17 = vpop.f32.mrb[22].mxu1 }
0x106d   : > { %v3447_v18 = vadd.f32 %v3443_v17, %v2961_v44  ;;  %v15892_v19 = vpop.f32.mrb[23].mxu1  ;;  %v17078_v17 = vpack.c.bf16 %v14572_v16, %v14571_v15  ;;  %v14605_v16 = vld [vmem:[%s19737_s25 + $0xb0] sm:$0xff] }
0x106e   : > { %v14586_v19 = vld [vmem:[%s19745_s8 + $0x98] sm:$0xff] }
0x106f   : > { %v3448_v20 = vadd.f32 %v3447_v18, %v18147_v14  ;;  %v3481_v14 = vld [vmem:[%s19744_s9 + $0x10] sm:$0xff] }
0x1070   : > { %v17060_v32 = vpack.c.bf16 %v3482_v31, %v3481_v14  ;;  %v14585_v18 = vld [vmem:[%s19745_s8 + $0x90] sm:$0xff]  ;;  %v17081_v31 = vpack.c.bf16 %v14577_v28, %v14576_v27  ;;  %v14601_v27 = vld [vmem:[%s19740_s20 + $0x5] ss:$0 sm:$0xff] }
0x1071   : > { %v3451_v21 = vsel %vm1505_vm1, %v3448_v20, 0.0  ;;  %v14608_v28 = vld [vmem:[%s19747_s4 + $0x5] ss:$0 sm:$0xff] }
0x1072   : > { %3452 = vadd.xlane.f32.xlu0 %v3451_v21  ;;  %17061 = vmatpush3.bf16.msra.mxu0 %v17060_v32 }
0x1073   : > { %17074 = vmatprep.subr.bf16.mxu0 %v17818_v3 }
0x10ff   : > { %v3453_v22 = vpop.xlane.xlu0 %3452 }
0x1100   : > { %v3455_v23 = vmul.f32 0.03125, %v3453_v22 }
0x1102   : > { %v3456_v24 = vsub.f32 %v3448_v20, %v3455_v23  ;;  %v17090_v20 = vpack.c.bf16 %v14586_v19, %v14585_v18 }
0x1104   : > { %v3457_v25 = vmul.f32 %v3456_v24, %v3456_v24 }
0x1106   : > { %v3458_v26 = vsel %vm1505_vm1, %v3457_v25, 0.0  ;;  %v14566_v25 = vld [vmem:[%s19760_s26] ss:$0 sm:$0xff] }
0x1107   : > { %3459 = vadd.xlane.f32.xlu1 %v3458_v26 }
0x1194   : > { %v3460_v42 = vpop.xlane.xlu1 %3459 }
0x1195   : > { %v3461_v43 = vmul.f32 0.03125, %v3460_v42  ;;  %v14574_v42 = vld [vmem:[%s19740_s20 + $0x4] ss:$0 sm:$0xff] }
0x1197   : > { %v3462_v44 = vadd.f32 1e-05, %v3461_v43  ;;  %v14581_v43 = vld [vmem:[%s19747_s4 + $0x4] ss:$0 sm:$0xff] }
0x1199   : > { %17603 = vrsqrt.f32 %v3462_v44 }
0x11a3   : > { %v17604_v45 = vpop.eup %17603 }
0x11a4   : > { %v3464_v47 = vmul.f32 %v17604_v45, %v3456_v24 }
0x11a6   : > { %v3471_v49 = vmul.f32 %v14560_v46, %v3464_v47 }
0x11a8   : > { %v3478_v50 = vadd.f32 %v14561_v48, %v3471_v49 }
0x11aa   : > { %15902 = vmatmul.mubr.msk.f32.vlgmr.msra.gmra.mrb[24].mxu0 %vm1505_vm1, %v3478_v50 }
0x11ab   : > { %15931 = vmatprep.mubr.msk.f32.mxu0 %vm17819_vm0, %v17820_v11  ;;  %17076 = vmatpush3.bf16.msra.mxu0 %v17075_v9  ;;  %v14613_v9 = vld [vmem:[%s19745_s8 + $0xb8] sm:$0xff] }
0x11ac   : > { %17077 = vmatprep.subr.bf16.mxu0 %v17818_v3  ;;  %v17108_v10 = vpack.c.bf16 %v14613_v9, %v14612_v8 }
0x11af   : > { %17079 = vmatpush3.bf16.msra.mxu0 %v17078_v17  ;;  %v14606_v17 = vld [vmem:[%s19737_s25 + $0xb8] sm:$0xff] }
0x11b0   : > { %17080 = vmatprep.subr.bf16.mxu0 %v17818_v3 }
0x127d   : > { %v3559_v55 = vpop.f32.mrb[24].mxu0 }
0x127e   : > { %v3560_v56 = vadd.f32 %v14562_v54, %v3559_v55  ;;  %v15903_v57 = vpop.f32.mrb[25].mxu0 }
0x1280   : > { %v3563_v58 = vmax.f32 %v3560_v56, 0.0 }
0x1282   : > { %15921 = vmatmul.mubr.msk.f32.vlgmr.msra.gmra.mrb[24].mxu1 %vm3579_vm3, %v3563_v58  ;;  %v14593_v58 = vld [vmem:[%s19734_s30 + $0x20] sm:$0xff] }
0x1283   : > { %15953 = vmatprep.mubr.msk.f32.mxu1 %vm17819_vm0, %v17820_v11  ;;  %17088 = vmatpush3.bf16.msra.mxu1 %v17087_v13  ;;  %v14604_v13 = vld [vmem:[%s19737_s25 + $0xa8] sm:$0xff] }
0x1284   : > { %17089 = vmatprep.subr.bf16.mxu1 %v17818_v3  ;;  %v17099_v15 = vpack.c.bf16 %v14604_v13, %v14603_v12 }
0x1287   : > { %17091 = vmatpush3.bf16.msra.mxu1 %v17090_v20  ;;  %v17102_v20 = vpack.c.bf16 %v14606_v17, %v14605_v16  ;;  %v14627_v17 = vld [vmem:[%s19740_s20 + $0x6] ss:$0 sm:$0xff] }
0x1288   : > { %15961 = vmatprep.subr.mxu1 %v17820_v11 }
0x1355   : > { %v3649_v60 = vpop.f32.mrb[24].mxu1 }
0x1356   : > { %v3650_v61 = vadd.f32 %v14564_v59, %v3649_v60  ;;  %v15922_v62 = vpop.f32.mrb[25].mxu1  ;;  %v14596_v60 = vld [vmem:[%s19736_s27 + $0xa0] sm:$0xff] }
0x1358   : > { %v3653_v63 = vadd.f32 %v3650_v61, %v3478_v50  ;;  %v14597_v61 = vld [vmem:[%s19736_s27 + $0xa8] sm:$0xff] }
0x135a   : > { %v3656_v0 = vsel %vm1505_vm1, %v3653_v63, 0.0 }
0x135b   : > { %3657 = vadd.xlane.f32.xlu0 %v3656_v0 }
0x13e8   : > { %v3658_v1 = vpop.xlane.xlu0 %3657 }
0x13e9   : > { %v3659_v2 = vmul.f32 0.03125, %v3658_v1  ;;  %v14598_v1 = vld [vmem:[%s19736_s27 + $0xb0] sm:$0xff] }
0x13eb   : > { %v3660_v4 = vsub.f32 %v3653_v63, %v3659_v2  ;;  %v17093_v63 = vpack.c.bf16 %v14597_v61, %v14596_v60  ;;  %v14599_v2 = vld [vmem:[%s19736_s27 + $0xb8] sm:$0xff]  ;;  %v14629_v61 = vld [vmem:[%s19737_s25 + $0xc0] sm:$0xff] }
0x13ed   : > { %v3661_v5 = vmul.f32 %v3660_v4, %v3660_v4 }
0x13ef   : > { %v3662_v6 = vsel %vm1505_vm1, %v3661_v5, 0.0  ;;  %v14610_v5 = vld [vmem:[%s19745_s8 + $0xa0] sm:$0xff] }
0x13f0   : > { %3663 = vadd.xlane.f32.xlu1 %v3662_v6  ;;  %v14611_v6 = vld [vmem:[%s19745_s8 + $0xa8] sm:$0xff] }
0x13f1   : > { %v17105_v7 = vpack.c.bf16 %v14611_v6, %v14610_v5 }
0x147d   : > { %v3664_v21 = vpop.xlane.xlu1 %3663 }
0x147e   : > { %v3665_v22 = vmul.f32 0.03125, %v3664_v21 }
0x1480   : > { %v3666_v23 = vadd.f32 1e-05, %v3665_v22 }
0x1482   : > { %17605 = vrsqrt.f32 %v3666_v23 }
0x148c   : > { %v17606_v24 = vpop.eup %17605 }
0x148d   : > { %v3668_v26 = vmul.f32 %v17606_v24, %v3660_v4  ;;  %v17096_v4 = vpack.c.bf16 %v14599_v2, %v14598_v1  ;;  %v14632_v1 = vld [vmem:[%s19737_s25 + $0xd8] sm:$0xff] }
0x148f   : > { %v3675_v14 = vmul.f32 %v14566_v25, %v3668_v26 }
0x1491   : > { %v18402_v32 = vadd.f32 %v14567_v29, %v3675_v14 }
0x1493   : > { %15932 = vmatmul.mubr.msk.f32.vlgmr.msra.gmra.mrb[26].mxu0 %vm1505_vm1, %v18402_v32  ;;  %15954 = vmatmul.mubr.msk.f32.vlgmr.msra.gmra.mrb[26].mxu1 %vm1505_vm1, %v18402_v32 }
0x1494   : > { %17082 = vmatpush3.bf16.msra.mxu0 %v17081_v31  ;;  %15942 = vmatprep.mubr.msk.f32.mxu0 %vm17819_vm0, %v17820_v11 }
0x1495   : > { %17083 = vmatprep.subr.bf16.mxu0 %v17818_v3  ;;  %15963 = vmatprep.mubr.msk.f32.mxu1 %vm17819_vm0, %v17820_v11 }
0x1498   : > { %17085 = vmatpush3.bf16.msra.mxu0 %v17084_v35 }
0x1499   : > { %15956 = vmatprep.subr.mxu0 %v17820_v11 }
0x149b   : > { %15943 = vmatmul.mubr.msk.f32.vlgmr.msra.gmra.mrb[28].mxu0 %vm1505_vm1, %v18402_v32 }
0x149c   : > { %15958 = vmatprep.mubr.msk.f32.mxu0 %vm17819_vm0, %v17820_v11 }
0x1566   : > { %v3767_v37 = vpop.f32.mrb[26].mxu0  ;;  %v3934_v38 = vpop.f32.mrb[26].mxu1 }
0x1567   : > { %v3935_v39 = vadd.f32 %v14588_v36, %v3934_v38  ;;  %v15933_v40 = vpop.f32.mrb[27].mxu0  ;;  %v15955_v41 = vpop.f32.mrb[27].mxu1  ;;  %v3768_v44 = vadd.f32 %v14574_v42, %v3767_v37 }
0x1569   : > { %15962 = vmatpush3.msra.mxu1 %v3935_v39  ;;  %v3771_v48 = vmul.f32 0.35355338, %v3768_v44 }
0x156a   : > { %17092 = vmatprep.subr.bf16.mxu1 %v17818_v3 }
0x156e   : > { %v3851_v45 = vpop.f32.mrb[28].mxu0 }
0x156f   : > { %v3852_v46 = vadd.f32 %v14581_v43, %v3851_v45  ;;  %v15944_v47 = vpop.f32.mrb[29].mxu0 }
0x1570   : > { %v14622_v47 = vld [vmem:[%s19736_s27 + $0xc0] sm:$0xff] }
0x1571   : > { %15957 = vmatpush3.xpose.msk.msra.mxu0 %vm1748_vm2, %v3852_v46  ;;  %v14620_v46 = vld [vmem:[%s19734_s30 + $0x28] sm:$0xff] }
0x1572   : > { %15966 = vmatprep.subr.mxu0 %v17820_v11 }
0x1574   : > { %15959 = vmatmul.mubr.msk.f32.vlgmr.msra.gmra.mrb[30].mxu0 %vm1748_vm2, %v3771_v48  ;;  %v14623_v48 = vld [vmem:[%s19736_s27 + $0xc8] sm:$0xff] }
0x1575   : > { %15968 = vmatprep.mubr.msk.f32.mxu0 %vm17819_vm0, %v17820_v11  ;;  %15967 = vmatpush3.msra.mxu0 %v14593_v58  ;;  %v14638_v58 = vld [vmem:[%s19745_s8 + $0xd0] sm:$0xff] }
0x1576   : > { %17098 = vmatprep.subr.bf16.mxu0 %v17818_v3 }
0x1647   : > { %v4010_v49 = vpop.f32.mrb[30].mxu0 }
0x1648   : > { %v4011_v50 = vadd.f32 %v18181_v30, %v4010_v49  ;;  %v15960_v51 = vpop.f32.mrb[31].mxu0 }
0x164a   : > { %v4014_v52 = vsel %vm1748_vm2, %v4011_v50, -inf }
0x164b   : > { %4015 = vmax.xlane.f32.xlu0 %v4014_v52  ;;  %v14624_v52 = vld [vmem:[%s19736_s27 + $0xd0] sm:$0xff] }
0x16d8   : > { %v4016_v53 = vpop.xlane.xlu0 %4015 }
0x16d9   : > { %v4017_v54 = vsub.f32 %v4011_v50, %v4016_v53  ;;  %v17111_v50 = vpack.c.bf16 %v14623_v48, %v14622_v47  ;;  %v14625_v53 = vld [vmem:[%s19736_s27 + $0xd8] sm:$0xff]  ;;  %v14663_v47 = vld [vmem:[%s19745_s8 + $0xe8] sm:$0xff] }
0x16db   : > { %v4018_v55 = vmul.f32 1.442695, %v4017_v54  ;;  %v17114_v54 = vpack.c.bf16 %v14625_v53, %v14624_v52  ;;  %v14655_v52 = vld [vmem:[%s19737_s25 + $0xe0] sm:$0xff]  ;;  %v14656_v53 = vld [vmem:[%s19737_s25 + $0xe8] sm:$0xff] }
0x16dd   : > { %17607 = vpow2.f32 %v4018_v55  ;;  %v14636_v55 = vld [vmem:[%s19745_s8 + $0xc0] sm:$0xff] }
0x16e7   : > { %v17608_v56 = vpop.eup %17607 }
0x16e8   : > { %v4020_v57 = vsel %vm1748_vm2, %v17608_v56, 0.0 }
0x16e9   : > { %4021 = vadd.xlane.f32.xlu1 %v4020_v57 }
0x1776   : > { %v4022_v59 = vpop.xlane.xlu1 %4021 }
0x1777   : > { %17609 = vrcp.f32 %v4022_v59  ;;  %v14639_v59 = vld [vmem:[%s19745_s8 + $0xd8] sm:$0xff] }
0x1778   : > { %v17126_v60 = vpack.c.bf16 %v14639_v59, %v14638_v58 }
0x1781   : > { %v17610_v62 = vpop.eup %17609 }
0x1782   : > { %v4024_v0 = vmul.f32 %v17610_v62, %v17608_v56  ;;  %v14637_v56 = vld [vmem:[%s19745_s8 + $0xc8] sm:$0xff] }
0x1783   : > { %v17123_v57 = vpack.c.bf16 %v14637_v56, %v14636_v55  ;;  %v14630_v62 = vld [vmem:[%s19737_s25 + $0xc8] sm:$0xff]  ;;  %v14657_v55 = vld [vmem:[%s19737_s25 + $0xf0] sm:$0xff]  ;;  %v14658_v56 = vld [vmem:[%s19737_s25 + $0xf8] sm:$0xff] }
0x1784   : > { %15964 = vmatmul.mubr.msk.f32.vlgmr.msra.gmra.mrb[28].mxu1 %vm1748_vm2, %v4024_v0  ;;  %v14631_v0 = vld [vmem:[%s19737_s25 + $0xd0] sm:$0xff]  ;;  %v17138_v59 = vpack.c.bf16 %v14658_v56, %v14657_v55  ;;  %s19778_s25 = sld [smem:[#allocation13_spill]] }
0x1785   : > { %17094 = vmatpush3.bf16.msra.mxu1 %v17093_v63  ;;  %15979 = vmatprep.mubr.msk.f32.mxu1 %vm17819_vm0, %v17820_v11  ;;  %v17117_v63 = vpack.c.bf16 %v14630_v62, %v14629_v61  ;;  %v17120_v5 = vpack.c.bf16 %v14632_v1, %v14631_v0 }
0x1786   : > { %17095 = vmatprep.subr.bf16.mxu1 %v17818_v3 }
0x1789   : > { %17097 = vmatpush3.bf16.msra.mxu1 %v17096_v4 }
0x178a   : > { %17104 = vmatprep.subr.bf16.mxu1 %v17818_v3 }
0x178c   : > { %15980 = vmatmul.mubr.msk.f32.vlgmr.msra.gmra.mrb[30].mxu1 %vm1505_vm1, %v18402_v32 }
0x178d   : > { %17106 = vmatpush3.bf16.msra.mxu1 %v17105_v7  ;;  %16001 = vmatprep.mubr.msk.f32.mxu1 %vm17819_vm0, %v17820_v11 }
0x178e   : > { %17107 = vmatprep.subr.bf16.mxu1 %v17818_v3 }
0x1791   : > { %17109 = vmatpush3.bf16.msra.mxu1 %v17108_v10  ;;  %v14595_v10 = vld [vmem:[%s19743_s12 + $0x1] ss:$0 sm:$0xff] }
0x1792   : > { %16014 = vmatprep.subr.mxu1 %v17820_v11 }
0x1794   : > { %16002 = vmatmul.mubr.msk.f32.vlgmr.msra.gmra.mrb[32].mxu1 %vm1505_vm1, %v18402_v32 }
0x1795   : > { %16016 = vmatprep.mubr.msk.f32.mxu1 %vm17819_vm0, %v17820_v11  ;;  %16015 = vmatpush3.msra.mxu1 %v14620_v46 }
0x1796   : > { %17116 = vmatprep.subr.bf16.mxu1 %v17818_v3 }
0x1857   : > { %v4094_v18 = vpop.f32.mrb[28].mxu1 }
0x1858   : > { %v15965_v19 = vpop.f32.mrb[29].mxu1  ;;  %15969 = vmatmul.mubr.msk.f32.vlgmr.msra.gmra.mrb[32].mxu0 %vm1748_vm2, %v4094_v18  ;;  %v14634_v18 = vld [vmem:[%s19747_s4 + $0x6] ss:$0 sm:$0xff] }
0x1859   : > { %17100 = vmatpush3.bf16.msra.mxu0 %v17099_v15  ;;  %15990 = vmatprep.mubr.msk.f32.mxu0 %vm17819_vm0, %v17820_v11 }
0x185a   : > { %17101 = vmatprep.subr.bf16.mxu0 %v17818_v3 }
0x185d   : > { %17103 = vmatpush3.bf16.msra.mxu0 %v17102_v20 }
0x185e   : > { %16004 = vmatprep.subr.mxu0 %v17820_v11 }
0x185f   : > { %v4259_v21 = vpop.f32.mrb[30].mxu1 }
0x1860   : > { %v15981_v22 = vpop.f32.mrb[31].mxu1  ;;  %15991 = vmatmul.mubr.msk.f32.vlgmr.msra.gmra.mrb[34].mxu0 %vm1505_vm1, %v18402_v32  ;;  %v4260_v29 = vadd.f32 %v14601_v27, %v4259_v21  ;;  %v18536_v27 = vld [vmem:[%s18178_s16] ss:$0 sm:$0xff] }
0x1861   : > { %16006 = vmatprep.mubr.msk.f32.mxu0 %vm17819_vm0, %v17820_v11 }
0x1862   : > { %v4263_v35 = vmul.f32 0.35355338, %v4260_v29 }
0x1867   : > { %v4426_v23 = vpop.f32.mrb[32].mxu1 }
0x1868   : > { %v16003_v24 = vpop.f32.mrb[33].mxu1  ;;  %v4427_v36 = vadd.f32 %v14615_v34, %v4426_v23  ;;  %v14641_v23 = vld [vmem:[%s19746_s6 + $0x6] ss:$0 sm:$0xff] }
0x192b   : > { %v18470_v25 = vpop.f32.mrb[32].mxu0 }
0x192c   : > { %v15970_v26 = vpop.f32.mrb[33].mxu0  ;;  %v4179_v12 = vadd.f32 %v14595_v10, %v18470_v25  ;;  %v14667_v10 = vld [vmem:[%s19746_s6 + $0x7] ss:$0 sm:$0xff]  ;;  %s19764_s6 = sld [smem:[#allocation32_spill]] }
0x1933   : > { %v4343_v14 = vpop.f32.mrb[34].mxu0 }
0x1934   : > { %v4344_v31 = vadd.f32 %v14608_v28, %v4343_v14  ;;  %v15992_v33 = vpop.f32.mrb[35].mxu0 }
0x1936   : > { %16005 = vmatpush3.xpose.msk.msra.mxu0 %vm1748_vm2, %v4344_v31 }
0x1937   : > { %16009 = vmatprep.subr.mxu0 %v17820_v11 }
0x1939   : > { %16007 = vmatmul.mubr.msk.f32.vlgmr.msra.gmra.mrb[36].mxu0 %vm1748_vm2, %v4263_v35 }
0x193a   : > { %16010 = vmatpush3.msra.mxu0 %v4427_v36  ;;  %16011 = vmatprep.mubr.msk.f32.mxu0 %vm17819_vm0, %v17820_v11 }
0x193b   : > { %17110 = vmatprep.subr.bf16.mxu0 %v17818_v3 }
0x1a0c   : > { %v4502_v37 = vpop.f32.mrb[36].mxu0 }
0x1a0d   : > { %v4503_v38 = vadd.f32 %v18181_v30, %v4502_v37  ;;  %v16008_v39 = vpop.f32.mrb[37].mxu0  ;;  %v14646_v37 = vld [vmem:[%s19734_s30 + $0x30] sm:$0xff] }
0x1a0e   : > { %v14648_v39 = vld [vmem:[%s19736_s27 + $0xe0] sm:$0xff] }
0x1a0f   : > { %v4506_v40 = vsel %vm1748_vm2, %v4503_v38, -inf }
0x1a10   : > { %4507 = vmax.xlane.f32.xlu0 %v4506_v40  ;;  %v14649_v40 = vld [vmem:[%s19736_s27 + $0xe8] sm:$0xff] }
0x1a9d   : > { %v4508_v41 = vpop.xlane.xlu0 %4507 }
0x1a9e   : > { %v4509_v42 = vsub.f32 %v4503_v38, %v4508_v41 }
0x1aa0   : > { %v4510_v43 = vmul.f32 1.442695, %v4509_v42  ;;  %v17129_v42 = vpack.c.bf16 %v14649_v40, %v14648_v39 }
0x1aa2   : > { %17611 = vpow2.f32 %v4510_v43 }
0x1aac   : > { %v17612_v44 = vpop.eup %17611 }
0x1aad   : > { %v4512_v45 = vsel %vm1748_vm2, %v17612_v44, 0.0 }
0x1aae   : > { %4513 = vadd.xlane.f32.xlu1 %v4512_v45  ;;  %v14651_v45 = vld [vmem:[%s19736_s27 + $0xf8] sm:$0xff] }
0x1b3b   : > { %v4514_v30 = vpop.xlane.xlu1 %4513 }
0x1b3c   : > { %17613 = vrcp.f32 %v4514_v30  ;;  %v14662_v30 = vld [vmem:[%s19745_s8 + $0xe0] sm:$0xff] }
0x1b3d   : > { %v17141_v48 = vpack.c.bf16 %v14663_v47, %v14662_v30  ;;  %v14686_v30 = vld [vmem:[%s19742_s14 + $0x48] sm:$0xff]  ;;  %v14687_v47 = vld [vmem:[%s19742_s14 + $0x50] sm:$0xff] }
0x1b46   : > { %v17614_v49 = vpop.eup %17613 }
0x1b47   : > { %v4516_v51 = vmul.f32 %v17614_v49, %v17612_v44  ;;  %v14650_v44 = vld [vmem:[%s19736_s27 + $0xf0] sm:$0xff]  ;;  %s19780_s27 = sld [smem:[#allocation17_spill]] }
0x1b48   : > { %v17132_v46 = vpack.c.bf16 %v14651_v45, %v14650_v44  ;;  %v14664_v49 = vld [vmem:[%s19745_s8 + $0xf0] sm:$0xff]  ;;  %v14681_v44 = vld [vmem:[%s19744_s9 + $0x38] sm:$0xff] }
0x1b49   : > { %16012 = vmatmul.mubr.msk.f32.vlgmr.msra.gmra.mrb[38].mxu0 %vm1748_vm2, %v4516_v51 }
0x1b4a   : > { %17112 = vmatpush3.bf16.msra.mxu0 %v17111_v50  ;;  %16027 = vmatprep.mubr.msk.f32.mxu0 %vm17819_vm0, %v17820_v11  ;;  %v14665_v50 = vld [vmem:[%s19745_s8 + $0xf8] sm:$0xff]  ;;  %s1470_s8 = scalar_lea.vmem %s19763_s5, %s18143_s10  ;;  %s19766_s5 = sld [smem:[#allocation29_spill]] }
0x1b4b   : > { %17113 = vmatprep.subr.bf16.mxu0 %v17818_v3  ;;  %v17144_v51 = vpack.c.bf16 %v14665_v50, %v14664_v49  ;;  %v14688_v49 = vld [vmem:[%s19742_s14 + $0x58] sm:$0xff] }
0x1b4c   : > { %v17156_v50 = vpack.c.bf16 %v14688_v49, %v14687_v47 }
0x1b4e   : > { %17115 = vmatpush3.bf16.msra.mxu0 %v17114_v54  ;;  %v17135_v54 = vpack.c.bf16 %v14656_v53, %v14655_v52  ;;  %v14690_v52 = vld [vmem:[%s19742_s14 + $0x68] sm:$0xff] }
0x1b4f   : > { %17122 = vmatprep.subr.bf16.mxu0 %v17818_v3 }
0x1b51   : > { %16028 = vmatmul.mubr.msk.f32.vlgmr.msra.gmra.mrb[40].mxu0 %vm1505_vm1, %v18402_v32 }
0x1b52   : > { %17124 = vmatpush3.bf16.msra.mxu0 %v17123_v57  ;;  %16049 = vmatprep.mubr.msk.f32.mxu0 %vm17819_vm0, %v17820_v11 }
0x1b53   : > { %17125 = vmatprep.subr.bf16.mxu0 %v17818_v3 }
0x1b56   : > { %17127 = vmatpush3.bf16.msra.mxu0 %v17126_v60 }
0x1b57   : > { %16062 = vmatprep.subr.mxu0 %v17820_v11 }
0x1b59   : > { %16050 = vmatmul.mubr.msk.f32.vlgmr.msra.gmra.mrb[42].mxu0 %vm1505_vm1, %v18402_v32 }
0x1b5a   : > { %16064 = vmatprep.mubr.msk.f32.mxu0 %vm17819_vm0, %v17820_v11  ;;  %16063 = vmatpush3.msra.mxu0 %v14646_v37 }
0x1b5b   : > { %17134 = vmatprep.subr.bf16.mxu0 %v17818_v3 }
0x1c1c   : > { %v4586_v2 = vpop.f32.mrb[38].mxu0 }
0x1c1d   : > { %v16013_v4 = vpop.f32.mrb[39].mxu0  ;;  %16017 = vmatmul.mubr.msk.f32.vlgmr.msra.gmra.mrb[34].mxu1 %vm1748_vm2, %v4586_v2 }
0x1c1e   : > { %17118 = vmatpush3.bf16.msra.mxu1 %v17117_v63  ;;  %16038 = vmatprep.mubr.msk.f32.mxu1 %vm17819_vm0, %v17820_v11  ;;  %v14653_v4 = vld [vmem:[%s19740_s20 + $0x7] ss:$0 sm:$0xff]  ;;  %s19774_s20 = sld [smem:[#allocation31_spill]] }
0x1c1f   : > { %17119 = vmatprep.subr.bf16.mxu1 %v17818_v3 }
0x1c22   : > { %17121 = vmatpush3.bf16.msra.mxu1 %v17120_v5  ;;  %v14660_v5 = vld [vmem:[%s19747_s4 + $0x7] ss:$0 sm:$0xff]  ;;  %s19762_s4 = sld [smem:[#allocation34_spill]] }
0x1c23   : > { %16052 = vmatprep.subr.mxu1 %v17820_v11 }
0x1c24   : > { %v4745_v6 = vpop.f32.mrb[40].mxu0 }
0x1c25   : > { %v16029_v7 = vpop.f32.mrb[41].mxu0  ;;  %16039 = vmatmul.mubr.msk.f32.vlgmr.msra.gmra.mrb[36].mxu1 %vm1505_vm1, %v18402_v32  ;;  %v4746_v19 = vadd.f32 %v14627_v17, %v4745_v6 }
0x1c26   : > { %16054 = vmatprep.mubr.msk.f32.mxu1 %vm17819_vm0, %v17820_v11 }
0x1c27   : > { %v4749_v24 = vmul.f32 0.35355338, %v4746_v19 }
0x1c2c   : > { %v4912_v8 = vpop.f32.mrb[42].mxu0 }
0x1c2d   : > { %v16051_v9 = vpop.f32.mrb[43].mxu0  ;;  %v4913_v26 = vadd.f32 %v14641_v23, %v4912_v8 }
0x1cf0   : > { %v4661_v13 = vpop.f32.mrb[34].mxu1 }
0x1cf1   : > { %v18524_v15 = vadd.f32 %v4661_v13, %v4179_v12  ;;  %v16018_v16 = vpop.f32.mrb[35].mxu1 }
0x1cf8   : > { %v4829_v20 = vpop.f32.mrb[36].mxu1 }
0x1cf9   : > { %v4830_v21 = vadd.f32 %v14634_v18, %v4829_v20  ;;  %v16040_v22 = vpop.f32.mrb[37].mxu1 }
0x1cfb   : > { %16053 = vmatpush3.xpose.msk.msra.mxu1 %vm1748_vm2, %v4830_v21 }
0x1cfc   : > { %16057 = vmatprep.subr.mxu1 %v17820_v11 }
0x1cfe   : > { %16055 = vmatmul.mubr.msk.f32.vlgmr.msra.gmra.mrb[38].mxu1 %vm1748_vm2, %v4749_v24  ;;  %v14672_v24 = vld [vmem:[%s19734_s30 + $0x38] sm:$0xff]  ;;  %s19782_s30 = sld [smem:[#allocation24_spill]] }
0x1cff   : > { %16058 = vmatpush3.msra.mxu1 %v4913_v26  ;;  %16059 = vmatprep.mubr.msk.f32.mxu1 %vm17819_vm0, %v17820_v11 }
0x1d00   : > { %17128 = vmatprep.subr.bf16.mxu1 %v17818_v3 }
0x1dd1   : > { %v4988_v25 = vpop.f32.mrb[38].mxu1 }
0x1dd2   : > { %v4989_v28 = vadd.f32 %v18536_v27, %v4988_v25  ;;  %v16056_v29 = vpop.f32.mrb[39].mxu1 }
0x1dd4   : > { %v4992_v14 = vsel %vm1748_vm2, %v4989_v28, -inf }
0x1dd5   : > { %4993 = vmax.xlane.f32.xlu0 %v4992_v14 }
0x1e62   : > { %v4994_v31 = vpop.xlane.xlu0 %4993 }
0x1e63   : > { %v4995_v33 = vsub.f32 %v4989_v28, %v4994_v31 }
0x1e65   : > { %v4996_v34 = vmul.f32 1.442695, %v4995_v33 }
0x1e67   : > { %17615 = vpow2.f32 %v4996_v34 }
0x1e71   : > { %v17616_v35 = vpop.eup %17615 }
0x1e72   : > { %v4998_v36 = vsel %vm1748_vm2, %v17616_v35, 0.0 }
0x1e73   : > { %4999 = vadd.xlane.f32.xlu1 %v4998_v36 }
0x1f00   : > { %v5000_v38 = vpop.xlane.xlu1 %4999 }
0x1f01   : > { %17617 = vrcp.f32 %v5000_v38 }
0x1f0b   : > { %v17618_v41 = vpop.eup %17617 }
0x1f0c   : > { %v5002_v43 = vmul.f32 %v17618_v41, %v17616_v35  ;;  %v14678_v41 = vld [vmem:[%s19744_s9 + $0x20] sm:$0xff] }
0x1f0e   : > { %16060 = vmatmul.mubr.msk.f32.vlgmr.msra.gmra.mrb[40].mxu1 %vm1748_vm2, %v5002_v43 }
0x1f0f   : > { %17130 = vmatpush3.bf16.msra.mxu1 %v17129_v42  ;;  %16075 = vmatprep.mubr.msk.f32.mxu1 %vm17819_vm0, %v17820_v11  ;;  %v14679_v42 = vld [vmem:[%s19744_s9 + $0x28] sm:$0xff] }
0x1f10   : > { %17131 = vmatprep.subr.bf16.mxu1 %v17818_v3  ;;  %v17147_v43 = vpack.c.bf16 %v14679_v42, %v14678_v41  ;;  %v1480_v42 = vlaneseq }
0x1f13   : > { %17133 = vmatpush3.bf16.msra.mxu1 %v17132_v46  ;;  %v14685_v46 = vld [vmem:[%s19742_s14 + $0x40] sm:$0xff] }
0x1f14   : > { %17140 = vmatprep.subr.bf16.mxu1 %v17818_v3 }
0x1f16   : > { %16076 = vmatmul.mubr.msk.f32.vlgmr.msra.gmra.mrb[42].mxu1 %vm1505_vm1, %v18402_v32 }
0x1f17   : > { %17142 = vmatpush3.bf16.msra.mxu1 %v17141_v48  ;;  %16097 = vmatprep.mubr.msk.f32.mxu1 %vm17819_vm0, %v17820_v11  ;;  %v17153_v48 = vpack.c.bf16 %v14686_v30, %v14685_v46 }
0x1f18   : > { %17143 = vmatprep.subr.bf16.mxu1 %v17818_v3 }
0x1f1b   : > { %17145 = vmatpush3.bf16.msra.mxu1 %v17144_v51  ;;  %v14689_v51 = vld [vmem:[%s19742_s14 + $0x60] sm:$0xff] }
0x1f1c   : > { %16110 = vmatprep.subr.mxu1 %v17820_v11  ;;  %v17159_v53 = vpack.c.bf16 %v14690_v52, %v14689_v51 }
0x1f1e   : > { %16098 = vmatmul.mubr.msk.f32.vlgmr.msra.gmra.mrb[44].mxu1 %vm1505_vm1, %v18402_v32 }
0x1f1f   : > { %16112 = vmatprep.mubr.msk.f32.mxu1 %vm17819_vm0, %v17820_v11  ;;  %16111 = vmatpush3.msra.mxu1 %v14672_v24 }
0x1f20   : > { %17152 = vmatprep.subr.bf16.mxu1 %v17818_v3 }
0x1fe1   : > { %v5072_v57 = vpop.f32.mrb[40].mxu1 }
0x1fe2   : > { %v16061_v58 = vpop.f32.mrb[41].mxu1  ;;  %16065 = vmatmul.mubr.msk.f32.vlgmr.msra.gmra.mrb[44].mxu0 %vm1748_vm2, %v5072_v57 }
0x1fe3   : > { %17136 = vmatpush3.bf16.msra.mxu0 %v17135_v54  ;;  %16086 = vmatprep.mubr.msk.f32.mxu0 %vm17819_vm0, %v17820_v11  ;;  %v14676_v58 = vld [vmem:[%s19738_s24 + $0x1] ss:$0 sm:$0xff]  ;;  %s19776_s24 = sld [smem:[#allocation26_spill]] }
0x1fe4   : > { %17137 = vmatprep.subr.bf16.mxu0 %v17818_v3 }
0x1fe7   : > { %17139 = vmatpush3.bf16.msra.mxu0 %v17138_v59 }
0x1fe8   : > { %16100 = vmatprep.subr.mxu0 %v17820_v11 }
0x1fe9   : > { %v5231_v60 = vpop.f32.mrb[42].mxu1 }
0x1fea   : > { %v16077_v61 = vpop.f32.mrb[43].mxu1  ;;  %16087 = vmatmul.mubr.msk.f32.vlgmr.msra.gmra.mrb[46].mxu0 %vm1505_vm1, %v18402_v32  ;;  %v5232_v6 = vadd.f32 %v14653_v4, %v5231_v60  ;;  %v5881_v60 = vld [vmem:[%s19762_s4] sm:$0xff]  ;;  %v5884_v4 = vld [vmem:[%s19762_s4 + $0x18] sm:$0xff] }
0x1feb   : > { %16102 = vmatprep.mubr.msk.f32.mxu0 %vm17819_vm0, %v17820_v11  ;;  %v5882_v61 = vld [vmem:[%s19762_s4 + $0x8] sm:$0xff] }
0x1fec   : > { %v5235_v12 = vmul.f32 0.35355338, %v5232_v6  ;;  %v5966_v6 = vld [vmem:[%s19764_s6] sm:$0xff] }
0x1ff1   : > { %v5398_v62 = vpop.f32.mrb[44].mxu1 }
0x1ff2   : > { %v16099_v63 = vpop.f32.mrb[45].mxu1  ;;  %v5399_v13 = vadd.f32 %v14667_v10, %v5398_v62  ;;  %v14677_v62 = vld [vmem:[%s19735_s29 + $0x1] ss:$0 sm:$0xff]  ;;  %v5968_v10 = vld [vmem:[%s19764_s6 + $0x10] sm:$0xff]  ;;  %s19781_s29 = sld [smem:[#allocation12_spill]] }
0x20b5   : > { %v5147_v0 = vpop.f32.mrb[44].mxu0 }
0x20b6   : > { %v5151_v1 = vadd.f32 %v5147_v0, %v18524_v15  ;;  %v16066_v2 = vpop.f32.mrb[45].mxu0  ;;  %v17165_v0 = vpack.c.bf16 %v5882_v61, %v5881_v60 }
0x20b7   : > { %v5883_v2 = vld [vmem:[%s19762_s4 + $0x10] sm:$0xff] }
0x20bd   : > { %v5315_v7 = vpop.f32.mrb[46].mxu0 }
0x20be   : > { %v5316_v8 = vadd.f32 %v14660_v5, %v5315_v7  ;;  %v16088_v9 = vpop.f32.mrb[47].mxu0  ;;  %v17168_v5 = vpack.c.bf16 %v5884_v4, %v5883_v2  ;;  %v5967_v7 = vld [vmem:[%s19764_s6 + $0x8] sm:$0xff]  ;;  %v14711_v2 = vld [vmem:[%s19762_s4 + $0x20] sm:$0xff] }
0x20bf   : > { %v17171_v9 = vpack.c.bf16 %v5967_v7, %v5966_v6  ;;  %v14712_v4 = vld [vmem:[%s19762_s4 + $0x28] sm:$0xff]  ;;  %v14713_v6 = vld [vmem:[%s19762_s4 + $0x30] sm:$0xff]  ;;  %v14714_v7 = vld [vmem:[%s19762_s4 + $0x38] sm:$0xff] }
0x20c0   : > { %16101 = vmatpush3.xpose.msk.msra.mxu0 %vm1748_vm2, %v5316_v8  ;;  %v18635_v8 = vld [vmem:[%s1470_s8] sm:$0xff]  ;;  %s19767_s8 = sld [smem:[#allocation27_spill]] }
0x20c1   : > { %16105 = vmatprep.subr.mxu0 %v17820_v11 }
0x20c3   : > { %16103 = vmatmul.mubr.msk.f32.vlgmr.msra.gmra.mrb[48].mxu0 %vm1748_vm2, %v5235_v12  ;;  %v5969_v12 = vld [vmem:[%s19764_s6 + $0x18] sm:$0xff] }
0x20c4   : > { %16106 = vmatpush3.msra.mxu0 %v5399_v13  ;;  %16107 = vmatprep.mubr.msk.f32.mxu0 %vm17819_vm0, %v17820_v11  ;;  %v17174_v13 = vpack.c.bf16 %v5969_v12, %v5968_v10  ;;  %v14718_v10 = vld [vmem:[%s19764_s6 + $0x20] sm:$0xff]  ;;  %v14719_v12 = vld [vmem:[%s19764_s6 + $0x28] sm:$0xff] }
0x20c5   : > { %17146 = vmatprep.subr.bf16.mxu0 %v17818_v3 }
0x2196   : > { %v5474_v15 = vpop.f32.mrb[48].mxu0 }
0x2197   : > { %v5475_v16 = vadd.f32 %v18536_v27, %v5474_v15  ;;  %v16104_v17 = vpop.f32.mrb[49].mxu0  ;;  %v14691_v15 = vld [vmem:[%s19742_s14 + $0x70] sm:$0xff] }
0x2199   : > { %v5478_v18 = vsel %vm1748_vm2, %v5475_v16, -inf }
0x219a   : > { %5479 = vmax.xlane.f32.xlu0 %v5478_v18  ;;  %v17821_v18 = vmov 0  }
0x219b   : > { %17586 = vset.pattern.permute.xlu0 %v17821_v18 }
0x2227   : > { %v5480_v19 = vpop.xlane.xlu0 %5479 }
0x2228   : > { %v5481_v20 = vsub.f32 %v5475_v16, %v5480_v19  ;;  %v14692_v16 = vld [vmem:[%s19742_s14 + $0x78] sm:$0xff]  ;;  %s19772_s14 = sld [smem:[#allocation16_spill]] }
0x2229   : > { %v17162_v17 = vpack.c.bf16 %v14692_v16, %v14691_v15  ;;  %v14720_v15 = vld [vmem:[%s19764_s6 + $0x30] sm:$0xff]  ;;  %v14721_v16 = vld [vmem:[%s19764_s6 + $0x38] sm:$0xff] }
0x222a   : > { %v5482_v21 = vmul.f32 1.442695, %v5481_v20  ;;  %v14683_v20 = vld [vmem:[%s19739_s21 + $0x1] ss:$0 sm:$0xff]  ;;  %s19775_s21 = sld [smem:[#allocation19_spill]] }
0x222c   : > { %17619 = vpow2.f32 %v5482_v21 }
0x2236   : > { %v17620_v22 = vpop.eup %17619 }
0x2237   : > { %v5484_v23 = vsel %vm1748_vm2, %v17620_v22, 0.0 }
0x2238   : > { %5485 = vadd.xlane.f32.xlu1 %v5484_v23 }
0x22c5   : > { %v5486_v26 = vpop.xlane.xlu1 %5485 }
0x22c6   : > { %17621 = vrcp.f32 %v5486_v26 }
0x22d0   : > { %v17622_v25 = vpop.eup %17621 }
0x22d1   : > { %v5488_v27 = vmul.f32 %v17622_v25, %v17620_v22 }
0x22d3   : > { %16108 = vmatmul.mubr.msk.f32.vlgmr.msra.gmra.mrb[50].mxu0 %vm1748_vm2, %v5488_v27  ;;  %v14700_v27 = vld [vmem:[%s19766_s5] ss:$0 sm:$0xff] }
0x22d4   : > { %16123 = vmatprep.mubr.msk.f32.mxu0 %vm17819_vm0, %v17820_v11  ;;  %17148 = vmatpush3.bf16.msra.mxu0 %v17147_v43 }
0x22d5   : > { %17149 = vmatprep.subr.bf16.mxu0 %v17818_v3 }
0x23a6   : > { %v5558_v28 = vpop.f32.mrb[50].mxu0 }
0x23a7   : > { %v16109_v29 = vpop.f32.mrb[51].mxu0  ;;  %16113 = vmatmul.mubr.msk.f32.vlgmr.msra.gmra.mrb[46].mxu1 %vm1748_vm2, %v5558_v28  ;;  %v14702_v28 = vld [vmem:[%s19767_s8] ss:$0 sm:$0xff] }
0x23a8   : > { %16142 = vmatprep.mubr.msk.f32.mxu1 %vm17819_vm0, %v17820_v11  ;;  %17154 = vmatpush3.bf16.msra.mxu1 %v17153_v48 }
0x23a9   : > { %17155 = vmatprep.subr.bf16.mxu1 %v17818_v3 }
0x23ac   : > { %17157 = vmatpush3.bf16.msra.mxu1 %v17156_v50 }
0x23ad   : > { %17158 = vmatprep.subr.bf16.mxu1 %v17818_v3 }
0x23b0   : > { %17160 = vmatpush3.bf16.msra.mxu1 %v17159_v53 }
0x23b1   : > { %17161 = vmatprep.subr.bf16.mxu1 %v17818_v3 }
0x23b4   : > { %17163 = vmatpush3.bf16.msra.mxu1 %v17162_v17 }
0x23b5   : > { %17176 = vmatprep.subr.bf16.mxu1 %v17818_v3 }
0x247a   : > { %v5633_v14 = vpop.f32.mrb[46].mxu1 }
0x247b   : > { %v5637_v31 = vadd.f32 %v5633_v14, %v5151_v1  ;;  %v16114_v33 = vpop.f32.mrb[47].mxu1 }
0x247d   : > { %v5638_v34 = vadd.f32 %v5637_v31, %v18402_v32  ;;  %v14680_v32 = vld [vmem:[%s19744_s9 + $0x30] sm:$0xff]  ;;  %s19765_s9 = sld [smem:[#allocation8_spill]] }
0x247e   : > { %v17150_v45 = vpack.c.bf16 %v14681_v44, %v14680_v32  ;;  %v1481_v32 = vshrl.u32 %v1480_v42, 7  ;;  %v1483_v44 = vand.u32 127, %v1480_v42 }
0x247f   : > { %v5643_v35 = vsel %vm1505_vm1, %v5638_v34, 0.0 }
0x2480   : > { %5644 = vadd.xlane.f32.xlu0 %v5643_v35  ;;  %17151 = vmatpush3.bf16.msra.mxu0 %v17150_v45  ;;  %v6047_v35 = vld [vmem:[%s19768_s13] sm:$0xff]  ;;  %vm1484_vm4 = vcmp.le.s32.totalorder %v1483_v44, %v1481_v32  ;;  %v17822_v45 = vmov -1e+30  }
0x2481   : > { %17164 = vmatprep.subr.bf16.mxu0 %v17818_v3  ;;  %v1485_v46 = vsel %vm1484_vm4, 0.0, %v17822_v45 }
0x2483   : > { %s1477_s12 = scalar_lea.vmem %s19765_s9, %s18143_s10  ;;  %s19769_s9 = sld [smem:[#allocation30_spill]] }
0x2484   : > { %v1479_v19 = vld [vmem:[%s1477_s12] sm:$0xff]  ;;  %s19770_s12 = sld [smem:[#allocation33_spill]]  ;;  %s19771_s10 = sld [smem:[#allocation28_spill]] }
0x248a   : > { %v6288_v61 = vld [vmem:[%s19770_s12] sm:$0xff] }
0x2496   : > { %1488 = vperm.xlu0 %17586, %v1479_v19   ;;  %v17192_v19 = vpack.c.bf16 %v14721_v16, %v14720_v15 }
0x250d   : > { %v5645_v36 = vpop.xlane.xlu0 %5644 }
0x250e   : > { %v5646_v37 = vmul.f32 0.03125, %v5645_v36  ;;  %v6048_v36 = vld [vmem:[%s19768_s13 + $0x8] sm:$0xff] }
0x2510   : > { %v5647_v38 = vsub.f32 %v5638_v34, %v5646_v37  ;;  %v6049_v37 = vld [vmem:[%s19768_s13 + $0x10] sm:$0xff] }
0x2512   : > { %v5648_v39 = vmul.f32 %v5647_v38, %v5647_v38 }
0x2514   : > { %v5649_v40 = vsel %vm1505_vm1, %v5648_v39, 0.0  ;;  %v6050_v39 = vld [vmem:[%s19768_s13 + $0x18] sm:$0xff] }
0x2515   : > { %5650 = vadd.xlane.f32.xlu1 %v5649_v40  ;;  %v17180_v40 = vpack.c.bf16 %v6050_v39, %v6049_v37  ;;  %v1489_v30 = vpop.permute.xlu0 %1488 }
0x2516   : > { %v18678_v47 = vadd.f32 %v1489_v30, %v1485_v46 }
0x25a2   : > { %v5651_v54 = vpop.xlane.xlu1 %5650 }
0x25a3   : > { %v5652_v55 = vmul.f32 0.03125, %v5651_v54 }
0x25a5   : > { %v5653_v56 = vadd.f32 1e-05, %v5652_v55 }
0x25a7   : > { %17623 = vrsqrt.f32 %v5653_v56 }
0x25b1   : > { %v17624_v57 = vpop.eup %17623 }
0x25b2   : > { %v5655_v59 = vmul.f32 %v17624_v57, %v5647_v38  ;;  %v17177_v38 = vpack.c.bf16 %v6048_v36, %v6047_v35  ;;  %v14728_v36 = vld [vmem:[%s19768_s13 + $0x38] sm:$0xff] }
0x25b4   : > { %v5662_v63 = vmul.f32 %v14676_v58, %v5655_v59  ;;  %v14704_v58 = vld [vmem:[%s19769_s9] ss:$0 sm:$0xff] }
0x25b6   : > { %v18622_v1 = vadd.f32 %v14677_v62, %v5662_v63 }
0x25b8   : > { %16124 = vmatmul.mubr.msk.f32.vlgmr.msra.gmra.mrb[52].mxu0 %vm1505_vm1, %v18622_v1 }
0x25b9   : > { %17166 = vmatpush3.bf16.msra.mxu0 %v17165_v0  ;;  %16153 = vmatprep.mubr.msk.f32.mxu0 %vm17819_vm0, %v17820_v11 }
0x25ba   : > { %17167 = vmatprep.subr.bf16.mxu0 %v17818_v3 }
0x25bd   : > { %17169 = vmatpush3.bf16.msra.mxu0 %v17168_v5  ;;  %v17183_v5 = vpack.c.bf16 %v14712_v4, %v14711_v2  ;;  %v14747_v2 = vld [vmem:[%s19764_s6 + $0x58] sm:$0xff] }
0x25be   : > { %17170 = vmatprep.subr.bf16.mxu0 %v17818_v3 }
0x25c0   : > { %16154 = vmatmul.mubr.msk.f32.vlgmr.msra.gmra.mrb[54].mxu0 %vm1505_vm1, %v18635_v8 }
0x25c1   : > { %17172 = vmatpush3.bf16.msra.mxu0 %v17171_v9  ;;  %16164 = vmatprep.mubr.msk.f32.mxu0 %vm17819_vm0, %v17820_v11  ;;  %v17186_v9 = vpack.c.bf16 %v14714_v7, %v14713_v6 }
0x25c2   : > { %17173 = vmatprep.subr.bf16.mxu0 %v17818_v3 }
0x25c5   : > { %17175 = vmatpush3.bf16.msra.mxu0 %v17174_v13  ;;  %v17189_v13 = vpack.c.bf16 %v14719_v12, %v14718_v10  ;;  %v14710_v10 = vld [vmem:[%s19771_s10] ss:$0 sm:$0xff] }
0x25c6   : > { %16178 = vmatprep.subr.mxu0 %v17820_v11 }
0x25c8   : > { %16165 = vmatmul.mubr.msk.f32.vlgmr.msra.gmra.mrb[56].mxu0 %vm1505_vm1, %v18635_v8 }
0x25c9   : > { %16180 = vmatprep.mubr.msk.f32.mxu0 %vm17819_vm0, %v17820_v11 }
0x268b   : > { %v5752_v21 = vpop.f32.mrb[52].mxu0 }
0x268c   : > { %v5753_v22 = vadd.f32 %v14683_v20, %v5752_v21  ;;  %v16125_v23 = vpop.f32.mrb[53].mxu0 }
0x268e   : > { %v5756_v24 = vmax.f32 %v5753_v22, 0.0 }
0x2690   : > { %16143 = vmatmul.mubr.msk.f32.vlgmr.msra.gmra.mrb[48].mxu1 %vm3579_vm3, %v5756_v24  ;;  %v14716_v24 = vld [vmem:[%s19766_s5 + $0x1] ss:$0 sm:$0xff] }
0x2691   : > { %16175 = vmatprep.mubr.msk.f32.mxu1 %vm17819_vm0, %v17820_v11  ;;  %17178 = vmatpush3.bf16.msra.mxu1 %v17177_v38 }
0x2692   : > { %17179 = vmatprep.subr.bf16.mxu1 %v17818_v3 }
0x2693   : > { %v5961_v26 = vpop.f32.mrb[54].mxu0 }
0x2694   : > { %v16155_v25 = vpop.f32.mrb[55].mxu0  ;;  %v5962_v29 = vadd.f32 %v14700_v27, %v5961_v26 }
0x2695   : > { %17181 = vmatpush3.bf16.msra.mxu1 %v17180_v40  ;;  %v14723_v25 = vld [vmem:[%s19767_s8 + $0x1] ss:$0 sm:$0xff] }
0x2696   : > { %v5965_v34 = vmul.f32 0.35355338, %v5962_v29  ;;  %16183 = vmatprep.subr.mxu1 %v17820_v11 }
0x2698   : > { %16176 = vmatmul.mubr.msk.f32.vlgmr.msra.gmra.mrb[50].mxu1 %vm1505_vm1, %v18635_v8 }
0x2699   : > { %16185 = vmatprep.mubr.msk.f32.mxu1 %vm17819_vm0, %v17820_v11 }
0x269b   : > { %v6043_v14 = vpop.f32.mrb[56].mxu0 }
0x269c   : > { %v6044_v31 = vadd.f32 %v14702_v28, %v6043_v14  ;;  %v16166_v33 = vpop.f32.mrb[57].mxu0 }
0x269d   : > { %v14726_v33 = vld [vmem:[%s19768_s13 + $0x28] sm:$0xff] }
0x269e   : > { %16179 = vmatpush3.xpose.msk.msra.mxu0 %vm1748_vm2, %v6044_v31  ;;  %v14725_v31 = vld [vmem:[%s19768_s13 + $0x20] sm:$0xff] }
0x269f   : > { %16188 = vmatprep.subr.mxu0 %v17820_v11  ;;  %v17195_v35 = vpack.c.bf16 %v14726_v33, %v14725_v31 }
0x26a1   : > { %16181 = vmatmul.mubr.msk.f32.vlgmr.msra.gmra.mrb[58].mxu0 %vm1748_vm2, %v5965_v34  ;;  %v14727_v34 = vld [vmem:[%s19768_s13 + $0x30] sm:$0xff] }
0x26a2   : > { %16190 = vmatprep.mubr.msk.f32.mxu0 %vm17819_vm0, %v17820_v11  ;;  %16189 = vmatpush3.msra.mxu0 %v6288_v61  ;;  %v17198_v37 = vpack.c.bf16 %v14728_v36, %v14727_v34  ;;  %v14744_v61 = vld [vmem:[%s19764_s6 + $0x40] sm:$0xff] }
0x26a3   : > { %17188 = vmatprep.subr.bf16.mxu0 %v17818_v3 }
0x2763   : > { %v18676_v41 = vpop.f32.mrb[48].mxu1 }
0x2764   : > { %v16144_v43 = vpop.f32.mrb[49].mxu1 }
0x276b   : > { %v6124_v57 = vpop.f32.mrb[50].mxu1 }
0x276c   : > { %v16177_v59 = vpop.f32.mrb[51].mxu1  ;;  %v6125_v60 = vadd.f32 %v14704_v58, %v6124_v57  ;;  %v14739_v58 = vld [vmem:[%s19762_s4 + $0x50] sm:$0xff] }
0x276d   : > { %v14740_v59 = vld [vmem:[%s19762_s4 + $0x58] sm:$0xff] }
0x276e   : > { %16184 = vmatpush3.msra.mxu1 %v6125_v60  ;;  %v17204_v60 = vpack.c.bf16 %v14740_v59, %v14739_v58  ;;  %v14773_v58 = vld [vmem:[%s19764_s6 + $0x78] sm:$0xff] }
0x276f   : > { %17182 = vmatprep.subr.bf16.mxu1 %v17818_v3 }
0x2774   : > { %v6200_v48 = vpop.f32.mrb[58].mxu0 }
0x2775   : > { %v6201_v49 = vadd.f32 %v6200_v48, %v18678_v47  ;;  %v16182_v50 = vpop.f32.mrb[59].mxu0  ;;  %v14730_v48 = vld [vmem:[%s19769_s9 + $0x1] ss:$0 sm:$0xff] }
0x2777   : > { %v6204_v51 = vsel %vm1748_vm2, %v6201_v49, -inf }
0x2778   : > { %6205 = vmax.xlane.f32.xlu1 %v6204_v51  ;;  %v14735_v51 = vld [vmem:[%s19770_s12 + $0x8] sm:$0xff] }
0x2805   : > { %v6206_v52 = vpop.xlane.xlu1 %6205 }
0x2806   : > { %v6207_v53 = vsub.f32 %v6201_v49, %v6206_v52 }
0x2808   : > { %v6208_v54 = vmul.f32 1.442695, %v6207_v53 }
0x280a   : > { %17625 = vpow2.f32 %v6208_v54 }
0x2814   : > { %v17626_v55 = vpop.eup %17625 }
0x2815   : > { %v6210_v56 = vsel %vm1748_vm2, %v17626_v55, 0.0 }
0x2816   : > { %6211 = vadd.xlane.f32.xlu1 %v6210_v56  ;;  %v14738_v56 = vld [vmem:[%s19762_s4 + $0x48] sm:$0xff] }
0x28a3   : > { %v6212_v62 = vpop.xlane.xlu1 %6211 }
0x28a4   : > { %17627 = vrcp.f32 %v6212_v62  ;;  %v14745_v62 = vld [vmem:[%s19764_s6 + $0x48] sm:$0xff] }
0x28ae   : > { %v17628_v63 = vpop.eup %17627 }
0x28af   : > { %v6214_v0 = vmul.f32 %v17628_v63, %v17626_v55  ;;  %v14737_v55 = vld [vmem:[%s19762_s4 + $0x40] sm:$0xff]  ;;  %v17207_v63 = vpack.c.bf16 %v14745_v62, %v14744_v61 }
0x28b0   : > { %v17201_v57 = vpack.c.bf16 %v14738_v56, %v14737_v55  ;;  %v14771_v55 = vld [vmem:[%s19764_s6 + $0x68] sm:$0xff] }
0x28b1   : > { %16186 = vmatmul.mubr.msk.f32.vlgmr.msra.gmra.mrb[52].mxu1 %vm1748_vm2, %v6214_v0  ;;  %v14746_v0 = vld [vmem:[%s19764_s6 + $0x50] sm:$0xff] }
0x28b2   : > { %16201 = vmatprep.mubr.msk.f32.mxu1 %vm17819_vm0, %v17820_v11  ;;  %17184 = vmatpush3.bf16.msra.mxu1 %v17183_v5  ;;  %v17210_v6 = vpack.c.bf16 %v14747_v2, %v14746_v0 }
0x28b3   : > { %17185 = vmatprep.subr.bf16.mxu1 %v17818_v3 }
0x28b6   : > { %17187 = vmatpush3.bf16.msra.mxu1 %v17186_v9 }
0x28b7   : > { %17194 = vmatprep.subr.bf16.mxu1 %v17818_v3 }
0x28b9   : > { %16202 = vmatmul.mubr.msk.f32.vlgmr.msra.gmra.mrb[54].mxu1 %vm1505_vm1, %v18635_v8 }
0x28ba   : > { %16223 = vmatprep.mubr.msk.f32.mxu1 %vm17819_vm0, %v17820_v11  ;;  %17196 = vmatpush3.bf16.msra.mxu1 %v17195_v35 }
0x28bb   : > { %17197 = vmatprep.subr.bf16.mxu1 %v17818_v3 }
0x28be   : > { %17199 = vmatpush3.bf16.msra.mxu1 %v17198_v37 }
0x28bf   : > { %16236 = vmatprep.subr.mxu1 %v17820_v11 }
0x28c1   : > { %16224 = vmatmul.mubr.msk.f32.vlgmr.msra.gmra.mrb[56].mxu1 %vm1505_vm1, %v18635_v8 }
0x28c2   : > { %16238 = vmatprep.mubr.msk.f32.mxu1 %vm17819_vm0, %v17820_v11  ;;  %16237 = vmatpush3.msra.mxu1 %v14735_v51  ;;  %v14765_v51 = vld [vmem:[%s19762_s4 + $0x70] sm:$0xff] }
0x28c3   : > { %17206 = vmatprep.subr.bf16.mxu1 %v17818_v3 }
0x2984   : > { %v6284_v17 = vpop.f32.mrb[52].mxu1 }
0x2985   : > { %v16187_v18 = vpop.f32.mrb[53].mxu1  ;;  %16191 = vmatmul.mubr.msk.f32.vlgmr.msra.gmra.mrb[60].mxu0 %vm1748_vm2, %v6284_v17  ;;  %v14742_v17 = vld [vmem:[%s19766_s5 + $0x2] ss:$0 sm:$0xff] }
0x2986   : > { %17190 = vmatpush3.bf16.msra.mxu0 %v17189_v13  ;;  %16212 = vmatprep.mubr.msk.f32.mxu0 %vm17819_vm0, %v17820_v11 }
0x2987   : > { %17191 = vmatprep.subr.bf16.mxu0 %v17818_v3 }
0x298a   : > { %17193 = vmatpush3.bf16.msra.mxu0 %v17192_v19  ;;  %v14749_v19 = vld [vmem:[%s19767_s8 + $0x2] ss:$0 sm:$0xff] }
0x298b   : > { %16226 = vmatprep.subr.mxu0 %v17820_v11 }
0x298c   : > { %v6448_v20 = vpop.f32.mrb[54].mxu1 }
0x298d   : > { %16213 = vmatmul.mubr.msk.f32.vlgmr.msra.gmra.mrb[62].mxu0 %vm1505_vm1, %v18635_v8  ;;  %v16203_v21 = vpop.f32.mrb[55].mxu1  ;;  %v6449_v26 = vadd.f32 %v14716_v24, %v6448_v20 }
0x298e   : > { %16228 = vmatprep.mubr.msk.f32.mxu0 %vm17819_vm0, %v17820_v11 }
0x298f   : > { %v6452_v14 = vmul.f32 0.35355338, %v6449_v26  ;;  %v14752_v26 = vld [vmem:[%s19768_s13 + $0x48] sm:$0xff] }
0x2994   : > { %v6615_v30 = vpop.f32.mrb[56].mxu1 }
0x2995   : > { %v16225_v49 = vpop.f32.mrb[57].mxu1  ;;  %v6616_v50 = vadd.f32 %v14730_v48, %v6615_v30  ;;  %v14763_v48 = vld [vmem:[%s19762_s4 + $0x60] sm:$0xff] }
0x2996   : > { %v14764_v49 = vld [vmem:[%s19762_s4 + $0x68] sm:$0xff] }
0x2a58   : > { %v18713_v22 = vpop.f32.mrb[60].mxu0 }
0x2a59   : > { %v16192_v23 = vpop.f32.mrb[61].mxu0  ;;  %v6368_v12 = vadd.f32 %v14710_v10, %v18713_v22  ;;  %v14751_v22 = vld [vmem:[%s19768_s13 + $0x40] sm:$0xff] }
0x2a60   : > { %v6532_v27 = vpop.f32.mrb[62].mxu0 }
0x2a61   : > { %v6533_v28 = vadd.f32 %v14723_v25, %v6532_v27  ;;  %v16214_v29 = vpop.f32.mrb[63].mxu0  ;;  %v14753_v25 = vld [vmem:[%s19768_s13 + $0x50] sm:$0xff]  ;;  %v17213_v27 = vpack.c.bf16 %v14752_v26, %v14751_v22 }
0x2a63   : > { %16227 = vmatpush3.xpose.msk.msra.mxu0 %vm1748_vm2, %v6533_v28  ;;  %v14754_v28 = vld [vmem:[%s19768_s13 + $0x58] sm:$0xff] }
0x2a64   : > { %16231 = vmatprep.subr.mxu0 %v17820_v11  ;;  %v17216_v29 = vpack.c.bf16 %v14754_v28, %v14753_v25  ;;  %v14694_v28 = vld [vmem:[%s19741_s19 + $0x1] ss:$0 sm:$0xff]  ;;  %s19773_s19 = sld [smem:[#allocation18_spill]] }
0x2a66   : > { %16229 = vmatmul.mubr.msk.f32.vlgmr.msra.gmra.mrb[64].mxu0 %vm1748_vm2, %v6452_v14 }
0x2a67   : > { %16233 = vmatprep.mubr.msk.f32.mxu0 %vm17819_vm0, %v17820_v11  ;;  %16232 = vmatpush3.msra.mxu0 %v6616_v50  ;;  %v17219_v50 = vpack.c.bf16 %v14764_v49, %v14763_v48 }
0x2a68   : > { %17200 = vmatprep.subr.bf16.mxu0 %v17818_v3 }
0x2b39   : > { %v6691_v38 = vpop.f32.mrb[64].mxu0 }
0x2b3a   : > { %v6692_v39 = vadd.f32 %v6691_v38, %v18678_v47  ;;  %v16230_v40 = vpop.f32.mrb[65].mxu0 }
0x2b3c   : > { %v6695_v42 = vsel %vm1748_vm2, %v6692_v39, -inf }
0x2b3d   : > { %6696 = vmax.xlane.f32.xlu1 %v6695_v42  ;;  %v14756_v42 = vld [vmem:[%s19769_s9 + $0x2] ss:$0 sm:$0xff] }
0x2bca   : > { %v6697_v43 = vpop.xlane.xlu1 %6696 }
0x2bcb   : > { %v6698_v32 = vsub.f32 %v6692_v39, %v6697_v43 }
0x2bcd   : > { %v6699_v44 = vmul.f32 1.442695, %v6698_v32 }
0x2bcf   : > { %17629 = vpow2.f32 %v6699_v44  ;;  %v14761_v44 = vld [vmem:[%s19770_s12 + $0x10] sm:$0xff] }
0x2bd9   : > { %v17630_v45 = vpop.eup %17629 }
0x2bda   : > { %v6701_v46 = vsel %vm1748_vm2, %v17630_v45, 0.0 }
0x2bdb   : > { %6702 = vadd.xlane.f32.xlu1 %v6701_v46 }
0x2c68   : > { %v6703_v52 = vpop.xlane.xlu1 %6702 }
0x2c69   : > { %17631 = vrcp.f32 %v6703_v52  ;;  %v14766_v52 = vld [vmem:[%s19762_s4 + $0x78] sm:$0xff] }
0x2c73   : > { %v17632_v53 = vpop.eup %17631 }
0x2c74   : > { %v6705_v54 = vmul.f32 %v17632_v53, %v17630_v45  ;;  %v17222_v53 = vpack.c.bf16 %v14766_v52, %v14765_v51 }
0x2c76   : > { %16234 = vmatmul.mubr.msk.f32.vlgmr.msra.gmra.mrb[66].mxu0 %vm1748_vm2, %v6705_v54  ;;  %v14770_v54 = vld [vmem:[%s19764_s6 + $0x60] sm:$0xff] }
0x2c77   : > { %16249 = vmatprep.mubr.msk.f32.mxu0 %vm17819_vm0, %v17820_v11  ;;  %17202 = vmatpush3.bf16.msra.mxu0 %v17201_v57  ;;  %v17225_v56 = vpack.c.bf16 %v14771_v55, %v14770_v54  ;;  %v14772_v57 = vld [vmem:[%s19764_s6 + $0x70] sm:$0xff]  ;;  %v7944_v54 = vld [vmem:[%s19772_s14 + $0x8] sm:$0xff] }
0x2c78   : > { %17203 = vmatprep.subr.bf16.mxu0 %v17818_v3  ;;  %v17228_v61 = vpack.c.bf16 %v14773_v58, %v14772_v57  ;;  %v7946_v57 = vld [vmem:[%s19772_s14 + $0x18] sm:$0xff] }
0x2c7b   : > { %17205 = vmatpush3.bf16.msra.mxu0 %v17204_v60 }
0x2c7c   : > { %17212 = vmatprep.subr.bf16.mxu0 %v17818_v3 }
0x2c7e   : > { %16250 = vmatmul.mubr.msk.f32.vlgmr.msra.gmra.mrb[68].mxu0 %vm1505_vm1, %v18635_v8 }
0x2c7f   : > { %16271 = vmatprep.mubr.msk.f32.mxu0 %vm17819_vm0, %v17820_v11  ;;  %17214 = vmatpush3.bf16.msra.mxu0 %v17213_v27 }
0x2c80   : > { %17215 = vmatprep.subr.bf16.mxu0 %v17818_v3 }
0x2c83   : > { %17217 = vmatpush3.bf16.msra.mxu0 %v17216_v29  ;;  %v5844_v29 = vadd.f32 %v14694_v28, %v18676_v41 }
0x2c84   : > { %16284 = vmatprep.subr.mxu0 %v17820_v11 }
0x2c86   : > { %16272 = vmatmul.mubr.msk.f32.vlgmr.msra.gmra.mrb[70].mxu0 %vm1505_vm1, %v18635_v8 }
0x2c87   : > { %16286 = vmatprep.mubr.msk.f32.mxu0 %vm17819_vm0, %v17820_v11  ;;  %16285 = vmatpush3.msra.mxu0 %v14761_v44 }
0x2c88   : > { %17224 = vmatprep.subr.bf16.mxu0 %v17818_v3 }
0x2d49   : > { %v6775_v4 = vpop.f32.mrb[66].mxu0 }
0x2d4a   : > { %v16235_v5 = vpop.f32.mrb[67].mxu0  ;;  %16239 = vmatmul.mubr.msk.f32.vlgmr.msra.gmra.mrb[58].mxu1 %vm1748_vm2, %v6775_v4 }
0x2d4b   : > { %17208 = vmatpush3.bf16.msra.mxu1 %v17207_v63  ;;  %16260 = vmatprep.mubr.msk.f32.mxu1 %vm17819_vm0, %v17820_v11  ;;  %v14768_v5 = vld [vmem:[%s19766_s5 + $0x3] ss:$0 sm:$0xff] }
0x2d4c   : > { %17209 = vmatprep.subr.bf16.mxu1 %v17818_v3 }
0x2d4f   : > { %17211 = vmatpush3.bf16.msra.mxu1 %v17210_v6 }
0x2d50   : > { %16274 = vmatprep.subr.mxu1 %v17820_v11 }
0x2d51   : > { %v6934_v7 = vpop.f32.mrb[68].mxu0 }
0x2d52   : > { %16261 = vmatmul.mubr.msk.f32.vlgmr.msra.gmra.mrb[60].mxu1 %vm1505_vm1, %v18635_v8  ;;  %v16251_v9 = vpop.f32.mrb[69].mxu0  ;;  %v6935_v18 = vadd.f32 %v14742_v17, %v6934_v7  ;;  %v14775_v7 = vld [vmem:[%s19767_s8 + $0x3] ss:$0 sm:$0xff]  ;;  %v14779_v17 = vld [vmem:[%s19768_s13 + $0x70] sm:$0xff] }
0x2d53   : > { %16276 = vmatprep.mubr.msk.f32.mxu1 %vm17819_vm0, %v17820_v11 }
0x2d54   : > { %v6938_v24 = vmul.f32 0.35355338, %v6935_v18 }
0x2d59   : > { %v7101_v40 = vpop.f32.mrb[70].mxu0 }
0x2d5a   : > { %v16273_v43 = vpop.f32.mrb[71].mxu0  ;;  %v7102_v32 = vadd.f32 %v14756_v42, %v7101_v40 }
0x2e1d   : > { %v6850_v13 = vpop.f32.mrb[58].mxu1 }
0x2e1e   : > { %v18767_v15 = vadd.f32 %v6850_v13, %v6368_v12  ;;  %v16240_v16 = vpop.f32.mrb[59].mxu1 }
0x2e1f   : > { %v14778_v16 = vld [vmem:[%s19768_s13 + $0x68] sm:$0xff] }
0x2e25   : > { %v7018_v20 = vpop.f32.mrb[60].mxu1 }
0x2e26   : > { %v7019_v21 = vadd.f32 %v14749_v19, %v7018_v20  ;;  %v16262_v23 = vpop.f32.mrb[61].mxu1  ;;  %v14780_v19 = vld [vmem:[%s19768_s13 + $0x78] sm:$0xff] }
0x2e27   : > { %v17234_v20 = vpack.c.bf16 %v14780_v19, %v14779_v17  ;;  %v7861_v17 = vld [vmem:[%s19773_s19 + $0x18] sm:$0xff] }
0x2e28   : > { %16275 = vmatpush3.xpose.msk.msra.mxu1 %vm1748_vm2, %v7019_v21 }
0x2e29   : > { %16279 = vmatprep.subr.mxu1 %v17820_v11 }
0x2e2b   : > { %16277 = vmatmul.mubr.msk.f32.vlgmr.msra.gmra.mrb[62].mxu1 %vm1748_vm2, %v6938_v24 }
0x2e2c   : > { %16281 = vmatprep.mubr.msk.f32.mxu1 %vm17819_vm0, %v17820_v11  ;;  %16280 = vmatpush3.msra.mxu1 %v7102_v32 }
0x2e2d   : > { %17218 = vmatprep.subr.bf16.mxu1 %v17818_v3 }
0x2efe   : > { %v7177_v14 = vpop.f32.mrb[62].mxu1 }
0x2eff   : > { %v7178_v31 = vadd.f32 %v7177_v14, %v18678_v47  ;;  %v16278_v33 = vpop.f32.mrb[63].mxu1 }
0x2f00   : > { %v5847_v33 = vadd.f32 %v5844_v29, %v18622_v1 }
0x2f01   : > { %v7181_v34 = vsel %vm1748_vm2, %v7178_v31, -inf }
0x2f02   : > { %7182 = vmax.xlane.f32.xlu1 %v7181_v34  ;;  %v5852_v34 = vsel %vm1505_vm1, %v5847_v33, 0.0 }
0x2f8f   : > { %v7183_v35 = vpop.xlane.xlu1 %7182 }
0x2f90   : > { %v7184_v36 = vsub.f32 %v7178_v31, %v7183_v35 }
0x2f92   : > { %v7185_v37 = vmul.f32 1.442695, %v7184_v36  ;;  %v14782_v36 = vld [vmem:[%s19769_s9 + $0x3] ss:$0 sm:$0xff] }
0x2f94   : > { %17633 = vpow2.f32 %v7185_v37 }
0x2f9e   : > { %v17634_v38 = vpop.eup %17633 }
0x2f9f   : > { %v7187_v39 = vsel %vm1748_vm2, %v17634_v38, 0.0 }
0x2fa0   : > { %7188 = vadd.xlane.f32.xlu1 %v7187_v39  ;;  %v14787_v39 = vld [vmem:[%s19770_s12 + $0x18] sm:$0xff] }
0x302d   : > { %v7189_v45 = vpop.xlane.xlu1 %7188 }
0x302e   : > { %17635 = vrcp.f32 %v7189_v45 }
0x3038   : > { %v17636_v46 = vpop.eup %17635 }
0x3039   : > { %v7191_v30 = vmul.f32 %v17636_v46, %v17634_v38 }
0x303b   : > { %16282 = vmatmul.mubr.msk.f32.vlgmr.msra.gmra.mrb[64].mxu1 %vm1748_vm2, %v7191_v30 }
0x303c   : > { %16297 = vmatprep.mubr.msk.f32.mxu1 %vm17819_vm0, %v17820_v11  ;;  %17220 = vmatpush3.bf16.msra.mxu1 %v17219_v50 }
0x303d   : > { %17221 = vmatprep.subr.bf16.mxu1 %v17818_v3 }
0x3040   : > { %17223 = vmatpush3.bf16.msra.mxu1 %v17222_v53  ;;  %v7943_v53 = vld [vmem:[%s19772_s14] sm:$0xff] }
0x3041   : > { %17230 = vmatprep.subr.bf16.mxu1 %v17818_v3  ;;  %v17243_v55 = vpack.c.bf16 %v7944_v54, %v7943_v53 }
0x3043   : > { %16298 = vmatmul.mubr.msk.f32.vlgmr.msra.gmra.mrb[66].mxu1 %vm1505_vm1, %v18635_v8 }
0x3044   : > { %16319 = vmatprep.mubr.msk.f32.mxu1 %vm17819_vm0, %v17820_v11 }
0x310e   : > { %v7261_v59 = vpop.f32.mrb[64].mxu1 }
0x310f   : > { %v16283_v60 = vpop.f32.mrb[65].mxu1  ;;  %16287 = vmatmul.mubr.msk.f32.vlgmr.msra.gmra.mrb[72].mxu0 %vm1748_vm2, %v7261_v59 }
0x3110   : > { %17226 = vmatpush3.bf16.msra.mxu0 %v17225_v56  ;;  %16308 = vmatprep.mubr.msk.f32.mxu0 %vm17819_vm0, %v17820_v11  ;;  %v7945_v56 = vld [vmem:[%s19772_s14 + $0x10] sm:$0xff] }
0x3111   : > { %17227 = vmatprep.subr.bf16.mxu0 %v17818_v3  ;;  %v17246_v58 = vpack.c.bf16 %v7946_v57, %v7945_v56  ;;  %v8268_v56 = vld [vmem:[%s19780_s27] sm:$0xff] }
0x3114   : > { %17229 = vmatpush3.bf16.msra.mxu0 %v17228_v61 }
0x3115   : > { %16322 = vmatprep.subr.mxu0 %v17820_v11 }
0x3116   : > { %v7420_v62 = vpop.f32.mrb[66].mxu1 }
0x3117   : > { %16309 = vmatmul.mubr.msk.f32.vlgmr.msra.gmra.mrb[74].mxu0 %vm1505_vm1, %v18635_v8  ;;  %v16299_v63 = vpop.f32.mrb[67].mxu1  ;;  %v7421_v6 = vadd.f32 %v14768_v5, %v7420_v62  ;;  %v14698_v5 = vld [vmem:[%s19760_s26 + $0x1] ss:$0 sm:$0xff]  ;;  %s19779_s26 = sld [smem:[#allocation14_spill]] }
0x3118   : > { %16324 = vmatprep.mubr.msk.f32.mxu0 %vm17819_vm0, %v17820_v11 }
0x3119   : > { %v7424_v13 = vmul.f32 0.35355338, %v7421_v6 }
0x31e2   : > { %v7336_v0 = vpop.f32.mrb[72].mxu0 }
0x31e3   : > { %v18820_v2 = vadd.f32 %v7336_v0, %v18767_v15  ;;  %v16288_v4 = vpop.f32.mrb[73].mxu0  ;;  %v14777_v15 = vld [vmem:[%s19768_s13 + $0x60] sm:$0xff] }
0x31e4   : > { %v17231_v18 = vpack.c.bf16 %v14778_v16, %v14777_v15  ;;  %v7860_v16 = vld [vmem:[%s19773_s19 + $0x10] sm:$0xff] }
0x31e6   : > { %17232 = vmatpush3.bf16.msra.mxu1 %v17231_v18  ;;  %v17240_v18 = vpack.c.bf16 %v7861_v17, %v7860_v16  ;;  %v14811_v16 = vld [vmem:[%s19772_s14 + $0x30] sm:$0xff]  ;;  %v14812_v17 = vld [vmem:[%s19772_s14 + $0x38] sm:$0xff] }
0x31e7   : > { %17233 = vmatprep.subr.bf16.mxu1 %v17818_v3 }
0x31ea   : > { %v7504_v9 = vpop.f32.mrb[74].mxu0  ;;  %17235 = vmatpush3.bf16.msra.mxu1 %v17234_v20 }
0x31eb   : > { %v7505_v10 = vadd.f32 %v14775_v7, %v7504_v9  ;;  %v16310_v12 = vpop.f32.mrb[75].mxu0  ;;  %16332 = vmatprep.subr.mxu1 %v17820_v11  ;;  %v14699_v7 = vld [vmem:[%s19761_s15 + $0x1] ss:$0 sm:$0xff]  ;;  %s19777_s15 = sld [smem:[#allocation11_spill]] }
0x31ec   : > { %v7858_v12 = vld [vmem:[%s19773_s19] sm:$0xff] }
0x31ed   : > { %16323 = vmatpush3.xpose.msk.msra.mxu0 %vm1748_vm2, %v7505_v10  ;;  %16320 = vmatmul.mubr.msk.f32.vlgmr.msra.gmra.mrb[68].mxu1 %vm1505_vm1, %v18635_v8 }
0x31ee   : > { %16327 = vmatprep.subr.mxu0 %v17820_v11  ;;  %16334 = vmatprep.mubr.msk.f32.mxu1 %vm17819_vm0, %v17820_v11 }
0x31ef   : > { %16333 = vmatpush3.msra.mxu1 %v14787_v39  ;;  %v14791_v39 = vld [vmem:[%s19778_s25] ss:$0 sm:$0xff] }
0x31f0   : > { %16325 = vmatmul.mubr.msk.f32.vlgmr.msra.gmra.mrb[76].mxu0 %vm1748_vm2, %v7424_v13  ;;  %17242 = vmatprep.subr.bf16.mxu1 %v17818_v3  ;;  %v7859_v13 = vld [vmem:[%s19773_s19 + $0x8] sm:$0xff] }
0x31f1   : > { %16329 = vmatprep.mubr.msk.f32.mxu0 %vm17819_vm0, %v17820_v11  ;;  %v17237_v15 = vpack.c.bf16 %v7859_v13, %v7858_v12  ;;  %v14809_v12 = vld [vmem:[%s19772_s14 + $0x20] sm:$0xff]  ;;  %v14810_v13 = vld [vmem:[%s19772_s14 + $0x28] sm:$0xff] }
0x32c0   : > { %v7587_v35 = vpop.f32.mrb[68].mxu1 }
0x32c1   : > { %v16321_v37 = vpop.f32.mrb[69].mxu1  ;;  %v7588_v38 = vadd.f32 %v14782_v36, %v7587_v35  ;;  %v14793_v35 = vld [vmem:[%s19777_s15] ss:$0 sm:$0xff] }
0x32c3   : > { %v7663_v21 = vpop.f32.mrb[76].mxu0  ;;  %16328 = vmatpush3.msra.mxu0 %v7588_v38 }
0x32c4   : > { %v7664_v23 = vadd.f32 %v7663_v21, %v18678_v47  ;;  %v16326_v24 = vpop.f32.mrb[77].mxu0  ;;  %17236 = vmatprep.subr.bf16.mxu0 %v17818_v3 }
0x32c5   : > { %v14789_v24 = vld [vmem:[%s19774_s20] ss:$0 sm:$0xff] }
0x32c6   : > { %v7667_v22 = vsel %vm1748_vm2, %v7664_v23, -inf }
0x32c7   : > { %7668 = vmax.xlane.f32.xlu1 %v7667_v22 }
0x3354   : > { %v7669_v26 = vpop.xlane.xlu1 %7668 }
0x3355   : > { %v7670_v25 = vsub.f32 %v7664_v23, %v7669_v26  ;;  %v8027_v26 = vld [vmem:[%s19775_s21] sm:$0xff] }
0x3357   : > { %v7671_v27 = vmul.f32 1.442695, %v7670_v25  ;;  %v8028_v25 = vld [vmem:[%s19775_s21 + $0x8] sm:$0xff] }
0x3358   : > { %v17249_v29 = vpack.c.bf16 %v8028_v25, %v8027_v26 }
0x3359   : > { %17637 = vpow2.f32 %v7671_v27  ;;  %v14790_v27 = vld [vmem:[%s19776_s24] ss:$0 sm:$0xff] }
0x3363   : > { %v17638_v14 = vpop.eup %17637 }
0x3364   : > { %v7673_v31 = vsel %vm1748_vm2, %v17638_v14, 0.0 }
0x3365   : > { %7674 = vadd.xlane.f32.xlu1 %v7673_v31  ;;  %v8029_v31 = vld [vmem:[%s19775_s21 + $0x10] sm:$0xff] }
0x3369   : > { %5853 = vadd.xlane.f32.xlu1 %v5852_v34 }
0x33f2   : > { %v7675_v41 = vpop.xlane.xlu1 %7674 }
0x33f3   : > { %17639 = vrcp.f32 %v7675_v41 }
0x33f6   : > { %v5854_v32 = vpop.xlane.xlu1 %5853 }
0x33f7   : > { %v5855_v44 = vmul.f32 0.03125, %v5854_v32 }
0x33f9   : > { %v5856_v46 = vsub.f32 %v5847_v33, %v5855_v44  ;;  %v8030_v33 = vld [vmem:[%s19775_s21 + $0x18] sm:$0xff] }
0x33fa   : > { %v17252_v34 = vpack.c.bf16 %v8030_v33, %v8029_v31 }
0x33fb   : > { %v5857_v51 = vmul.f32 %v5856_v46, %v5856_v46 }
0x33fd   : > { %v17640_v40 = vpop.eup %17639  ;;  %v5858_v52 = vsel %vm1505_vm1, %v5857_v51, 0.0 }
0x33fe   : > { %v7677_v42 = vmul.f32 %v17640_v40, %v17638_v14 }
0x3400   : > { %16330 = vmatmul.mubr.msk.f32.vlgmr.msra.gmra.mrb[78].mxu0 %vm1748_vm2, %v7677_v42 }
0x3401   : > { %16345 = vmatprep.mubr.msk.f32.mxu0 %vm17819_vm0, %v17820_v11  ;;  %17238 = vmatpush3.bf16.msra.mxu0 %v17237_v15  ;;  %v17261_v15 = vpack.c.bf16 %v14810_v13, %v14809_v12 }
0x3402   : > { %17239 = vmatprep.subr.bf16.mxu0 %v17818_v3 }
0x3405   : > { %17241 = vmatpush3.bf16.msra.mxu0 %v17240_v18 }
0x3406   : > { %17248 = vmatprep.subr.bf16.mxu0 %v17818_v3 }
0x34d3   : > { %v7747_v1 = vpop.f32.mrb[78].mxu0 }
0x34d4   : > { %v16331_v43 = vpop.f32.mrb[79].mxu0  ;;  %16335 = vmatmul.mubr.msk.f32.vlgmr.msra.gmra.mrb[70].mxu1 %vm1748_vm2, %v7747_v1 }
0x34d5   : > { %16356 = vmatprep.mubr.msk.f32.mxu1 %vm17819_vm0, %v17820_v11  ;;  %17244 = vmatpush3.bf16.msra.mxu1 %v17243_v55  ;;  %v14795_v43 = vld [vmem:[%s19779_s26] ss:$0 sm:$0xff] }
0x34d6   : > { %17245 = vmatprep.subr.bf16.mxu1 %v17818_v3 }
0x34d9   : > { %17247 = vmatpush3.bf16.msra.mxu1 %v17246_v58  ;;  %v14802_v58 = vld [vmem:[%s19773_s19 + $0x20] sm:$0xff] }
0x34da   : > { %16370 = vmatprep.subr.mxu1 %v17820_v11 }
0x35a7   : > { %v7822_v45 = vpop.f32.mrb[70].mxu1 }
0x35a8   : > { %v7826_v30 = vadd.f32 %v7822_v45, %v18820_v2  ;;  %v16336_v48 = vpop.f32.mrb[71].mxu1 }
0x35aa   : > { %v7827_v49 = vadd.f32 %v7826_v30, %v18635_v8  ;;  %v18909_v30 = vld [vmem:[%s18178_s16] ss:$0 sm:$0xff] }
0x35ac   : > { %v7830_v50 = vsel %vm1505_vm1, %v7827_v49, 0.0 }
0x35ad   : > { %7831 = vadd.xlane.f32.xlu1 %v7830_v50 }
0x35b1   : > { %5859 = vadd.xlane.f32.xlu1 %v5858_v52 }
0x363a   : > { %v7832_v8 = vpop.xlane.xlu1 %7831 }
0x363b   : > { %v7833_v59 = vmul.f32 0.03125, %v7832_v8  ;;  %v14803_v8 = vld [vmem:[%s19773_s19 + $0x28] sm:$0xff] }
0x363d   : > { %v7834_v60 = vsub.f32 %v7827_v49, %v7833_v59 }
0x363e   : > { %v5860_v61 = vpop.xlane.xlu1 %5859 }
0x363f   : > { %v5861_v62 = vmul.f32 0.03125, %v5860_v61  ;;  %v7835_v63 = vmul.f32 %v7834_v60, %v7834_v60 }
0x3641   : > { %v5862_v0 = vadd.f32 1e-05, %v5861_v62  ;;  %v7836_v2 = vsel %vm1505_vm1, %v7835_v63, 0.0  ;;  %v14804_v62 = vld [vmem:[%s19773_s19 + $0x30] sm:$0xff]  ;;  %v14805_v63 = vld [vmem:[%s19773_s19 + $0x38] sm:$0xff] }
0x3642   : > { %7837 = vadd.xlane.f32.xlu0 %v7836_v2  ;;  %v14816_v2 = vld [vmem:[%s19775_s21 + $0x20] sm:$0xff] }
0x3643   : > { %17641 = vrsqrt.f32 %v5862_v0  ;;  %v17258_v0 = vpack.c.bf16 %v14805_v63, %v14804_v62  ;;  %v14836_v62 = vld [vmem:[%s19772_s14 + $0x48] sm:$0xff] }
0x364d   : > { %v17642_v4 = vpop.eup %17641 }
0x364e   : > { %v5864_v6 = vmul.f32 %v17642_v4, %v5856_v46  ;;  %v14817_v4 = vld [vmem:[%s19775_s21 + $0x28] sm:$0xff] }
0x3650   : > { %v5871_v9 = vmul.f32 %v14698_v5, %v5864_v6  ;;  %v17267_v5 = vpack.c.bf16 %v14817_v4, %v14816_v2  ;;  %v14818_v6 = vld [vmem:[%s19775_s21 + $0x30] sm:$0xff]  ;;  %v14838_v2 = vld [vmem:[%s19772_s14 + $0x58] sm:$0xff] }
0x3652   : > { %v18869_v10 = vadd.f32 %v14699_v7, %v5871_v9  ;;  %v14819_v7 = vld [vmem:[%s19775_s21 + $0x38] sm:$0xff] }
0x3653   : > { %v17270_v9 = vpack.c.bf16 %v14819_v7, %v14818_v6 }
0x3654   : > { %16357 = vmatmul.mubr.msk.f32.vlgmr.msra.gmra.mrb[72].mxu1 %vm1505_vm1, %v18869_v10 }
0x3655   : > { %16372 = vmatprep.mubr.msk.f32.mxu1 %vm17819_vm0, %v17820_v11 }
0x36cf   : > { %v7838_v19 = vpop.xlane.xlu0 %7837 }
0x36d0   : > { %v7839_v20 = vmul.f32 0.03125, %v7838_v19 }
0x36d2   : > { %v7840_v21 = vadd.f32 1e-05, %v7839_v20  ;;  %v17264_v20 = vpack.c.bf16 %v14812_v17, %v14811_v16 }
0x36d4   : > { %17643 = vrsqrt.f32 %v7840_v21 }
0x36de   : > { %v17644_v23 = vpop.eup %17643 }
0x36df   : > { %v7842_v22 = vmul.f32 %v17644_v23, %v7834_v60  ;;  %v17255_v60 = vpack.c.bf16 %v14803_v8, %v14802_v58  ;;  %v14844_v8 = vld [vmem:[%s19775_s21 + $0x50] sm:$0xff] }
0x36e1   : > { %v7849_v28 = vmul.f32 %v14789_v24, %v7842_v22 }
0x36e3   : > { %v18885_v14 = vadd.f32 %v14790_v27, %v7849_v28  ;;  %v14807_v27 = vld [vmem:[%s19778_s25 + $0x1] ss:$0 sm:$0xff] }
0x36e4   : > { %v14814_v28 = vld [vmem:[%s19777_s15 + $0x1] ss:$0 sm:$0xff] }
0x36e5   : > { %16346 = vmatmul.mubr.msk.f32.vlgmr.msra.gmra.mrb[80].mxu0 %vm1505_vm1, %v18885_v14 }
0x36e6   : > { %17250 = vmatpush3.bf16.msra.mxu0 %v17249_v29  ;;  %16367 = vmatprep.mubr.msk.f32.mxu0 %vm17819_vm0, %v17820_v11 }
0x36e7   : > { %17251 = vmatprep.subr.bf16.mxu0 %v17818_v3 }
0x36ea   : > { %17253 = vmatpush3.bf16.msra.mxu0 %v17252_v34 }
0x36eb   : > { %16380 = vmatprep.subr.mxu0 %v17820_v11 }
0x36ed   : > { %16368 = vmatmul.mubr.msk.f32.vlgmr.msra.gmra.mrb[82].mxu0 %vm1505_vm1, %v18869_v10 }
0x36ee   : > { %16382 = vmatprep.mubr.msk.f32.mxu0 %vm17819_vm0, %v17820_v11  ;;  %16381 = vmatpush3.msra.mxu0 %v8268_v56  ;;  %v14842_v56 = vld [vmem:[%s19775_s21 + $0x40] sm:$0xff] }
0x36ef   : > { %17260 = vmatprep.subr.bf16.mxu0 %v17818_v3 }
0x3727   : > { %v8023_v36 = vpop.f32.mrb[72].mxu1 }
0x3728   : > { %v8024_v37 = vadd.f32 %v14793_v35, %v8023_v36  ;;  %v16358_v38 = vpop.f32.mrb[73].mxu1  ;;  %v14821_v35 = vld [vmem:[%s19779_s26 + $0x1] ss:$0 sm:$0xff] }
0x372a   : > { %16371 = vmatpush3.xpose.msk.msra.mxu1 %vm1748_vm2, %v8024_v37 }
0x372b   : > { %16375 = vmatprep.subr.mxu1 %v17820_v11 }
0x37b8   : > { %v7938_v41 = vpop.f32.mrb[80].mxu0 }
0x37b9   : > { %v7939_v40 = vadd.f32 %v14791_v39, %v7938_v41  ;;  %v16347_v42 = vpop.f32.mrb[81].mxu0 }
0x37bb   : > { %v7942_v1 = vmul.f32 0.35355338, %v7939_v40 }
0x37bd   : > { %16373 = vmatmul.mubr.msk.f32.vlgmr.msra.gmra.mrb[74].mxu1 %vm1748_vm2, %v7942_v1 }
0x37be   : > { %16377 = vmatprep.mubr.msk.f32.mxu1 %vm17819_vm0, %v17820_v11 }
0x37c0   : > { %v8104_v32 = vpop.f32.mrb[82].mxu0 }
0x37c1   : > { %v8105_v44 = vadd.f32 %v14795_v43, %v8104_v32  ;;  %v16369_v45 = vpop.f32.mrb[83].mxu0 }
0x37c2   : > { %v14826_v45 = vld [vmem:[%s19780_s27 + $0x8] sm:$0xff] }
0x37c3   : > { %16376 = vmatpush3.msra.mxu1 %v8105_v44 }
0x37c4   : > { %17254 = vmatprep.subr.bf16.mxu1 %v17818_v3 }
0x3890   : > { %v8180_v46 = vpop.f32.mrb[74].mxu1 }
0x3891   : > { %v8181_v48 = vadd.f32 %v18909_v30, %v8180_v46  ;;  %v16374_v49 = vpop.f32.mrb[75].mxu1 }
0x3892   : > { %v14829_v49 = vld [vmem:[%s19773_s19 + $0x48] sm:$0xff] }
0x3893   : > { %v8184_v50 = vsel %vm1748_vm2, %v8181_v48, -inf }
0x3894   : > { %8185 = vmax.xlane.f32.xlu1 %v8184_v50 }
0x3921   : > { %v8186_v51 = vpop.xlane.xlu1 %8185 }
0x3922   : > { %v8187_v52 = vsub.f32 %v8181_v48, %v8186_v51  ;;  %v14828_v48 = vld [vmem:[%s19773_s19 + $0x40] sm:$0xff] }
0x3923   : > { %v17273_v51 = vpack.c.bf16 %v14829_v49, %v14828_v48  ;;  %v14868_v49 = vld [vmem:[%s19775_s21 + $0x60] sm:$0xff] }
0x3924   : > { %v8188_v53 = vmul.f32 1.442695, %v8187_v52 }
0x3926   : > { %17645 = vpow2.f32 %v8188_v53  ;;  %v14830_v53 = vld [vmem:[%s19773_s19 + $0x50] sm:$0xff] }
0x3930   : > { %v17646_v54 = vpop.eup %17645 }
0x3931   : > { %v8190_v55 = vsel %vm1748_vm2, %v17646_v54, 0.0 }
0x3932   : > { %8191 = vadd.xlane.f32.xlu1 %v8190_v55 }
0x39bf   : > { %v8192_v57 = vpop.xlane.xlu1 %8191 }
0x39c0   : > { %17647 = vrcp.f32 %v8192_v57  ;;  %v14843_v57 = vld [vmem:[%s19775_s21 + $0x48] sm:$0xff] }
0x39c1   : > { %v17285_v58 = vpack.c.bf16 %v14843_v57, %v14842_v56  ;;  %v14862_v56 = vld [vmem:[%s19772_s14 + $0x68] sm:$0xff] }
0x39ca   : > { %v17648_v59 = vpop.eup %17647 }
0x39cb   : > { %v8194_v61 = vmul.f32 %v17648_v59, %v17646_v54  ;;  %v14831_v54 = vld [vmem:[%s19773_s19 + $0x58] sm:$0xff] }
0x39cc   : > { %v17276_v55 = vpack.c.bf16 %v14831_v54, %v14830_v53  ;;  %v14845_v59 = vld [vmem:[%s19775_s21 + $0x58] sm:$0xff] }
0x39cd   : > { %16378 = vmatmul.mubr.msk.f32.vlgmr.msra.gmra.mrb[76].mxu1 %vm1748_vm2, %v8194_v61  ;;  %v14835_v61 = vld [vmem:[%s19772_s14 + $0x40] sm:$0xff]  ;;  %v14871_v53 = vld [vmem:[%s19775_s21 + $0x78] sm:$0xff] }
0x39ce   : > { %17256 = vmatpush3.bf16.msra.mxu1 %v17255_v60  ;;  %16393 = vmatprep.mubr.msk.f32.mxu1 %vm17819_vm0, %v17820_v11  ;;  %v17288_v60 = vpack.c.bf16 %v14845_v59, %v14844_v8  ;;  %v17279_v63 = vpack.c.bf16 %v14836_v62, %v14835_v61  ;;  %v14864_v8 = vld [vmem:[%s19772_s14 + $0x78] sm:$0xff] }
0x39cf   : > { %17257 = vmatprep.subr.bf16.mxu1 %v17818_v3 }
0x39d2   : > { %17259 = vmatpush3.bf16.msra.mxu1 %v17258_v0  ;;  %v14837_v0 = vld [vmem:[%s19772_s14 + $0x50] sm:$0xff] }
0x39d3   : > { %17266 = vmatprep.subr.bf16.mxu1 %v17818_v3  ;;  %v17282_v6 = vpack.c.bf16 %v14838_v2, %v14837_v0 }
0x39d5   : > { %16394 = vmatmul.mubr.msk.f32.vlgmr.msra.gmra.mrb[78].mxu1 %vm1505_vm1, %v18885_v14 }
0x39d6   : > { %17268 = vmatpush3.bf16.msra.mxu1 %v17267_v5  ;;  %16415 = vmatprep.mubr.msk.f32.mxu1 %vm17819_vm0, %v17820_v11 }
0x39d7   : > { %17269 = vmatprep.subr.bf16.mxu1 %v17818_v3 }
0x39da   : > { %17271 = vmatpush3.bf16.msra.mxu1 %v17270_v9 }
0x39db   : > { %16428 = vmatprep.subr.mxu1 %v17820_v11 }
0x39dd   : > { %16416 = vmatmul.mubr.msk.f32.vlgmr.msra.gmra.mrb[80].mxu1 %vm1505_vm1, %v18869_v10 }
0x39de   : > { %16430 = vmatprep.mubr.msk.f32.mxu1 %vm17819_vm0, %v17820_v11  ;;  %16429 = vmatpush3.msra.mxu1 %v14826_v45  ;;  %v14856_v45 = vld [vmem:[%s19773_s19 + $0x70] sm:$0xff] }
0x39df   : > { %17278 = vmatprep.subr.bf16.mxu1 %v17818_v3 }
0x3aa0   : > { %v8264_v18 = vpop.f32.mrb[76].mxu1 }
0x3aa1   : > { %v16379_v19 = vpop.f32.mrb[77].mxu1  ;;  %16383 = vmatmul.mubr.msk.f32.vlgmr.msra.gmra.mrb[84].mxu0 %vm1748_vm2, %v8264_v18 }
0x3aa2   : > { %17262 = vmatpush3.bf16.msra.mxu0 %v17261_v15  ;;  %16404 = vmatprep.mubr.msk.f32.mxu0 %vm17819_vm0, %v17820_v11  ;;  %v14801_v15 = vld [vmem:[%s19781_s29] ss:$0 sm:$0xff] }
0x3aa3   : > { %17263 = vmatprep.subr.bf16.mxu0 %v17818_v3 }
0x3aa6   : > { %17265 = vmatpush3.bf16.msra.mxu0 %v17264_v20  ;;  %v14833_v20 = vld [vmem:[%s19778_s25 + $0x2] ss:$0 sm:$0xff] }
0x3aa7   : > { %16418 = vmatprep.subr.mxu0 %v17820_v11 }
0x3aa8   : > { %v8428_v21 = vpop.f32.mrb[78].mxu1 }
0x3aa9   : > { %v16395_v23 = vpop.f32.mrb[79].mxu1  ;;  %16405 = vmatmul.mubr.msk.f32.vlgmr.msra.gmra.mrb[86].mxu0 %vm1505_vm1, %v18869_v10  ;;  %v8429_v29 = vadd.f32 %v14807_v27, %v8428_v21  ;;  %v14840_v21 = vld [vmem:[%s19777_s15 + $0x2] ss:$0 sm:$0xff] }
0x3aaa   : > { %16420 = vmatprep.mubr.msk.f32.mxu0 %vm17819_vm0, %v17820_v11  ;;  %v14847_v27 = vld [vmem:[%s19779_s26 + $0x2] ss:$0 sm:$0xff] }
0x3aab   : > { %v8432_v36 = vmul.f32 0.35355338, %v8429_v29 }
0x3ab0   : > { %v8595_v24 = vpop.f32.mrb[80].mxu1 }
0x3ab1   : > { %v16417_v22 = vpop.f32.mrb[81].mxu1  ;;  %v8596_v37 = vadd.f32 %v14821_v35, %v8595_v24 }
0x3b74   : > { %v18952_v26 = vpop.f32.mrb[84].mxu0 }
0x3b75   : > { %v16384_v25 = vpop.f32.mrb[85].mxu0  ;;  %v8348_v16 = vadd.f32 %v14801_v15, %v18952_v26 }
0x3b7c   : > { %v8512_v31 = vpop.f32.mrb[86].mxu0 }
0x3b7d   : > { %v8513_v33 = vadd.f32 %v14814_v28, %v8512_v31  ;;  %v16406_v34 = vpop.f32.mrb[87].mxu0 }
0x3b7f   : > { %16419 = vmatpush3.xpose.msk.msra.mxu0 %vm1748_vm2, %v8513_v33 }
0x3b80   : > { %16423 = vmatprep.subr.mxu0 %v17820_v11 }
0x3b82   : > { %16421 = vmatmul.mubr.msk.f32.vlgmr.msra.gmra.mrb[88].mxu0 %vm1748_vm2, %v8432_v36 }
0x3b83   : > { %16424 = vmatpush3.msra.mxu0 %v8596_v37  ;;  %16425 = vmatprep.mubr.msk.f32.mxu0 %vm17819_vm0, %v17820_v11 }
0x3b84   : > { %17272 = vmatprep.subr.bf16.mxu0 %v17818_v3 }
0x3c55   : > { %v8671_v38 = vpop.f32.mrb[88].mxu0 }
0x3c56   : > { %v8672_v39 = vadd.f32 %v18909_v30, %v8671_v38  ;;  %v16422_v41 = vpop.f32.mrb[89].mxu0 }
0x3c57   : > { %v14852_v41 = vld [vmem:[%s19780_s27 + $0x10] sm:$0xff] }
0x3c58   : > { %v8675_v40 = vsel %vm1748_vm2, %v8672_v39, -inf }
0x3c59   : > { %8676 = vmax.xlane.f32.xlu1 %v8675_v40 }
0x3ce6   : > { %v8677_v42 = vpop.xlane.xlu1 %8676 }
0x3ce7   : > { %v8678_v1 = vsub.f32 %v8672_v39, %v8677_v42  ;;  %v14854_v42 = vld [vmem:[%s19773_s19 + $0x60] sm:$0xff] }
0x3ce9   : > { %v8679_v43 = vmul.f32 1.442695, %v8678_v1  ;;  %v14855_v1 = vld [vmem:[%s19773_s19 + $0x68] sm:$0xff] }
0x3ceb   : > { %17649 = vpow2.f32 %v8679_v43 }
0x3cf5   : > { %v17650_v32 = vpop.eup %17649 }
0x3cf6   : > { %v8681_v44 = vsel %vm1748_vm2, %v17650_v32, 0.0 }
0x3cf7   : > { %8682 = vadd.xlane.f32.xlu1 %v8681_v44 }
0x3d84   : > { %v8683_v46 = vpop.xlane.xlu1 %8682 }
0x3d85   : > { %17651 = vrcp.f32 %v8683_v46  ;;  %v14857_v46 = vld [vmem:[%s19773_s19 + $0x78] sm:$0xff] }
0x3d86   : > { %v17294_v48 = vpack.c.bf16 %v14857_v46, %v14856_v45  ;;  %v9838_v45 = vld [vmem:[%s19782_s30 + $0x8] sm:$0xff] }
0x3d8f   : > { %v17652_v50 = vpop.eup %17651 }
0x3d90   : > { %v8685_v52 = vmul.f32 %v17652_v50, %v17650_v32  ;;  %v17291_v32 = vpack.c.bf16 %v14855_v1, %v14854_v42  ;;  %v14869_v50 = vld [vmem:[%s19775_s21 + $0x68] sm:$0xff] }
0x3d92   : > { %16426 = vmatmul.mubr.msk.f32.vlgmr.msra.gmra.mrb[90].mxu0 %vm1748_vm2, %v8685_v52  ;;  %v14870_v52 = vld [vmem:[%s19775_s21 + $0x70] sm:$0xff] }
0x3d93   : > { %17274 = vmatpush3.bf16.msra.mxu0 %v17273_v51  ;;  %16441 = vmatprep.mubr.msk.f32.mxu0 %vm17819_vm0, %v17820_v11  ;;  %v17303_v51 = vpack.c.bf16 %v14869_v50, %v14868_v49  ;;  %v17306_v54 = vpack.c.bf16 %v14871_v53, %v14870_v52  ;;  %v9922_v50 = vld [vmem:[%s19783_s18] sm:$0xff]  ;;  %v9924_v52 = vld [vmem:[%s19783_s18 + $0x10] sm:$0xff] }
0x3d94   : > { %17275 = vmatprep.subr.bf16.mxu0 %v17818_v3 }
0x3d97   : > { %17277 = vmatpush3.bf16.msra.mxu0 %v17276_v55  ;;  %v14861_v55 = vld [vmem:[%s19772_s14 + $0x60] sm:$0xff] }
0x3d98   : > { %17284 = vmatprep.subr.bf16.mxu0 %v17818_v3  ;;  %v17297_v57 = vpack.c.bf16 %v14862_v56, %v14861_v55  ;;  %v9926_v56 = vld [vmem:[%s19783_s18 + $0x20] sm:$0xff] }
0x3d9a   : > { %16442 = vmatmul.mubr.msk.f32.vlgmr.msra.gmra.mrb[92].mxu0 %vm1505_vm1, %v18885_v14 }
0x3d9b   : > { %17286 = vmatpush3.bf16.msra.mxu0 %v17285_v58  ;;  %16463 = vmatprep.mubr.msk.f32.mxu0 %vm17819_vm0, %v17820_v11  ;;  %v14863_v58 = vld [vmem:[%s19772_s14 + $0x70] sm:$0xff] }
0x3d9c   : > { %17287 = vmatprep.subr.bf16.mxu0 %v17818_v3  ;;  %v17300_v61 = vpack.c.bf16 %v14864_v8, %v14863_v58 }
0x3d9f   : > { %17289 = vmatpush3.bf16.msra.mxu0 %v17288_v60 }
0x3da0   : > { %16476 = vmatprep.subr.mxu0 %v17820_v11 }
0x3da2   : > { %16464 = vmatmul.mubr.msk.f32.vlgmr.msra.gmra.mrb[94].mxu0 %vm1505_vm1, %v18869_v10 }
0x3da3   : > { %16478 = vmatprep.mubr.msk.f32.mxu0 %vm17819_vm0, %v17820_v11  ;;  %16477 = vmatpush3.msra.mxu0 %v14852_v41 }
0x3da4   : > { %17296 = vmatprep.subr.bf16.mxu0 %v17818_v3 }
0x3e65   : > { %v8755_v4 = vpop.f32.mrb[90].mxu0 }
0x3e66   : > { %v16427_v5 = vpop.f32.mrb[91].mxu0  ;;  %16431 = vmatmul.mubr.msk.f32.vlgmr.msra.gmra.mrb[82].mxu1 %vm1748_vm2, %v8755_v4 }
0x3e67   : > { %17280 = vmatpush3.bf16.msra.mxu1 %v17279_v63  ;;  %16452 = vmatprep.mubr.msk.f32.mxu1 %vm17819_vm0, %v17820_v11 }
0x3e68   : > { %17281 = vmatprep.subr.bf16.mxu1 %v17818_v3 }
0x3e6b   : > { %17283 = vmatpush3.bf16.msra.mxu1 %v17282_v6 }
0x3e6c   : > { %16466 = vmatprep.subr.mxu1 %v17820_v11 }
0x3e6d   : > { %v8914_v7 = vpop.f32.mrb[92].mxu0 }
0x3e6e   : > { %v16443_v9 = vpop.f32.mrb[93].mxu0  ;;  %16453 = vmatmul.mubr.msk.f32.vlgmr.msra.gmra.mrb[84].mxu1 %vm1505_vm1, %v18869_v10  ;;  %v8915_v23 = vadd.f32 %v14833_v20, %v8914_v7  ;;  %v14859_v7 = vld [vmem:[%s19778_s25 + $0x3] ss:$0 sm:$0xff] }
0x3e6f   : > { %16468 = vmatprep.mubr.msk.f32.mxu1 %vm17819_vm0, %v17820_v11  ;;  %v14866_v9 = vld [vmem:[%s19777_s15 + $0x3] ss:$0 sm:$0xff] }
0x3e70   : > { %v8918_v28 = vmul.f32 0.35355338, %v8915_v23 }
0x3e75   : > { %v9081_v12 = vpop.f32.mrb[94].mxu0 }
0x3e76   : > { %v16465_v13 = vpop.f32.mrb[95].mxu0  ;;  %v9082_v29 = vadd.f32 %v14847_v27, %v9081_v12 }
0x3f39   : > { %v8830_v17 = vpop.f32.mrb[82].mxu1 }
0x3f3a   : > { %v19006_v18 = vadd.f32 %v8830_v17, %v8348_v16  ;;  %v16432_v19 = vpop.f32.mrb[83].mxu1  ;;  %v14873_v17 = vld [vmem:[%s19779_s26 + $0x3] ss:$0 sm:$0xff] }
0x3f41   : > { %v8998_v24 = vpop.f32.mrb[84].mxu1 }
0x3f42   : > { %v8999_v22 = vadd.f32 %v14840_v21, %v8998_v24  ;;  %v16454_v25 = vpop.f32.mrb[85].mxu1 }
0x3f44   : > { %16467 = vmatpush3.xpose.msk.msra.mxu1 %vm1748_vm2, %v8999_v22 }
0x3f45   : > { %16471 = vmatprep.subr.mxu1 %v17820_v11 }
0x3f47   : > { %16469 = vmatmul.mubr.msk.f32.vlgmr.msra.gmra.mrb[86].mxu1 %vm1748_vm2, %v8918_v28 }
0x3f48   : > { %16472 = vmatpush3.msra.mxu1 %v9082_v29  ;;  %16473 = vmatprep.mubr.msk.f32.mxu1 %vm17819_vm0, %v17820_v11 }
0x3f49   : > { %17290 = vmatprep.subr.bf16.mxu1 %v17818_v3 }
0x401a   : > { %v9157_v26 = vpop.f32.mrb[86].mxu1 }
0x401b   : > { %v9158_v31 = vadd.f32 %v18909_v30, %v9157_v26  ;;  %v16470_v33 = vpop.f32.mrb[87].mxu1  ;;  %v14878_v26 = vld [vmem:[%s19780_s27 + $0x18] sm:$0xff] }
0x401d   : > { %v9161_v34 = vsel %vm1748_vm2, %v9158_v31, -inf }
0x401e   : > { %9162 = vmax.xlane.f32.xlu1 %v9161_v34 }
0x40ab   : > { %v9163_v35 = vpop.xlane.xlu1 %9162 }
0x40ac   : > { %v9164_v36 = vsub.f32 %v9158_v31, %v9163_v35 }
0x40ae   : > { %v9165_v37 = vmul.f32 1.442695, %v9164_v36 }
0x40b0   : > { %17653 = vpow2.f32 %v9165_v37 }
0x40ba   : > { %v17654_v38 = vpop.eup %17653 }
0x40bb   : > { %v9167_v39 = vsel %vm1748_vm2, %v17654_v38, 0.0 }
0x40bc   : > { %9168 = vadd.xlane.f32.xlu1 %v9167_v39 }
0x4149   : > { %v9169_v40 = vpop.xlane.xlu1 %9168 }
0x414a   : > { %17655 = vrcp.f32 %v9169_v40 }
0x4154   : > { %v17656_v43 = vpop.eup %17655 }
0x4155   : > { %v9171_v44 = vmul.f32 %v17656_v43, %v17654_v38 }
0x4157   : > { %16474 = vmatmul.mubr.msk.f32.vlgmr.msra.gmra.mrb[88].mxu1 %vm1748_vm2, %v9171_v44  ;;  %v9837_v44 = vld [vmem:[%s19782_s30] sm:$0xff] }
0x4158   : > { %17292 = vmatpush3.bf16.msra.mxu1 %v17291_v32  ;;  %16489 = vmatprep.mubr.msk.f32.mxu1 %vm17819_vm0, %v17820_v11  ;;  %v17309_v46 = vpack.c.bf16 %v9838_v45, %v9837_v44  ;;  %v14896_v45 = vld [vmem:[%s19764_s6 + $0x80] sm:$0xff] }
0x4159   : > { %17293 = vmatprep.subr.bf16.mxu1 %v17818_v3 }
0x415c   : > { %17295 = vmatpush3.bf16.msra.mxu1 %v17294_v48  ;;  %v9840_v48 = vld [vmem:[%s19782_s30 + $0x18] sm:$0xff] }
0x415d   : > { %17302 = vmatprep.subr.bf16.mxu1 %v17818_v3 }
0x415f   : > { %16490 = vmatmul.mubr.msk.f32.vlgmr.msra.gmra.mrb[90].mxu1 %vm1505_vm1, %v18885_v14 }
0x4160   : > { %17304 = vmatpush3.bf16.msra.mxu1 %v17303_v51  ;;  %16511 = vmatprep.mubr.msk.f32.mxu1 %vm17819_vm0, %v17820_v11  ;;  %v9923_v51 = vld [vmem:[%s19783_s18 + $0x8] sm:$0xff] }
0x4161   : > { %17305 = vmatprep.subr.bf16.mxu1 %v17818_v3  ;;  %v17315_v53 = vpack.c.bf16 %v9923_v51, %v9922_v50  ;;  %v14898_v51 = vld [vmem:[%s19764_s6 + $0x90] sm:$0xff] }
0x4164   : > { %17307 = vmatpush3.bf16.msra.mxu1 %v17306_v54  ;;  %v9925_v54 = vld [vmem:[%s19783_s18 + $0x18] sm:$0xff] }
0x4165   : > { %16524 = vmatprep.subr.mxu1 %v17820_v11  ;;  %v17318_v55 = vpack.c.bf16 %v9925_v54, %v9924_v52  ;;  %v14899_v52 = vld [vmem:[%s19764_s6 + $0x98] sm:$0xff]  ;;  %v14908_v54 = vld [vmem:[%s19769_s9 + $0x4] ss:$0 sm:$0xff] }
0x4167   : > { %16512 = vmatmul.mubr.msk.f32.vlgmr.msra.gmra.mrb[92].mxu1 %vm1505_vm1, %v18869_v10 }
0x4168   : > { %16526 = vmatprep.mubr.msk.f32.mxu1 %vm17819_vm0, %v17820_v11  ;;  %16525 = vmatpush3.msra.mxu1 %v14878_v26  ;;  %v14890_v26 = vld [vmem:[%s19762_s4 + $0x88] sm:$0xff] }
0x4169   : > { %17314 = vmatprep.subr.bf16.mxu1 %v17818_v3 }
0x422a   : > { %v9241_v59 = vpop.f32.mrb[88].mxu1 }
0x422b   : > { %v16475_v60 = vpop.f32.mrb[89].mxu1  ;;  %16479 = vmatmul.mubr.msk.f32.vlgmr.msra.gmra.mrb[96].mxu0 %vm1748_vm2, %v9241_v59 }
0x422c   : > { %17298 = vmatpush3.bf16.msra.mxu0 %v17297_v57  ;;  %16500 = vmatprep.mubr.msk.f32.mxu0 %vm17819_vm0, %v17820_v11  ;;  %v9927_v57 = vld [vmem:[%s19783_s18 + $0x28] sm:$0xff] }
0x422d   : > { %17299 = vmatprep.subr.bf16.mxu0 %v17818_v3  ;;  %v17321_v58 = vpack.c.bf16 %v9927_v57, %v9926_v56 }
0x4230   : > { %17301 = vmatpush3.bf16.msra.mxu0 %v17300_v61 }
0x4231   : > { %16514 = vmatprep.subr.mxu0 %v17820_v11 }
0x4232   : > { %v9400_v62 = vpop.f32.mrb[90].mxu1 }
0x4233   : > { %v16491_v63 = vpop.f32.mrb[91].mxu1  ;;  %16501 = vmatmul.mubr.msk.f32.vlgmr.msra.gmra.mrb[98].mxu0 %vm1505_vm1, %v18869_v10  ;;  %v9401_v12 = vadd.f32 %v14859_v7, %v9400_v62  ;;  %v14880_v62 = vld [vmem:[%s19784_s2] ss:$0 sm:$0xff]  ;;  %s19793_s2 = sld [smem:[#allocation22_spill]] }
0x4234   : > { %16516 = vmatprep.mubr.msk.f32.mxu0 %vm17819_vm0, %v17820_v11 }
0x4235   : > { %v9404_v19 = vmul.f32 0.35355338, %v9401_v12 }
0x4239   : > { %s19794_s17 = smov %s19793_s2 }
0x423a   : > { %v9567_v0 = vpop.f32.mrb[92].mxu1 }
0x423b   : > { %v16513_v2 = vpop.f32.mrb[93].mxu1  ;;  %v9568_v20 = vadd.f32 %v14873_v17, %v9567_v0  ;;  %v14881_v0 = vld [vmem:[%s19786_s23] ss:$0 sm:$0xff] }
0x423c   : > { %v14884_v17 = vld [vmem:[%s19789_s7] ss:$0 sm:$0xff]  ;;  %s19795_s7 = sld [smem:[#allocation52_spill]] }
0x42fe   : > { %v9316_v4 = vpop.f32.mrb[96].mxu0 }
0x42ff   : > { %v9320_v5 = vadd.f32 %v9316_v4, %v19006_v18  ;;  %v16480_v6 = vpop.f32.mrb[97].mxu0 }
0x4300   : > { %v9929_v6 = vld [vmem:[%s19783_s18 + $0x38] sm:$0xff] }
0x4306   : > { %v9484_v13 = vpop.f32.mrb[98].mxu0 }
0x4307   : > { %v9485_v15 = vadd.f32 %v14866_v9, %v9484_v13  ;;  %v16502_v16 = vpop.f32.mrb[99].mxu0  ;;  %v14882_v9 = vld [vmem:[%s19787_s28] ss:$0 sm:$0xff]  ;;  %s19791_s28 = sld [smem:[#allocation23_spill]] }
0x4309   : > { %16515 = vmatpush3.xpose.msk.msra.mxu0 %vm1748_vm2, %v9485_v15 }
0x430a   : > { %16519 = vmatprep.subr.mxu0 %v17820_v11 }
0x430c   : > { %16517 = vmatmul.mubr.msk.f32.vlgmr.msra.gmra.mrb[100].mxu0 %vm1748_vm2, %v9404_v19 }
0x430d   : > { %16520 = vmatpush3.msra.mxu0 %v9568_v20  ;;  %16521 = vmatprep.mubr.msk.f32.mxu0 %vm17819_vm0, %v17820_v11  ;;  %s19792_s0 = smov %s19791_s28 }
0x430e   : > { %17308 = vmatprep.subr.bf16.mxu0 %v17818_v3 }
0x43df   : > { %v9643_v18 = vpop.f32.mrb[100].mxu0 }
0x43e0   : > { %v9644_v21 = vadd.f32 %v18909_v30, %v9643_v18  ;;  %v16518_v23 = vpop.f32.mrb[101].mxu0 }
0x43e2   : > { %v9647_v24 = vsel %vm1748_vm2, %v9644_v21, -inf }
0x43e3   : > { %9648 = vmax.xlane.f32.xlu1 %v9647_v24 }
0x4470   : > { %v9649_v22 = vpop.xlane.xlu1 %9648 }
0x4471   : > { %v9650_v25 = vsub.f32 %v9644_v21, %v9649_v22 }
0x4473   : > { %v9651_v27 = vmul.f32 1.442695, %v9650_v25 }
0x4475   : > { %17657 = vpow2.f32 %v9651_v27 }
0x447f   : > { %v17658_v28 = vpop.eup %17657 }
0x4480   : > { %v9653_v29 = vsel %vm1748_vm2, %v17658_v28, 0.0 }
0x4481   : > { %9654 = vadd.xlane.f32.xlu1 %v9653_v29  ;;  %v14889_v29 = vld [vmem:[%s19762_s4 + $0x80] sm:$0xff] }
0x450e   : > { %v9655_v31 = vpop.xlane.xlu1 %9654 }
0x450f   : > { %17659 = vrcp.f32 %v9655_v31  ;;  %v17327_v31 = vpack.c.bf16 %v14890_v26, %v14889_v29  ;;  %v14931_v29 = vld [vmem:[%s19768_s13 + $0xa8] sm:$0xff] }
0x4519   : > { %v17660_v33 = vpop.eup %17659 }
0x451a   : > { %v9657_v30 = vmul.f32 %v17660_v33, %v17658_v28  ;;  %v14903_v33 = vld [vmem:[%s19768_s13 + $0x80] sm:$0xff] }
0x451c   : > { %16522 = vmatmul.mubr.msk.f32.vlgmr.msra.gmra.mrb[102].mxu0 %vm1748_vm2, %v9657_v30  ;;  %v14904_v30 = vld [vmem:[%s19768_s13 + $0x88] sm:$0xff] }
0x451d   : > { %16537 = vmatprep.mubr.msk.f32.mxu0 %vm17819_vm0, %v17820_v11  ;;  %17310 = vmatpush3.bf16.msra.mxu0 %v17309_v46  ;;  %v14897_v46 = vld [vmem:[%s19764_s6 + $0x88] sm:$0xff] }
0x451e   : > { %17311 = vmatprep.subr.bf16.mxu0 %v17818_v3 }
0x45ef   : > { %v9727_v34 = vpop.f32.mrb[102].mxu0 }
0x45f0   : > { %v16523_v35 = vpop.f32.mrb[103].mxu0  ;;  %16527 = vmatmul.mubr.msk.f32.vlgmr.msra.gmra.mrb[94].mxu1 %vm1748_vm2, %v9727_v34  ;;  %v17339_v34 = vpack.c.bf16 %v14904_v30, %v14903_v33  ;;  %v14933_v33 = vld [vmem:[%s19768_s13 + $0xb8] sm:$0xff] }
0x45f1   : > { %16556 = vmatprep.mubr.msk.f32.mxu1 %vm17819_vm0, %v17820_v11  ;;  %17316 = vmatpush3.bf16.msra.mxu1 %v17315_v53  ;;  %v14891_v35 = vld [vmem:[%s19762_s4 + $0x90] sm:$0xff]  ;;  %v17336_v53 = vpack.c.bf16 %v14899_v52, %v14898_v51 }
0x45f2   : > { %17317 = vmatprep.subr.bf16.mxu1 %v17818_v3 }
0x45f5   : > { %17319 = vmatpush3.bf16.msra.mxu1 %v17318_v55 }
0x45f6   : > { %17320 = vmatprep.subr.bf16.mxu1 %v17818_v3 }
0x45f9   : > { %17322 = vmatpush3.bf16.msra.mxu1 %v17321_v58 }
0x45fa   : > { %17323 = vmatprep.subr.bf16.mxu1 %v17818_v3 }
0x46c3   : > { %v9802_v36 = vpop.f32.mrb[94].mxu1 }
0x46c4   : > { %v9806_v37 = vadd.f32 %v9802_v36, %v9320_v5  ;;  %v16528_v38 = vpop.f32.mrb[95].mxu1  ;;  %v9928_v5 = vld [vmem:[%s19783_s18 + $0x30] sm:$0xff]  ;;  %v14892_v36 = vld [vmem:[%s19762_s4 + $0x98] sm:$0xff] }
0x46c5   : > { %v17324_v7 = vpack.c.bf16 %v9929_v6, %v9928_v5  ;;  %v14905_v38 = vld [vmem:[%s19768_s13 + $0x90] sm:$0xff] }
0x46c6   : > { %v9807_v39 = vadd.f32 %v9806_v37, %v18885_v14  ;;  %v9839_v14 = vld [vmem:[%s19782_s30 + $0x10] sm:$0xff]  ;;  %v17330_v37 = vpack.c.bf16 %v14892_v36, %v14891_v35  ;;  %v14924_v35 = vld [vmem:[%s19764_s6 + $0xa8] sm:$0xff] }
0x46c7   : > { %v17312_v49 = vpack.c.bf16 %v9840_v48, %v9839_v14  ;;  %17325 = vmatpush3.bf16.msra.mxu1 %v17324_v7  ;;  %v14887_v14 = vld [vmem:[%s19793_s2] ss:$0 sm:$0xff]  ;;  %s19798_s2 = sld [smem:[#allocation57_spill]] }
0x46c8   : > { %v9810_v41 = vsel %vm1505_vm1, %v9807_v39, 0.0  ;;  %17338 = vmatprep.subr.bf16.mxu1 %v17818_v3 }
0x46c9   : > { %9811 = vadd.xlane.f32.xlu0 %v9810_v41  ;;  %17313 = vmatpush3.bf16.msra.mxu0 %v17312_v49  ;;  %v17333_v49 = vpack.c.bf16 %v14897_v46, %v14896_v45  ;;  %v14921_v46 = vld [vmem:[%s19766_s5 + $0x5] ss:$0 sm:$0xff] }
0x46ca   : > { %17326 = vmatprep.subr.bf16.mxu0 %v17818_v3 }
0x4756   : > { %v9812_v40 = vpop.xlane.xlu0 %9811 }
0x4757   : > { %v9813_v42 = vmul.f32 0.03125, %v9812_v40 }
0x4759   : > { %v9814_v1 = vsub.f32 %v9807_v39, %v9813_v42  ;;  %v14906_v39 = vld [vmem:[%s19768_s13 + $0x98] sm:$0xff] }
0x475a   : > { %v17342_v41 = vpack.c.bf16 %v14906_v39, %v14905_v38  ;;  %v14926_v38 = vld [vmem:[%s19764_s6 + $0xb8] sm:$0xff] }
0x475b   : > { %v9815_v43 = vmul.f32 %v9814_v1, %v9814_v1 }
0x475d   : > { %v9816_v32 = vsel %vm1505_vm1, %v9815_v43, 0.0 }
0x475e   : > { %9817 = vadd.xlane.f32.xlu1 %v9816_v32  ;;  %v14886_v32 = vld [vmem:[%s19791_s28] ss:$0 sm:$0xff]  ;;  %s19797_s28 = sld [smem:[#allocation9_spill]] }
0x47eb   : > { %v9818_v8 = vpop.xlane.xlu1 %9817 }
0x47ec   : > { %v9819_v59 = vmul.f32 0.03125, %v9818_v8 }
0x47ee   : > { %v9820_v60 = vadd.f32 1e-05, %v9819_v59  ;;  %v14894_v59 = vld [vmem:[%s19766_s5 + $0x4] ss:$0 sm:$0xff] }
0x47f0   : > { %17661 = vrsqrt.f32 %v9820_v60  ;;  %v14901_v60 = vld [vmem:[%s19767_s8 + $0x4] ss:$0 sm:$0xff] }
0x47fa   : > { %v17662_v61 = vpop.eup %17661 }
0x47fb   : > { %v9822_v63 = vmul.f32 %v17662_v61, %v9814_v1 }
0x47fd   : > { %v9829_v2 = vmul.f32 %v14880_v62, %v9822_v63 }
0x47ff   : > { %v9836_v4 = vadd.f32 %v14881_v0, %v9829_v2 }
0x4801   : > { %16538 = vmatmul.mubr.msk.f32.vlgmr.msra.gmra.mrb[104].mxu0 %vm1505_vm1, %v9836_v4 }
0x4802   : > { %16567 = vmatprep.mubr.msk.f32.mxu0 %vm17819_vm0, %v17820_v11  ;;  %17328 = vmatpush3.bf16.msra.mxu0 %v17327_v31  ;;  %v14932_v31 = vld [vmem:[%s19768_s13 + $0xb0] sm:$0xff] }
0x4803   : > { %17329 = vmatprep.subr.bf16.mxu0 %v17818_v3  ;;  %v17360_v30 = vpack.c.bf16 %v14933_v33, %v14932_v31 }
0x4806   : > { %17331 = vmatpush3.bf16.msra.mxu0 %v17330_v37  ;;  %v14925_v37 = vld [vmem:[%s19764_s6 + $0xb0] sm:$0xff] }
0x4807   : > { %17332 = vmatprep.subr.bf16.mxu0 %v17818_v3 }
0x48d4   : > { %v9917_v12 = vpop.f32.mrb[104].mxu0 }
0x48d5   : > { %v9918_v13 = vadd.f32 %v14882_v9, %v9917_v12  ;;  %v16539_v15 = vpop.f32.mrb[105].mxu0 }
0x48d7   : > { %v9921_v16 = vmax.f32 %v9918_v13, 0.0 }
0x48d9   : > { %16557 = vmatmul.mubr.msk.f32.vlgmr.msra.gmra.mrb[96].mxu1 %vm3579_vm3, %v9921_v16 }
0x48da   : > { %16589 = vmatprep.mubr.msk.f32.mxu1 %vm17819_vm0, %v17820_v11  ;;  %17340 = vmatpush3.bf16.msra.mxu1 %v17339_v34  ;;  %v14923_v34 = vld [vmem:[%s19764_s6 + $0xa0] sm:$0xff] }
0x48db   : > { %17341 = vmatprep.subr.bf16.mxu1 %v17818_v3  ;;  %v17351_v36 = vpack.c.bf16 %v14924_v35, %v14923_v34  ;;  %v14915_v35 = vld [vmem:[%s19771_s10 + $0x1] ss:$0 sm:$0xff] }
0x48de   : > { %17343 = vmatpush3.bf16.msra.mxu1 %v17342_v41 }
0x48df   : > { %16597 = vmatprep.subr.mxu1 %v17820_v11 }
0x49ac   : > { %v10006_v19 = vpop.f32.mrb[96].mxu1 }
0x49ad   : > { %v10007_v20 = vadd.f32 %v14884_v17, %v10006_v19  ;;  %v16558_v18 = vpop.f32.mrb[97].mxu1  ;;  %v14913_v17 = vld [vmem:[%s19770_s12 + $0x20] sm:$0xff] }
0x49ae   : > { %v14917_v18 = vld [vmem:[%s19762_s4 + $0xa8] sm:$0xff] }
0x49af   : > { %v10010_v21 = vadd.f32 %v10007_v20, %v9836_v4  ;;  %v14916_v20 = vld [vmem:[%s19762_s4 + $0xa0] sm:$0xff] }
0x49b1   : > { %v10013_v23 = vsel %vm1505_vm1, %v10010_v21, 0.0 }
0x49b2   : > { %10014 = vadd.xlane.f32.xlu0 %v10013_v23  ;;  %v17345_v23 = vpack.c.bf16 %v14917_v18, %v14916_v20  ;;  %v14958_v20 = vld [vmem:[%s19768_s13 + $0xd0] sm:$0xff]  ;;  %v14959_v18 = vld [vmem:[%s19768_s13 + $0xd8] sm:$0xff] }
0x4a3f   : > { %v10015_v24 = vpop.xlane.xlu0 %10014 }
0x4a40   : > { %v10016_v22 = vmul.f32 0.03125, %v10015_v24 }
0x4a42   : > { %v10017_v25 = vsub.f32 %v10010_v21, %v10016_v22  ;;  %v14918_v22 = vld [vmem:[%s19762_s4 + $0xb0] sm:$0xff] }
0x4a44   : > { %v10018_v27 = vmul.f32 %v10017_v25, %v10017_v25 }
0x4a46   : > { %v10019_v28 = vsel %vm1505_vm1, %v10018_v27, 0.0 }
0x4a47   : > { %10020 = vadd.xlane.f32.xlu1 %v10019_v28  ;;  %v14930_v28 = vld [vmem:[%s19768_s13 + $0xa0] sm:$0xff] }
0x4a48   : > { %v17357_v26 = vpack.c.bf16 %v14931_v29, %v14930_v28 }
0x4ad4   : > { %v10021_v40 = vpop.xlane.xlu1 %10020 }
0x4ad5   : > { %v10022_v42 = vmul.f32 0.03125, %v10021_v40  ;;  %v17354_v40 = vpack.c.bf16 %v14926_v38, %v14925_v37 }
0x4ad7   : > { %v10023_v1 = vadd.f32 1e-05, %v10022_v42 }
0x4ad9   : > { %17663 = vrsqrt.f32 %v10023_v1 }
0x4ae3   : > { %v17664_v43 = vpop.eup %17663 }
0x4ae4   : > { %v10025_v44 = vmul.f32 %v17664_v43, %v10017_v25  ;;  %v14919_v25 = vld [vmem:[%s19762_s4 + $0xb8] sm:$0xff] }
0x4ae5   : > { %v17348_v27 = vpack.c.bf16 %v14919_v25, %v14918_v22  ;;  %v14951_v25 = vld [vmem:[%s19764_s6 + $0xd0] sm:$0xff] }
0x4ae6   : > { %v10032_v48 = vmul.f32 %v14886_v32, %v10025_v44 }
0x4ae8   : > { %v19128_v50 = vadd.f32 %v14887_v14, %v10032_v48  ;;  %v14928_v14 = vld [vmem:[%s19767_s8 + $0x5] ss:$0 sm:$0xff] }
0x4aea   : > { %16568 = vmatmul.mubr.msk.f32.vlgmr.msra.gmra.mrb[106].mxu0 %vm1505_vm1, %v19128_v50  ;;  %16590 = vmatmul.mubr.msk.f32.vlgmr.msra.gmra.mrb[98].mxu1 %vm1505_vm1, %v19128_v50 }
0x4aeb   : > { %17334 = vmatpush3.bf16.msra.mxu0 %v17333_v49  ;;  %16578 = vmatprep.mubr.msk.f32.mxu0 %vm17819_vm0, %v17820_v11 }
0x4aec   : > { %17335 = vmatprep.subr.bf16.mxu0 %v17818_v3  ;;  %16599 = vmatprep.mubr.msk.f32.mxu1 %vm17819_vm0, %v17820_v11 }
0x4aef   : > { %17337 = vmatpush3.bf16.msra.mxu0 %v17336_v53  ;;  %v14935_v53 = vld [vmem:[%s19769_s9 + $0x5] ss:$0 sm:$0xff] }
0x4af0   : > { %16592 = vmatprep.subr.mxu0 %v17820_v11 }
0x4af2   : > { %16579 = vmatmul.mubr.msk.f32.vlgmr.msra.gmra.mrb[108].mxu0 %vm1505_vm1, %v19128_v50 }
0x4af3   : > { %16594 = vmatprep.mubr.msk.f32.mxu0 %vm17819_vm0, %v17820_v11 }
0x4bbd   : > { %v10124_v55 = vpop.f32.mrb[106].mxu0  ;;  %v10291_v56 = vpop.f32.mrb[98].mxu1 }
0x4bbe   : > { %v10292_v57 = vadd.f32 %v14908_v54, %v10291_v56  ;;  %v16569_v58 = vpop.f32.mrb[107].mxu0  ;;  %v16591_v8 = vpop.f32.mrb[99].mxu1  ;;  %v10125_v61 = vadd.f32 %v14894_v59, %v10124_v55 }
0x4bc0   : > { %16598 = vmatpush3.msra.mxu1 %v10292_v57  ;;  %v10128_v2 = vmul.f32 0.35355338, %v10125_v61 }
0x4bc1   : > { %17344 = vmatprep.subr.bf16.mxu1 %v17818_v3 }
0x4bc5   : > { %v10208_v62 = vpop.f32.mrb[108].mxu0 }
0x4bc6   : > { %v10209_v63 = vadd.f32 %v14901_v60, %v10208_v62  ;;  %v16580_v0 = vpop.f32.mrb[109].mxu0 }
0x4bc7   : > { %v14940_v0 = vld [vmem:[%s19770_s12 + $0x28] sm:$0xff] }
0x4bc8   : > { %16593 = vmatpush3.xpose.msk.msra.mxu0 %vm1748_vm2, %v10209_v63 }
0x4bc9   : > { %16602 = vmatprep.subr.mxu0 %v17820_v11 }
0x4bcb   : > { %16595 = vmatmul.mubr.msk.f32.vlgmr.msra.gmra.mrb[110].mxu0 %vm1748_vm2, %v10128_v2 }
0x4bcc   : > { %16604 = vmatprep.mubr.msk.f32.mxu0 %vm17819_vm0, %v17820_v11  ;;  %16603 = vmatpush3.msra.mxu0 %v14913_v17  ;;  %v14957_v17 = vld [vmem:[%s19768_s13 + $0xc8] sm:$0xff] }
0x4bcd   : > { %17350 = vmatprep.subr.bf16.mxu0 %v17818_v3 }
0x4c9e   : > { %v10367_v4 = vpop.f32.mrb[110].mxu0 }
0x4c9f   : > { %v10368_v5 = vadd.f32 %v10367_v4, %v18678_v47  ;;  %v16596_v6 = vpop.f32.mrb[111].mxu0  ;;  %v14942_v4 = vld [vmem:[%s19762_s4 + $0xc0] sm:$0xff] }
0x4ca1   : > { %v10371_v7 = vsel %vm1748_vm2, %v10368_v5, -inf }
0x4ca2   : > { %10372 = vmax.xlane.f32.xlu0 %v10371_v7 }
0x4d2f   : > { %v10373_v9 = vpop.xlane.xlu0 %10372 }
0x4d30   : > { %v10374_v12 = vsub.f32 %v10368_v5, %v10373_v9  ;;  %v14943_v5 = vld [vmem:[%s19762_s4 + $0xc8] sm:$0xff] }
0x4d31   : > { %v17363_v7 = vpack.c.bf16 %v14943_v5, %v14942_v4  ;;  %v14982_v4 = vld [vmem:[%s19768_s13 + $0xe0] sm:$0xff]  ;;  %v14983_v5 = vld [vmem:[%s19768_s13 + $0xe8] sm:$0xff] }
0x4d32   : > { %v10375_v13 = vmul.f32 1.442695, %v10374_v12  ;;  %v14944_v12 = vld [vmem:[%s19762_s4 + $0xd0] sm:$0xff] }
0x4d34   : > { %17665 = vpow2.f32 %v10375_v13  ;;  %v14945_v13 = vld [vmem:[%s19762_s4 + $0xd8] sm:$0xff] }
0x4d3e   : > { %v17666_v15 = vpop.eup %17665 }
0x4d3f   : > { %v10377_v16 = vsel %vm1748_vm2, %v17666_v15, 0.0 }
0x4d40   : > { %10378 = vadd.xlane.f32.xlu1 %v10377_v16  ;;  %v14956_v16 = vld [vmem:[%s19768_s13 + $0xc0] sm:$0xff] }
0x4dcd   : > { %v10379_v19 = vpop.xlane.xlu1 %10378 }
0x4dce   : > { %17667 = vrcp.f32 %v10379_v19  ;;  %v17375_v19 = vpack.c.bf16 %v14957_v17, %v14956_v16  ;;  %v14977_v17 = vld [vmem:[%s19764_s6 + $0xf0] sm:$0xff] }
0x4dd8   : > { %v17668_v21 = vpop.eup %17667 }
0x4dd9   : > { %v10381_v24 = vmul.f32 %v17668_v21, %v17666_v15  ;;  %v17366_v15 = vpack.c.bf16 %v14945_v13, %v14944_v12  ;;  %v17378_v21 = vpack.c.bf16 %v14959_v18, %v14958_v20  ;;  %v14975_v13 = vld [vmem:[%s19764_s6 + $0xe0] sm:$0xff] }
0x4ddb   : > { %16600 = vmatmul.mubr.msk.f32.vlgmr.msra.gmra.mrb[100].mxu1 %vm1748_vm2, %v10381_v24  ;;  %v14950_v24 = vld [vmem:[%s19764_s6 + $0xc8] sm:$0xff] }
0x4ddc   : > { %17346 = vmatpush3.bf16.msra.mxu1 %v17345_v23  ;;  %16615 = vmatprep.mubr.msk.f32.mxu1 %vm17819_vm0, %v17820_v11  ;;  %v14949_v23 = vld [vmem:[%s19764_s6 + $0xc0] sm:$0xff] }
0x4ddd   : > { %17347 = vmatprep.subr.bf16.mxu1 %v17818_v3  ;;  %v17369_v22 = vpack.c.bf16 %v14950_v24, %v14949_v23 }
0x4de0   : > { %17349 = vmatpush3.bf16.msra.mxu1 %v17348_v27  ;;  %v14952_v27 = vld [vmem:[%s19764_s6 + $0xd8] sm:$0xff] }
0x4de1   : > { %17356 = vmatprep.subr.bf16.mxu1 %v17818_v3 }
0x4de3   : > { %16616 = vmatmul.mubr.msk.f32.vlgmr.msra.gmra.mrb[102].mxu1 %vm1505_vm1, %v19128_v50 }
0x4de4   : > { %17358 = vmatpush3.bf16.msra.mxu1 %v17357_v26  ;;  %16637 = vmatprep.mubr.msk.f32.mxu1 %vm17819_vm0, %v17820_v11  ;;  %v17372_v26 = vpack.c.bf16 %v14952_v27, %v14951_v25 }
0x4de5   : > { %17359 = vmatprep.subr.bf16.mxu1 %v17818_v3 }
0x4de8   : > { %17361 = vmatpush3.bf16.msra.mxu1 %v17360_v30 }
0x4de9   : > { %16650 = vmatprep.subr.mxu1 %v17820_v11 }
0x4deb   : > { %16638 = vmatmul.mubr.msk.f32.vlgmr.msra.gmra.mrb[104].mxu1 %vm1505_vm1, %v19128_v50 }
0x4dec   : > { %16652 = vmatprep.mubr.msk.f32.mxu1 %vm17819_vm0, %v17820_v11  ;;  %16651 = vmatpush3.msra.mxu1 %v14940_v0  ;;  %v14971_v0 = vld [vmem:[%s19762_s4 + $0xf8] sm:$0xff] }
0x4ded   : > { %17368 = vmatprep.subr.bf16.mxu1 %v17818_v3 }
0x4eae   : > { %v10451_v39 = vpop.f32.mrb[100].mxu1 }
0x4eaf   : > { %v16601_v41 = vpop.f32.mrb[101].mxu1  ;;  %16605 = vmatmul.mubr.msk.f32.vlgmr.msra.gmra.mrb[112].mxu0 %vm1748_vm2, %v10451_v39 }
0x4eb0   : > { %17352 = vmatpush3.bf16.msra.mxu0 %v17351_v36  ;;  %16626 = vmatprep.mubr.msk.f32.mxu0 %vm17819_vm0, %v17820_v11  ;;  %v14947_v41 = vld [vmem:[%s19766_s5 + $0x6] ss:$0 sm:$0xff] }
0x4eb1   : > { %17353 = vmatprep.subr.bf16.mxu0 %v17818_v3 }
0x4eb4   : > { %17355 = vmatpush3.bf16.msra.mxu0 %v17354_v40  ;;  %v14954_v40 = vld [vmem:[%s19767_s8 + $0x6] ss:$0 sm:$0xff] }
0x4eb5   : > { %16640 = vmatprep.subr.mxu0 %v17820_v11 }
0x4eb6   : > { %v10616_v42 = vpop.f32.mrb[102].mxu1 }
0x4eb7   : > { %v16617_v1 = vpop.f32.mrb[103].mxu1  ;;  %16627 = vmatmul.mubr.msk.f32.vlgmr.msra.gmra.mrb[114].mxu0 %vm1505_vm1, %v19128_v50  ;;  %v10617_v48 = vadd.f32 %v14921_v46, %v10616_v42 }
0x4eb8   : > { %16642 = vmatprep.mubr.msk.f32.mxu0 %vm17819_vm0, %v17820_v11 }
0x4eb9   : > { %v10620_v54 = vmul.f32 0.35355338, %v10617_v48 }
0x4ebe   : > { %v10783_v43 = vpop.f32.mrb[104].mxu1 }
0x4ebf   : > { %v16639_v32 = vpop.f32.mrb[105].mxu1  ;;  %v10784_v55 = vadd.f32 %v14935_v53, %v10783_v43 }
0x4f82   : > { %v19196_v44 = vpop.f32.mrb[112].mxu0 }
0x4f83   : > { %v16606_v45 = vpop.f32.mrb[113].mxu0  ;;  %v10536_v36 = vadd.f32 %v14915_v35, %v19196_v44 }
0x4f84   : > { %v14961_v45 = vld [vmem:[%s19769_s9 + $0x6] ss:$0 sm:$0xff] }
0x4f8a   : > { %v10700_v49 = vpop.f32.mrb[114].mxu0 }
0x4f8b   : > { %v10701_v51 = vadd.f32 %v14928_v14, %v10700_v49  ;;  %v16628_v52 = vpop.f32.mrb[115].mxu0 }
0x4f8d   : > { %16641 = vmatpush3.xpose.msk.msra.mxu0 %vm1748_vm2, %v10701_v51 }
0x4f8e   : > { %16645 = vmatprep.subr.mxu0 %v17820_v11 }
0x4f90   : > { %16643 = vmatmul.mubr.msk.f32.vlgmr.msra.gmra.mrb[116].mxu0 %vm1748_vm2, %v10620_v54 }
0x4f91   : > { %16646 = vmatpush3.msra.mxu0 %v10784_v55  ;;  %16647 = vmatprep.mubr.msk.f32.mxu0 %vm17819_vm0, %v17820_v11 }
0x4f92   : > { %17362 = vmatprep.subr.bf16.mxu0 %v17818_v3 }
0x5063   : > { %v10859_v56 = vpop.f32.mrb[116].mxu0 }
0x5064   : > { %v10860_v57 = vadd.f32 %v10859_v56, %v18678_v47  ;;  %v16644_v58 = vpop.f32.mrb[117].mxu0 }
0x5066   : > { %v10863_v8 = vsel %vm1748_vm2, %v10860_v57, -inf }
0x5067   : > { %10864 = vmax.xlane.f32.xlu0 %v10863_v8  ;;  %v14968_v8 = vld [vmem:[%s19762_s4 + $0xe0] sm:$0xff] }
0x50f4   : > { %v10865_v59 = vpop.xlane.xlu0 %10864 }
0x50f5   : > { %v10866_v60 = vsub.f32 %v10860_v57, %v10865_v59  ;;  %v14966_v57 = vld [vmem:[%s19770_s12 + $0x30] sm:$0xff]  ;;  %v14969_v59 = vld [vmem:[%s19762_s4 + $0xe8] sm:$0xff] }
0x50f7   : > { %v10867_v61 = vmul.f32 1.442695, %v10866_v60 }
0x50f9   : > { %17669 = vpow2.f32 %v10867_v61  ;;  %v17381_v61 = vpack.c.bf16 %v14969_v59, %v14968_v8 }
0x5103   : > { %v17670_v62 = vpop.eup %17669 }
0x5104   : > { %v10869_v63 = vsel %vm1748_vm2, %v17670_v62, 0.0 }
0x5105   : > { %10870 = vadd.xlane.f32.xlu1 %v10869_v63  ;;  %v14970_v63 = vld [vmem:[%s19762_s4 + $0xf0] sm:$0xff]  ;;  %s1460_s4 = sand.u32 1, %s17760_s1  }
0x5192   : > { %v10871_v2 = vpop.xlane.xlu1 %10870 }
0x5193   : > { %17671 = vrcp.f32 %v10871_v2  ;;  %v17384_v2 = vpack.c.bf16 %v14971_v0, %v14970_v63 }
0x519d   : > { %v17672_v6 = vpop.eup %17671 }
0x519e   : > { %v10873_v9 = vmul.f32 %v17672_v6, %v17670_v62  ;;  %v17393_v6 = vpack.c.bf16 %v14983_v5, %v14982_v4 }
0x51a0   : > { %16648 = vmatmul.mubr.msk.f32.vlgmr.msra.gmra.mrb[118].mxu0 %vm1748_vm2, %v10873_v9  ;;  %v14985_v9 = vld [vmem:[%s19768_s13 + $0xf8] sm:$0xff] }
0x51a1   : > { %17364 = vmatpush3.bf16.msra.mxu0 %v17363_v7  ;;  %16663 = vmatprep.mubr.msk.f32.mxu0 %vm17819_vm0, %v17820_v11  ;;  %v14984_v7 = vld [vmem:[%s19768_s13 + $0xf0] sm:$0xff] }
0x51a2   : > { %17365 = vmatprep.subr.bf16.mxu0 %v17818_v3  ;;  %v17396_v12 = vpack.c.bf16 %v14985_v9, %v14984_v7  ;;  %v14999_v9 = vld [vmem:[%s19773_s19 + $0x80] sm:$0xff] }
0x51a5   : > { %17367 = vmatpush3.bf16.msra.mxu0 %v17366_v15  ;;  %v14976_v15 = vld [vmem:[%s19764_s6 + $0xe8] sm:$0xff] }
0x51a6   : > { %17374 = vmatprep.subr.bf16.mxu0 %v17818_v3  ;;  %v17387_v16 = vpack.c.bf16 %v14976_v15, %v14975_v13  ;;  %v15001_v15 = vld [vmem:[%s19773_s19 + $0x90] sm:$0xff] }
0x51a8   : > { %16664 = vmatmul.mubr.msk.f32.vlgmr.msra.gmra.mrb[120].mxu0 %vm1505_vm1, %v19128_v50 }
0x51a9   : > { %17376 = vmatpush3.bf16.msra.mxu0 %v17375_v19  ;;  %16685 = vmatprep.mubr.msk.f32.mxu0 %vm17819_vm0, %v17820_v11  ;;  %v14978_v19 = vld [vmem:[%s19764_s6 + $0xf8] sm:$0xff]  ;;  %s15133_s6 = sshll.u32 %s19798_s2, 7 }
0x51aa   : > { %17377 = vmatprep.subr.bf16.mxu0 %v17818_v3 }
0x51ad   : > { %17379 = vmatpush3.bf16.msra.mxu0 %v17378_v21  ;;  %v17390_v21 = vpack.c.bf16 %v14978_v19, %v14977_v17 }
0x51ae   : > { %16698 = vmatprep.subr.mxu0 %v17820_v11 }
0x51b0   : > { %16686 = vmatmul.mubr.msk.f32.vlgmr.msra.gmra.mrb[122].mxu0 %vm1505_vm1, %v19128_v50 }
0x51b1   : > { %16700 = vmatprep.mubr.msk.f32.mxu0 %vm17819_vm0, %v17820_v11  ;;  %16699 = vmatpush3.msra.mxu0 %v14966_v57 }
0x51b2   : > { %17386 = vmatprep.subr.bf16.mxu0 %v17818_v3 }
0x5273   : > { %v10943_v28 = vpop.f32.mrb[118].mxu0 }
0x5274   : > { %v16649_v29 = vpop.f32.mrb[119].mxu0  ;;  %16653 = vmatmul.mubr.msk.f32.vlgmr.msra.gmra.mrb[106].mxu1 %vm1748_vm2, %v10943_v28 }
0x5275   : > { %17370 = vmatpush3.bf16.msra.mxu1 %v17369_v22  ;;  %16674 = vmatprep.mubr.msk.f32.mxu1 %vm17819_vm0, %v17820_v11 }
0x5276   : > { %17371 = vmatprep.subr.bf16.mxu1 %v17818_v3 }
0x5279   : > { %17373 = vmatpush3.bf16.msra.mxu1 %v17372_v26  ;;  %v14973_v26 = vld [vmem:[%s19766_s5 + $0x7] ss:$0 sm:$0xff]  ;;  %s14466_s5 = sshll.u32 %s1460_s4, 3 }
0x527a   : > { %16688 = vmatprep.subr.mxu1 %v17820_v11 }
0x527b   : > { %v11102_v31 = vpop.f32.mrb[120].mxu0 }
0x527c   : > { %v16665_v33 = vpop.f32.mrb[121].mxu0  ;;  %16675 = vmatmul.mubr.msk.f32.vlgmr.msra.gmra.mrb[108].mxu1 %vm1505_vm1, %v19128_v50  ;;  %v11103_v42 = vadd.f32 %v14947_v41, %v11102_v31  ;;  %v14980_v31 = vld [vmem:[%s19767_s8 + $0x7] ss:$0 sm:$0xff]  ;;  %s1462_s8 = scalar_lea.vmem [#allocation2], %s14466_s5 }
0x527d   : > { %16690 = vmatprep.mubr.msk.f32.mxu1 %vm17819_vm0, %v17820_v11 }
0x527e   : > { %v11106_v46 = vmul.f32 0.35355338, %v11103_v42 }
0x5283   : > { %v11269_v30 = vpop.f32.mrb[122].mxu0 }
0x5284   : > { %v16687_v34 = vpop.f32.mrb[123].mxu0  ;;  %v11270_v14 = vadd.f32 %v14961_v45, %v11269_v30 }
0x5347   : > { %v11018_v37 = vpop.f32.mrb[106].mxu1 }
0x5348   : > { %v19250_v38 = vadd.f32 %v11018_v37, %v10536_v36  ;;  %v16654_v39 = vpop.f32.mrb[107].mxu1  ;;  %v14987_v36 = vld [vmem:[%s19769_s9 + $0x7] ss:$0 sm:$0xff]  ;;  %s14322_s9 = sshll.u32 %s1462_s8, 4  ;;  %s19584_s9 = int_to_ptr.vmem [resolvable:$true] %s14322_s9 }
0x534f   : > { %v11186_v1 = vpop.f32.mrb[108].mxu1 }
0x5350   : > { %v11187_v43 = vadd.f32 %v14954_v40, %v11186_v1  ;;  %v16676_v32 = vpop.f32.mrb[109].mxu1 }
0x5352   : > { %16689 = vmatpush3.xpose.msk.msra.mxu1 %vm1748_vm2, %v11187_v43 }
0x5353   : > { %16693 = vmatprep.subr.mxu1 %v17820_v11 }
0x5355   : > { %16691 = vmatmul.mubr.msk.f32.vlgmr.msra.gmra.mrb[110].mxu1 %vm1748_vm2, %v11106_v46 }
0x5356   : > { %16694 = vmatpush3.msra.mxu1 %v11270_v14  ;;  %16695 = vmatprep.mubr.msk.f32.mxu1 %vm17819_vm0, %v17820_v11  ;;  %v14992_v14 = vld [vmem:[%s19770_s12 + $0x38] sm:$0xff] }
0x5357   : > { %17380 = vmatprep.subr.bf16.mxu1 %v17818_v3 }
0x5428   : > { %v11345_v44 = vpop.f32.mrb[110].mxu1 }
0x5429   : > { %v11346_v48 = vadd.f32 %v11345_v44, %v18678_v47  ;;  %v16692_v49 = vpop.f32.mrb[111].mxu1 }
0x542a   : > { %v15006_v49 = vld [vmem:[%s19772_s14 + $0x80] sm:$0xff] }
0x542b   : > { %v11349_v51 = vsel %vm1748_vm2, %v11346_v48, -inf }
0x542c   : > { %11350 = vmax.xlane.f32.xlu0 %v11349_v51  ;;  %v15007_v51 = vld [vmem:[%s19772_s14 + $0x88] sm:$0xff] }
0x54b9   : > { %v11351_v52 = vpop.xlane.xlu0 %11350 }
0x54ba   : > { %v11352_v53 = vsub.f32 %v11346_v48, %v11351_v52  ;;  %v17405_v52 = vpack.c.bf16 %v15007_v51, %v15006_v49  ;;  %v15023_v51 = vld [vmem:[%s19780_s27 + $0x20] sm:$0xff] }
0x54bc   : > { %v11353_v54 = vmul.f32 1.442695, %v11352_v53  ;;  %v15008_v53 = vld [vmem:[%s19772_s14 + $0x90] sm:$0xff] }
0x54be   : > { %17673 = vpow2.f32 %v11353_v54  ;;  %v15009_v54 = vld [vmem:[%s19772_s14 + $0x98] sm:$0xff] }
0x54bf   : > { %v17408_v57 = vpack.c.bf16 %v15009_v54, %v15008_v53  ;;  %v15026_v53 = vld [vmem:[%s19773_s19 + $0xa0] sm:$0xff]  ;;  %v15027_v54 = vld [vmem:[%s19773_s19 + $0xa8] sm:$0xff] }
0x54c8   : > { %v17674_v55 = vpop.eup %17673 }
0x54c9   : > { %v11355_v56 = vsel %vm1748_vm2, %v17674_v55, 0.0 }
0x54ca   : > { %11356 = vadd.xlane.f32.xlu1 %v11355_v56 }
0x5557   : > { %v11357_v58 = vpop.xlane.xlu1 %11356 }
0x5558   : > { %17675 = vrcp.f32 %v11357_v58 }
0x5562   : > { %v17676_v60 = vpop.eup %17675 }
0x5563   : > { %v11359_v62 = vmul.f32 %v17676_v60, %v17674_v55 }
0x5565   : > { %16696 = vmatmul.mubr.msk.f32.vlgmr.msra.gmra.mrb[112].mxu1 %vm1748_vm2, %v11359_v62  ;;  %v15011_v62 = vld [vmem:[%s19777_s15 + $0x4] ss:$0 sm:$0xff] }
0x5566   : > { %17382 = vmatpush3.bf16.msra.mxu1 %v17381_v61  ;;  %16711 = vmatprep.mubr.msk.f32.mxu1 %vm17819_vm0, %v17820_v11 }
0x5567   : > { %17383 = vmatprep.subr.bf16.mxu1 %v17818_v3 }
0x556a   : > { %17385 = vmatpush3.bf16.msra.mxu1 %v17384_v2 }
0x556b   : > { %17392 = vmatprep.subr.bf16.mxu1 %v17818_v3 }
0x556d   : > { %16712 = vmatmul.mubr.msk.f32.vlgmr.msra.gmra.mrb[114].mxu1 %vm1505_vm1, %v19128_v50 }
0x556e   : > { %17394 = vmatpush3.bf16.msra.mxu1 %v17393_v6  ;;  %16733 = vmatprep.mubr.msk.f32.mxu1 %vm17819_vm0, %v17820_v11 }
0x556f   : > { %17395 = vmatprep.subr.bf16.mxu1 %v17818_v3 }
0x5572   : > { %17397 = vmatpush3.bf16.msra.mxu1 %v17396_v12  ;;  %v15000_v12 = vld [vmem:[%s19773_s19 + $0x88] sm:$0xff] }
0x5573   : > { %16746 = vmatprep.subr.mxu1 %v17820_v11  ;;  %v17399_v13 = vpack.c.bf16 %v15000_v12, %v14999_v9 }
0x5575   : > { %16734 = vmatmul.mubr.msk.f32.vlgmr.msra.gmra.mrb[116].mxu1 %vm1505_vm1, %v19128_v50 }
0x5576   : > { %16748 = vmatprep.mubr.msk.f32.mxu1 %vm17819_vm0, %v17820_v11  ;;  %16747 = vmatpush3.msra.mxu1 %v14992_v14 }
0x5577   : > { %17404 = vmatprep.subr.bf16.mxu1 %v17818_v3 }
0x5638   : > { %v11429_v20 = vpop.f32.mrb[112].mxu1 }
0x5639   : > { %v16697_v18 = vpop.f32.mrb[113].mxu1  ;;  %16701 = vmatmul.mubr.msk.f32.vlgmr.msra.gmra.mrb[124].mxu0 %vm1748_vm2, %v11429_v20 }
0x563a   : > { %17388 = vmatpush3.bf16.msra.mxu0 %v17387_v16  ;;  %16722 = vmatprep.mubr.msk.f32.mxu0 %vm17819_vm0, %v17820_v11  ;;  %v15002_v16 = vld [vmem:[%s19773_s19 + $0x98] sm:$0xff] }
0x563b   : > { %17389 = vmatprep.subr.bf16.mxu0 %v17818_v3  ;;  %v17402_v17 = vpack.c.bf16 %v15002_v16, %v15001_v15 }
0x563e   : > { %17391 = vmatpush3.bf16.msra.mxu0 %v17390_v21 }
0x563f   : > { %16736 = vmatprep.subr.mxu0 %v17820_v11 }
0x5640   : > { %v11588_v23 = vpop.f32.mrb[114].mxu1 }
0x5641   : > { %v16713_v24 = vpop.f32.mrb[115].mxu1  ;;  %16723 = vmatmul.mubr.msk.f32.vlgmr.msra.gmra.mrb[126].mxu0 %vm1505_vm1, %v19128_v50  ;;  %v11589_v33 = vadd.f32 %v14973_v26, %v11588_v23  ;;  %v14996_v23 = vld [vmem:[%s19774_s20 + $0x1] ss:$0 sm:$0xff] }
0x5642   : > { %16738 = vmatprep.mubr.msk.f32.mxu0 %vm17819_vm0, %v17820_v11 }
0x5643   : > { %v11592_v37 = vmul.f32 0.35355338, %v11589_v33  ;;  %v15016_v33 = vld [vmem:[%s19775_s21 + $0x98] sm:$0xff] }
0x5648   : > { %v11755_v22 = vpop.f32.mrb[116].mxu1 }
0x5649   : > { %v16735_v25 = vpop.f32.mrb[117].mxu1  ;;  %v11756_v39 = vadd.f32 %v14987_v36, %v11755_v22  ;;  %v15013_v22 = vld [vmem:[%s19775_s21 + $0x80] sm:$0xff] }
0x564a   : > { %v15014_v25 = vld [vmem:[%s19775_s21 + $0x88] sm:$0xff] }
0x570c   : > { %v11504_v27 = vpop.f32.mrb[124].mxu0 }
0x570d   : > { %v11508_v28 = vadd.f32 %v11504_v27, %v19250_v38  ;;  %v16702_v29 = vpop.f32.mrb[125].mxu0  ;;  %v14997_v27 = vld [vmem:[%s19776_s24 + $0x1] ss:$0 sm:$0xff] }
0x570e   : > { %v17411_v29 = vpack.c.bf16 %v15014_v25, %v15013_v22 }
0x5714   : > { %v11672_v30 = vpop.f32.mrb[126].mxu0 }
0x5715   : > { %v11673_v34 = vadd.f32 %v14980_v31, %v11672_v30  ;;  %v16724_v35 = vpop.f32.mrb[127].mxu0  ;;  %v15015_v31 = vld [vmem:[%s19775_s21 + $0x90] sm:$0xff] }
0x5716   : > { %v17414_v30 = vpack.c.bf16 %v15016_v33, %v15015_v31 }
0x5717   : > { %16737 = vmatpush3.xpose.msk.msra.mxu0 %vm1748_vm2, %v11673_v34  ;;  %v15004_v34 = vld [vmem:[%s19778_s25 + $0x4] ss:$0 sm:$0xff] }
0x5718   : > { %16741 = vmatprep.subr.mxu0 %v17820_v11 }
0x571a   : > { %16739 = vmatmul.mubr.msk.f32.vlgmr.msra.gmra.mrb[128].mxu0 %vm1748_vm2, %v11592_v37 }
0x571b   : > { %16742 = vmatpush3.msra.mxu0 %v11756_v39  ;;  %16743 = vmatprep.mubr.msk.f32.mxu0 %vm17819_vm0, %v17820_v11 }
0x571c   : > { %17398 = vmatprep.subr.bf16.mxu0 %v17818_v3 }
0x57ed   : > { %v11831_v38 = vpop.f32.mrb[128].mxu0 }
0x57ee   : > { %v11832_v41 = vadd.f32 %v11831_v38, %v18678_v47  ;;  %v16740_v40 = vpop.f32.mrb[129].mxu0  ;;  %v15018_v38 = vld [vmem:[%s19779_s26 + $0x4] ss:$0 sm:$0xff] }
0x57f0   : > { %v11835_v42 = vsel %vm1748_vm2, %v11832_v41, -inf }
0x57f1   : > { %11836 = vmax.xlane.f32.xlu0 %v11835_v42 }
0x587e   : > { %v11837_v1 = vpop.xlane.xlu0 %11836 }
0x587f   : > { %v11838_v43 = vsub.f32 %v11832_v41, %v11837_v1 }
0x5881   : > { %v11839_v32 = vmul.f32 1.442695, %v11838_v43  ;;  %v19370_v43 = vld [vmem:[%s18178_s16] ss:$0 sm:$0xff]  ;;  %s19796_s16 = smov %s19795_s7 }
0x5883   : > { %17677 = vpow2.f32 %v11839_v32 }
0x588d   : > { %v17678_v45 = vpop.eup %17677 }
0x588e   : > { %v11841_v46 = vsel %vm1748_vm2, %v17678_v45, 0.0 }
0x588f   : > { %11842 = vadd.xlane.f32.xlu1 %v11841_v46 }
0x591c   : > { %v11843_v47 = vpop.xlane.xlu1 %11842 }
0x591d   : > { %17679 = vrcp.f32 %v11843_v47 }
0x5927   : > { %v17680_v44 = vpop.eup %17679 }
0x5928   : > { %v11845_v48 = vmul.f32 %v17680_v44, %v17678_v45 }
0x592a   : > { %16744 = vmatmul.mubr.msk.f32.vlgmr.msra.gmra.mrb[130].mxu0 %vm1748_vm2, %v11845_v48 }
0x592b   : > { %16759 = vmatprep.mubr.msk.f32.mxu0 %vm17819_vm0, %v17820_v11  ;;  %17400 = vmatpush3.bf16.msra.mxu0 %v17399_v13 }
0x592c   : > { %17401 = vmatprep.subr.bf16.mxu0 %v17818_v3 }
0x592f   : > { %17403 = vmatpush3.bf16.msra.mxu0 %v17402_v17 }
0x5930   : > { %17410 = vmatprep.subr.bf16.mxu0 %v17818_v3 }
0x59fd   : > { %v11915_v55 = vpop.f32.mrb[130].mxu0 }
0x59fe   : > { %v16745_v56 = vpop.f32.mrb[131].mxu0  ;;  %16749 = vmatmul.mubr.msk.f32.vlgmr.msra.gmra.mrb[118].mxu1 %vm1748_vm2, %v11915_v55 }
0x59ff   : > { %17406 = vmatpush3.bf16.msra.mxu1 %v17405_v52  ;;  %16770 = vmatprep.mubr.msk.f32.mxu1 %vm17819_vm0, %v17820_v11  ;;  %v17417_v56 = vpack.c.bf16 %v15027_v54, %v15026_v53  ;;  %v15068_v53 = vld [vmem:[%s19775_s21 + $0xd0] sm:$0xff]  ;;  %v15069_v54 = vld [vmem:[%s19775_s21 + $0xd8] sm:$0xff] }
0x5a00   : > { %17407 = vmatprep.subr.bf16.mxu1 %v17818_v3 }
0x5a03   : > { %17409 = vmatpush3.bf16.msra.mxu1 %v17408_v57 }
0x5a04   : > { %16784 = vmatprep.subr.mxu1 %v17820_v11 }
0x5a06   : > { %16771 = vmatmul.mubr.msk.f32.vlgmr.msra.gmra.mrb[120].mxu1 %vm1505_vm1, %v18869_v10 }
0x5a07   : > { %16786 = vmatprep.mubr.msk.f32.mxu1 %vm17819_vm0, %v17820_v11 }
0x5ad1   : > { %v11990_v58 = vpop.f32.mrb[118].mxu1 }
0x5ad2   : > { %v11994_v8 = vadd.f32 %v11990_v58, %v11508_v28  ;;  %v16750_v59 = vpop.f32.mrb[119].mxu1  ;;  %v15028_v58 = vld [vmem:[%s19773_s19 + $0xb0] sm:$0xff] }
0x5ad4   : > { %v11995_v60 = vadd.f32 %v11994_v8, %v19128_v50  ;;  %v15029_v8 = vld [vmem:[%s19773_s19 + $0xb8] sm:$0xff] }
0x5ad5   : > { %v17420_v59 = vpack.c.bf16 %v15029_v8, %v15028_v58  ;;  %v15061_v8 = vld [vmem:[%s19772_s14 + $0xd0] sm:$0xff] }
0x5ad6   : > { %v12000_v61 = vsel %vm1505_vm1, %v11995_v60, 0.0 }
0x5ad7   : > { %12001 = vadd.xlane.f32.xlu0 %v12000_v61  ;;  %v15041_v61 = vld [vmem:[%s19775_s21 + $0xa8] sm:$0xff] }
0x5ad9   : > { %v12195_v63 = vpop.f32.mrb[120].mxu1 }
0x5ada   : > { %v12196_v0 = vadd.f32 %v15011_v62, %v12195_v63  ;;  %v16772_v2 = vpop.f32.mrb[121].mxu1  ;;  %v15042_v63 = vld [vmem:[%s19775_s21 + $0xb0] sm:$0xff] }
0x5adc   : > { %16785 = vmatpush3.xpose.msk.msra.mxu1 %vm1748_vm2, %v12196_v0  ;;  %v15043_v0 = vld [vmem:[%s19775_s21 + $0xb8] sm:$0xff] }
0x5add   : > { %16789 = vmatprep.subr.mxu1 %v17820_v11  ;;  %v17432_v2 = vpack.c.bf16 %v15043_v0, %v15042_v63 }
0x5b64   : > { %v12002_v4 = vpop.xlane.xlu0 %12001 }
0x5b65   : > { %v12003_v5 = vmul.f32 0.03125, %v12002_v4  ;;  %v15033_v4 = vld [vmem:[%s19772_s14 + $0xa0] sm:$0xff] }
0x5b67   : > { %v12004_v6 = vsub.f32 %v11995_v60, %v12003_v5  ;;  %v15040_v60 = vld [vmem:[%s19775_s21 + $0xa0] sm:$0xff]  ;;  %v15034_v5 = vld [vmem:[%s19772_s14 + $0xa8] sm:$0xff] }
0x5b68   : > { %v17429_v62 = vpack.c.bf16 %v15041_v61, %v15040_v60 }
0x5b69   : > { %v12005_v7 = vmul.f32 %v12004_v6, %v12004_v6 }
0x5b6b   : > { %v12006_v50 = vsel %vm1505_vm1, %v12005_v7, 0.0  ;;  %v15035_v7 = vld [vmem:[%s19772_s14 + $0xb0] sm:$0xff] }
0x5b6c   : > { %12007 = vadd.xlane.f32.xlu1 %v12006_v50  ;;  %v15036_v50 = vld [vmem:[%s19772_s14 + $0xb8] sm:$0xff] }
0x5b6d   : > { %v17426_v13 = vpack.c.bf16 %v15036_v50, %v15035_v7 }
0x5bf9   : > { %v12008_v19 = vpop.xlane.xlu1 %12007 }
0x5bfa   : > { %v12009_v20 = vmul.f32 0.03125, %v12008_v19 }
0x5bfc   : > { %v12010_v18 = vadd.f32 1e-05, %v12009_v20 }
0x5bfe   : > { %17681 = vrsqrt.f32 %v12010_v18 }
0x5c08   : > { %v17682_v21 = vpop.eup %17681 }
0x5c09   : > { %v12012_v24 = vmul.f32 %v17682_v21, %v12004_v6  ;;  %v17423_v6 = vpack.c.bf16 %v15034_v5, %v15033_v4  ;;  %v15031_v21 = vld [vmem:[%s19778_s25 + $0x5] ss:$0 sm:$0xff]  ;;  %v15025_v5 = vld [vmem:[%s19781_s29 + $0x1] ss:$0 sm:$0xff] }
0x5c0b   : > { %v12019_v28 = vmul.f32 %v14996_v23, %v12012_v24  ;;  %v15038_v23 = vld [vmem:[%s19777_s15 + $0x5] ss:$0 sm:$0xff] }
0x5c0d   : > { %v19349_v26 = vadd.f32 %v14997_v27, %v12019_v28  ;;  %v15045_v28 = vld [vmem:[%s19779_s26 + $0x5] ss:$0 sm:$0xff] }
0x5c0f   : > { %16760 = vmatmul.mubr.msk.f32.vlgmr.msra.gmra.mrb[132].mxu0 %vm1505_vm1, %v19349_v26 }
0x5c10   : > { %17412 = vmatpush3.bf16.msra.mxu0 %v17411_v29  ;;  %16781 = vmatprep.mubr.msk.f32.mxu0 %vm17819_vm0, %v17820_v11 }
0x5c11   : > { %17413 = vmatprep.subr.bf16.mxu0 %v17818_v3 }
0x5c14   : > { %17415 = vmatpush3.bf16.msra.mxu0 %v17414_v30 }
0x5c15   : > { %16794 = vmatprep.subr.mxu0 %v17820_v11 }
0x5c17   : > { %16782 = vmatmul.mubr.msk.f32.vlgmr.msra.gmra.mrb[134].mxu0 %vm1505_vm1, %v18869_v10 }
0x5c18   : > { %16796 = vmatprep.mubr.msk.f32.mxu0 %vm17819_vm0, %v17820_v11  ;;  %16795 = vmatpush3.msra.mxu0 %v15023_v51  ;;  %v15067_v51 = vld [vmem:[%s19775_s21 + $0xc8] sm:$0xff] }
0x5c19   : > { %17422 = vmatprep.subr.bf16.mxu0 %v17818_v3 }
0x5ce2   : > { %v12111_v35 = vpop.f32.mrb[132].mxu0 }
0x5ce3   : > { %v12112_v36 = vadd.f32 %v15004_v34, %v12111_v35  ;;  %v16761_v37 = vpop.f32.mrb[133].mxu0 }
0x5ce5   : > { %v12115_v39 = vmul.f32 0.35355338, %v12112_v36 }
0x5ce7   : > { %16787 = vmatmul.mubr.msk.f32.vlgmr.msra.gmra.mrb[122].mxu1 %vm1748_vm2, %v12115_v39 }
0x5ce8   : > { %16791 = vmatprep.mubr.msk.f32.mxu1 %vm17819_vm0, %v17820_v11 }
0x5cea   : > { %v12278_v41 = vpop.f32.mrb[134].mxu0 }
0x5ceb   : > { %v12279_v40 = vadd.f32 %v15018_v38, %v12278_v41  ;;  %v16783_v42 = vpop.f32.mrb[135].mxu0 }
0x5ced   : > { %16790 = vmatpush3.msra.mxu1 %v12279_v40  ;;  %v15050_v40 = vld [vmem:[%s19780_s27 + $0x28] sm:$0xff] }
0x5cee   : > { %17416 = vmatprep.subr.bf16.mxu1 %v17818_v3 }
0x5dba   : > { %v12354_v1 = vpop.f32.mrb[122].mxu1 }
0x5dbb   : > { %v12355_v32 = vadd.f32 %v19370_v43, %v12354_v1  ;;  %v16788_v45 = vpop.f32.mrb[123].mxu1  ;;  %v15052_v1 = vld [vmem:[%s19773_s19 + $0xc0] sm:$0xff] }
0x5dbd   : > { %v12358_v46 = vsel %vm1748_vm2, %v12355_v32, -inf }
0x5dbe   : > { %12359 = vmax.xlane.f32.xlu0 %v12358_v46 }
0x5e4b   : > { %v12360_v14 = vpop.xlane.xlu0 %12359 }
0x5e4c   : > { %v12361_v47 = vsub.f32 %v12355_v32, %v12360_v14  ;;  %v15053_v32 = vld [vmem:[%s19773_s19 + $0xc8] sm:$0xff] }
0x5e4d   : > { %v17435_v46 = vpack.c.bf16 %v15053_v32, %v15052_v1  ;;  %v15092_v1 = vld [vmem:[%s19775_s21 + $0xe0] sm:$0xff]  ;;  %v15093_v32 = vld [vmem:[%s19775_s21 + $0xe8] sm:$0xff] }
0x5e4e   : > { %v12362_v44 = vmul.f32 1.442695, %v12361_v47  ;;  %v15054_v47 = vld [vmem:[%s19773_s19 + $0xd0] sm:$0xff] }
0x5e50   : > { %17683 = vpow2.f32 %v12362_v44  ;;  %v15055_v44 = vld [vmem:[%s19773_s19 + $0xd8] sm:$0xff] }
0x5e5a   : > { %v17684_v48 = vpop.eup %17683 }
0x5e5b   : > { %v12364_v49 = vsel %vm1748_vm2, %v17684_v48, 0.0 }
0x5e5c   : > { %12365 = vadd.xlane.f32.xlu1 %v12364_v49  ;;  %v15066_v49 = vld [vmem:[%s19775_s21 + $0xc0] sm:$0xff] }
0x5ee9   : > { %v12366_v52 = vpop.xlane.xlu1 %12365 }
0x5eea   : > { %17685 = vrcp.f32 %v12366_v52  ;;  %v17447_v52 = vpack.c.bf16 %v15067_v51, %v15066_v49  ;;  %v15087_v51 = vld [vmem:[%s19772_s14 + $0xf0] sm:$0xff] }
0x5ef4   : > { %v17686_v55 = vpop.eup %17685 }
0x5ef5   : > { %v12368_v57 = vmul.f32 %v17686_v55, %v17684_v48  ;;  %v17438_v48 = vpack.c.bf16 %v15055_v44, %v15054_v47  ;;  %v17450_v55 = vpack.c.bf16 %v15069_v54, %v15068_v53  ;;  %v15085_v44 = vld [vmem:[%s19772_s14 + $0xe0] sm:$0xff] }
0x5ef7   : > { %16792 = vmatmul.mubr.msk.f32.vlgmr.msra.gmra.mrb[124].mxu1 %vm1748_vm2, %v12368_v57  ;;  %v15060_v57 = vld [vmem:[%s19772_s14 + $0xc8] sm:$0xff] }
0x5ef8   : > { %17418 = vmatpush3.bf16.msra.mxu1 %v17417_v56  ;;  %16807 = vmatprep.mubr.msk.f32.mxu1 %vm17819_vm0, %v17820_v11  ;;  %v15059_v56 = vld [vmem:[%s19772_s14 + $0xc0] sm:$0xff] }
0x5ef9   : > { %17419 = vmatprep.subr.bf16.mxu1 %v17818_v3  ;;  %v17441_v58 = vpack.c.bf16 %v15060_v57, %v15059_v56 }
0x5efc   : > { %17421 = vmatpush3.bf16.msra.mxu1 %v17420_v59  ;;  %v15062_v59 = vld [vmem:[%s19772_s14 + $0xd8] sm:$0xff] }
0x5efd   : > { %17428 = vmatprep.subr.bf16.mxu1 %v17818_v3 }
0x5eff   : > { %16808 = vmatmul.mubr.msk.f32.vlgmr.msra.gmra.mrb[126].mxu1 %vm1505_vm1, %v19349_v26 }
0x5f00   : > { %17430 = vmatpush3.bf16.msra.mxu1 %v17429_v62  ;;  %16829 = vmatprep.mubr.msk.f32.mxu1 %vm17819_vm0, %v17820_v11  ;;  %v17444_v62 = vpack.c.bf16 %v15062_v59, %v15061_v8 }
0x5f01   : > { %17431 = vmatprep.subr.bf16.mxu1 %v17818_v3 }
0x5f04   : > { %17433 = vmatpush3.bf16.msra.mxu1 %v17432_v2 }
0x5f05   : > { %16842 = vmatprep.subr.mxu1 %v17820_v11 }
0x5f07   : > { %16830 = vmatmul.mubr.msk.f32.vlgmr.msra.gmra.mrb[128].mxu1 %vm1505_vm1, %v18869_v10 }
0x5f08   : > { %16844 = vmatprep.mubr.msk.f32.mxu1 %vm17819_vm0, %v17820_v11  ;;  %16843 = vmatpush3.msra.mxu1 %v15050_v40  ;;  %v15081_v40 = vld [vmem:[%s19773_s19 + $0xf8] sm:$0xff] }
0x5f09   : > { %17440 = vmatprep.subr.bf16.mxu1 %v17818_v3 }
0x5fca   : > { %v12438_v9 = vpop.f32.mrb[124].mxu1 }
0x5fcb   : > { %v16793_v12 = vpop.f32.mrb[125].mxu1  ;;  %16797 = vmatmul.mubr.msk.f32.vlgmr.msra.gmra.mrb[136].mxu0 %vm1748_vm2, %v12438_v9 }
0x5fcc   : > { %17424 = vmatpush3.bf16.msra.mxu0 %v17423_v6  ;;  %16818 = vmatprep.mubr.msk.f32.mxu0 %vm17819_vm0, %v17820_v11  ;;  %v15057_v12 = vld [vmem:[%s19778_s25 + $0x6] ss:$0 sm:$0xff] }
0x5fcd   : > { %17425 = vmatprep.subr.bf16.mxu0 %v17818_v3 }
0x5fd0   : > { %17427 = vmatpush3.bf16.msra.mxu0 %v17426_v13  ;;  %v15064_v13 = vld [vmem:[%s19777_s15 + $0x6] ss:$0 sm:$0xff] }
0x5fd1   : > { %16832 = vmatprep.subr.mxu0 %v17820_v11 }
0x5fd2   : > { %v12603_v15 = vpop.f32.mrb[126].mxu1 }
0x5fd3   : > { %v16809_v16 = vpop.f32.mrb[127].mxu1  ;;  %16819 = vmatmul.mubr.msk.f32.vlgmr.msra.gmra.mrb[138].mxu0 %vm1505_vm1, %v18869_v10  ;;  %v12604_v24 = vadd.f32 %v15031_v21, %v12603_v15 }
0x5fd4   : > { %16834 = vmatprep.mubr.msk.f32.mxu0 %vm17819_vm0, %v17820_v11 }
0x5fd5   : > { %v12607_v29 = vmul.f32 0.35355338, %v12604_v24 }
0x5fda   : > { %v12770_v17 = vpop.f32.mrb[128].mxu1 }
0x5fdb   : > { %v16831_v19 = vpop.f32.mrb[129].mxu1  ;;  %v12771_v31 = vadd.f32 %v15045_v28, %v12770_v17 }
0x609e   : > { %v19413_v20 = vpop.f32.mrb[136].mxu0 }
0x609f   : > { %v16798_v18 = vpop.f32.mrb[137].mxu0  ;;  %v12523_v6 = vadd.f32 %v15025_v5, %v19413_v20 }
0x60a0   : > { %v15071_v18 = vld [vmem:[%s19779_s26 + $0x6] ss:$0 sm:$0xff] }
0x60a6   : > { %v12687_v22 = vpop.f32.mrb[138].mxu0 }
0x60a7   : > { %v12688_v25 = vadd.f32 %v15038_v23, %v12687_v22  ;;  %v16820_v27 = vpop.f32.mrb[139].mxu0 }
0x60a9   : > { %16833 = vmatpush3.xpose.msk.msra.mxu0 %vm1748_vm2, %v12688_v25 }
0x60aa   : > { %16837 = vmatprep.subr.mxu0 %v17820_v11 }
0x60ac   : > { %16835 = vmatmul.mubr.msk.f32.vlgmr.msra.gmra.mrb[140].mxu0 %vm1748_vm2, %v12607_v29 }
0x60ad   : > { %16838 = vmatpush3.msra.mxu0 %v12771_v31  ;;  %16839 = vmatprep.mubr.msk.f32.mxu0 %vm17819_vm0, %v17820_v11 }
0x60ae   : > { %17434 = vmatprep.subr.bf16.mxu0 %v17818_v3 }
0x617f   : > { %v12846_v33 = vpop.f32.mrb[140].mxu0 }
0x6180   : > { %v12847_v30 = vadd.f32 %v19370_v43, %v12846_v33  ;;  %v16836_v34 = vpop.f32.mrb[141].mxu0 }
0x6182   : > { %v12850_v35 = vsel %vm1748_vm2, %v12847_v30, -inf }
0x6183   : > { %12851 = vmax.xlane.f32.xlu0 %v12850_v35  ;;  %v15078_v35 = vld [vmem:[%s19773_s19 + $0xe0] sm:$0xff] }
0x6210   : > { %v12852_v36 = vpop.xlane.xlu0 %12851 }
0x6211   : > { %v12853_v37 = vsub.f32 %v12847_v30, %v12852_v36  ;;  %v15076_v30 = vld [vmem:[%s19780_s27 + $0x30] sm:$0xff]  ;;  %v15079_v36 = vld [vmem:[%s19773_s19 + $0xe8] sm:$0xff] }
0x6213   : > { %v12854_v39 = vmul.f32 1.442695, %v12853_v37 }
0x6215   : > { %17687 = vpow2.f32 %v12854_v39  ;;  %v17453_v39 = vpack.c.bf16 %v15079_v36, %v15078_v35 }
0x621f   : > { %v17688_v38 = vpop.eup %17687 }
0x6220   : > { %v12856_v41 = vsel %vm1748_vm2, %v17688_v38, 0.0 }
0x6221   : > { %12857 = vadd.xlane.f32.xlu1 %v12856_v41  ;;  %v15080_v41 = vld [vmem:[%s19773_s19 + $0xf0] sm:$0xff] }
0x62ae   : > { %v12858_v42 = vpop.xlane.xlu1 %12857 }
0x62af   : > { %17689 = vrcp.f32 %v12858_v42  ;;  %v17456_v42 = vpack.c.bf16 %v15081_v40, %v15080_v41  ;;  %v15111_v41 = vld [vmem:[%s19782_s30 + $0x38] sm:$0xff] }
0x62b9   : > { %v17690_v45 = vpop.eup %17689 }
0x62ba   : > { %v12860_v14 = vmul.f32 %v17690_v45, %v17688_v38  ;;  %v17465_v45 = vpack.c.bf16 %v15093_v32, %v15092_v1  ;;  %v15116_v1 = vld [vmem:[%s19783_s18 + $0x48] sm:$0xff]  ;;  %v15117_v32 = vld [vmem:[%s19783_s18 + $0x50] sm:$0xff] }
0x62bc   : > { %16840 = vmatmul.mubr.msk.f32.vlgmr.msra.gmra.mrb[142].mxu0 %vm1748_vm2, %v12860_v14  ;;  %v15095_v14 = vld [vmem:[%s19775_s21 + $0xf8] sm:$0xff] }
0x62bd   : > { %17436 = vmatpush3.bf16.msra.mxu0 %v17435_v46  ;;  %16855 = vmatprep.mubr.msk.f32.mxu0 %vm17819_vm0, %v17820_v11  ;;  %v15094_v46 = vld [vmem:[%s19775_s21 + $0xf0] sm:$0xff] }
0x62be   : > { %17437 = vmatprep.subr.bf16.mxu0 %v17818_v3  ;;  %v17468_v47 = vpack.c.bf16 %v15095_v14, %v15094_v46  ;;  %v15118_v46 = vld [vmem:[%s19783_s18 + $0x58] sm:$0xff] }
0x62bf   : > { %v17480_v14 = vpack.c.bf16 %v15118_v46, %v15117_v32 }
0x62c1   : > { %17439 = vmatpush3.bf16.msra.mxu0 %v17438_v48  ;;  %v15086_v48 = vld [vmem:[%s19772_s14 + $0xe8] sm:$0xff] }
0x62c2   : > { %17446 = vmatprep.subr.bf16.mxu0 %v17818_v3  ;;  %v17459_v49 = vpack.c.bf16 %v15086_v48, %v15085_v44  ;;  %v15120_v44 = vld [vmem:[%s19783_s18 + $0x68] sm:$0xff] }
0x62c4   : > { %16856 = vmatmul.mubr.msk.f32.vlgmr.msra.gmra.mrb[144].mxu0 %vm1505_vm1, %v19349_v26 }
0x62c5   : > { %17448 = vmatpush3.bf16.msra.mxu0 %v17447_v52  ;;  %16877 = vmatprep.mubr.msk.f32.mxu0 %vm17819_vm0, %v17820_v11  ;;  %v15088_v52 = vld [vmem:[%s19772_s14 + $0xf8] sm:$0xff] }
0x62c6   : > { %17449 = vmatprep.subr.bf16.mxu0 %v17818_v3 }
0x62c9   : > { %17451 = vmatpush3.bf16.msra.mxu0 %v17450_v55  ;;  %v17462_v55 = vpack.c.bf16 %v15088_v52, %v15087_v51 }
0x62ca   : > { %16890 = vmatprep.subr.mxu0 %v17820_v11 }
0x62cc   : > { %16878 = vmatmul.mubr.msk.f32.vlgmr.msra.gmra.mrb[146].mxu0 %vm1505_vm1, %v18869_v10 }
0x62cd   : > { %16892 = vmatprep.mubr.msk.f32.mxu0 %vm17819_vm0, %v17820_v11  ;;  %16891 = vmatpush3.msra.mxu0 %v15076_v30 }
0x62ce   : > { %17458 = vmatprep.subr.bf16.mxu0 %v17818_v3 }
0x638f   : > { %v12930_v60 = vpop.f32.mrb[142].mxu0 }
0x6390   : > { %v16841_v61 = vpop.f32.mrb[143].mxu0  ;;  %16845 = vmatmul.mubr.msk.f32.vlgmr.msra.gmra.mrb[130].mxu1 %vm1748_vm2, %v12930_v60 }
0x6391   : > { %17442 = vmatpush3.bf16.msra.mxu1 %v17441_v58  ;;  %16866 = vmatprep.mubr.msk.f32.mxu1 %vm17819_vm0, %v17820_v11 }
0x6392   : > { %17443 = vmatprep.subr.bf16.mxu1 %v17818_v3 }
0x6395   : > { %17445 = vmatpush3.bf16.msra.mxu1 %v17444_v62  ;;  %v15083_v62 = vld [vmem:[%s19778_s25 + $0x7] ss:$0 sm:$0xff] }
0x6396   : > { %16880 = vmatprep.subr.mxu1 %v17820_v11 }
0x6397   : > { %v13089_v63 = vpop.f32.mrb[144].mxu0 }
0x6398   : > { %v16857_v0 = vpop.f32.mrb[145].mxu0  ;;  %16867 = vmatmul.mubr.msk.f32.vlgmr.msra.gmra.mrb[132].mxu1 %vm1505_vm1, %v18869_v10  ;;  %v13090_v15 = vadd.f32 %v15057_v12, %v13089_v63  ;;  %v15090_v63 = vld [vmem:[%s19777_s15 + $0x7] ss:$0 sm:$0xff] }
0x6399   : > { %16882 = vmatprep.mubr.msk.f32.mxu1 %vm17819_vm0, %v17820_v11 }
0x639a   : > { %v13093_v21 = vmul.f32 0.35355338, %v13090_v15 }
0x639f   : > { %v13256_v2 = vpop.f32.mrb[146].mxu0 }
0x63a0   : > { %v16879_v4 = vpop.f32.mrb[147].mxu0  ;;  %v13257_v23 = vadd.f32 %v15071_v18, %v13256_v2 }
0x6463   : > { %v13005_v7 = vpop.f32.mrb[130].mxu1 }
0x6464   : > { %v19467_v50 = vadd.f32 %v13005_v7, %v12523_v6  ;;  %v16846_v9 = vpop.f32.mrb[131].mxu1  ;;  %v15097_v6 = vld [vmem:[%s19779_s26 + $0x7] ss:$0 sm:$0xff] }
0x646b   : > { %v13173_v16 = vpop.f32.mrb[132].mxu1 }
0x646c   : > { %v13174_v17 = vadd.f32 %v15064_v13, %v13173_v16  ;;  %v16868_v19 = vpop.f32.mrb[133].mxu1 }
0x646e   : > { %16881 = vmatpush3.xpose.msk.msra.mxu1 %vm1748_vm2, %v13174_v17 }
0x646f   : > { %16885 = vmatprep.subr.mxu1 %v17820_v11 }
0x6471   : > { %16883 = vmatmul.mubr.msk.f32.vlgmr.msra.gmra.mrb[134].mxu1 %vm1748_vm2, %v13093_v21  ;;  %v15102_v21 = vld [vmem:[%s19780_s27 + $0x38] sm:$0xff] }
0x6472   : > { %16886 = vmatpush3.msra.mxu1 %v13257_v23  ;;  %16887 = vmatprep.mubr.msk.f32.mxu1 %vm17819_vm0, %v17820_v11 }
0x6473   : > { %17452 = vmatprep.subr.bf16.mxu1 %v17818_v3 }
0x6544   : > { %v13332_v20 = vpop.f32.mrb[134].mxu1 }
0x6545   : > { %v13333_v24 = vadd.f32 %v19370_v43, %v13332_v20  ;;  %v16884_v22 = vpop.f32.mrb[135].mxu1 }
0x6547   : > { %v13336_v25 = vsel %vm1748_vm2, %v13333_v24, -inf }
0x6548   : > { %13337 = vmax.xlane.f32.xlu0 %v13336_v25 }
0x65d5   : > { %v13338_v27 = vpop.xlane.xlu0 %13337 }
0x65d6   : > { %v13339_v28 = vsub.f32 %v13333_v24, %v13338_v27 }
0x65d8   : > { %v13340_v29 = vmul.f32 1.442695, %v13339_v28 }
0x65da   : > { %17691 = vpow2.f32 %v13340_v29 }
0x65e4   : > { %v17692_v31 = vpop.eup %17691 }
0x65e5   : > { %v13342_v33 = vsel %vm1748_vm2, %v17692_v31, 0.0 }
0x65e6   : > { %13343 = vadd.xlane.f32.xlu1 %v13342_v33 }
0x6673   : > { %v13344_v34 = vpop.xlane.xlu1 %13343 }
0x6674   : > { %17693 = vrcp.f32 %v13344_v34 }
0x667e   : > { %v17694_v37 = vpop.eup %17693 }
0x667f   : > { %v13346_v38 = vmul.f32 %v17694_v37, %v17692_v31  ;;  %v15108_v37 = vld [vmem:[%s19782_s30 + $0x20] sm:$0xff] }
0x6681   : > { %16888 = vmatmul.mubr.msk.f32.vlgmr.msra.gmra.mrb[136].mxu1 %vm1748_vm2, %v13346_v38 }
0x6682   : > { %17454 = vmatpush3.bf16.msra.mxu1 %v17453_v39  ;;  %16903 = vmatprep.mubr.msk.f32.mxu1 %vm17819_vm0, %v17820_v11  ;;  %v15109_v39 = vld [vmem:[%s19782_s30 + $0x28] sm:$0xff] }
0x6683   : > { %17455 = vmatprep.subr.bf16.mxu1 %v17818_v3  ;;  %v17471_v38 = vpack.c.bf16 %v15109_v39, %v15108_v37 }
0x6686   : > { %17457 = vmatpush3.bf16.msra.mxu1 %v17456_v42  ;;  %v15115_v42 = vld [vmem:[%s19783_s18 + $0x40] sm:$0xff] }
0x6687   : > { %17464 = vmatprep.subr.bf16.mxu1 %v17818_v3 }
0x6689   : > { %16904 = vmatmul.mubr.msk.f32.vlgmr.msra.gmra.mrb[138].mxu1 %vm1505_vm1, %v19349_v26 }
0x668a   : > { %17466 = vmatpush3.bf16.msra.mxu1 %v17465_v45  ;;  %16925 = vmatprep.mubr.msk.f32.mxu1 %vm17819_vm0, %v17820_v11  ;;  %v17477_v45 = vpack.c.bf16 %v15116_v1, %v15115_v42 }
0x668b   : > { %17467 = vmatprep.subr.bf16.mxu1 %v17818_v3 }
0x668e   : > { %17469 = vmatpush3.bf16.msra.mxu1 %v17468_v47  ;;  %v15119_v47 = vld [vmem:[%s19783_s18 + $0x60] sm:$0xff] }
0x668f   : > { %16938 = vmatprep.subr.mxu1 %v17820_v11  ;;  %v17483_v48 = vpack.c.bf16 %v15120_v44, %v15119_v47 }
0x6691   : > { %16926 = vmatmul.mubr.msk.f32.vlgmr.msra.gmra.mrb[140].mxu1 %vm1505_vm1, %v18869_v10 }
0x6692   : > { %16940 = vmatprep.mubr.msk.f32.mxu1 %vm17819_vm0, %v17820_v11  ;;  %16939 = vmatpush3.msra.mxu1 %v15102_v21  ;;  %v14226_v21 = vld [vmem:[%s19796_s16 + $0x18] sm:$0xff] }
0x6693   : > { %17476 = vmatprep.subr.bf16.mxu1 %v17818_v3 }
0x6754   : > { %v13416_v53 = vpop.f32.mrb[136].mxu1 }
0x6755   : > { %v16889_v54 = vpop.f32.mrb[137].mxu1  ;;  %16893 = vmatmul.mubr.msk.f32.vlgmr.msra.gmra.mrb[148].mxu0 %vm1748_vm2, %v13416_v53 }
0x6756   : > { %17460 = vmatpush3.bf16.msra.mxu0 %v17459_v49  ;;  %16914 = vmatprep.mubr.msk.f32.mxu0 %vm17819_vm0, %v17820_v11  ;;  %v15106_v54 = vld [vmem:[%s19785_s11 + $0x1] ss:$0 sm:$0xff]  ;;  %s17706_s11 = scalar_lea.vmem %s19584_s9, 128 }
0x6757   : > { %17461 = vmatprep.subr.bf16.mxu0 %v17818_v3  ;;  %p17707_p11 = scmp.ne.s32.totalorder %s19584_s9, %s17706_s11 }
0x6759   : > { %p17708_p12 = pnand %p17707_p11, %p18112_p5 }
0x675a   : > { %17463 = vmatpush3.bf16.msra.mxu0 %v17462_v55 }
0x675b   : > { %16928 = vmatprep.subr.mxu0 %v17820_v11  ;;  %p17709_p13 = pneg %p17708_p12 }
0x675c   : > { %v13575_v56 = vpop.f32.mrb[138].mxu1 }
0x675d   : > { %v16905_v57 = vpop.f32.mrb[139].mxu1  ;;  %16915 = vmatmul.mubr.msk.f32.vlgmr.msra.gmra.mrb[150].mxu0 %vm1505_vm1, %v18869_v10  ;;  %v13576_v0 = vadd.f32 %v15083_v62, %v13575_v56  ;;  %v15107_v56 = vld [vmem:[%s19786_s23 + $0x1] ss:$0 sm:$0xff] }
0x675e   : > { %16930 = vmatprep.mubr.msk.f32.mxu0 %vm17819_vm0, %v17820_v11 }
0x675f   : > { %v13579_v7 = vmul.f32 0.35355338, %v13576_v0 }
0x6764   : > { %v13742_v58 = vpop.f32.mrb[140].mxu1 }
0x6765   : > { %v16927_v8 = vpop.f32.mrb[141].mxu1  ;;  %v13743_v10 = vadd.f32 %v15097_v6, %v13742_v58 }
0x6766   : > { %v15121_v8 = vld [vmem:[%s19783_s18 + $0x70] sm:$0xff] }
0x6828   : > { %v13491_v59 = vpop.f32.mrb[148].mxu0 }
0x6829   : > { %v13495_v60 = vadd.f32 %v13491_v59, %v19467_v50  ;;  %v16894_v61 = vpop.f32.mrb[149].mxu0  ;;  %v15122_v59 = vld [vmem:[%s19783_s18 + $0x78] sm:$0xff] }
0x682a   : > { %v15113_v61 = vld [vmem:[%s19788_s22 + $0x1] ss:$0 sm:$0xff] }
0x6830   : > { %v13659_v2 = vpop.f32.mrb[150].mxu0 }
0x6831   : > { %v13660_v4 = vadd.f32 %v15090_v63, %v13659_v2  ;;  %v16916_v5 = vpop.f32.mrb[151].mxu0 }
0x6833   : > { %16929 = vmatpush3.xpose.msk.msra.mxu0 %vm1748_vm2, %v13660_v4  ;;  %v15124_v4 = vld [vmem:[%s19790_s3 + $0x1] ss:$0 sm:$0xff]  ;;  %s19799_s3 = sld [smem:[#allocation53_spill]] }
0x6834   : > { %16933 = vmatprep.subr.mxu0 %v17820_v11 }
0x6836   : > { %16931 = vmatmul.mubr.msk.f32.vlgmr.msra.gmra.mrb[152].mxu0 %vm1748_vm2, %v13579_v7 }
0x6837   : > { %16934 = vmatpush3.msra.mxu0 %v13743_v10  ;;  %16935 = vmatprep.mubr.msk.f32.mxu0 %vm17819_vm0, %v17820_v11 }
0x6838   : > { %17470 = vmatprep.subr.bf16.mxu0 %v17818_v3 }
0x6839   : > { %s19582_s10 = scalar_lea.hbm %s19799_s3, %s15133_s6 }
0x6909   : > { %v13818_v50 = vpop.f32.mrb[152].mxu0 }
0x690a   : > { %v13819_v9 = vadd.f32 %v19370_v43, %v13818_v50  ;;  %v16932_v12 = vpop.f32.mrb[153].mxu0 }
0x690c   : > { %v13822_v13 = vsel %vm1748_vm2, %v13819_v9, -inf }
0x690d   : > { %13823 = vmax.xlane.f32.xlu0 %v13822_v13 }
0x699a   : > { %v13824_v15 = vpop.xlane.xlu0 %13823 }
0x699b   : > { %v13825_v16 = vsub.f32 %v13819_v9, %v13824_v15 }
0x699d   : > { %v13826_v17 = vmul.f32 1.442695, %v13825_v16  ;;  %v14223_v16 = vld [vmem:[%s19795_s7] sm:$0xff] }
0x699f   : > { %17695 = vpow2.f32 %v13826_v17  ;;  %v14224_v17 = vld [vmem:[%s19796_s16 + $0x8] sm:$0xff] }
0x69a9   : > { %v17696_v19 = vpop.eup %17695 }
0x69aa   : > { %v13828_v18 = vsel %vm1748_vm2, %v17696_v19, 0.0 }
0x69ab   : > { %13829 = vadd.xlane.f32.xlu1 %v13828_v18  ;;  %v14225_v18 = vld [vmem:[%s19796_s16 + $0x10] sm:$0xff] }
0x6a38   : > { %v13830_v23 = vpop.xlane.xlu1 %13829 }
0x6a39   : > { %17697 = vrcp.f32 %v13830_v23  ;;  %v17492_v23 = vpack.c.bf16 %v14226_v21, %v14225_v18 }
0x6a43   : > { %v17698_v20 = vpop.eup %17697 }
0x6a44   : > { %v13832_v43 = vmul.f32 %v17698_v20, %v17696_v19  ;;  %v17489_v19 = vpack.c.bf16 %v14224_v17, %v14223_v16 }
0x6a46   : > { %16936 = vmatmul.mubr.msk.f32.vlgmr.msra.gmra.mrb[154].mxu0 %vm1748_vm2, %v13832_v43 }
0x6a47   : > { %16951 = vmatprep.mubr.msk.f32.mxu0 %vm17819_vm0, %v17820_v11  ;;  %17472 = vmatpush3.bf16.msra.mxu0 %v17471_v38 }
0x6a48   : > { %17473 = vmatprep.subr.bf16.mxu0 %v17818_v3 }
0x6b19   : > { %v13902_v24 = vpop.f32.mrb[154].mxu0 }
0x6b1a   : > { %v16937_v22 = vpop.f32.mrb[155].mxu0  ;;  %16941 = vmatmul.mubr.msk.f32.vlgmr.msra.gmra.mrb[142].mxu1 %vm1748_vm2, %v13902_v24 }
0x6b1b   : > { %16970 = vmatprep.mubr.msk.f32.mxu1 %vm17819_vm0, %v17820_v11  ;;  %17478 = vmatpush3.bf16.msra.mxu1 %v17477_v45 }
0x6b1c   : > { %17479 = vmatprep.subr.bf16.mxu1 %v17818_v3 }
0x6b1f   : > { %17481 = vmatpush3.bf16.msra.mxu1 %v17480_v14 }
0x6b20   : > { %17482 = vmatprep.subr.bf16.mxu1 %v17818_v3 }
0x6b23   : > { %17484 = vmatpush3.bf16.msra.mxu1 %v17483_v48 }
0x6b24   : > { %17485 = vmatprep.subr.bf16.mxu1 %v17818_v3 }
0x6bed   : > { %v13977_v25 = vpop.f32.mrb[142].mxu1 }
0x6bee   : > { %v13981_v27 = vadd.f32 %v13977_v25, %v13495_v60  ;;  %v16942_v28 = vpop.f32.mrb[143].mxu1  ;;  %v17486_v60 = vpack.c.bf16 %v15122_v59, %v15121_v8  ;;  %v15128_v25 = vld [vmem:[%s19792_s0 + $0x1] ss:$0 sm:$0xff]  ;;  %s14309_s0 = scalar_lea.sflag [#allocation3], %s1460_s4 }
0x6bef   : > { %v15129_v28 = vld [vmem:[%s19794_s17 + $0x1] ss:$0 sm:$0xff] }
0x6bf0   : > { %v13982_v29 = vadd.f32 %v13981_v27, %v19349_v26  ;;  %v15110_v26 = vld [vmem:[%s19782_s30 + $0x30] sm:$0xff]  ;;  %17487 = vmatpush3.bf16.msra.mxu1 %v17486_v60 }
0x6bf1   : > { %v17474_v40 = vpack.c.bf16 %v15111_v41, %v15110_v26 }
0x6bf2   : > { %v13987_v31 = vsel %vm1505_vm1, %v13982_v29, 0.0 }
0x6bf3   : > { %13988 = vadd.xlane.f32.xlu0 %v13987_v31  ;;  %17475 = vmatpush3.bf16.msra.mxu0 %v17474_v40 }
0x6bf4   : > { %17488 = vmatprep.subr.bf16.mxu0 %v17818_v3 }
0x6c80   : > { %v13989_v33 = vpop.xlane.xlu0 %13988 }
0x6c81   : > { %v13990_v30 = vmul.f32 0.03125, %v13989_v33 }
0x6c83   : > { %v13991_v34 = vsub.f32 %v13982_v29, %v13990_v30 }
0x6c85   : > { %v13992_v35 = vmul.f32 %v13991_v34, %v13991_v34 }
0x6c87   : > { %v13993_v36 = vsel %vm1505_vm1, %v13992_v35, 0.0 }
0x6c88   : > { %13994 = vadd.xlane.f32.xlu1 %v13993_v36 }
0x6d15   : > { %v13995_v49 = vpop.xlane.xlu1 %13994 }
0x6d16   : > { %v13996_v51 = vmul.f32 0.03125, %v13995_v49 }
0x6d18   : > { %v13997_v52 = vadd.f32 1e-05, %v13996_v51 }
0x6d1a   : > { %17699 = vrsqrt.f32 %v13997_v52 }
0x6d24   : > { %v17700_v53 = vpop.eup %17699 }
0x6d25   : > { %v13999_v55 = vmul.f32 %v17700_v53, %v13991_v34 }
0x6d27   : > { %v14006_v57 = vmul.f32 %v15106_v54, %v13999_v55 }
0x6d29   : > { %v14013_v58 = vadd.f32 %v15107_v56, %v14006_v57 }
0x6d2b   : > { %16952 = vmatmul.mubr.msk.f32.vlgmr.msra.gmra.mrb[156].mxu0 %vm1505_vm1, %v14013_v58 }
0x6d2c   : > { %16981 = vmatprep.mubr.msk.f32.mxu0 %vm17819_vm0, %v17820_v11  ;;  %17490 = vmatpush3.bf16.msra.mxu0 %v17489_v19 }
0x6d2d   : > { %17491 = vmatprep.subr.bf16.mxu0 %v17818_v3  ;;  %v15130_v3 = vld [vmem:[%s19797_s28] ss:$0 sm:$0xff]  ;;  %s17823_s28 = smov [#allocation2]  }
0x6d2e   : > { %s17710_s5 = sshll.u32 %s17823_s28, 4  ;;  %s17711_s5 = int_to_ptr.vmem [resolvable:$false] %s17710_s5 }
0x6d2f   : > { %s17712_s2 = scalar_lea.vmem %s17711_s5, 256  ;;  %p17713_p0 = scmp.lt.s32.totalorder %s19584_s9, %s17711_s5 }
0x6d30   : > { %17493 = vmatpush3.bf16.msra.mxu0 %v17492_v23  ;;  %p17714_p1 = scmp.lt.s32.totalorder %s17712_s2, %s17706_s11 }
0x6d32   : > { %p17715_p2 = por %p17714_p1, %p17713_p0 }
0x6d34   : > { %p17716_p3 = pnand %p17715_p2, %p17709_p13 }
0x6dfe   : > { %v14096_v62 = vpop.f32.mrb[156].mxu0 }
0x6dff   : > { %v14097_v63 = vadd.f32 %v15113_v61, %v14096_v62  ;;  %v16953_v0 = vpop.f32.mrb[157].mxu0 }
0x6e01   : > { %v14100_v2 = vmax.f32 %v14097_v63, 0.0 }
0x6e03   : > { %16971 = vmatmul.mubr.msk.f32.vlgmr.msra.gmra.mrb[144].mxu1 %vm3579_vm3, %v14100_v2 }
0x6ed6   : > { %v14187_v5 = vpop.f32.mrb[144].mxu1 }
0x6ed7   : > { %v14188_v6 = vadd.f32 %v15124_v4, %v14187_v5  ;;  %v16972_v7 = vpop.f32.mrb[145].mxu1 }
0x6ed9   : > { %v14191_v11 = vadd.f32 %v14188_v6, %v14013_v58 }
0x6edb   : > { %v14196_v10 = vsel %vm1505_vm1, %v14191_v11, 0.0 }
0x6edc   : > { %14197 = vadd.xlane.f32.xlu0 %v14196_v10 }
0x6f69   : > { %v14198_v50 = vpop.xlane.xlu0 %14197 }
0x6f6a   : > { %v14199_v9 = vmul.f32 0.03125, %v14198_v50 }
0x6f6c   : > { %v14200_v12 = vsub.f32 %v14191_v11, %v14199_v9 }
0x6f6e   : > { %v14201_v13 = vmul.f32 %v14200_v12, %v14200_v12 }
0x6f70   : > { %v14202_v15 = vsel %vm1505_vm1, %v14201_v13, 0.0 }
0x6f71   : > { %14203 = vadd.xlane.f32.xlu1 %v14202_v15 }
0x6ffe   : > { %v14204_v20 = vpop.xlane.xlu1 %14203 }
0x6fff   : > { %v14205_v43 = vmul.f32 0.03125, %v14204_v20 }
0x7001   : > { %v14206_v24 = vadd.f32 1e-05, %v14205_v43 }
0x7003   : > { %17701 = vrsqrt.f32 %v14206_v24 }
0x700d   : > { %v17702_v22 = vpop.eup %17701 }
0x700e   : > { %v14208_v27 = vmul.f32 %v17702_v22, %v14200_v12 }
0x7010   : > { %v14215_v29 = vmul.f32 %v15128_v25, %v14208_v27 }
0x7012   : > { %v14222_v31 = vadd.f32 %v15129_v28, %v14215_v29 }
0x7014   : > { %16982 = vmatmul.mubr.msk.f32.vlgmr.msra.gmra.mrb[158].mxu0 %vm1505_vm1, %v14222_v31 }
0x70e7   : > { %v14303_v33 = vpop.f32.mrb[158].mxu0 }
0x70e8   : > { %v14304_v30 = vadd.f32 %v15130_v3, %v14303_v33  ;;  %v16983_v34 = vpop.f32.mrb[159].mxu0 }
0x70ea   : > { %14307 = vst [vmem:[%s1462_s8] sm:$0xff] %v14304_v30 }
0x70eb   : > { %17719 = shalt.err (!%p17716_p3)
}
0x70ec   : > { %s17720_s6 = scalar_lea.hbm %s19582_s10, 128  ;;  %s17724_s4 = scalar_lea.hbm %s19799_s3, 256 }
0x70ed   : > { %p17721_p4 = scmp.ne.s32.totalorder %s19582_s10, %s17720_s6  ;;  %p17725_p9 = scmp.lt.u32.totalorder %s19582_s10, %s19799_s3 }
0x70ee   : > { %p17726_p10 = scmp.lt.u32.totalorder %s17724_s4, %s17720_s6  ;;  %p17728_p12 = scmp.lt.u32.totalorder %s17720_s6, %s19582_s10 }
0x70ef   : > { %p17722_p7 = pnand %p17721_p4, %p18112_p5 }
0x70f0   : > { %p17727_p11 = por %p17726_p10, %p17725_p9 }
0x70f1   : > { %p17723_p8 = pneg %p17722_p7 }
0x70f2   : > { %p17729_p0 = por %p17728_p12, %p17727_p11 }
0x70f4   : > { %p17730_p13 = pnand %p17729_p0, %p17723_p8 }
0x70f6   : > { %17733 = shalt.err (!%p17730_p13)
}
0x70f7   : > { %17494 = dma.vmem_to_hbm [thread:$0]  (%p18112_p5), %s19584_s9, 128, %s19582_s10, %s14309_s0  }
0x70f8 PF: > { %s19801_s11 = sld [smem:[#allocation56_spill]]  ;;  %s19802_s8 = sld [smem:[#allocation54_spill]] }
0x70fe   : > { %p17500_p1 = scmp.ge.s32.totalorder %s19801_s11, 2  ;;  %s14334_s5 = sand.u32 1, %s19802_s8  }
0x70ff   : > { %s14335_s2 = scalar_lea.sflag [#allocation3], %s14334_s5 }
0x7100   : > { %p17497_p2 = pnand %p17500_p1, %p18116_p6 }
0x7102   : > { %17751 = dma.done.wait (!%p17497_p2), %s14335_s2, 128  }
0x7103   : > { %17753 = vsyncadd (!%p17497_p2), %s14335_s2, 4294967168  ;;  %s19804_s7 = sld [smem:[#allocation58_spill]]  ;;  %s19805_s6 = sld [smem:[#allocation55_spill]] }
0x7104   : > { %s19806_s2 = sld [smem:[#allocation59_spill]]  ;;  %s19807_s28 = smov %s17760_s1 }
0x7109   : > { %p107_p3 = scmp.ge.s32.totalorder %s19804_s7, 4   ;;  %s19808_s1 = smov %s19805_s6 }
0x710b   :  { %109 = sbr.rel (!%p107_p3) target bundleno = 107 (0x6b), region = 472 }
0x7112   :  { %14340 = vsyncpa [#allocation3], 1 }
0x7113   :  { %14342 = vsyncpa [#allocation3 + $0x1], 1 }

</bundles_post_ra>
